<compile_context>
chip_gen: v5e
topology: v5e:2x2
jax: 0.10.0
libtpu: 0.0.40
codegen_flags: <defaults>
</compile_context>

<pallas_src>
import functools

import jax
import jax.numpy as jnp
from jax.experimental import pallas as pl
from jax.experimental.pallas import tpu as pltpu

N_CHANNEL = 32   # args.nChannel
N_CONV = 3       # args.nConv
BN_EPS = 1e-5

_VMEM_LIMIT = 32 * 1024 * 1024  # explicit, safe on v5e/v6e (128 MiB) and v7x (64 MiB)

_CompilerParams = getattr(pltpu, "CompilerParams", None)
if _CompilerParams is None:  # older JAX fallback
    _CompilerParams = getattr(pltpu, "TPUCompilerParams", None)


def _compiler_params(dim_semantics):
    if _CompilerParams is None:
        return None
    return _CompilerParams(dimension_semantics=dim_semantics,
                           vmem_limit_bytes=_VMEM_LIMIT)


def _largest_divisor_leq(n, cap):
    cap = int(max(1, min(n, cap)))
    for t in range(cap, 0, -1):
        if n % t == 0:
            return t
    return 1


# --------------------------------------------------------------------------
# Pass 1 (3x3 layers): conv(3x3, SAME) + bias + ReLU + per-tile BN statistics
# --------------------------------------------------------------------------
def _conv3x3_kernel(xa_ref, xb1_ref, xb2_ref, w_ref, b_ref, o_ref, s_ref,
                    p_ref, *, tr, width):
    """xa_ref : (1, tr, W+2, Cin) bf16  padded rows [r*tr, r*tr+tr)
       xb1/2  : (1, 1,  W+2, Cin) bf16  the two halo rows below the block
       w_ref  : (3, 3, Cin, Cout) bf16
       b_ref  : (1, Cout) f32
       o_ref  : (tr*W, Cout) f32        pre-BN activation (conv + bias + ReLU)
       s_ref  : (1, 1, 8, Cout) f32     row0 = sum, row1 = sum of squares
       p_ref  : (tr*W, Cin) bf16        VMEM scratch: one tap's im2col patch
    """
    cout = o_ref.shape[-1]
    first = True
    for ky in range(3):
        for kx in range(3):
            # Build this tap's patch in VMEM straight from the halo window
            # (no 9x-expanded im2col ever touches HBM).
            for t in range(tr):
                src_row = ky + t
                if src_row < tr:
                    row = xa_ref[0, src_row, kx:kx + width, :]
                elif src_row == tr:
                    row = xb1_ref[0, 0, kx:kx + width, :]
                else:
                    row = xb2_ref[0, 0, kx:kx + width, :]
                p_ref[t * width:(t + 1) * width, :] = row
            tap = jnp.dot(p_ref[...], w_ref[ky, kx],
                          preferred_element_type=jnp.float32)
            if first:
                o_ref[...] = tap
                first = False
            else:
                o_ref[...] += tap
    y = jnp.maximum(o_ref[...] + b_ref[...], 0.0)
    o_ref[...] = y
    # Per-tile BN partial statistics (finalized once, outside, over all tiles).
    s_ref[0, 0, 0:1, :] = jnp.sum(y, axis=0, keepdims=True)
    s_ref[0, 0, 1:2, :] = jnp.sum(y * y, axis=0, keepdims=True)
    s_ref[0, 0, 2:8, :] = jnp.zeros((6, cout), jnp.float32)


def conv3x3_relu_stats(x_nhwc, w, b):
    """One 3x3 SAME conv + bias + ReLU; returns pre-BN output (M, Cout) and stats."""
    bsz, h, wd, cin = x_nhwc.shape
    cout = w.shape[-1]
    # Row-tile: big enough to amortize per-step overhead, small enough for every
    # generation's VMEM (block is a few hundred KB even at 512x512 inputs).
    tr = _largest_divisor_leq(h, min(max(1, h // 2), max(1, 4096 // max(wd, 1)), 32))
    nr = h // tr
    m = bsz * h * wd
    wp = wd + 2

    xpad = jnp.pad(x_nhwc, ((0, 0), (1, 1), (1, 1), (0, 0))).astype(jnp.bfloat16)
    wq = w.astype(jnp.bfloat16)
    b2 = b.reshape(1, cout).astype(jnp.float32)

    kernel = functools.partial(_conv3x3_kernel, tr=tr, width=wd)
    y, stats = pl.pallas_call(
        kernel,
        out_shape=(jax.ShapeDtypeStruct((m, cout), jnp.float32),
                   jax.ShapeDtypeStruct((bsz, nr, 8, cout), jnp.float32)),
        grid=(bsz, nr),
        in_specs=[
            # Same padded array three times: TR-row main window + two halo rows.
            pl.BlockSpec((1, tr, wp, cin), lambda i, r: (i, r, 0, 0)),
            pl.BlockSpec((1, 1, wp, cin), lambda i, r: (i, r * tr + tr, 0, 0)),
            pl.BlockSpec((1, 1, wp, cin), lambda i, r: (i, r * tr + tr + 1, 0, 0)),
            pl.BlockSpec((3, 3, cin, cout), lambda i, r: (0, 0, 0, 0)),
            pl.BlockSpec((1, cout), lambda i, r: (0, 0)),
        ],
        out_specs=(
            pl.BlockSpec((tr * wd, cout), lambda i, r: (i * nr + r, 0)),
            pl.BlockSpec((1, 1, 8, cout), lambda i, r: (i, r, 0, 0)),
        ),
        scratch_shapes=[pltpu.VMEM((tr * wd, cin), jnp.bfloat16)],
        compiler_params=_compiler_params(("parallel", "parallel")),
    )(xpad, xpad, xpad, wq, b2)
    return y, stats


# --------------------------------------------------------------------------
# Pass 1 (1x1 layer): lane-dense conv + per-tile BN statistics (no bias/ReLU)
# --------------------------------------------------------------------------
def _conv1x1_kernel(x_ref, w_ref, o_ref, s_ref):
    y = jnp.dot(x_ref[...], w_ref[...], preferred_element_type=jnp.float32)
    o_ref[...] = y
    s_ref[0, 0:1, :] = jnp.sum(y, axis=0, keepdims=True)
    s_ref[0, 1:2, :] = jnp.sum(y * y, axis=0, keepdims=True)
    s_ref[0, 2:8, :] = jnp.zeros((6, y.shape[-1]), jnp.float32)


def conv1x1_stats(x_flat, w):
    """1x1 conv on a packed (M/4, 128) view with a 128x128 block-diagonal weight."""
    m, cin = x_flat.shape
    cout = w.shape[-1]
    pack = 128 // cout
    assert cout * pack == 128 and m % pack == 0
    m4 = m // pack
    xq = x_flat.astype(jnp.bfloat16).reshape(m4, pack * cin)
    wq = jnp.kron(jnp.eye(pack, dtype=jnp.float32),
                  w.reshape(cin, cout)).astype(jnp.bfloat16)
    t = _largest_divisor_leq(m4, 1024)
    nb = m4 // t
    y, stats = pl.pallas_call(
        _conv1x1_kernel,
        out_shape=(jax.ShapeDtypeStruct((m4, pack * cout), jnp.float32),
                   jax.ShapeDtypeStruct((nb, 8, pack * cout), jnp.float32)),
        grid=(nb,),
        in_specs=[pl.BlockSpec((t, pack * cin), lambda i: (i, 0)),
                  pl.BlockSpec((pack * cin, pack * cout), lambda i: (0, 0))],
        out_specs=(pl.BlockSpec((t, pack * cout), lambda i: (i, 0)),
                   pl.BlockSpec((1, 8, pack * cout), lambda i: (i, 0, 0))),
        compiler_params=_compiler_params(("parallel",)),
    )(xq, wq)
    return y, stats


# --------------------------------------------------------------------------
# Pass 2: finalize BN stats (tiny JAX glue) + lane-dense normalize kernel
# --------------------------------------------------------------------------
def _norm_kernel(y_ref, scale_ref, shift_ref, o_ref):
    # Folded affine: single multiply-add per element, fully 128-lane-dense.
    o_ref[...] = y_ref[...] * scale_ref[...] + shift_ref[...]


def _finalize_batchnorm(y_packed, stats, gamma, beta, count, cout, eps=BN_EPS):
    lanes = y_packed.shape[-1]                       # 128
    pack = lanes // cout
    tot = stats.reshape(-1, stats.shape[-2], stats.shape[-1]).sum(axis=0)
    ssum = tot[0].reshape(-1, cout).sum(axis=0)      # (cout,)
    ssq = tot[1].reshape(-1, cout).sum(axis=0)
    mean = ssum / count
    var = jnp.maximum(ssq / count - mean * mean, 0.0)   # biased (training-mode) variance
    scale = gamma * jax.lax.rsqrt(var + eps)
    shift = beta - mean * scale
    scale_l = jnp.tile(scale, pack).reshape(1, lanes)
    shift_l = jnp.tile(shift, pack).reshape(1, lanes)

    m4 = y_packed.shape[0]
    t = _largest_divisor_leq(m4, 1024)
    return pl.pallas_call(
        _norm_kernel,
        out_shape=jax.ShapeDtypeStruct((m4, lanes), jnp.float32),
        grid=(m4 // t,),
        in_specs=[pl.BlockSpec((t, lanes), lambda i: (i, 0)),
                  pl.BlockSpec((1, lanes), lambda i: (0, 0)),
                  pl.BlockSpec((1, lanes), lambda i: (0, 0))],
        out_specs=pl.BlockSpec((t, lanes), lambda i: (i, 0)),
        compiler_params=_compiler_params(("parallel",)),
    )(y_packed, scale_l, shift_l)


# --------------------------------------------------------------------------
# Parameters + forward
# --------------------------------------------------------------------------
def init_params(key, input_dim, n_channel, n_conv):
    """Deterministic synthetic parameter init (shapes match MyNet.__init__, HWIO)."""
    ks = list(jax.random.split(key, 2 * (n_conv + 1)))
    nxt = iter(ks).__next__

    def conv_init(k, kh, kw, cin, cout):
        scale = 1.0 / jnp.sqrt(jnp.float32(kh * kw * cin))
        return scale * jax.random.normal(k, (kh, kw, cin, cout), jnp.float32)

    p = {
        "conv1_w": conv_init(nxt(), 3, 3, input_dim, n_channel),
        "conv1_b": 0.1 * jax.random.normal(nxt(), (n_channel,), jnp.float32),
        "bn1_g": jnp.ones((n_channel,), jnp.float32),
        "bn1_b": jnp.zeros((n_channel,), jnp.float32),
        "conv2_w": [], "conv2_b": [], "bn2_g": [], "bn2_b": [],
    }
    for _ in range(n_conv - 1):
        p["conv2_w"].append(conv_init(nxt(), 3, 3, n_channel, n_channel))
        p["conv2_b"].append(0.1 * jax.random.normal(nxt(), (n_channel,), jnp.float32))
        p["bn2_g"].append(jnp.ones((n_channel,), jnp.float32))
        p["bn2_b"].append(jnp.zeros((n_channel,), jnp.float32))
    p["conv3_w"] = conv_init(nxt(), 1, 1, n_channel, n_channel)
    p["conv3_b"] = 0.1 * jax.random.normal(nxt(), (n_channel,), jnp.float32)
    p["bn3_g"] = jnp.ones((n_channel,), jnp.float32)
    p["bn3_b"] = jnp.zeros((n_channel,), jnp.float32)
    return p


def mynet_forward(params, x_nchw, n_conv=N_CONV):
    """Forward pass; input/output are NCHW like the PyTorch module."""
    x = jnp.transpose(x_nchw, (0, 2, 3, 1)).astype(jnp.float32)   # -> NHWC
    bsz, h, wd, _ = x.shape
    m = bsz * h * wd
    nch = params["conv1_w"].shape[-1]
    pack = 128 // nch
    assert 128 % nch == 0 and m % pack == 0
    count = float(m)

    def layer3x3(inp, w, b, g, bb):
        y, stats = conv3x3_relu_stats(inp, w, b)                  # (M, C) pre-BN
        y4 = y.reshape(m // pack, 128)                            # free lane-dense repack
        out4 = _finalize_batchnorm(y4, stats, g, bb, count, nch)
        return out4.reshape(bsz, h, wd, nch)

    x = layer3x3(x, params["conv1_w"], params["conv1_b"],
                 params["bn1_g"], params["bn1_b"])
    for i in range(n_conv - 1):
        x = layer3x3(x, params["conv2_w"][i], params["conv2_b"][i],
                     params["bn2_g"][i], params["bn2_b"][i])

    # conv3 (1x1) + BN.  The conv bias is dropped: with no ReLU in between, the BN
    # mean-subtraction cancels it exactly, so the result is bitwise-equivalent math.
    y, stats = conv1x1_stats(x.reshape(m, nch), params["conv3_w"])
    out4 = _finalize_batchnorm(y, stats, params["bn3_g"], params["bn3_b"], count, nch)
    x = out4.reshape(bsz, h, wd, nch)
    return jnp.transpose(x, (0, 3, 1, 2))                          # -> NCHW


# --------------------------------------------------------------------------
# Pure-JAX reference (mirrors the kernels' bf16 input/weight rounding)
# --------------------------------------------------------------------------
def _ref_forward(params, x_nchw, n_conv=N_CONV):
    def q(a):
        return a.astype(jnp.bfloat16).astype(jnp.float32)

    def bn(y, g, b):
        mean = jnp.mean(y, axis=(0, 2, 3), keepdims=True)
        var = jnp.mean(jnp.square(y - mean), axis=(0, 2, 3), keepdims=True)
        return ((y - mean) * jax.lax.rsqrt(var + BN_EPS)
                * g.reshape(1, -1, 1, 1) + b.reshape(1, -1, 1, 1))

    def conv(x, w, b, pad):
        out = jax.lax.conv_general_dilated(
            q(x), q(w), window_strides=(1, 1), padding=pad,
            dimension_numbers=("NCHW", "HWIO", "NCHW"),
            preferred_element_type=jnp.float32)
        return out + b.reshape(1, -1, 1, 1)

    y = conv(x_nchw.astype(jnp.float32), params["conv1_w"], params["conv1_b"], "SAME")
    y = bn(jax.nn.relu(y), params["bn1_g"], params["bn1_b"])
    for i in range(n_conv - 1):
        y = conv(y, params["conv2_w"][i], params["conv2_b"][i], "SAME")
        y = bn(jax.nn.relu(y), params["bn2_g"][i], params["bn2_b"][i])
    y = conv(y, params["conv3_w"], params["conv3_b"], "VALID")
    return bn(y, params["bn3_g"], params["bn3_b"])


if __name__ == "__main__":
    key = jax.random.PRNGKey(0)
    k_x, k_p = jax.random.split(key)

    B, input_dim, H, W = 2, 4, 16, 16
    x = jax.random.normal(k_x, (B, input_dim, H, W), jnp.float32)  # NCHW input
    params = init_params(k_p, input_dim, N_CHANNEL, N_CONV)

    fwd = jax.jit(mynet_forward)
    out = jax.block_until_ready(fwd(params, x))

    assert out.shape == (B, N_CHANNEL, H, W)
    assert bool(jnp.isfinite(out).all())

    ref = jax.block_until_ready(_ref_forward(params, x))
    err = float(jnp.max(jnp.abs(out - ref)))
    assert err < 5e-2, f"max abs error vs reference = {err}"
    print("KERNEL_OK")
</pallas_src>

<mosaic_0001>
module attributes {stable_mosaic.version = 11 : i64} {
  func.func @_conv3x3_kernel(%arg0: i32, %arg1: i32, %arg2: memref<1x8x18x4xbf16, #tpu.memory_space<vmem>>, %arg3: memref<1x1x18x4xbf16, #tpu.memory_space<vmem>>, %arg4: memref<1x1x18x4xbf16, #tpu.memory_space<vmem>>, %arg5: memref<3x3x4x32xbf16, #tpu.memory_space<vmem>>, %arg6: memref<1x32xf32, #tpu.memory_space<vmem>>, %arg7: memref<128x32xf32, #tpu.memory_space<vmem>>, %arg8: memref<1x1x8x32xf32, #tpu.memory_space<vmem>>, %arg9: memref<128x4xbf16, #tpu.memory_space<vmem>>) attributes {dimension_semantics = [#tpu.dimension_semantics<parallel>, #tpu.dimension_semantics<parallel>], iteration_bounds = array<i64: 2, 2>, scalar_prefetch = 0 : i64, scratch_operands = 1 : i64, tpu.core_type = #tpu.core_type<tc>, window_params = [{transform_indices = @transform_0, window_bounds = array<i64: 1, 8, 18, 4>}, {transform_indices = @transform_1, window_bounds = array<i64: 1, 1, 18, 4>}, {transform_indices = @transform_2, window_bounds = array<i64: 1, 1, 18, 4>}, {pipeline_mode = #tpu.pipeline_mode<synchronous>, transform_indices = @transform_3, window_bounds = array<i64: 3, 3, 4, 32>}, {pipeline_mode = #tpu.pipeline_mode<synchronous>, transform_indices = @transform_4, window_bounds = array<i64: 1, 32>}, {transform_indices = @transform_5, window_bounds = array<i64: 128, 32>}, {transform_indices = @transform_6, window_bounds = array<i64: 1, 1, 8, 32>}]} {
    %c0 = arith.constant 0 : index
    %c0_0 = arith.constant 0 : index
    %c0_1 = arith.constant 0 : index
    %c0_2 = arith.constant 0 : index
    %0 = vector.load %arg2[%c0, %c0_0, %c0_1, %c0_2] : memref<1x8x18x4xbf16, #tpu.memory_space<vmem>>, vector<1x1x16x4xbf16>
    %1 = vector.shape_cast %0 : vector<1x1x16x4xbf16> to vector<16x4xbf16>
    %c0_3 = arith.constant 0 : index
    %c0_4 = arith.constant 0 : index
    %2 = vector.load %arg9[%c0_3, %c0_4] : memref<128x4xbf16, #tpu.memory_space<vmem>>, vector<16x4xbf16>
    tpu.vector_store %arg9[%c0_3, %c0_4], %1 {strides = array<i32>} : memref<128x4xbf16, #tpu.memory_space<vmem>>, vector<16x4xbf16>,
    %c0_5 = arith.constant 0 : index
    %c1 = arith.constant 1 : index
    %c0_6 = arith.constant 0 : index
    %c0_7 = arith.constant 0 : index
    %3 = vector.load %arg2[%c0_5, %c1, %c0_6, %c0_7] : memref<1x8x18x4xbf16, #tpu.memory_space<vmem>>, vector<1x1x16x4xbf16>
    %4 = vector.shape_cast %3 : vector<1x1x16x4xbf16> to vector<16x4xbf16>
    %c16 = arith.constant 16 : index
    %c0_8 = arith.constant 0 : index
    %5 = vector.load %arg9[%c16, %c0_8] : memref<128x4xbf16, #tpu.memory_space<vmem>>, vector<16x4xbf16>
    tpu.vector_store %arg9[%c16, %c0_8], %4 {strides = array<i32>} : memref<128x4xbf16, #tpu.memory_space<vmem>>, vector<16x4xbf16>,
    %c0_9 = arith.constant 0 : index
    %c2 = arith.constant 2 : index
    %c0_10 = arith.constant 0 : index
    %c0_11 = arith.constant 0 : index
    %6 = vector.load %arg2[%c0_9, %c2, %c0_10, %c0_11] : memref<1x8x18x4xbf16, #tpu.memory_space<vmem>>, vector<1x1x16x4xbf16>
    %7 = vector.shape_cast %6 : vector<1x1x16x4xbf16> to vector<16x4xbf16>
    %c32 = arith.constant 32 : index
    %c0_12 = arith.constant 0 : index
    %8 = vector.load %arg9[%c32, %c0_12] : memref<128x4xbf16, #tpu.memory_space<vmem>>, vector<16x4xbf16>
    tpu.vector_store %arg9[%c32, %c0_12], %7 {strides = array<i32>} : memref<128x4xbf16, #tpu.memory_space<vmem>>, vector<16x4xbf16>,
    %c0_13 = arith.constant 0 : index
    %c3 = arith.constant 3 : index
    %c0_14 = arith.constant 0 : index
    %c0_15 = arith.constant 0 : index
    %9 = vector.load %arg2[%c0_13, %c3, %c0_14, %c0_15] : memref<1x8x18x4xbf16, #tpu.memory_space<vmem>>, vector<1x1x16x4xbf16>
    %10 = vector.shape_cast %9 : vector<1x1x16x4xbf16> to vector<16x4xbf16>
    %c48 = arith.constant 48 : index
    %c0_16 = arith.constant 0 : index
    %11 = vector.load %arg9[%c48, %c0_16] : memref<128x4xbf16, #tpu.memory_space<vmem>>, vector<16x4xbf16>
    tpu.vector_store %arg9[%c48, %c0_16], %10 {strides = array<i32>} : memref<128x4xbf16, #tpu.memory_space<vmem>>, vector<16x4xbf16>,
    %c0_17 = arith.constant 0 : index
    %c4 = arith.constant 4 : index
    %c0_18 = arith.constant 0 : index
    %c0_19 = arith.constant 0 : index
    %12 = vector.load %arg2[%c0_17, %c4, %c0_18, %c0_19] : memref<1x8x18x4xbf16, #tpu.memory_space<vmem>>, vector<1x1x16x4xbf16>
    %13 = vector.shape_cast %12 : vector<1x1x16x4xbf16> to vector<16x4xbf16>
    %c64 = arith.constant 64 : index
    %c0_20 = arith.constant 0 : index
    %14 = vector.load %arg9[%c64, %c0_20] : memref<128x4xbf16, #tpu.memory_space<vmem>>, vector<16x4xbf16>
    tpu.vector_store %arg9[%c64, %c0_20], %13 {strides = array<i32>} : memref<128x4xbf16, #tpu.memory_space<vmem>>, vector<16x4xbf16>,
    %c0_21 = arith.constant 0 : index
    %c5 = arith.constant 5 : index
    %c0_22 = arith.constant 0 : index
    %c0_23 = arith.constant 0 : index
    %15 = vector.load %arg2[%c0_21, %c5, %c0_22, %c0_23] : memref<1x8x18x4xbf16, #tpu.memory_space<vmem>>, vector<1x1x16x4xbf16>
    %16 = vector.shape_cast %15 : vector<1x1x16x4xbf16> to vector<16x4xbf16>
    %c80 = arith.constant 80 : index
    %c0_24 = arith.constant 0 : index
    %17 = vector.load %arg9[%c80, %c0_24] : memref<128x4xbf16, #tpu.memory_space<vmem>>, vector<16x4xbf16>
    tpu.vector_store %arg9[%c80, %c0_24], %16 {strides = array<i32>} : memref<128x4xbf16, #tpu.memory_space<vmem>>, vector<16x4xbf16>,
    %c0_25 = arith.constant 0 : index
    %c6 = arith.constant 6 : index
    %c0_26 = arith.constant 0 : index
    %c0_27 = arith.constant 0 : index
    %18 = vector.load %arg2[%c0_25, %c6, %c0_26, %c0_27] : memref<1x8x18x4xbf16, #tpu.memory_space<vmem>>, vector<1x1x16x4xbf16>
    %19 = vector.shape_cast %18 : vector<1x1x16x4xbf16> to vector<16x4xbf16>
    %c96 = arith.constant 96 : index
    %c0_28 = arith.constant 0 : index
    %20 = vector.load %arg9[%c96, %c0_28] : memref<128x4xbf16, #tpu.memory_space<vmem>>, vector<16x4xbf16>
    tpu.vector_store %arg9[%c96, %c0_28], %19 {strides = array<i32>} : memref<128x4xbf16, #tpu.memory_space<vmem>>, vector<16x4xbf16>,
    %c0_29 = arith.constant 0 : index
    %c7 = arith.constant 7 : index
    %c0_30 = arith.constant 0 : index
    %c0_31 = arith.constant 0 : index
    %21 = vector.load %arg2[%c0_29, %c7, %c0_30, %c0_31] : memref<1x8x18x4xbf16, #tpu.memory_space<vmem>>, vector<1x1x16x4xbf16>
    %22 = vector.shape_cast %21 : vector<1x1x16x4xbf16> to vector<16x4xbf16>
    %c112 = arith.constant 112 : index
    %c0_32 = arith.constant 0 : index
    %23 = vector.load %arg9[%c112, %c0_32] : memref<128x4xbf16, #tpu.memory_space<vmem>>, vector<16x4xbf16>
    tpu.vector_store %arg9[%c112, %c0_32], %22 {strides = array<i32>} : memref<128x4xbf16, #tpu.memory_space<vmem>>, vector<16x4xbf16>,
    %c0_33 = arith.constant 0 : index
    %c0_34 = arith.constant 0 : index
    %24 = vector.load %arg9[%c0_33, %c0_34] : memref<128x4xbf16, #tpu.memory_space<vmem>>, vector<128x4xbf16>
    %c0_35 = arith.constant 0 : index
    %c0_36 = arith.constant 0 : index
    %c0_37 = arith.constant 0 : index
    %c0_38 = arith.constant 0 : index
    %25 = vector.load %arg5[%c0_35, %c0_36, %c0_37, %c0_38] : memref<3x3x4x32xbf16, #tpu.memory_space<vmem>>, vector<1x1x4x32xbf16>
    %26 = vector.shape_cast %25 : vector<1x1x4x32xbf16> to vector<4x32xbf16>
    %cst = arith.constant dense<0.000000e+00> : vector<128x32xf32>
    %27 = tpu.matmul %24, %26, %cst {dimension_numbers = #tpu.dot_dimension_numbers<[1], [0], [0], [1], [0, 0, 1, 1], [], []>} : vector<128x4xbf16>, vector<4x32xbf16>, vector<128x32xf32> -> vector<128x32xf32>
    %c0_39 = arith.constant 0 : index
    %c0_40 = arith.constant 0 : index
    %28 = vector.load %arg7[%c0_39, %c0_40] : memref<128x32xf32, #tpu.memory_space<vmem>>, vector<128x32xf32>
    tpu.vector_store %arg7[%c0_39, %c0_40], %27 {strides = array<i32>} : memref<128x32xf32, #tpu.memory_space<vmem>>, vector<128x32xf32>,
    %c0_41 = arith.constant 0 : index
    %c0_42 = arith.constant 0 : index
    %c1_43 = arith.constant 1 : index
    %c0_44 = arith.constant 0 : index
    %29 = vector.load %arg2[%c0_41, %c0_42, %c1_43, %c0_44] : memref<1x8x18x4xbf16, #tpu.memory_space<vmem>>, vector<1x1x16x4xbf16>
    %30 = vector.shape_cast %29 : vector<1x1x16x4xbf16> to vector<16x4xbf16>
    %c0_45 = arith.constant 0 : index
    %c0_46 = arith.constant 0 : index
    %31 = vector.load %arg9[%c0_45, %c0_46] : memref<128x4xbf16, #tpu.memory_space<vmem>>, vector<16x4xbf16>
    tpu.vector_store %arg9[%c0_45, %c0_46], %30 {strides = array<i32>} : memref<128x4xbf16, #tpu.memory_space<vmem>>, vector<16x4xbf16>,
    %c0_47 = arith.constant 0 : index
    %c1_48 = arith.constant 1 : index
    %c1_49 = arith.constant 1 : index
    %c0_50 = arith.constant 0 : index
    %32 = vector.load %arg2[%c0_47, %c1_48, %c1_49, %c0_50] : memref<1x8x18x4xbf16, #tpu.memory_space<vmem>>, vector<1x1x16x4xbf16>
    %33 = vector.shape_cast %32 : vector<1x1x16x4xbf16> to vector<16x4xbf16>
    %c16_51 = arith.constant 16 : index
    %c0_52 = arith.constant 0 : index
    %34 = vector.load %arg9[%c16_51, %c0_52] : memref<128x4xbf16, #tpu.memory_space<vmem>>, vector<16x4xbf16>
    tpu.vector_store %arg9[%c16_51, %c0_52], %33 {strides = array<i32>} : memref<128x4xbf16, #tpu.memory_space<vmem>>, vector<16x4xbf16>,
    %c0_53 = arith.constant 0 : index
    %c2_54 = arith.constant 2 : index
    %c1_55 = arith.constant 1 : index
    %c0_56 = arith.constant 0 : index
    %35 = vector.load %arg2[%c0_53, %c2_54, %c1_55, %c0_56] : memref<1x8x18x4xbf16, #tpu.memory_space<vmem>>, vector<1x1x16x4xbf16>
    %36 = vector.shape_cast %35 : vector<1x1x16x4xbf16> to vector<16x4xbf16>
    %c32_57 = arith.constant 32 : index
    %c0_58 = arith.constant 0 : index
    %37 = vector.load %arg9[%c32_57, %c0_58] : memref<128x4xbf16, #tpu.memory_space<vmem>>, vector<16x4xbf16>
    tpu.vector_store %arg9[%c32_57, %c0_58], %36 {strides = array<i32>} : memref<128x4xbf16, #tpu.memory_space<vmem>>, vector<16x4xbf16>,
    %c0_59 = arith.constant 0 : index
    %c3_60 = arith.constant 3 : index
    %c1_61 = arith.constant 1 : index
    %c0_62 = arith.constant 0 : index
    %38 = vector.load %arg2[%c0_59, %c3_60, %c1_61, %c0_62] : memref<1x8x18x4xbf16, #tpu.memory_space<vmem>>, vector<1x1x16x4xbf16>
    %39 = vector.shape_cast %38 : vector<1x1x16x4xbf16> to vector<16x4xbf16>
    %c48_63 = arith.constant 48 : index
    %c0_64 = arith.constant 0 : index
    %40 = vector.load %arg9[%c48_63, %c0_64] : memref<128x4xbf16, #tpu.memory_space<vmem>>, vector<16x4xbf16>
    tpu.vector_store %arg9[%c48_63, %c0_64], %39 {strides = array<i32>} : memref<128x4xbf16, #tpu.memory_space<vmem>>, vector<16x4xbf16>,
    %c0_65 = arith.constant 0 : index
    %c4_66 = arith.constant 4 : index
    %c1_67 = arith.constant 1 : index
    %c0_68 = arith.constant 0 : index
    %41 = vector.load %arg2[%c0_65, %c4_66, %c1_67, %c0_68] : memref<1x8x18x4xbf16, #tpu.memory_space<vmem>>, vector<1x1x16x4xbf16>
    %42 = vector.shape_cast %41 : vector<1x1x16x4xbf16> to vector<16x4xbf16>
    %c64_69 = arith.constant 64 : index
    %c0_70 = arith.constant 0 : index
    %43 = vector.load %arg9[%c64_69, %c0_70] : memref<128x4xbf16, #tpu.memory_space<vmem>>, vector<16x4xbf16>
    tpu.vector_store %arg9[%c64_69, %c0_70], %42 {strides = array<i32>} : memref<128x4xbf16, #tpu.memory_space<vmem>>, vector<16x4xbf16>,
    %c0_71 = arith.constant 0 : index
    %c5_72 = arith.constant 5 : index
    %c1_73 = arith.constant 1 : index
    %c0_74 = arith.constant 0 : index
    %44 = vector.load %arg2[%c0_71, %c5_72, %c1_73, %c0_74] : memref<1x8x18x4xbf16, #tpu.memory_space<vmem>>, vector<1x1x16x4xbf16>
    %45 = vector.shape_cast %44 : vector<1x1x16x4xbf16> to vector<16x4xbf16>
    %c80_75 = arith.constant 80 : index
    %c0_76 = arith.constant 0 : index
    %46 = vector.load %arg9[%c80_75, %c0_76] : memref<128x4xbf16, #tpu.memory_space<vmem>>, vector<16x4xbf16>
    tpu.vector_store %arg9[%c80_75, %c0_76], %45 {strides = array<i32>} : memref<128x4xbf16, #tpu.memory_space<vmem>>, vector<16x4xbf16>,
    %c0_77 = arith.constant 0 : index
    %c6_78 = arith.constant 6 : index
    %c1_79 = arith.constant 1 : index
    %c0_80 = arith.constant 0 : index
    %47 = vector.load %arg2[%c0_77, %c6_78, %c1_79, %c0_80] : memref<1x8x18x4xbf16, #tpu.memory_space<vmem>>, vector<1x1x16x4xbf16>
    %48 = vector.shape_cast %47 : vector<1x1x16x4xbf16> to vector<16x4xbf16>
    %c96_81 = arith.constant 96 : index
    %c0_82 = arith.constant 0 : index
    %49 = vector.load %arg9[%c96_81, %c0_82] : memref<128x4xbf16, #tpu.memory_space<vmem>>, vector<16x4xbf16>
    tpu.vector_store %arg9[%c96_81, %c0_82], %48 {strides = array<i32>} : memref<128x4xbf16, #tpu.memory_space<vmem>>, vector<16x4xbf16>,
    %c0_83 = arith.constant 0 : index
    %c7_84 = arith.constant 7 : index
    %c1_85 = arith.constant 1 : index
    %c0_86 = arith.constant 0 : index
    %50 = vector.load %arg2[%c0_83, %c7_84, %c1_85, %c0_86] : memref<1x8x18x4xbf16, #tpu.memory_space<vmem>>, vector<1x1x16x4xbf16>
    %51 = vector.shape_cast %50 : vector<1x1x16x4xbf16> to vector<16x4xbf16>
    %c112_87 = arith.constant 112 : index
    %c0_88 = arith.constant 0 : index
    %52 = vector.load %arg9[%c112_87, %c0_88] : memref<128x4xbf16, #tpu.memory_space<vmem>>, vector<16x4xbf16>
    tpu.vector_store %arg9[%c112_87, %c0_88], %51 {strides = array<i32>} : memref<128x4xbf16, #tpu.memory_space<vmem>>, vector<16x4xbf16>,
    %c0_89 = arith.constant 0 : index
    %c0_90 = arith.constant 0 : index
    %53 = vector.load %arg9[%c0_89, %c0_90] : memref<128x4xbf16, #tpu.memory_space<vmem>>, vector<128x4xbf16>
    %c0_91 = arith.constant 0 : index
    %c1_92 = arith.constant 1 : index
    %c0_93 = arith.constant 0 : index
    %c0_94 = arith.constant 0 : index
    %54 = vector.load %arg5[%c0_91, %c1_92, %c0_93, %c0_94] : memref<3x3x4x32xbf16, #tpu.memory_space<vmem>>, vector<1x1x4x32xbf16>
    %55 = vector.shape_cast %54 : vector<1x1x4x32xbf16> to vector<4x32xbf16>
    %cst_95 = arith.constant dense<0.000000e+00> : vector<128x32xf32>
    %56 = tpu.matmul %53, %55, %cst_95 {dimension_numbers = #tpu.dot_dimension_numbers<[1], [0], [0], [1], [0, 0, 1, 1], [], []>} : vector<128x4xbf16>, vector<4x32xbf16>, vector<128x32xf32> -> vector<128x32xf32>
    %c0_96 = arith.constant 0 : index
    %c0_97 = arith.constant 0 : index
    %57 = vector.load %arg7[%c0_96, %c0_97] : memref<128x32xf32, #tpu.memory_space<vmem>>, vector<128x32xf32>
    %58 = arith.addf %57, %56 : vector<128x32xf32>
    %c0_98 = arith.constant 0 : index
    %c0_99 = arith.constant 0 : index
    %59 = vector.load %arg7[%c0_98, %c0_99] : memref<128x32xf32, #tpu.memory_space<vmem>>, vector<128x32xf32>
    tpu.vector_store %arg7[%c0_98, %c0_99], %58 {strides = array<i32>} : memref<128x32xf32, #tpu.memory_space<vmem>>, vector<128x32xf32>,
    %c0_100 = arith.constant 0 : index
    %c0_101 = arith.constant 0 : index
    %c2_102 = arith.constant 2 : index
    %c0_103 = arith.constant 0 : index
    %60 = vector.load %arg2[%c0_100, %c0_101, %c2_102, %c0_103] : memref<1x8x18x4xbf16, #tpu.memory_space<vmem>>, vector<1x1x16x4xbf16>
    %61 = vector.shape_cast %60 : vector<1x1x16x4xbf16> to vector<16x4xbf16>
    %c0_104 = arith.constant 0 : index
    %c0_105 = arith.constant 0 : index
    %62 = vector.load %arg9[%c0_104, %c0_105] : memref<128x4xbf16, #tpu.memory_space<vmem>>, vector<16x4xbf16>
    tpu.vector_store %arg9[%c0_104, %c0_105], %61 {strides = array<i32>} : memref<128x4xbf16, #tpu.memory_space<vmem>>, vector<16x4xbf16>,
    %c0_106 = arith.constant 0 : index
    %c1_107 = arith.constant 1 : index
    %c2_108 = arith.constant 2 : index
    %c0_109 = arith.constant 0 : index
    %63 = vector.load %arg2[%c0_106, %c1_107, %c2_108, %c0_109] : memref<1x8x18x4xbf16, #tpu.memory_space<vmem>>, vector<1x1x16x4xbf16>
    %64 = vector.shape_cast %63 : vector<1x1x16x4xbf16> to vector<16x4xbf16>
    %c16_110 = arith.constant 16 : index
    %c0_111 = arith.constant 0 : index
    %65 = vector.load %arg9[%c16_110, %c0_111] : memref<128x4xbf16, #tpu.memory_space<vmem>>, vector<16x4xbf16>
    tpu.vector_store %arg9[%c16_110, %c0_111], %64 {strides = array<i32>} : memref<128x4xbf16, #tpu.memory_space<vmem>>, vector<16x4xbf16>,
    %c0_112 = arith.constant 0 : index
    %c2_113 = arith.constant 2 : index
    %c2_114 = arith.constant 2 : index
    %c0_115 = arith.constant 0 : index
    %66 = vector.load %arg2[%c0_112, %c2_113, %c2_114, %c0_115] : memref<1x8x18x4xbf16, #tpu.memory_space<vmem>>, vector<1x1x16x4xbf16>
    %67 = vector.shape_cast %66 : vector<1x1x16x4xbf16> to vector<16x4xbf16>
    %c32_116 = arith.constant 32 : index
    %c0_117 = arith.constant 0 : index
    %68 = vector.load %arg9[%c32_116, %c0_117] : memref<128x4xbf16, #tpu.memory_space<vmem>>, vector<16x4xbf16>
    tpu.vector_store %arg9[%c32_116, %c0_117], %67 {strides = array<i32>} : memref<128x4xbf16, #tpu.memory_space<vmem>>, vector<16x4xbf16>,
    %c0_118 = arith.constant 0 : index
    %c3_119 = arith.constant 3 : index
    %c2_120 = arith.constant 2 : index
    %c0_121 = arith.constant 0 : index
    %69 = vector.load %arg2[%c0_118, %c3_119, %c2_120, %c0_121] : memref<1x8x18x4xbf16, #tpu.memory_space<vmem>>, vector<1x1x16x4xbf16>
    %70 = vector.shape_cast %69 : vector<1x1x16x4xbf16> to vector<16x4xbf16>
    %c48_122 = arith.constant 48 : index
    %c0_123 = arith.constant 0 : index
    %71 = vector.load %arg9[%c48_122, %c0_123] : memref<128x4xbf16, #tpu.memory_space<vmem>>, vector<16x4xbf16>
    tpu.vector_store %arg9[%c48_122, %c0_123], %70 {strides = array<i32>} : memref<128x4xbf16, #tpu.memory_space<vmem>>, vector<16x4xbf16>,
    %c0_124 = arith.constant 0 : index
    %c4_125 = arith.constant 4 : index
    %c2_126 = arith.constant 2 : index
    %c0_127 = arith.constant 0 : index
    %72 = vector.load %arg2[%c0_124, %c4_125, %c2_126, %c0_127] : memref<1x8x18x4xbf16, #tpu.memory_space<vmem>>, vector<1x1x16x4xbf16>
    %73 = vector.shape_cast %72 : vector<1x1x16x4xbf16> to vector<16x4xbf16>
    %c64_128 = arith.constant 64 : index
    %c0_129 = arith.constant 0 : index
    %74 = vector.load %arg9[%c64_128, %c0_129] : memref<128x4xbf16, #tpu.memory_space<vmem>>, vector<16x4xbf16>
    tpu.vector_store %arg9[%c64_128, %c0_129], %73 {strides = array<i32>} : memref<128x4xbf16, #tpu.memory_space<vmem>>, vector<16x4xbf16>,
    %c0_130 = arith.constant 0 : index
    %c5_131 = arith.constant 5 : index
    %c2_132 = arith.constant 2 : index
    %c0_133 = arith.constant 0 : index
    %75 = vector.load %arg2[%c0_130, %c5_131, %c2_132, %c0_133] : memref<1x8x18x4xbf16, #tpu.memory_space<vmem>>, vector<1x1x16x4xbf16>
    %76 = vector.shape_cast %75 : vector<1x1x16x4xbf16> to vector<16x4xbf16>
    %c80_134 = arith.constant 80 : index
    %c0_135 = arith.constant 0 : index
    %77 = vector.load %arg9[%c80_134, %c0_135] : memref<128x4xbf16, #tpu.memory_space<vmem>>, vector<16x4xbf16>
    tpu.vector_store %arg9[%c80_134, %c0_135], %76 {strides = array<i32>} : memref<128x4xbf16, #tpu.memory_space<vmem>>, vector<16x4xbf16>,
    %c0_136 = arith.constant 0 : index
    %c6_137 = arith.constant 6 : index
    %c2_138 = arith.constant 2 : index
    %c0_139 = arith.constant 0 : index
    %78 = vector.load %arg2[%c0_136, %c6_137, %c2_138, %c0_139] : memref<1x8x18x4xbf16, #tpu.memory_space<vmem>>, vector<1x1x16x4xbf16>
    %79 = vector.shape_cast %78 : vector<1x1x16x4xbf16> to vector<16x4xbf16>
    %c96_140 = arith.constant 96 : index
    %c0_141 = arith.constant 0 : index
    %80 = vector.load %arg9[%c96_140, %c0_141] : memref<128x4xbf16, #tpu.memory_space<vmem>>, vector<16x4xbf16>
    tpu.vector_store %arg9[%c96_140, %c0_141], %79 {strides = array<i32>} : memref<128x4xbf16, #tpu.memory_space<vmem>>, vector<16x4xbf16>,
    %c0_142 = arith.constant 0 : index
    %c7_143 = arith.constant 7 : index
    %c2_144 = arith.constant 2 : index
    %c0_145 = arith.constant 0 : index
    %81 = vector.load %arg2[%c0_142, %c7_143, %c2_144, %c0_145] : memref<1x8x18x4xbf16, #tpu.memory_space<vmem>>, vector<1x1x16x4xbf16>
    %82 = vector.shape_cast %81 : vector<1x1x16x4xbf16> to vector<16x4xbf16>
    %c112_146 = arith.constant 112 : index
    %c0_147 = arith.constant 0 : index
    %83 = vector.load %arg9[%c112_146, %c0_147] : memref<128x4xbf16, #tpu.memory_space<vmem>>, vector<16x4xbf16>
    tpu.vector_store %arg9[%c112_146, %c0_147], %82 {strides = array<i32>} : memref<128x4xbf16, #tpu.memory_space<vmem>>, vector<16x4xbf16>,
    %c0_148 = arith.constant 0 : index
    %c0_149 = arith.constant 0 : index
    %84 = vector.load %arg9[%c0_148, %c0_149] : memref<128x4xbf16, #tpu.memory_space<vmem>>, vector<128x4xbf16>
    %c0_150 = arith.constant 0 : index
    %c2_151 = arith.constant 2 : index
    %c0_152 = arith.constant 0 : index
    %c0_153 = arith.constant 0 : index
    %85 = vector.load %arg5[%c0_150, %c2_151, %c0_152, %c0_153] : memref<3x3x4x32xbf16, #tpu.memory_space<vmem>>, vector<1x1x4x32xbf16>
    %86 = vector.shape_cast %85 : vector<1x1x4x32xbf16> to vector<4x32xbf16>
    %cst_154 = arith.constant dense<0.000000e+00> : vector<128x32xf32>
    %87 = tpu.matmul %84, %86, %cst_154 {dimension_numbers = #tpu.dot_dimension_numbers<[1], [0], [0], [1], [0, 0, 1, 1], [], []>} : vector<128x4xbf16>, vector<4x32xbf16>, vector<128x32xf32> -> vector<128x32xf32>
    %c0_155 = arith.constant 0 : index
    %c0_156 = arith.constant 0 : index
    %88 = vector.load %arg7[%c0_155, %c0_156] : memref<128x32xf32, #tpu.memory_space<vmem>>, vector<128x32xf32>
    %89 = arith.addf %88, %87 : vector<128x32xf32>
    %c0_157 = arith.constant 0 : index
    %c0_158 = arith.constant 0 : index
    %90 = vector.load %arg7[%c0_157, %c0_158] : memref<128x32xf32, #tpu.memory_space<vmem>>, vector<128x32xf32>
    tpu.vector_store %arg7[%c0_157, %c0_158], %89 {strides = array<i32>} : memref<128x32xf32, #tpu.memory_space<vmem>>, vector<128x32xf32>,
    %c0_159 = arith.constant 0 : index
    %c1_160 = arith.constant 1 : index
    %c0_161 = arith.constant 0 : index
    %c0_162 = arith.constant 0 : index
    %91 = vector.load %arg2[%c0_159, %c1_160, %c0_161, %c0_162] : memref<1x8x18x4xbf16, #tpu.memory_space<vmem>>, vector<1x1x16x4xbf16>
    %92 = vector.shape_cast %91 : vector<1x1x16x4xbf16> to vector<16x4xbf16>
    %c0_163 = arith.constant 0 : index
    %c0_164 = arith.constant 0 : index
    %93 = vector.load %arg9[%c0_163, %c0_164] : memref<128x4xbf16, #tpu.memory_space<vmem>>, vector<16x4xbf16>
    tpu.vector_store %arg9[%c0_163, %c0_164], %92 {strides = array<i32>} : memref<128x4xbf16, #tpu.memory_space<vmem>>, vector<16x4xbf16>,
    %c0_165 = arith.constant 0 : index
    %c2_166 = arith.constant 2 : index
    %c0_167 = arith.constant 0 : index
    %c0_168 = arith.constant 0 : index
    %94 = vector.load %arg2[%c0_165, %c2_166, %c0_167, %c0_168] : memref<1x8x18x4xbf16, #tpu.memory_space<vmem>>, vector<1x1x16x4xbf16>
    %95 = vector.shape_cast %94 : vector<1x1x16x4xbf16> to vector<16x4xbf16>
    %c16_169 = arith.constant 16 : index
    %c0_170 = arith.constant 0 : index
    %96 = vector.load %arg9[%c16_169, %c0_170] : memref<128x4xbf16, #tpu.memory_space<vmem>>, vector<16x4xbf16>
    tpu.vector_store %arg9[%c16_169, %c0_170], %95 {strides = array<i32>} : memref<128x4xbf16, #tpu.memory_space<vmem>>, vector<16x4xbf16>,
    %c0_171 = arith.constant 0 : index
    %c3_172 = arith.constant 3 : index
    %c0_173 = arith.constant 0 : index
    %c0_174 = arith.constant 0 : index
    %97 = vector.load %arg2[%c0_171, %c3_172, %c0_173, %c0_174] : memref<1x8x18x4xbf16, #tpu.memory_space<vmem>>, vector<1x1x16x4xbf16>
    %98 = vector.shape_cast %97 : vector<1x1x16x4xbf16> to vector<16x4xbf16>
    %c32_175 = arith.constant 32 : index
    %c0_176 = arith.constant 0 : index
    %99 = vector.load %arg9[%c32_175, %c0_176] : memref<128x4xbf16, #tpu.memory_space<vmem>>, vector<16x4xbf16>
    tpu.vector_store %arg9[%c32_175, %c0_176], %98 {strides = array<i32>} : memref<128x4xbf16, #tpu.memory_space<vmem>>, vector<16x4xbf16>,
    %c0_177 = arith.constant 0 : index
    %c4_178 = arith.constant 4 : index
    %c0_179 = arith.constant 0 : index
    %c0_180 = arith.constant 0 : index
    %100 = vector.load %arg2[%c0_177, %c4_178, %c0_179, %c0_180] : memref<1x8x18x4xbf16, #tpu.memory_space<vmem>>, vector<1x1x16x4xbf16>
    %101 = vector.shape_cast %100 : vector<1x1x16x4xbf16> to vector<16x4xbf16>
    %c48_181 = arith.constant 48 : index
    %c0_182 = arith.constant 0 : index
    %102 = vector.load %arg9[%c48_181, %c0_182] : memref<128x4xbf16, #tpu.memory_space<vmem>>, vector<16x4xbf16>
    tpu.vector_store %arg9[%c48_181, %c0_182], %101 {strides = array<i32>} : memref<128x4xbf16, #tpu.memory_space<vmem>>, vector<16x4xbf16>,
    %c0_183 = arith.constant 0 : index
    %c5_184 = arith.constant 5 : index
    %c0_185 = arith.constant 0 : index
    %c0_186 = arith.constant 0 : index
    %103 = vector.load %arg2[%c0_183, %c5_184, %c0_185, %c0_186] : memref<1x8x18x4xbf16, #tpu.memory_space<vmem>>, vector<1x1x16x4xbf16>
    %104 = vector.shape_cast %103 : vector<1x1x16x4xbf16> to vector<16x4xbf16>
    %c64_187 = arith.constant 64 : index
    %c0_188 = arith.constant 0 : index
    %105 = vector.load %arg9[%c64_187, %c0_188] : memref<128x4xbf16, #tpu.memory_space<vmem>>, vector<16x4xbf16>
    tpu.vector_store %arg9[%c64_187, %c0_188], %104 {strides = array<i32>} : memref<128x4xbf16, #tpu.memory_space<vmem>>, vector<16x4xbf16>,
    %c0_189 = arith.constant 0 : index
    %c6_190 = arith.constant 6 : index
    %c0_191 = arith.constant 0 : index
    %c0_192 = arith.constant 0 : index
    %106 = vector.load %arg2[%c0_189, %c6_190, %c0_191, %c0_192] : memref<1x8x18x4xbf16, #tpu.memory_space<vmem>>, vector<1x1x16x4xbf16>
    %107 = vector.shape_cast %106 : vector<1x1x16x4xbf16> to vector<16x4xbf16>
    %c80_193 = arith.constant 80 : index
    %c0_194 = arith.constant 0 : index
    %108 = vector.load %arg9[%c80_193, %c0_194] : memref<128x4xbf16, #tpu.memory_space<vmem>>, vector<16x4xbf16>
    tpu.vector_store %arg9[%c80_193, %c0_194], %107 {strides = array<i32>} : memref<128x4xbf16, #tpu.memory_space<vmem>>, vector<16x4xbf16>,
    %c0_195 = arith.constant 0 : index
    %c7_196 = arith.constant 7 : index
    %c0_197 = arith.constant 0 : index
    %c0_198 = arith.constant 0 : index
    %109 = vector.load %arg2[%c0_195, %c7_196, %c0_197, %c0_198] : memref<1x8x18x4xbf16, #tpu.memory_space<vmem>>, vector<1x1x16x4xbf16>
    %110 = vector.shape_cast %109 : vector<1x1x16x4xbf16> to vector<16x4xbf16>
    %c96_199 = arith.constant 96 : index
    %c0_200 = arith.constant 0 : index
    %111 = vector.load %arg9[%c96_199, %c0_200] : memref<128x4xbf16, #tpu.memory_space<vmem>>, vector<16x4xbf16>
    tpu.vector_store %arg9[%c96_199, %c0_200], %110 {strides = array<i32>} : memref<128x4xbf16, #tpu.memory_space<vmem>>, vector<16x4xbf16>,
    %c0_201 = arith.constant 0 : index
    %c0_202 = arith.constant 0 : index
    %c0_203 = arith.constant 0 : index
    %c0_204 = arith.constant 0 : index
    %112 = vector.load %arg3[%c0_201, %c0_202, %c0_203, %c0_204] : memref<1x1x18x4xbf16, #tpu.memory_space<vmem>>, vector<1x1x16x4xbf16>
    %113 = vector.shape_cast %112 : vector<1x1x16x4xbf16> to vector<16x4xbf16>
    %c112_205 = arith.constant 112 : index
    %c0_206 = arith.constant 0 : index
    %114 = vector.load %arg9[%c112_205, %c0_206] : memref<128x4xbf16, #tpu.memory_space<vmem>>, vector<16x4xbf16>
    tpu.vector_store %arg9[%c112_205, %c0_206], %113 {strides = array<i32>} : memref<128x4xbf16, #tpu.memory_space<vmem>>, vector<16x4xbf16>,
    %c0_207 = arith.constant 0 : index
    %c0_208 = arith.constant 0 : index
    %115 = vector.load %arg9[%c0_207, %c0_208] : memref<128x4xbf16, #tpu.memory_space<vmem>>, vector<128x4xbf16>
    %c1_209 = arith.constant 1 : index
    %c0_210 = arith.constant 0 : index
    %c0_211 = arith.constant 0 : index
    %c0_212 = arith.constant 0 : index
    %116 = vector.load %arg5[%c1_209, %c0_210, %c0_211, %c0_212] : memref<3x3x4x32xbf16, #tpu.memory_space<vmem>>, vector<1x1x4x32xbf16>
    %117 = vector.shape_cast %116 : vector<1x1x4x32xbf16> to vector<4x32xbf16>
    %cst_213 = arith.constant dense<0.000000e+00> : vector<128x32xf32>
    %118 = tpu.matmul %115, %117, %cst_213 {dimension_numbers = #tpu.dot_dimension_numbers<[1], [0], [0], [1], [0, 0, 1, 1], [], []>} : vector<128x4xbf16>, vector<4x32xbf16>, vector<128x32xf32> -> vector<128x32xf32>
    %c0_214 = arith.constant 0 : index
    %c0_215 = arith.constant 0 : index
    %119 = vector.load %arg7[%c0_214, %c0_215] : memref<128x32xf32, #tpu.memory_space<vmem>>, vector<128x32xf32>
    %120 = arith.addf %119, %118 : vector<128x32xf32>
    %c0_216 = arith.constant 0 : index
    %c0_217 = arith.constant 0 : index
    %121 = vector.load %arg7[%c0_216, %c0_217] : memref<128x32xf32, #tpu.memory_space<vmem>>, vector<128x32xf32>
    tpu.vector_store %arg7[%c0_216, %c0_217], %120 {strides = array<i32>} : memref<128x32xf32, #tpu.memory_space<vmem>>, vector<128x32xf32>,
    %c0_218 = arith.constant 0 : index
    %c1_219 = arith.constant 1 : index
    %c1_220 = arith.constant 1 : index
    %c0_221 = arith.constant 0 : index
    %122 = vector.load %arg2[%c0_218, %c1_219, %c1_220, %c0_221] : memref<1x8x18x4xbf16, #tpu.memory_space<vmem>>, vector<1x1x16x4xbf16>
    %123 = vector.shape_cast %122 : vector<1x1x16x4xbf16> to vector<16x4xbf16>
    %c0_222 = arith.constant 0 : index
    %c0_223 = arith.constant 0 : index
    %124 = vector.load %arg9[%c0_222, %c0_223] : memref<128x4xbf16, #tpu.memory_space<vmem>>, vector<16x4xbf16>
    tpu.vector_store %arg9[%c0_222, %c0_223], %123 {strides = array<i32>} : memref<128x4xbf16, #tpu.memory_space<vmem>>, vector<16x4xbf16>,
    %c0_224 = arith.constant 0 : index
    %c2_225 = arith.constant 2 : index
    %c1_226 = arith.constant 1 : index
    %c0_227 = arith.constant 0 : index
    %125 = vector.load %arg2[%c0_224, %c2_225, %c1_226, %c0_227] : memref<1x8x18x4xbf16, #tpu.memory_space<vmem>>, vector<1x1x16x4xbf16>
    %126 = vector.shape_cast %125 : vector<1x1x16x4xbf16> to vector<16x4xbf16>
    %c16_228 = arith.constant 16 : index
    %c0_229 = arith.constant 0 : index
    %127 = vector.load %arg9[%c16_228, %c0_229] : memref<128x4xbf16, #tpu.memory_space<vmem>>, vector<16x4xbf16>
    tpu.vector_store %arg9[%c16_228, %c0_229], %126 {strides = array<i32>} : memref<128x4xbf16, #tpu.memory_space<vmem>>, vector<16x4xbf16>,
    %c0_230 = arith.constant 0 : index
    %c3_231 = arith.constant 3 : index
    %c1_232 = arith.constant 1 : index
    %c0_233 = arith.constant 0 : index
    %128 = vector.load %arg2[%c0_230, %c3_231, %c1_232, %c0_233] : memref<1x8x18x4xbf16, #tpu.memory_space<vmem>>, vector<1x1x16x4xbf16>
    %129 = vector.shape_cast %128 : vector<1x1x16x4xbf16> to vector<16x4xbf16>
    %c32_234 = arith.constant 32 : index
    %c0_235 = arith.constant 0 : index
    %130 = vector.load %arg9[%c32_234, %c0_235] : memref<128x4xbf16, #tpu.memory_space<vmem>>, vector<16x4xbf16>
    tpu.vector_store %arg9[%c32_234, %c0_235], %129 {strides = array<i32>} : memref<128x4xbf16, #tpu.memory_space<vmem>>, vector<16x4xbf16>,
    %c0_236 = arith.constant 0 : index
    %c4_237 = arith.constant 4 : index
    %c1_238 = arith.constant 1 : index
    %c0_239 = arith.constant 0 : index
    %131 = vector.load %arg2[%c0_236, %c4_237, %c1_238, %c0_239] : memref<1x8x18x4xbf16, #tpu.memory_space<vmem>>, vector<1x1x16x4xbf16>
    %132 = vector.shape_cast %131 : vector<1x1x16x4xbf16> to vector<16x4xbf16>
    %c48_240 = arith.constant 48 : index
    %c0_241 = arith.constant 0 : index
    %133 = vector.load %arg9[%c48_240, %c0_241] : memref<128x4xbf16, #tpu.memory_space<vmem>>, vector<16x4xbf16>
    tpu.vector_store %arg9[%c48_240, %c0_241], %132 {strides = array<i32>} : memref<128x4xbf16, #tpu.memory_space<vmem>>, vector<16x4xbf16>,
    %c0_242 = arith.constant 0 : index
    %c5_243 = arith.constant 5 : index
    %c1_244 = arith.constant 1 : index
    %c0_245 = arith.constant 0 : index
    %134 = vector.load %arg2[%c0_242, %c5_243, %c1_244, %c0_245] : memref<1x8x18x4xbf16, #tpu.memory_space<vmem>>, vector<1x1x16x4xbf16>
    %135 = vector.shape_cast %134 : vector<1x1x16x4xbf16> to vector<16x4xbf16>
    %c64_246 = arith.constant 64 : index
    %c0_247 = arith.constant 0 : index
    %136 = vector.load %arg9[%c64_246, %c0_247] : memref<128x4xbf16, #tpu.memory_space<vmem>>, vector<16x4xbf16>
    tpu.vector_store %arg9[%c64_246, %c0_247], %135 {strides = array<i32>} : memref<128x4xbf16, #tpu.memory_space<vmem>>, vector<16x4xbf16>,
    %c0_248 = arith.constant 0 : index
    %c6_249 = arith.constant 6 : index
    %c1_250 = arith.constant 1 : index
    %c0_251 = arith.constant 0 : index
    %137 = vector.load %arg2[%c0_248, %c6_249, %c1_250, %c0_251] : memref<1x8x18x4xbf16, #tpu.memory_space<vmem>>, vector<1x1x16x4xbf16>
    %138 = vector.shape_cast %137 : vector<1x1x16x4xbf16> to vector<16x4xbf16>
    %c80_252 = arith.constant 80 : index
    %c0_253 = arith.constant 0 : index
    %139 = vector.load %arg9[%c80_252, %c0_253] : memref<128x4xbf16, #tpu.memory_space<vmem>>, vector<16x4xbf16>
    tpu.vector_store %arg9[%c80_252, %c0_253], %138 {strides = array<i32>} : memref<128x4xbf16, #tpu.memory_space<vmem>>, vector<16x4xbf16>,
    %c0_254 = arith.constant 0 : index
    %c7_255 = arith.constant 7 : index
    %c1_256 = arith.constant 1 : index
    %c0_257 = arith.constant 0 : index
    %140 = vector.load %arg2[%c0_254, %c7_255, %c1_256, %c0_257] : memref<1x8x18x4xbf16, #tpu.memory_space<vmem>>, vector<1x1x16x4xbf16>
    %141 = vector.shape_cast %140 : vector<1x1x16x4xbf16> to vector<16x4xbf16>
    %c96_258 = arith.constant 96 : index
    %c0_259 = arith.constant 0 : index
    %142 = vector.load %arg9[%c96_258, %c0_259] : memref<128x4xbf16, #tpu.memory_space<vmem>>, vector<16x4xbf16>
    tpu.vector_store %arg9[%c96_258, %c0_259], %141 {strides = array<i32>} : memref<128x4xbf16, #tpu.memory_space<vmem>>, vector<16x4xbf16>,
    %c0_260 = arith.constant 0 : index
    %c0_261 = arith.constant 0 : index
    %c1_262 = arith.constant 1 : index
    %c0_263 = arith.constant 0 : index
    %143 = vector.load %arg3[%c0_260, %c0_261, %c1_262, %c0_263] : memref<1x1x18x4xbf16, #tpu.memory_space<vmem>>, vector<1x1x16x4xbf16>
    %144 = vector.shape_cast %143 : vector<1x1x16x4xbf16> to vector<16x4xbf16>
    %c112_264 = arith.constant 112 : index
    %c0_265 = arith.constant 0 : index
    %145 = vector.load %arg9[%c112_264, %c0_265] : memref<128x4xbf16, #tpu.memory_space<vmem>>, vector<16x4xbf16>
    tpu.vector_store %arg9[%c112_264, %c0_265], %144 {strides = array<i32>} : memref<128x4xbf16, #tpu.memory_space<vmem>>, vector<16x4xbf16>,
    %c0_266 = arith.constant 0 : index
    %c0_267 = arith.constant 0 : index
    %146 = vector.load %arg9[%c0_266, %c0_267] : memref<128x4xbf16, #tpu.memory_space<vmem>>, vector<128x4xbf16>
    %c1_268 = arith.constant 1 : index
    %c1_269 = arith.constant 1 : index
    %c0_270 = arith.constant 0 : index
    %c0_271 = arith.constant 0 : index
    %147 = vector.load %arg5[%c1_268, %c1_269, %c0_270, %c0_271] : memref<3x3x4x32xbf16, #tpu.memory_space<vmem>>, vector<1x1x4x32xbf16>
    %148 = vector.shape_cast %147 : vector<1x1x4x32xbf16> to vector<4x32xbf16>
    %cst_272 = arith.constant dense<0.000000e+00> : vector<128x32xf32>
    %149 = tpu.matmul %146, %148, %cst_272 {dimension_numbers = #tpu.dot_dimension_numbers<[1], [0], [0], [1], [0, 0, 1, 1], [], []>} : vector<128x4xbf16>, vector<4x32xbf16>, vector<128x32xf32> -> vector<128x32xf32>
    %c0_273 = arith.constant 0 : index
    %c0_274 = arith.constant 0 : index
    %150 = vector.load %arg7[%c0_273, %c0_274] : memref<128x32xf32, #tpu.memory_space<vmem>>, vector<128x32xf32>
    %151 = arith.addf %150, %149 : vector<128x32xf32>
    %c0_275 = arith.constant 0 : index
    %c0_276 = arith.constant 0 : index
    %152 = vector.load %arg7[%c0_275, %c0_276] : memref<128x32xf32, #tpu.memory_space<vmem>>, vector<128x32xf32>
    tpu.vector_store %arg7[%c0_275, %c0_276], %151 {strides = array<i32>} : memref<128x32xf32, #tpu.memory_space<vmem>>, vector<128x32xf32>,
    %c0_277 = arith.constant 0 : index
    %c1_278 = arith.constant 1 : index
    %c2_279 = arith.constant 2 : index
    %c0_280 = arith.constant 0 : index
    %153 = vector.load %arg2[%c0_277, %c1_278, %c2_279, %c0_280] : memref<1x8x18x4xbf16, #tpu.memory_space<vmem>>, vector<1x1x16x4xbf16>
    %154 = vector.shape_cast %153 : vector<1x1x16x4xbf16> to vector<16x4xbf16>
    %c0_281 = arith.constant 0 : index
    %c0_282 = arith.constant 0 : index
    %155 = vector.load %arg9[%c0_281, %c0_282] : memref<128x4xbf16, #tpu.memory_space<vmem>>, vector<16x4xbf16>
    tpu.vector_store %arg9[%c0_281, %c0_282], %154 {strides = array<i32>} : memref<128x4xbf16, #tpu.memory_space<vmem>>, vector<16x4xbf16>,
    %c0_283 = arith.constant 0 : index
    %c2_284 = arith.constant 2 : index
    %c2_285 = arith.constant 2 : index
    %c0_286 = arith.constant 0 : index
    %156 = vector.load %arg2[%c0_283, %c2_284, %c2_285, %c0_286] : memref<1x8x18x4xbf16, #tpu.memory_space<vmem>>, vector<1x1x16x4xbf16>
    %157 = vector.shape_cast %156 : vector<1x1x16x4xbf16> to vector<16x4xbf16>
    %c16_287 = arith.constant 16 : index
    %c0_288 = arith.constant 0 : index
    %158 = vector.load %arg9[%c16_287, %c0_288] : memref<128x4xbf16, #tpu.memory_space<vmem>>, vector<16x4xbf16>
    tpu.vector_store %arg9[%c16_287, %c0_288], %157 {strides = array<i32>} : memref<128x4xbf16, #tpu.memory_space<vmem>>, vector<16x4xbf16>,
    %c0_289 = arith.constant 0 : index
    %c3_290 = arith.constant 3 : index
    %c2_291 = arith.constant 2 : index
    %c0_292 = arith.constant 0 : index
    %159 = vector.load %arg2[%c0_289, %c3_290, %c2_291, %c0_292] : memref<1x8x18x4xbf16, #tpu.memory_space<vmem>>, vector<1x1x16x4xbf16>
    %160 = vector.shape_cast %159 : vector<1x1x16x4xbf16> to vector<16x4xbf16>
    %c32_293 = arith.constant 32 : index
    %c0_294 = arith.constant 0 : index
    %161 = vector.load %arg9[%c32_293, %c0_294] : memref<128x4xbf16, #tpu.memory_space<vmem>>, vector<16x4xbf16>
    tpu.vector_store %arg9[%c32_293, %c0_294], %160 {strides = array<i32>} : memref<128x4xbf16, #tpu.memory_space<vmem>>, vector<16x4xbf16>,
    %c0_295 = arith.constant 0 : index
    %c4_296 = arith.constant 4 : index
    %c2_297 = arith.constant 2 : index
    %c0_298 = arith.constant 0 : index
    %162 = vector.load %arg2[%c0_295, %c4_296, %c2_297, %c0_298] : memref<1x8x18x4xbf16, #tpu.memory_space<vmem>>, vector<1x1x16x4xbf16>
    %163 = vector.shape_cast %162 : vector<1x1x16x4xbf16> to vector<16x4xbf16>
    %c48_299 = arith.constant 48 : index
    %c0_300 = arith.constant 0 : index
    %164 = vector.load %arg9[%c48_299, %c0_300] : memref<128x4xbf16, #tpu.memory_space<vmem>>, vector<16x4xbf16>
    tpu.vector_store %arg9[%c48_299, %c0_300], %163 {strides = array<i32>} : memref<128x4xbf16, #tpu.memory_space<vmem>>, vector<16x4xbf16>,
    %c0_301 = arith.constant 0 : index
    %c5_302 = arith.constant 5 : index
    %c2_303 = arith.constant 2 : index
    %c0_304 = arith.constant 0 : index
    %165 = vector.load %arg2[%c0_301, %c5_302, %c2_303, %c0_304] : memref<1x8x18x4xbf16, #tpu.memory_space<vmem>>, vector<1x1x16x4xbf16>
    %166 = vector.shape_cast %165 : vector<1x1x16x4xbf16> to vector<16x4xbf16>
    %c64_305 = arith.constant 64 : index
    %c0_306 = arith.constant 0 : index
    %167 = vector.load %arg9[%c64_305, %c0_306] : memref<128x4xbf16, #tpu.memory_space<vmem>>, vector<16x4xbf16>
    tpu.vector_store %arg9[%c64_305, %c0_306], %166 {strides = array<i32>} : memref<128x4xbf16, #tpu.memory_space<vmem>>, vector<16x4xbf16>,
    %c0_307 = arith.constant 0 : index
    %c6_308 = arith.constant 6 : index
    %c2_309 = arith.constant 2 : index
    %c0_310 = arith.constant 0 : index
    %168 = vector.load %arg2[%c0_307, %c6_308, %c2_309, %c0_310] : memref<1x8x18x4xbf16, #tpu.memory_space<vmem>>, vector<1x1x16x4xbf16>
    %169 = vector.shape_cast %168 : vector<1x1x16x4xbf16> to vector<16x4xbf16>
    %c80_311 = arith.constant 80 : index
    %c0_312 = arith.constant 0 : index
    %170 = vector.load %arg9[%c80_311, %c0_312] : memref<128x4xbf16, #tpu.memory_space<vmem>>, vector<16x4xbf16>
    tpu.vector_store %arg9[%c80_311, %c0_312], %169 {strides = array<i32>} : memref<128x4xbf16, #tpu.memory_space<vmem>>, vector<16x4xbf16>,
    %c0_313 = arith.constant 0 : index
    %c7_314 = arith.constant 7 : index
    %c2_315 = arith.constant 2 : index
    %c0_316 = arith.constant 0 : index
    %171 = vector.load %arg2[%c0_313, %c7_314, %c2_315, %c0_316] : memref<1x8x18x4xbf16, #tpu.memory_space<vmem>>, vector<1x1x16x4xbf16>
    %172 = vector.shape_cast %171 : vector<1x1x16x4xbf16> to vector<16x4xbf16>
    %c96_317 = arith.constant 96 : index
    %c0_318 = arith.constant 0 : index
    %173 = vector.load %arg9[%c96_317, %c0_318] : memref<128x4xbf16, #tpu.memory_space<vmem>>, vector<16x4xbf16>
    tpu.vector_store %arg9[%c96_317, %c0_318], %172 {strides = array<i32>} : memref<128x4xbf16, #tpu.memory_space<vmem>>, vector<16x4xbf16>,
    %c0_319 = arith.constant 0 : index
    %c0_320 = arith.constant 0 : index
    %c2_321 = arith.constant 2 : index
    %c0_322 = arith.constant 0 : index
    %174 = vector.load %arg3[%c0_319, %c0_320, %c2_321, %c0_322] : memref<1x1x18x4xbf16, #tpu.memory_space<vmem>>, vector<1x1x16x4xbf16>
    %175 = vector.shape_cast %174 : vector<1x1x16x4xbf16> to vector<16x4xbf16>
    %c112_323 = arith.constant 112 : index
    %c0_324 = arith.constant 0 : index
    %176 = vector.load %arg9[%c112_323, %c0_324] : memref<128x4xbf16, #tpu.memory_space<vmem>>, vector<16x4xbf16>
    tpu.vector_store %arg9[%c112_323, %c0_324], %175 {strides = array<i32>} : memref<128x4xbf16, #tpu.memory_space<vmem>>, vector<16x4xbf16>,
    %c0_325 = arith.constant 0 : index
    %c0_326 = arith.constant 0 : index
    %177 = vector.load %arg9[%c0_325, %c0_326] : memref<128x4xbf16, #tpu.memory_space<vmem>>, vector<128x4xbf16>
    %c1_327 = arith.constant 1 : index
    %c2_328 = arith.constant 2 : index
    %c0_329 = arith.constant 0 : index
    %c0_330 = arith.constant 0 : index
    %178 = vector.load %arg5[%c1_327, %c2_328, %c0_329, %c0_330] : memref<3x3x4x32xbf16, #tpu.memory_space<vmem>>, vector<1x1x4x32xbf16>
    %179 = vector.shape_cast %178 : vector<1x1x4x32xbf16> to vector<4x32xbf16>
    %cst_331 = arith.constant dense<0.000000e+00> : vector<128x32xf32>
    %180 = tpu.matmul %177, %179, %cst_331 {dimension_numbers = #tpu.dot_dimension_numbers<[1], [0], [0], [1], [0, 0, 1, 1], [], []>} : vector<128x4xbf16>, vector<4x32xbf16>, vector<128x32xf32> -> vector<128x32xf32>
    %c0_332 = arith.constant 0 : index
    %c0_333 = arith.constant 0 : index
    %181 = vector.load %arg7[%c0_332, %c0_333] : memref<128x32xf32, #tpu.memory_space<vmem>>, vector<128x32xf32>
    %182 = arith.addf %181, %180 : vector<128x32xf32>
    %c0_334 = arith.constant 0 : index
    %c0_335 = arith.constant 0 : index
    %183 = vector.load %arg7[%c0_334, %c0_335] : memref<128x32xf32, #tpu.memory_space<vmem>>, vector<128x32xf32>
    tpu.vector_store %arg7[%c0_334, %c0_335], %182 {strides = array<i32>} : memref<128x32xf32, #tpu.memory_space<vmem>>, vector<128x32xf32>,
    %c0_336 = arith.constant 0 : index
    %c2_337 = arith.constant 2 : index
    %c0_338 = arith.constant 0 : index
    %c0_339 = arith.constant 0 : index
    %184 = vector.load %arg2[%c0_336, %c2_337, %c0_338, %c0_339] : memref<1x8x18x4xbf16, #tpu.memory_space<vmem>>, vector<1x1x16x4xbf16>
    %185 = vector.shape_cast %184 : vector<1x1x16x4xbf16> to vector<16x4xbf16>
    %c0_340 = arith.constant 0 : index
    %c0_341 = arith.constant 0 : index
    %186 = vector.load %arg9[%c0_340, %c0_341] : memref<128x4xbf16, #tpu.memory_space<vmem>>, vector<16x4xbf16>
    tpu.vector_store %arg9[%c0_340, %c0_341], %185 {strides = array<i32>} : memref<128x4xbf16, #tpu.memory_space<vmem>>, vector<16x4xbf16>,
    %c0_342 = arith.constant 0 : index
    %c3_343 = arith.constant 3 : index
    %c0_344 = arith.constant 0 : index
    %c0_345 = arith.constant 0 : index
    %187 = vector.load %arg2[%c0_342, %c3_343, %c0_344, %c0_345] : memref<1x8x18x4xbf16, #tpu.memory_space<vmem>>, vector<1x1x16x4xbf16>
    %188 = vector.shape_cast %187 : vector<1x1x16x4xbf16> to vector<16x4xbf16>
    %c16_346 = arith.constant 16 : index
    %c0_347 = arith.constant 0 : index
    %189 = vector.load %arg9[%c16_346, %c0_347] : memref<128x4xbf16, #tpu.memory_space<vmem>>, vector<16x4xbf16>
    tpu.vector_store %arg9[%c16_346, %c0_347], %188 {strides = array<i32>} : memref<128x4xbf16, #tpu.memory_space<vmem>>, vector<16x4xbf16>,
    %c0_348 = arith.constant 0 : index
    %c4_349 = arith.constant 4 : index
    %c0_350 = arith.constant 0 : index
    %c0_351 = arith.constant 0 : index
    %190 = vector.load %arg2[%c0_348, %c4_349, %c0_350, %c0_351] : memref<1x8x18x4xbf16, #tpu.memory_space<vmem>>, vector<1x1x16x4xbf16>
    %191 = vector.shape_cast %190 : vector<1x1x16x4xbf16> to vector<16x4xbf16>
    %c32_352 = arith.constant 32 : index
    %c0_353 = arith.constant 0 : index
    %192 = vector.load %arg9[%c32_352, %c0_353] : memref<128x4xbf16, #tpu.memory_space<vmem>>, vector<16x4xbf16>
    tpu.vector_store %arg9[%c32_352, %c0_353], %191 {strides = array<i32>} : memref<128x4xbf16, #tpu.memory_space<vmem>>, vector<16x4xbf16>,
    %c0_354 = arith.constant 0 : index
    %c5_355 = arith.constant 5 : index
    %c0_356 = arith.constant 0 : index
    %c0_357 = arith.constant 0 : index
    %193 = vector.load %arg2[%c0_354, %c5_355, %c0_356, %c0_357] : memref<1x8x18x4xbf16, #tpu.memory_space<vmem>>, vector<1x1x16x4xbf16>
    %194 = vector.shape_cast %193 : vector<1x1x16x4xbf16> to vector<16x4xbf16>
    %c48_358 = arith.constant 48 : index
    %c0_359 = arith.constant 0 : index
    %195 = vector.load %arg9[%c48_358, %c0_359] : memref<128x4xbf16, #tpu.memory_space<vmem>>, vector<16x4xbf16>
    tpu.vector_store %arg9[%c48_358, %c0_359], %194 {strides = array<i32>} : memref<128x4xbf16, #tpu.memory_space<vmem>>, vector<16x4xbf16>,
    %c0_360 = arith.constant 0 : index
    %c6_361 = arith.constant 6 : index
    %c0_362 = arith.constant 0 : index
    %c0_363 = arith.constant 0 : index
    %196 = vector.load %arg2[%c0_360, %c6_361, %c0_362, %c0_363] : memref<1x8x18x4xbf16, #tpu.memory_space<vmem>>, vector<1x1x16x4xbf16>
    %197 = vector.shape_cast %196 : vector<1x1x16x4xbf16> to vector<16x4xbf16>
    %c64_364 = arith.constant 64 : index
    %c0_365 = arith.constant 0 : index
    %198 = vector.load %arg9[%c64_364, %c0_365] : memref<128x4xbf16, #tpu.memory_space<vmem>>, vector<16x4xbf16>
    tpu.vector_store %arg9[%c64_364, %c0_365], %197 {strides = array<i32>} : memref<128x4xbf16, #tpu.memory_space<vmem>>, vector<16x4xbf16>,
    %c0_366 = arith.constant 0 : index
    %c7_367 = arith.constant 7 : index
    %c0_368 = arith.constant 0 : index
    %c0_369 = arith.constant 0 : index
    %199 = vector.load %arg2[%c0_366, %c7_367, %c0_368, %c0_369] : memref<1x8x18x4xbf16, #tpu.memory_space<vmem>>, vector<1x1x16x4xbf16>
    %200 = vector.shape_cast %199 : vector<1x1x16x4xbf16> to vector<16x4xbf16>
    %c80_370 = arith.constant 80 : index
    %c0_371 = arith.constant 0 : index
    %201 = vector.load %arg9[%c80_370, %c0_371] : memref<128x4xbf16, #tpu.memory_space<vmem>>, vector<16x4xbf16>
    tpu.vector_store %arg9[%c80_370, %c0_371], %200 {strides = array<i32>} : memref<128x4xbf16, #tpu.memory_space<vmem>>, vector<16x4xbf16>,
    %c0_372 = arith.constant 0 : index
    %c0_373 = arith.constant 0 : index
    %c0_374 = arith.constant 0 : index
    %c0_375 = arith.constant 0 : index
    %202 = vector.load %arg3[%c0_372, %c0_373, %c0_374, %c0_375] : memref<1x1x18x4xbf16, #tpu.memory_space<vmem>>, vector<1x1x16x4xbf16>
    %203 = vector.shape_cast %202 : vector<1x1x16x4xbf16> to vector<16x4xbf16>
    %c96_376 = arith.constant 96 : index
    %c0_377 = arith.constant 0 : index
    %204 = vector.load %arg9[%c96_376, %c0_377] : memref<128x4xbf16, #tpu.memory_space<vmem>>, vector<16x4xbf16>
    tpu.vector_store %arg9[%c96_376, %c0_377], %203 {strides = array<i32>} : memref<128x4xbf16, #tpu.memory_space<vmem>>, vector<16x4xbf16>,
    %c0_378 = arith.constant 0 : index
    %c0_379 = arith.constant 0 : index
    %c0_380 = arith.constant 0 : index
    %c0_381 = arith.constant 0 : index
    %205 = vector.load %arg4[%c0_378, %c0_379, %c0_380, %c0_381] : memref<1x1x18x4xbf16, #tpu.memory_space<vmem>>, vector<1x1x16x4xbf16>
    %206 = vector.shape_cast %205 : vector<1x1x16x4xbf16> to vector<16x4xbf16>
    %c112_382 = arith.constant 112 : index
    %c0_383 = arith.constant 0 : index
    %207 = vector.load %arg9[%c112_382, %c0_383] : memref<128x4xbf16, #tpu.memory_space<vmem>>, vector<16x4xbf16>
    tpu.vector_store %arg9[%c112_382, %c0_383], %206 {strides = array<i32>} : memref<128x4xbf16, #tpu.memory_space<vmem>>, vector<16x4xbf16>,
    %c0_384 = arith.constant 0 : index
    %c0_385 = arith.constant 0 : index
    %208 = vector.load %arg9[%c0_384, %c0_385] : memref<128x4xbf16, #tpu.memory_space<vmem>>, vector<128x4xbf16>
    %c2_386 = arith.constant 2 : index
    %c0_387 = arith.constant 0 : index
    %c0_388 = arith.constant 0 : index
    %c0_389 = arith.constant 0 : index
    %209 = vector.load %arg5[%c2_386, %c0_387, %c0_388, %c0_389] : memref<3x3x4x32xbf16, #tpu.memory_space<vmem>>, vector<1x1x4x32xbf16>
    %210 = vector.shape_cast %209 : vector<1x1x4x32xbf16> to vector<4x32xbf16>
    %cst_390 = arith.constant dense<0.000000e+00> : vector<128x32xf32>
    %211 = tpu.matmul %208, %210, %cst_390 {dimension_numbers = #tpu.dot_dimension_numbers<[1], [0], [0], [1], [0, 0, 1, 1], [], []>} : vector<128x4xbf16>, vector<4x32xbf16>, vector<128x32xf32> -> vector<128x32xf32>
    %c0_391 = arith.constant 0 : index
    %c0_392 = arith.constant 0 : index
    %212 = vector.load %arg7[%c0_391, %c0_392] : memref<128x32xf32, #tpu.memory_space<vmem>>, vector<128x32xf32>
    %213 = arith.addf %212, %211 : vector<128x32xf32>
    %c0_393 = arith.constant 0 : index
    %c0_394 = arith.constant 0 : index
    %214 = vector.load %arg7[%c0_393, %c0_394] : memref<128x32xf32, #tpu.memory_space<vmem>>, vector<128x32xf32>
    tpu.vector_store %arg7[%c0_393, %c0_394], %213 {strides = array<i32>} : memref<128x32xf32, #tpu.memory_space<vmem>>, vector<128x32xf32>,
    %c0_395 = arith.constant 0 : index
    %c2_396 = arith.constant 2 : index
    %c1_397 = arith.constant 1 : index
    %c0_398 = arith.constant 0 : index
    %215 = vector.load %arg2[%c0_395, %c2_396, %c1_397, %c0_398] : memref<1x8x18x4xbf16, #tpu.memory_space<vmem>>, vector<1x1x16x4xbf16>
    %216 = vector.shape_cast %215 : vector<1x1x16x4xbf16> to vector<16x4xbf16>
    %c0_399 = arith.constant 0 : index
    %c0_400 = arith.constant 0 : index
    %217 = vector.load %arg9[%c0_399, %c0_400] : memref<128x4xbf16, #tpu.memory_space<vmem>>, vector<16x4xbf16>
    tpu.vector_store %arg9[%c0_399, %c0_400], %216 {strides = array<i32>} : memref<128x4xbf16, #tpu.memory_space<vmem>>, vector<16x4xbf16>,
    %c0_401 = arith.constant 0 : index
    %c3_402 = arith.constant 3 : index
    %c1_403 = arith.constant 1 : index
    %c0_404 = arith.constant 0 : index
    %218 = vector.load %arg2[%c0_401, %c3_402, %c1_403, %c0_404] : memref<1x8x18x4xbf16, #tpu.memory_space<vmem>>, vector<1x1x16x4xbf16>
    %219 = vector.shape_cast %218 : vector<1x1x16x4xbf16> to vector<16x4xbf16>
    %c16_405 = arith.constant 16 : index
    %c0_406 = arith.constant 0 : index
    %220 = vector.load %arg9[%c16_405, %c0_406] : memref<128x4xbf16, #tpu.memory_space<vmem>>, vector<16x4xbf16>
    tpu.vector_store %arg9[%c16_405, %c0_406], %219 {strides = array<i32>} : memref<128x4xbf16, #tpu.memory_space<vmem>>, vector<16x4xbf16>,
    %c0_407 = arith.constant 0 : index
    %c4_408 = arith.constant 4 : index
    %c1_409 = arith.constant 1 : index
    %c0_410 = arith.constant 0 : index
    %221 = vector.load %arg2[%c0_407, %c4_408, %c1_409, %c0_410] : memref<1x8x18x4xbf16, #tpu.memory_space<vmem>>, vector<1x1x16x4xbf16>
    %222 = vector.shape_cast %221 : vector<1x1x16x4xbf16> to vector<16x4xbf16>
    %c32_411 = arith.constant 32 : index
    %c0_412 = arith.constant 0 : index
    %223 = vector.load %arg9[%c32_411, %c0_412] : memref<128x4xbf16, #tpu.memory_space<vmem>>, vector<16x4xbf16>
    tpu.vector_store %arg9[%c32_411, %c0_412], %222 {strides = array<i32>} : memref<128x4xbf16, #tpu.memory_space<vmem>>, vector<16x4xbf16>,
    %c0_413 = arith.constant 0 : index
    %c5_414 = arith.constant 5 : index
    %c1_415 = arith.constant 1 : index
    %c0_416 = arith.constant 0 : index
    %224 = vector.load %arg2[%c0_413, %c5_414, %c1_415, %c0_416] : memref<1x8x18x4xbf16, #tpu.memory_space<vmem>>, vector<1x1x16x4xbf16>
    %225 = vector.shape_cast %224 : vector<1x1x16x4xbf16> to vector<16x4xbf16>
    %c48_417 = arith.constant 48 : index
    %c0_418 = arith.constant 0 : index
    %226 = vector.load %arg9[%c48_417, %c0_418] : memref<128x4xbf16, #tpu.memory_space<vmem>>, vector<16x4xbf16>
    tpu.vector_store %arg9[%c48_417, %c0_418], %225 {strides = array<i32>} : memref<128x4xbf16, #tpu.memory_space<vmem>>, vector<16x4xbf16>,
    %c0_419 = arith.constant 0 : index
    %c6_420 = arith.constant 6 : index
    %c1_421 = arith.constant 1 : index
    %c0_422 = arith.constant 0 : index
    %227 = vector.load %arg2[%c0_419, %c6_420, %c1_421, %c0_422] : memref<1x8x18x4xbf16, #tpu.memory_space<vmem>>, vector<1x1x16x4xbf16>
    %228 = vector.shape_cast %227 : vector<1x1x16x4xbf16> to vector<16x4xbf16>
    %c64_423 = arith.constant 64 : index
    %c0_424 = arith.constant 0 : index
    %229 = vector.load %arg9[%c64_423, %c0_424] : memref<128x4xbf16, #tpu.memory_space<vmem>>, vector<16x4xbf16>
    tpu.vector_store %arg9[%c64_423, %c0_424], %228 {strides = array<i32>} : memref<128x4xbf16, #tpu.memory_space<vmem>>, vector<16x4xbf16>,
    %c0_425 = arith.constant 0 : index
    %c7_426 = arith.constant 7 : index
    %c1_427 = arith.constant 1 : index
    %c0_428 = arith.constant 0 : index
    %230 = vector.load %arg2[%c0_425, %c7_426, %c1_427, %c0_428] : memref<1x8x18x4xbf16, #tpu.memory_space<vmem>>, vector<1x1x16x4xbf16>
    %231 = vector.shape_cast %230 : vector<1x1x16x4xbf16> to vector<16x4xbf16>
    %c80_429 = arith.constant 80 : index
    %c0_430 = arith.constant 0 : index
    %232 = vector.load %arg9[%c80_429, %c0_430] : memref<128x4xbf16, #tpu.memory_space<vmem>>, vector<16x4xbf16>
    tpu.vector_store %arg9[%c80_429, %c0_430], %231 {strides = array<i32>} : memref<128x4xbf16, #tpu.memory_space<vmem>>, vector<16x4xbf16>,
    %c0_431 = arith.constant 0 : index
    %c0_432 = arith.constant 0 : index
    %c1_433 = arith.constant 1 : index
    %c0_434 = arith.constant 0 : index
    %233 = vector.load %arg3[%c0_431, %c0_432, %c1_433, %c0_434] : memref<1x1x18x4xbf16, #tpu.memory_space<vmem>>, vector<1x1x16x4xbf16>
    %234 = vector.shape_cast %233 : vector<1x1x16x4xbf16> to vector<16x4xbf16>
    %c96_435 = arith.constant 96 : index
    %c0_436 = arith.constant 0 : index
    %235 = vector.load %arg9[%c96_435, %c0_436] : memref<128x4xbf16, #tpu.memory_space<vmem>>, vector<16x4xbf16>
    tpu.vector_store %arg9[%c96_435, %c0_436], %234 {strides = array<i32>} : memref<128x4xbf16, #tpu.memory_space<vmem>>, vector<16x4xbf16>,
    %c0_437 = arith.constant 0 : index
    %c0_438 = arith.constant 0 : index
    %c1_439 = arith.constant 1 : index
    %c0_440 = arith.constant 0 : index
    %236 = vector.load %arg4[%c0_437, %c0_438, %c1_439, %c0_440] : memref<1x1x18x4xbf16, #tpu.memory_space<vmem>>, vector<1x1x16x4xbf16>
    %237 = vector.shape_cast %236 : vector<1x1x16x4xbf16> to vector<16x4xbf16>
    %c112_441 = arith.constant 112 : index
    %c0_442 = arith.constant 0 : index
    %238 = vector.load %arg9[%c112_441, %c0_442] : memref<128x4xbf16, #tpu.memory_space<vmem>>, vector<16x4xbf16>
    tpu.vector_store %arg9[%c112_441, %c0_442], %237 {strides = array<i32>} : memref<128x4xbf16, #tpu.memory_space<vmem>>, vector<16x4xbf16>,
    %c0_443 = arith.constant 0 : index
    %c0_444 = arith.constant 0 : index
    %239 = vector.load %arg9[%c0_443, %c0_444] : memref<128x4xbf16, #tpu.memory_space<vmem>>, vector<128x4xbf16>
    %c2_445 = arith.constant 2 : index
    %c1_446 = arith.constant 1 : index
    %c0_447 = arith.constant 0 : index
    %c0_448 = arith.constant 0 : index
    %240 = vector.load %arg5[%c2_445, %c1_446, %c0_447, %c0_448] : memref<3x3x4x32xbf16, #tpu.memory_space<vmem>>, vector<1x1x4x32xbf16>
    %241 = vector.shape_cast %240 : vector<1x1x4x32xbf16> to vector<4x32xbf16>
    %cst_449 = arith.constant dense<0.000000e+00> : vector<128x32xf32>
    %242 = tpu.matmul %239, %241, %cst_449 {dimension_numbers = #tpu.dot_dimension_numbers<[1], [0], [0], [1], [0, 0, 1, 1], [], []>} : vector<128x4xbf16>, vector<4x32xbf16>, vector<128x32xf32> -> vector<128x32xf32>
    %c0_450 = arith.constant 0 : index
    %c0_451 = arith.constant 0 : index
    %243 = vector.load %arg7[%c0_450, %c0_451] : memref<128x32xf32, #tpu.memory_space<vmem>>, vector<128x32xf32>
    %244 = arith.addf %243, %242 : vector<128x32xf32>
    %c0_452 = arith.constant 0 : index
    %c0_453 = arith.constant 0 : index
    %245 = vector.load %arg7[%c0_452, %c0_453] : memref<128x32xf32, #tpu.memory_space<vmem>>, vector<128x32xf32>
    tpu.vector_store %arg7[%c0_452, %c0_453], %244 {strides = array<i32>} : memref<128x32xf32, #tpu.memory_space<vmem>>, vector<128x32xf32>,
    %c0_454 = arith.constant 0 : index
    %c2_455 = arith.constant 2 : index
    %c2_456 = arith.constant 2 : index
    %c0_457 = arith.constant 0 : index
    %246 = vector.load %arg2[%c0_454, %c2_455, %c2_456, %c0_457] : memref<1x8x18x4xbf16, #tpu.memory_space<vmem>>, vector<1x1x16x4xbf16>
    %247 = vector.shape_cast %246 : vector<1x1x16x4xbf16> to vector<16x4xbf16>
    %c0_458 = arith.constant 0 : index
    %c0_459 = arith.constant 0 : index
    %248 = vector.load %arg9[%c0_458, %c0_459] : memref<128x4xbf16, #tpu.memory_space<vmem>>, vector<16x4xbf16>
    tpu.vector_store %arg9[%c0_458, %c0_459], %247 {strides = array<i32>} : memref<128x4xbf16, #tpu.memory_space<vmem>>, vector<16x4xbf16>,
    %c0_460 = arith.constant 0 : index
    %c3_461 = arith.constant 3 : index
    %c2_462 = arith.constant 2 : index
    %c0_463 = arith.constant 0 : index
    %249 = vector.load %arg2[%c0_460, %c3_461, %c2_462, %c0_463] : memref<1x8x18x4xbf16, #tpu.memory_space<vmem>>, vector<1x1x16x4xbf16>
    %250 = vector.shape_cast %249 : vector<1x1x16x4xbf16> to vector<16x4xbf16>
    %c16_464 = arith.constant 16 : index
    %c0_465 = arith.constant 0 : index
    %251 = vector.load %arg9[%c16_464, %c0_465] : memref<128x4xbf16, #tpu.memory_space<vmem>>, vector<16x4xbf16>
    tpu.vector_store %arg9[%c16_464, %c0_465], %250 {strides = array<i32>} : memref<128x4xbf16, #tpu.memory_space<vmem>>, vector<16x4xbf16>,
    %c0_466 = arith.constant 0 : index
    %c4_467 = arith.constant 4 : index
    %c2_468 = arith.constant 2 : index
    %c0_469 = arith.constant 0 : index
    %252 = vector.load %arg2[%c0_466, %c4_467, %c2_468, %c0_469] : memref<1x8x18x4xbf16, #tpu.memory_space<vmem>>, vector<1x1x16x4xbf16>
    %253 = vector.shape_cast %252 : vector<1x1x16x4xbf16> to vector<16x4xbf16>
    %c32_470 = arith.constant 32 : index
    %c0_471 = arith.constant 0 : index
    %254 = vector.load %arg9[%c32_470, %c0_471] : memref<128x4xbf16, #tpu.memory_space<vmem>>, vector<16x4xbf16>
    tpu.vector_store %arg9[%c32_470, %c0_471], %253 {strides = array<i32>} : memref<128x4xbf16, #tpu.memory_space<vmem>>, vector<16x4xbf16>,
    %c0_472 = arith.constant 0 : index
    %c5_473 = arith.constant 5 : index
    %c2_474 = arith.constant 2 : index
    %c0_475 = arith.constant 0 : index
    %255 = vector.load %arg2[%c0_472, %c5_473, %c2_474, %c0_475] : memref<1x8x18x4xbf16, #tpu.memory_space<vmem>>, vector<1x1x16x4xbf16>
    %256 = vector.shape_cast %255 : vector<1x1x16x4xbf16> to vector<16x4xbf16>
    %c48_476 = arith.constant 48 : index
    %c0_477 = arith.constant 0 : index
    %257 = vector.load %arg9[%c48_476, %c0_477] : memref<128x4xbf16, #tpu.memory_space<vmem>>, vector<16x4xbf16>
    tpu.vector_store %arg9[%c48_476, %c0_477], %256 {strides = array<i32>} : memref<128x4xbf16, #tpu.memory_space<vmem>>, vector<16x4xbf16>,
    %c0_478 = arith.constant 0 : index
    %c6_479 = arith.constant 6 : index
    %c2_480 = arith.constant 2 : index
    %c0_481 = arith.constant 0 : index
    %258 = vector.load %arg2[%c0_478, %c6_479, %c2_480, %c0_481] : memref<1x8x18x4xbf16, #tpu.memory_space<vmem>>, vector<1x1x16x4xbf16>
    %259 = vector.shape_cast %258 : vector<1x1x16x4xbf16> to vector<16x4xbf16>
    %c64_482 = arith.constant 64 : index
    %c0_483 = arith.constant 0 : index
    %260 = vector.load %arg9[%c64_482, %c0_483] : memref<128x4xbf16, #tpu.memory_space<vmem>>, vector<16x4xbf16>
    tpu.vector_store %arg9[%c64_482, %c0_483], %259 {strides = array<i32>} : memref<128x4xbf16, #tpu.memory_space<vmem>>, vector<16x4xbf16>,
    %c0_484 = arith.constant 0 : index
    %c7_485 = arith.constant 7 : index
    %c2_486 = arith.constant 2 : index
    %c0_487 = arith.constant 0 : index
    %261 = vector.load %arg2[%c0_484, %c7_485, %c2_486, %c0_487] : memref<1x8x18x4xbf16, #tpu.memory_space<vmem>>, vector<1x1x16x4xbf16>
    %262 = vector.shape_cast %261 : vector<1x1x16x4xbf16> to vector<16x4xbf16>
    %c80_488 = arith.constant 80 : index
    %c0_489 = arith.constant 0 : index
    %263 = vector.load %arg9[%c80_488, %c0_489] : memref<128x4xbf16, #tpu.memory_space<vmem>>, vector<16x4xbf16>
    tpu.vector_store %arg9[%c80_488, %c0_489], %262 {strides = array<i32>} : memref<128x4xbf16, #tpu.memory_space<vmem>>, vector<16x4xbf16>,
    %c0_490 = arith.constant 0 : index
    %c0_491 = arith.constant 0 : index
    %c2_492 = arith.constant 2 : index
    %c0_493 = arith.constant 0 : index
    %264 = vector.load %arg3[%c0_490, %c0_491, %c2_492, %c0_493] : memref<1x1x18x4xbf16, #tpu.memory_space<vmem>>, vector<1x1x16x4xbf16>
    %265 = vector.shape_cast %264 : vector<1x1x16x4xbf16> to vector<16x4xbf16>
    %c96_494 = arith.constant 96 : index
    %c0_495 = arith.constant 0 : index
    %266 = vector.load %arg9[%c96_494, %c0_495] : memref<128x4xbf16, #tpu.memory_space<vmem>>, vector<16x4xbf16>
    tpu.vector_store %arg9[%c96_494, %c0_495], %265 {strides = array<i32>} : memref<128x4xbf16, #tpu.memory_space<vmem>>, vector<16x4xbf16>,
    %c0_496 = arith.constant 0 : index
    %c0_497 = arith.constant 0 : index
    %c2_498 = arith.constant 2 : index
    %c0_499 = arith.constant 0 : index
    %267 = vector.load %arg4[%c0_496, %c0_497, %c2_498, %c0_499] : memref<1x1x18x4xbf16, #tpu.memory_space<vmem>>, vector<1x1x16x4xbf16>
    %268 = vector.shape_cast %267 : vector<1x1x16x4xbf16> to vector<16x4xbf16>
    %c112_500 = arith.constant 112 : index
    %c0_501 = arith.constant 0 : index
    %269 = vector.load %arg9[%c112_500, %c0_501] : memref<128x4xbf16, #tpu.memory_space<vmem>>, vector<16x4xbf16>
    tpu.vector_store %arg9[%c112_500, %c0_501], %268 {strides = array<i32>} : memref<128x4xbf16, #tpu.memory_space<vmem>>, vector<16x4xbf16>,
    %c0_502 = arith.constant 0 : index
    %c0_503 = arith.constant 0 : index
    %270 = vector.load %arg9[%c0_502, %c0_503] : memref<128x4xbf16, #tpu.memory_space<vmem>>, vector<128x4xbf16>
    %c2_504 = arith.constant 2 : index
    %c2_505 = arith.constant 2 : index
    %c0_506 = arith.constant 0 : index
    %c0_507 = arith.constant 0 : index
    %271 = vector.load %arg5[%c2_504, %c2_505, %c0_506, %c0_507] : memref<3x3x4x32xbf16, #tpu.memory_space<vmem>>, vector<1x1x4x32xbf16>
    %272 = vector.shape_cast %271 : vector<1x1x4x32xbf16> to vector<4x32xbf16>
    %cst_508 = arith.constant dense<0.000000e+00> : vector<128x32xf32>
    %273 = tpu.matmul %270, %272, %cst_508 {dimension_numbers = #tpu.dot_dimension_numbers<[1], [0], [0], [1], [0, 0, 1, 1], [], []>} : vector<128x4xbf16>, vector<4x32xbf16>, vector<128x32xf32> -> vector<128x32xf32>
    %c0_509 = arith.constant 0 : index
    %c0_510 = arith.constant 0 : index
    %274 = vector.load %arg7[%c0_509, %c0_510] : memref<128x32xf32, #tpu.memory_space<vmem>>, vector<128x32xf32>
    %275 = arith.addf %274, %273 : vector<128x32xf32>
    %c0_511 = arith.constant 0 : index
    %c0_512 = arith.constant 0 : index
    %276 = vector.load %arg7[%c0_511, %c0_512] : memref<128x32xf32, #tpu.memory_space<vmem>>, vector<128x32xf32>
    tpu.vector_store %arg7[%c0_511, %c0_512], %275 {strides = array<i32>} : memref<128x32xf32, #tpu.memory_space<vmem>>, vector<128x32xf32>,
    %c0_513 = arith.constant 0 : index
    %c0_514 = arith.constant 0 : index
    %277 = vector.load %arg7[%c0_513, %c0_514] : memref<128x32xf32, #tpu.memory_space<vmem>>, vector<128x32xf32>
    %c0_515 = arith.constant 0 : index
    %c0_516 = arith.constant 0 : index
    %278 = vector.load %arg6[%c0_515, %c0_516] : memref<1x32xf32, #tpu.memory_space<vmem>>, vector<1x32xf32>
    %279 = vector.broadcast %278 : vector<1x32xf32> to vector<128x32xf32>
    %280 = arith.addf %277, %279 : vector<128x32xf32>
    %cst_517 = arith.constant 0.000000e+00 : f32
    %281 = vector.broadcast %cst_517 : f32 to vector<128x32xf32>
    %282 = arith.maximumf %280, %281 : vector<128x32xf32>
    %c0_518 = arith.constant 0 : index
    %c0_519 = arith.constant 0 : index
    %283 = vector.load %arg7[%c0_518, %c0_519] : memref<128x32xf32, #tpu.memory_space<vmem>>, vector<128x32xf32>
    tpu.vector_store %arg7[%c0_518, %c0_519], %282 {strides = array<i32>} : memref<128x32xf32, #tpu.memory_space<vmem>>, vector<128x32xf32>,
    %cst_520 = arith.constant dense<0.000000e+00> : vector<32xf32>
    %284 = vector.multi_reduction <add>, %282, %cst_520 [0] : vector<128x32xf32> to vector<32xf32>
    %285 = vector.shape_cast %284 : vector<32xf32> to vector<1x32xf32>
    %c0_521 = arith.constant 0 : index
    %c0_522 = arith.constant 0 : index
    %c0_523 = arith.constant 0 : index
    %c0_524 = arith.constant 0 : index
    %286 = vector.load %arg8[%c0_521, %c0_522, %c0_523, %c0_524] : memref<1x1x8x32xf32, #tpu.memory_space<vmem>>, vector<1x1x1x32xf32>
    %287 = vector.shape_cast %286 : vector<1x1x1x32xf32> to vector<1x32xf32>
    %288 = vector.shape_cast %285 : vector<1x32xf32> to vector<1x1x1x32xf32>
    tpu.vector_store %arg8[%c0_521, %c0_522, %c0_523, %c0_524], %288 {strides = array<i32>} : memref<1x1x8x32xf32, #tpu.memory_space<vmem>>, vector<1x1x1x32xf32>,
    %289 = arith.mulf %282, %282 : vector<128x32xf32>
    %cst_525 = arith.constant dense<0.000000e+00> : vector<32xf32>
    %290 = vector.multi_reduction <add>, %289, %cst_525 [0] : vector<128x32xf32> to vector<32xf32>
    %291 = vector.shape_cast %290 : vector<32xf32> to vector<1x32xf32>
    %c0_526 = arith.constant 0 : index
    %c0_527 = arith.constant 0 : index
    %c1_528 = arith.constant 1 : index
    %c0_529 = arith.constant 0 : index
    %292 = vector.load %arg8[%c0_526, %c0_527, %c1_528, %c0_529] : memref<1x1x8x32xf32, #tpu.memory_space<vmem>>, vector<1x1x1x32xf32>
    %293 = vector.shape_cast %292 : vector<1x1x1x32xf32> to vector<1x32xf32>
    %294 = vector.shape_cast %291 : vector<1x32xf32> to vector<1x1x1x32xf32>
    tpu.vector_store %arg8[%c0_526, %c0_527, %c1_528, %c0_529], %294 {strides = array<i32>} : memref<1x1x8x32xf32, #tpu.memory_space<vmem>>, vector<1x1x1x32xf32>,
    %cst_530 = arith.constant 0.000000e+00 : f32
    %295 = vector.broadcast %cst_530 : f32 to vector<6x32xf32>
    %c0_531 = arith.constant 0 : index
    %c0_532 = arith.constant 0 : index
    %c2_533 = arith.constant 2 : index
    %c0_534 = arith.constant 0 : index
    %296 = vector.load %arg8[%c0_531, %c0_532, %c2_533, %c0_534] : memref<1x1x8x32xf32, #tpu.memory_space<vmem>>, vector<1x1x6x32xf32>
    %297 = vector.shape_cast %296 : vector<1x1x6x32xf32> to vector<6x32xf32>
    %298 = vector.shape_cast %295 : vector<6x32xf32> to vector<1x1x6x32xf32>
    tpu.vector_store %arg8[%c0_531, %c0_532, %c2_533, %c0_534], %298 {strides = array<i32>} : memref<1x1x8x32xf32, #tpu.memory_space<vmem>>, vector<1x1x6x32xf32>,
    return
  }
  func.func @transform_0(%arg0: i32, %arg1: i32) -> (i32, i32, i32, i32) {
    %c0_i32 = arith.constant 0 : i32
    %c0_i32_0 = arith.constant 0 : i32
    %c0_i32_1 = arith.constant 0 : i32
    return %arg0, %arg1, %c0_i32, %c0_i32_0 : i32, i32, i32, i32
  }
  func.func @transform_1(%arg0: i32, %arg1: i32) -> (i32, i32, i32, i32) {
    %c8_i32 = arith.constant 8 : i32
    %0 = arith.muli %arg1, %c8_i32 : i32
    %c8_i32_0 = arith.constant 8 : i32
    %1 = arith.addi %0, %c8_i32_0 : i32
    %c0_i32 = arith.constant 0 : i32
    %c0_i32_1 = arith.constant 0 : i32
    %c0_i32_2 = arith.constant 0 : i32
    return %arg0, %1, %c0_i32, %c0_i32_1 : i32, i32, i32, i32
  }
  func.func @transform_2(%arg0: i32, %arg1: i32) -> (i32, i32, i32, i32) {
    %c8_i32 = arith.constant 8 : i32
    %0 = arith.muli %arg1, %c8_i32 : i32
    %c8_i32_0 = arith.constant 8 : i32
    %1 = arith.addi %0, %c8_i32_0 : i32
    %c1_i32 = arith.constant 1 : i32
    %2 = arith.addi %1, %c1_i32 : i32
    %c0_i32 = arith.constant 0 : i32
    %c0_i32_1 = arith.constant 0 : i32
    %c0_i32_2 = arith.constant 0 : i32
    return %arg0, %2, %c0_i32, %c0_i32_1 : i32, i32, i32, i32
  }
  func.func @transform_3(%arg0: i32, %arg1: i32) -> (i32, i32, i32, i32) {
    %c0_i32 = arith.constant 0 : i32
    %c0_i32_0 = arith.constant 0 : i32
    %c0_i32_1 = arith.constant 0 : i32
    %c0_i32_2 = arith.constant 0 : i32
    %c0_i32_3 = arith.constant 0 : i32
    return %c0_i32, %c0_i32_0, %c0_i32_1, %c0_i32_2 : i32, i32, i32, i32
  }
  func.func @transform_4(%arg0: i32, %arg1: i32) -> (i32, i32) {
    %c0_i32 = arith.constant 0 : i32
    %c0_i32_0 = arith.constant 0 : i32
    %c0_i32_1 = arith.constant 0 : i32
    return %c0_i32, %c0_i32_0 : i32, i32
  }
  func.func @transform_5(%arg0: i32, %arg1: i32) -> (i32, i32) {
    %c2_i32 = arith.constant 2 : i32
    %0 = arith.muli %arg0, %c2_i32 : i32
    %1 = arith.addi %0, %arg1 : i32
    %c0_i32 = arith.constant 0 : i32
    %c0_i32_0 = arith.constant 0 : i32
    return %1, %c0_i32 : i32, i32
  }
  func.func @transform_6(%arg0: i32, %arg1: i32) -> (i32, i32, i32, i32) {
    %c0_i32 = arith.constant 0 : i32
    %c0_i32_0 = arith.constant 0 : i32
    %c0_i32_1 = arith.constant 0 : i32
    return %arg0, %arg1, %c0_i32, %c0_i32_0 : i32, i32, i32, i32
  }
}

module attributes {stable_mosaic.version = 11 : i64} {
  func.func @_norm_kernel(%arg0: i32, %arg1: memref<128x128xf32, #tpu.memory_space<vmem>>, %arg2: memref<1x128xf32, #tpu.memory_space<vmem>>, %arg3: memref<1x128xf32, #tpu.memory_space<vmem>>, %arg4: memref<128x128xf32, #tpu.memory_space<vmem>>) attributes {dimension_semantics = [#tpu.dimension_semantics<parallel>], iteration_bounds = array<i64: 1>, scalar_prefetch = 0 : i64, scratch_operands = 0 : i64, tpu.core_type = #tpu.core_type<tc>, window_params = [{transform_indices = @transform_0, window_bounds = array<i64: 128, 128>}, {pipeline_mode = #tpu.pipeline_mode<synchronous>, transform_indices = @transform_1, window_bounds = array<i64: 1, 128>}, {pipeline_mode = #tpu.pipeline_mode<synchronous>, transform_indices = @transform_2, window_bounds = array<i64: 1, 128>}, {transform_indices = @transform_3, window_bounds = array<i64: 128, 128>}]} {
    %c0 = arith.constant 0 : index
    %c0_0 = arith.constant 0 : index
    %0 = vector.load %arg1[%c0, %c0_0] : memref<128x128xf32, #tpu.memory_space<vmem>>, vector<128x128xf32>
    %c0_1 = arith.constant 0 : index
    %c0_2 = arith.constant 0 : index
    %1 = vector.load %arg2[%c0_1, %c0_2] : memref<1x128xf32, #tpu.memory_space<vmem>>, vector<1x128xf32>
    %2 = vector.broadcast %1 : vector<1x128xf32> to vector<128x128xf32>
    %3 = arith.mulf %0, %2 : vector<128x128xf32>
    %c0_3 = arith.constant 0 : index
    %c0_4 = arith.constant 0 : index
    %4 = vector.load %arg3[%c0_3, %c0_4] : memref<1x128xf32, #tpu.memory_space<vmem>>, vector<1x128xf32>
    %5 = vector.broadcast %4 : vector<1x128xf32> to vector<128x128xf32>
    %6 = arith.addf %3, %5 : vector<128x128xf32>
    %c0_5 = arith.constant 0 : index
    %c0_6 = arith.constant 0 : index
    %7 = vector.load %arg4[%c0_5, %c0_6] : memref<128x128xf32, #tpu.memory_space<vmem>>, vector<128x128xf32>
    tpu.vector_store %arg4[%c0_5, %c0_6], %6 {strides = array<i32>} : memref<128x128xf32, #tpu.memory_space<vmem>>, vector<128x128xf32>,
    return
  }
  func.func @transform_0(%arg0: i32) -> (i32, i32) {
    %c0_i32 = arith.constant 0 : i32
    %c0_i32_0 = arith.constant 0 : i32
    return %arg0, %c0_i32 : i32, i32
  }
  func.func @transform_1(%arg0: i32) -> (i32, i32) {
    %c0_i32 = arith.constant 0 : i32
    %c0_i32_0 = arith.constant 0 : i32
    %c0_i32_1 = arith.constant 0 : i32
    return %c0_i32, %c0_i32_0 : i32, i32
  }
  func.func @transform_2(%arg0: i32) -> (i32, i32) {
    %c0_i32 = arith.constant 0 : i32
    %c0_i32_0 = arith.constant 0 : i32
    %c0_i32_1 = arith.constant 0 : i32
    return %c0_i32, %c0_i32_0 : i32, i32
  }
  func.func @transform_3(%arg0: i32) -> (i32, i32) {
    %c0_i32 = arith.constant 0 : i32
    %c0_i32_0 = arith.constant 0 : i32
    return %arg0, %c0_i32 : i32, i32
  }
}

module attributes {stable_mosaic.version = 11 : i64} {
  func.func @_conv3x3_kernel(%arg0: i32, %arg1: i32, %arg2: memref<1x8x18x32xbf16, #tpu.memory_space<vmem>>, %arg3: memref<1x1x18x32xbf16, #tpu.memory_space<vmem>>, %arg4: memref<1x1x18x32xbf16, #tpu.memory_space<vmem>>, %arg5: memref<3x3x32x32xbf16, #tpu.memory_space<vmem>>, %arg6: memref<1x32xf32, #tpu.memory_space<vmem>>, %arg7: memref<128x32xf32, #tpu.memory_space<vmem>>, %arg8: memref<1x1x8x32xf32, #tpu.memory_space<vmem>>, %arg9: memref<128x32xbf16, #tpu.memory_space<vmem>>) attributes {dimension_semantics = [#tpu.dimension_semantics<parallel>, #tpu.dimension_semantics<parallel>], iteration_bounds = array<i64: 2, 2>, scalar_prefetch = 0 : i64, scratch_operands = 1 : i64, tpu.core_type = #tpu.core_type<tc>, window_params = [{transform_indices = @transform_0, window_bounds = array<i64: 1, 8, 18, 32>}, {transform_indices = @transform_1, window_bounds = array<i64: 1, 1, 18, 32>}, {transform_indices = @transform_2, window_bounds = array<i64: 1, 1, 18, 32>}, {pipeline_mode = #tpu.pipeline_mode<synchronous>, transform_indices = @transform_3, window_bounds = array<i64: 3, 3, 32, 32>}, {pipeline_mode = #tpu.pipeline_mode<synchronous>, transform_indices = @transform_4, window_bounds = array<i64: 1, 32>}, {transform_indices = @transform_5, window_bounds = array<i64: 128, 32>}, {transform_indices = @transform_6, window_bounds = array<i64: 1, 1, 8, 32>}]} {
    %c0 = arith.constant 0 : index
    %c0_0 = arith.constant 0 : index
    %c0_1 = arith.constant 0 : index
    %c0_2 = arith.constant 0 : index
    %0 = vector.load %arg2[%c0, %c0_0, %c0_1, %c0_2] : memref<1x8x18x32xbf16, #tpu.memory_space<vmem>>, vector<1x1x16x32xbf16>
    %1 = vector.shape_cast %0 : vector<1x1x16x32xbf16> to vector<16x32xbf16>
    %c0_3 = arith.constant 0 : index
    %c0_4 = arith.constant 0 : index
    %2 = vector.load %arg9[%c0_3, %c0_4] : memref<128x32xbf16, #tpu.memory_space<vmem>>, vector<16x32xbf16>
    tpu.vector_store %arg9[%c0_3, %c0_4], %1 {strides = array<i32>} : memref<128x32xbf16, #tpu.memory_space<vmem>>, vector<16x32xbf16>,
    %c0_5 = arith.constant 0 : index
    %c1 = arith.constant 1 : index
    %c0_6 = arith.constant 0 : index
    %c0_7 = arith.constant 0 : index
    %3 = vector.load %arg2[%c0_5, %c1, %c0_6, %c0_7] : memref<1x8x18x32xbf16, #tpu.memory_space<vmem>>, vector<1x1x16x32xbf16>
    %4 = vector.shape_cast %3 : vector<1x1x16x32xbf16> to vector<16x32xbf16>
    %c16 = arith.constant 16 : index
    %c0_8 = arith.constant 0 : index
    %5 = vector.load %arg9[%c16, %c0_8] : memref<128x32xbf16, #tpu.memory_space<vmem>>, vector<16x32xbf16>
    tpu.vector_store %arg9[%c16, %c0_8], %4 {strides = array<i32>} : memref<128x32xbf16, #tpu.memory_space<vmem>>, vector<16x32xbf16>,
    %c0_9 = arith.constant 0 : index
    %c2 = arith.constant 2 : index
    %c0_10 = arith.constant 0 : index
    %c0_11 = arith.constant 0 : index
    %6 = vector.load %arg2[%c0_9, %c2, %c0_10, %c0_11] : memref<1x8x18x32xbf16, #tpu.memory_space<vmem>>, vector<1x1x16x32xbf16>
    %7 = vector.shape_cast %6 : vector<1x1x16x32xbf16> to vector<16x32xbf16>
    %c32 = arith.constant 32 : index
    %c0_12 = arith.constant 0 : index
    %8 = vector.load %arg9[%c32, %c0_12] : memref<128x32xbf16, #tpu.memory_space<vmem>>, vector<16x32xbf16>
    tpu.vector_store %arg9[%c32, %c0_12], %7 {strides = array<i32>} : memref<128x32xbf16, #tpu.memory_space<vmem>>, vector<16x32xbf16>,
    %c0_13 = arith.constant 0 : index
    %c3 = arith.constant 3 : index
    %c0_14 = arith.constant 0 : index
    %c0_15 = arith.constant 0 : index
    %9 = vector.load %arg2[%c0_13, %c3, %c0_14, %c0_15] : memref<1x8x18x32xbf16, #tpu.memory_space<vmem>>, vector<1x1x16x32xbf16>
    %10 = vector.shape_cast %9 : vector<1x1x16x32xbf16> to vector<16x32xbf16>
    %c48 = arith.constant 48 : index
    %c0_16 = arith.constant 0 : index
    %11 = vector.load %arg9[%c48, %c0_16] : memref<128x32xbf16, #tpu.memory_space<vmem>>, vector<16x32xbf16>
    tpu.vector_store %arg9[%c48, %c0_16], %10 {strides = array<i32>} : memref<128x32xbf16, #tpu.memory_space<vmem>>, vector<16x32xbf16>,
    %c0_17 = arith.constant 0 : index
    %c4 = arith.constant 4 : index
    %c0_18 = arith.constant 0 : index
    %c0_19 = arith.constant 0 : index
    %12 = vector.load %arg2[%c0_17, %c4, %c0_18, %c0_19] : memref<1x8x18x32xbf16, #tpu.memory_space<vmem>>, vector<1x1x16x32xbf16>
    %13 = vector.shape_cast %12 : vector<1x1x16x32xbf16> to vector<16x32xbf16>
    %c64 = arith.constant 64 : index
    %c0_20 = arith.constant 0 : index
    %14 = vector.load %arg9[%c64, %c0_20] : memref<128x32xbf16, #tpu.memory_space<vmem>>, vector<16x32xbf16>
    tpu.vector_store %arg9[%c64, %c0_20], %13 {strides = array<i32>} : memref<128x32xbf16, #tpu.memory_space<vmem>>, vector<16x32xbf16>,
    %c0_21 = arith.constant 0 : index
    %c5 = arith.constant 5 : index
    %c0_22 = arith.constant 0 : index
    %c0_23 = arith.constant 0 : index
    %15 = vector.load %arg2[%c0_21, %c5, %c0_22, %c0_23] : memref<1x8x18x32xbf16, #tpu.memory_space<vmem>>, vector<1x1x16x32xbf16>
    %16 = vector.shape_cast %15 : vector<1x1x16x32xbf16> to vector<16x32xbf16>
    %c80 = arith.constant 80 : index
    %c0_24 = arith.constant 0 : index
    %17 = vector.load %arg9[%c80, %c0_24] : memref<128x32xbf16, #tpu.memory_space<vmem>>, vector<16x32xbf16>
    tpu.vector_store %arg9[%c80, %c0_24], %16 {strides = array<i32>} : memref<128x32xbf16, #tpu.memory_space<vmem>>, vector<16x32xbf16>,
    %c0_25 = arith.constant 0 : index
    %c6 = arith.constant 6 : index
    %c0_26 = arith.constant 0 : index
    %c0_27 = arith.constant 0 : index
    %18 = vector.load %arg2[%c0_25, %c6, %c0_26, %c0_27] : memref<1x8x18x32xbf16, #tpu.memory_space<vmem>>, vector<1x1x16x32xbf16>
    %19 = vector.shape_cast %18 : vector<1x1x16x32xbf16> to vector<16x32xbf16>
    %c96 = arith.constant 96 : index
    %c0_28 = arith.constant 0 : index
    %20 = vector.load %arg9[%c96, %c0_28] : memref<128x32xbf16, #tpu.memory_space<vmem>>, vector<16x32xbf16>
    tpu.vector_store %arg9[%c96, %c0_28], %19 {strides = array<i32>} : memref<128x32xbf16, #tpu.memory_space<vmem>>, vector<16x32xbf16>,
    %c0_29 = arith.constant 0 : index
    %c7 = arith.constant 7 : index
    %c0_30 = arith.constant 0 : index
    %c0_31 = arith.constant 0 : index
    %21 = vector.load %arg2[%c0_29, %c7, %c0_30, %c0_31] : memref<1x8x18x32xbf16, #tpu.memory_space<vmem>>, vector<1x1x16x32xbf16>
    %22 = vector.shape_cast %21 : vector<1x1x16x32xbf16> to vector<16x32xbf16>
    %c112 = arith.constant 112 : index
    %c0_32 = arith.constant 0 : index
    %23 = vector.load %arg9[%c112, %c0_32] : memref<128x32xbf16, #tpu.memory_space<vmem>>, vector<16x32xbf16>
    tpu.vector_store %arg9[%c112, %c0_32], %22 {strides = array<i32>} : memref<128x32xbf16, #tpu.memory_space<vmem>>, vector<16x32xbf16>,
    %c0_33 = arith.constant 0 : index
    %c0_34 = arith.constant 0 : index
    %24 = vector.load %arg9[%c0_33, %c0_34] : memref<128x32xbf16, #tpu.memory_space<vmem>>, vector<128x32xbf16>
    %c0_35 = arith.constant 0 : index
    %c0_36 = arith.constant 0 : index
    %c0_37 = arith.constant 0 : index
    %c0_38 = arith.constant 0 : index
    %25 = vector.load %arg5[%c0_35, %c0_36, %c0_37, %c0_38] : memref<3x3x32x32xbf16, #tpu.memory_space<vmem>>, vector<1x1x32x32xbf16>
    %26 = vector.shape_cast %25 : vector<1x1x32x32xbf16> to vector<32x32xbf16>
    %cst = arith.constant dense<0.000000e+00> : vector<128x32xf32>
    %27 = tpu.matmul %24, %26, %cst {dimension_numbers = #tpu.dot_dimension_numbers<[1], [0], [0], [1], [0, 0, 1, 1], [], []>} : vector<128x32xbf16>, vector<32x32xbf16>, vector<128x32xf32> -> vector<128x32xf32>
    %c0_39 = arith.constant 0 : index
    %c0_40 = arith.constant 0 : index
    %28 = vector.load %arg7[%c0_39, %c0_40] : memref<128x32xf32, #tpu.memory_space<vmem>>, vector<128x32xf32>
    tpu.vector_store %arg7[%c0_39, %c0_40], %27 {strides = array<i32>} : memref<128x32xf32, #tpu.memory_space<vmem>>, vector<128x32xf32>,
    %c0_41 = arith.constant 0 : index
    %c0_42 = arith.constant 0 : index
    %c1_43 = arith.constant 1 : index
    %c0_44 = arith.constant 0 : index
    %29 = vector.load %arg2[%c0_41, %c0_42, %c1_43, %c0_44] : memref<1x8x18x32xbf16, #tpu.memory_space<vmem>>, vector<1x1x16x32xbf16>
    %30 = vector.shape_cast %29 : vector<1x1x16x32xbf16> to vector<16x32xbf16>
    %c0_45 = arith.constant 0 : index
    %c0_46 = arith.constant 0 : index
    %31 = vector.load %arg9[%c0_45, %c0_46] : memref<128x32xbf16, #tpu.memory_space<vmem>>, vector<16x32xbf16>
    tpu.vector_store %arg9[%c0_45, %c0_46], %30 {strides = array<i32>} : memref<128x32xbf16, #tpu.memory_space<vmem>>, vector<16x32xbf16>,
    %c0_47 = arith.constant 0 : index
    %c1_48 = arith.constant 1 : index
    %c1_49 = arith.constant 1 : index
    %c0_50 = arith.constant 0 : index
    %32 = vector.load %arg2[%c0_47, %c1_48, %c1_49, %c0_50] : memref<1x8x18x32xbf16, #tpu.memory_space<vmem>>, vector<1x1x16x32xbf16>
    %33 = vector.shape_cast %32 : vector<1x1x16x32xbf16> to vector<16x32xbf16>
    %c16_51 = arith.constant 16 : index
    %c0_52 = arith.constant 0 : index
    %34 = vector.load %arg9[%c16_51, %c0_52] : memref<128x32xbf16, #tpu.memory_space<vmem>>, vector<16x32xbf16>
    tpu.vector_store %arg9[%c16_51, %c0_52], %33 {strides = array<i32>} : memref<128x32xbf16, #tpu.memory_space<vmem>>, vector<16x32xbf16>,
    %c0_53 = arith.constant 0 : index
    %c2_54 = arith.constant 2 : index
    %c1_55 = arith.constant 1 : index
    %c0_56 = arith.constant 0 : index
    %35 = vector.load %arg2[%c0_53, %c2_54, %c1_55, %c0_56] : memref<1x8x18x32xbf16, #tpu.memory_space<vmem>>, vector<1x1x16x32xbf16>
    %36 = vector.shape_cast %35 : vector<1x1x16x32xbf16> to vector<16x32xbf16>
    %c32_57 = arith.constant 32 : index
    %c0_58 = arith.constant 0 : index
    %37 = vector.load %arg9[%c32_57, %c0_58] : memref<128x32xbf16, #tpu.memory_space<vmem>>, vector<16x32xbf16>
    tpu.vector_store %arg9[%c32_57, %c0_58], %36 {strides = array<i32>} : memref<128x32xbf16, #tpu.memory_space<vmem>>, vector<16x32xbf16>,
    %c0_59 = arith.constant 0 : index
    %c3_60 = arith.constant 3 : index
    %c1_61 = arith.constant 1 : index
    %c0_62 = arith.constant 0 : index
    %38 = vector.load %arg2[%c0_59, %c3_60, %c1_61, %c0_62] : memref<1x8x18x32xbf16, #tpu.memory_space<vmem>>, vector<1x1x16x32xbf16>
    %39 = vector.shape_cast %38 : vector<1x1x16x32xbf16> to vector<16x32xbf16>
    %c48_63 = arith.constant 48 : index
    %c0_64 = arith.constant 0 : index
    %40 = vector.load %arg9[%c48_63, %c0_64] : memref<128x32xbf16, #tpu.memory_space<vmem>>, vector<16x32xbf16>
    tpu.vector_store %arg9[%c48_63, %c0_64], %39 {strides = array<i32>} : memref<128x32xbf16, #tpu.memory_space<vmem>>, vector<16x32xbf16>,
    %c0_65 = arith.constant 0 : index
    %c4_66 = arith.constant 4 : index
    %c1_67 = arith.constant 1 : index
    %c0_68 = arith.constant 0 : index
    %41 = vector.load %arg2[%c0_65, %c4_66, %c1_67, %c0_68] : memref<1x8x18x32xbf16, #tpu.memory_space<vmem>>, vector<1x1x16x32xbf16>
    %42 = vector.shape_cast %41 : vector<1x1x16x32xbf16> to vector<16x32xbf16>
    %c64_69 = arith.constant 64 : index
    %c0_70 = arith.constant 0 : index
    %43 = vector.load %arg9[%c64_69, %c0_70] : memref<128x32xbf16, #tpu.memory_space<vmem>>, vector<16x32xbf16>
    tpu.vector_store %arg9[%c64_69, %c0_70], %42 {strides = array<i32>} : memref<128x32xbf16, #tpu.memory_space<vmem>>, vector<16x32xbf16>,
    %c0_71 = arith.constant 0 : index
    %c5_72 = arith.constant 5 : index
    %c1_73 = arith.constant 1 : index
    %c0_74 = arith.constant 0 : index
    %44 = vector.load %arg2[%c0_71, %c5_72, %c1_73, %c0_74] : memref<1x8x18x32xbf16, #tpu.memory_space<vmem>>, vector<1x1x16x32xbf16>
    %45 = vector.shape_cast %44 : vector<1x1x16x32xbf16> to vector<16x32xbf16>
    %c80_75 = arith.constant 80 : index
    %c0_76 = arith.constant 0 : index
    %46 = vector.load %arg9[%c80_75, %c0_76] : memref<128x32xbf16, #tpu.memory_space<vmem>>, vector<16x32xbf16>
    tpu.vector_store %arg9[%c80_75, %c0_76], %45 {strides = array<i32>} : memref<128x32xbf16, #tpu.memory_space<vmem>>, vector<16x32xbf16>,
    %c0_77 = arith.constant 0 : index
    %c6_78 = arith.constant 6 : index
    %c1_79 = arith.constant 1 : index
    %c0_80 = arith.constant 0 : index
    %47 = vector.load %arg2[%c0_77, %c6_78, %c1_79, %c0_80] : memref<1x8x18x32xbf16, #tpu.memory_space<vmem>>, vector<1x1x16x32xbf16>
    %48 = vector.shape_cast %47 : vector<1x1x16x32xbf16> to vector<16x32xbf16>
    %c96_81 = arith.constant 96 : index
    %c0_82 = arith.constant 0 : index
    %49 = vector.load %arg9[%c96_81, %c0_82] : memref<128x32xbf16, #tpu.memory_space<vmem>>, vector<16x32xbf16>
    tpu.vector_store %arg9[%c96_81, %c0_82], %48 {strides = array<i32>} : memref<128x32xbf16, #tpu.memory_space<vmem>>, vector<16x32xbf16>,
    %c0_83 = arith.constant 0 : index
    %c7_84 = arith.constant 7 : index
    %c1_85 = arith.constant 1 : index
    %c0_86 = arith.constant 0 : index
    %50 = vector.load %arg2[%c0_83, %c7_84, %c1_85, %c0_86] : memref<1x8x18x32xbf16, #tpu.memory_space<vmem>>, vector<1x1x16x32xbf16>
    %51 = vector.shape_cast %50 : vector<1x1x16x32xbf16> to vector<16x32xbf16>
    %c112_87 = arith.constant 112 : index
    %c0_88 = arith.constant 0 : index
    %52 = vector.load %arg9[%c112_87, %c0_88] : memref<128x32xbf16, #tpu.memory_space<vmem>>, vector<16x32xbf16>
    tpu.vector_store %arg9[%c112_87, %c0_88], %51 {strides = array<i32>} : memref<128x32xbf16, #tpu.memory_space<vmem>>, vector<16x32xbf16>,
    %c0_89 = arith.constant 0 : index
    %c0_90 = arith.constant 0 : index
    %53 = vector.load %arg9[%c0_89, %c0_90] : memref<128x32xbf16, #tpu.memory_space<vmem>>, vector<128x32xbf16>
    %c0_91 = arith.constant 0 : index
    %c1_92 = arith.constant 1 : index
    %c0_93 = arith.constant 0 : index
    %c0_94 = arith.constant 0 : index
    %54 = vector.load %arg5[%c0_91, %c1_92, %c0_93, %c0_94] : memref<3x3x32x32xbf16, #tpu.memory_space<vmem>>, vector<1x1x32x32xbf16>
    %55 = vector.shape_cast %54 : vector<1x1x32x32xbf16> to vector<32x32xbf16>
    %cst_95 = arith.constant dense<0.000000e+00> : vector<128x32xf32>
    %56 = tpu.matmul %53, %55, %cst_95 {dimension_numbers = #tpu.dot_dimension_numbers<[1], [0], [0], [1], [0, 0, 1, 1], [], []>} : vector<128x32xbf16>, vector<32x32xbf16>, vector<128x32xf32> -> vector<128x32xf32>
    %c0_96 = arith.constant 0 : index
    %c0_97 = arith.constant 0 : index
    %57 = vector.load %arg7[%c0_96, %c0_97] : memref<128x32xf32, #tpu.memory_space<vmem>>, vector<128x32xf32>
    %58 = arith.addf %57, %56 : vector<128x32xf32>
    %c0_98 = arith.constant 0 : index
    %c0_99 = arith.constant 0 : index
    %59 = vector.load %arg7[%c0_98, %c0_99] : memref<128x32xf32, #tpu.memory_space<vmem>>, vector<128x32xf32>
    tpu.vector_store %arg7[%c0_98, %c0_99], %58 {strides = array<i32>} : memref<128x32xf32, #tpu.memory_space<vmem>>, vector<128x32xf32>,
    %c0_100 = arith.constant 0 : index
    %c0_101 = arith.constant 0 : index
    %c2_102 = arith.constant 2 : index
    %c0_103 = arith.constant 0 : index
    %60 = vector.load %arg2[%c0_100, %c0_101, %c2_102, %c0_103] : memref<1x8x18x32xbf16, #tpu.memory_space<vmem>>, vector<1x1x16x32xbf16>
    %61 = vector.shape_cast %60 : vector<1x1x16x32xbf16> to vector<16x32xbf16>
    %c0_104 = arith.constant 0 : index
    %c0_105 = arith.constant 0 : index
    %62 = vector.load %arg9[%c0_104, %c0_105] : memref<128x32xbf16, #tpu.memory_space<vmem>>, vector<16x32xbf16>
    tpu.vector_store %arg9[%c0_104, %c0_105], %61 {strides = array<i32>} : memref<128x32xbf16, #tpu.memory_space<vmem>>, vector<16x32xbf16>,
    %c0_106 = arith.constant 0 : index
    %c1_107 = arith.constant 1 : index
    %c2_108 = arith.constant 2 : index
    %c0_109 = arith.constant 0 : index
    %63 = vector.load %arg2[%c0_106, %c1_107, %c2_108, %c0_109] : memref<1x8x18x32xbf16, #tpu.memory_space<vmem>>, vector<1x1x16x32xbf16>
    %64 = vector.shape_cast %63 : vector<1x1x16x32xbf16> to vector<16x32xbf16>
    %c16_110 = arith.constant 16 : index
    %c0_111 = arith.constant 0 : index
    %65 = vector.load %arg9[%c16_110, %c0_111] : memref<128x32xbf16, #tpu.memory_space<vmem>>, vector<16x32xbf16>
    tpu.vector_store %arg9[%c16_110, %c0_111], %64 {strides = array<i32>} : memref<128x32xbf16, #tpu.memory_space<vmem>>, vector<16x32xbf16>,
    %c0_112 = arith.constant 0 : index
    %c2_113 = arith.constant 2 : index
    %c2_114 = arith.constant 2 : index
    %c0_115 = arith.constant 0 : index
    %66 = vector.load %arg2[%c0_112, %c2_113, %c2_114, %c0_115] : memref<1x8x18x32xbf16, #tpu.memory_space<vmem>>, vector<1x1x16x32xbf16>
    %67 = vector.shape_cast %66 : vector<1x1x16x32xbf16> to vector<16x32xbf16>
    %c32_116 = arith.constant 32 : index
    %c0_117 = arith.constant 0 : index
    %68 = vector.load %arg9[%c32_116, %c0_117] : memref<128x32xbf16, #tpu.memory_space<vmem>>, vector<16x32xbf16>
    tpu.vector_store %arg9[%c32_116, %c0_117], %67 {strides = array<i32>} : memref<128x32xbf16, #tpu.memory_space<vmem>>, vector<16x32xbf16>,
    %c0_118 = arith.constant 0 : index
    %c3_119 = arith.constant 3 : index
    %c2_120 = arith.constant 2 : index
    %c0_121 = arith.constant 0 : index
    %69 = vector.load %arg2[%c0_118, %c3_119, %c2_120, %c0_121] : memref<1x8x18x32xbf16, #tpu.memory_space<vmem>>, vector<1x1x16x32xbf16>
    %70 = vector.shape_cast %69 : vector<1x1x16x32xbf16> to vector<16x32xbf16>
    %c48_122 = arith.constant 48 : index
    %c0_123 = arith.constant 0 : index
    %71 = vector.load %arg9[%c48_122, %c0_123] : memref<128x32xbf16, #tpu.memory_space<vmem>>, vector<16x32xbf16>
    tpu.vector_store %arg9[%c48_122, %c0_123], %70 {strides = array<i32>} : memref<128x32xbf16, #tpu.memory_space<vmem>>, vector<16x32xbf16>,
    %c0_124 = arith.constant 0 : index
    %c4_125 = arith.constant 4 : index
    %c2_126 = arith.constant 2 : index
    %c0_127 = arith.constant 0 : index
    %72 = vector.load %arg2[%c0_124, %c4_125, %c2_126, %c0_127] : memref<1x8x18x32xbf16, #tpu.memory_space<vmem>>, vector<1x1x16x32xbf16>
    %73 = vector.shape_cast %72 : vector<1x1x16x32xbf16> to vector<16x32xbf16>
    %c64_128 = arith.constant 64 : index
    %c0_129 = arith.constant 0 : index
    %74 = vector.load %arg9[%c64_128, %c0_129] : memref<128x32xbf16, #tpu.memory_space<vmem>>, vector<16x32xbf16>
    tpu.vector_store %arg9[%c64_128, %c0_129], %73 {strides = array<i32>} : memref<128x32xbf16, #tpu.memory_space<vmem>>, vector<16x32xbf16>,
    %c0_130 = arith.constant 0 : index
    %c5_131 = arith.constant 5 : index
    %c2_132 = arith.constant 2 : index
    %c0_133 = arith.constant 0 : index
    %75 = vector.load %arg2[%c0_130, %c5_131, %c2_132, %c0_133] : memref<1x8x18x32xbf16, #tpu.memory_space<vmem>>, vector<1x1x16x32xbf16>
    %76 = vector.shape_cast %75 : vector<1x1x16x32xbf16> to vector<16x32xbf16>
    %c80_134 = arith.constant 80 : index
    %c0_135 = arith.constant 0 : index
    %77 = vector.load %arg9[%c80_134, %c0_135] : memref<128x32xbf16, #tpu.memory_space<vmem>>, vector<16x32xbf16>
    tpu.vector_store %arg9[%c80_134, %c0_135], %76 {strides = array<i32>} : memref<128x32xbf16, #tpu.memory_space<vmem>>, vector<16x32xbf16>,
    %c0_136 = arith.constant 0 : index
    %c6_137 = arith.constant 6 : index
    %c2_138 = arith.constant 2 : index
    %c0_139 = arith.constant 0 : index
    %78 = vector.load %arg2[%c0_136, %c6_137, %c2_138, %c0_139] : memref<1x8x18x32xbf16, #tpu.memory_space<vmem>>, vector<1x1x16x32xbf16>
    %79 = vector.shape_cast %78 : vector<1x1x16x32xbf16> to vector<16x32xbf16>
    %c96_140 = arith.constant 96 : index
    %c0_141 = arith.constant 0 : index
    %80 = vector.load %arg9[%c96_140, %c0_141] : memref<128x32xbf16, #tpu.memory_space<vmem>>, vector<16x32xbf16>
    tpu.vector_store %arg9[%c96_140, %c0_141], %79 {strides = array<i32>} : memref<128x32xbf16, #tpu.memory_space<vmem>>, vector<16x32xbf16>,
    %c0_142 = arith.constant 0 : index
    %c7_143 = arith.constant 7 : index
    %c2_144 = arith.constant 2 : index
    %c0_145 = arith.constant 0 : index
    %81 = vector.load %arg2[%c0_142, %c7_143, %c2_144, %c0_145] : memref<1x8x18x32xbf16, #tpu.memory_space<vmem>>, vector<1x1x16x32xbf16>
    %82 = vector.shape_cast %81 : vector<1x1x16x32xbf16> to vector<16x32xbf16>
    %c112_146 = arith.constant 112 : index
    %c0_147 = arith.constant 0 : index
    %83 = vector.load %arg9[%c112_146, %c0_147] : memref<128x32xbf16, #tpu.memory_space<vmem>>, vector<16x32xbf16>
    tpu.vector_store %arg9[%c112_146, %c0_147], %82 {strides = array<i32>} : memref<128x32xbf16, #tpu.memory_space<vmem>>, vector<16x32xbf16>,
    %c0_148 = arith.constant 0 : index
    %c0_149 = arith.constant 0 : index
    %84 = vector.load %arg9[%c0_148, %c0_149] : memref<128x32xbf16, #tpu.memory_space<vmem>>, vector<128x32xbf16>
    %c0_150 = arith.constant 0 : index
    %c2_151 = arith.constant 2 : index
    %c0_152 = arith.constant 0 : index
    %c0_153 = arith.constant 0 : index
    %85 = vector.load %arg5[%c0_150, %c2_151, %c0_152, %c0_153] : memref<3x3x32x32xbf16, #tpu.memory_space<vmem>>, vector<1x1x32x32xbf16>
    %86 = vector.shape_cast %85 : vector<1x1x32x32xbf16> to vector<32x32xbf16>
    %cst_154 = arith.constant dense<0.000000e+00> : vector<128x32xf32>
    %87 = tpu.matmul %84, %86, %cst_154 {dimension_numbers = #tpu.dot_dimension_numbers<[1], [0], [0], [1], [0, 0, 1, 1], [], []>} : vector<128x32xbf16>, vector<32x32xbf16>, vector<128x32xf32> -> vector<128x32xf32>
    %c0_155 = arith.constant 0 : index
    %c0_156 = arith.constant 0 : index
    %88 = vector.load %arg7[%c0_155, %c0_156] : memref<128x32xf32, #tpu.memory_space<vmem>>, vector<128x32xf32>
    %89 = arith.addf %88, %87 : vector<128x32xf32>
    %c0_157 = arith.constant 0 : index
    %c0_158 = arith.constant 0 : index
    %90 = vector.load %arg7[%c0_157, %c0_158] : memref<128x32xf32, #tpu.memory_space<vmem>>, vector<128x32xf32>
    tpu.vector_store %arg7[%c0_157, %c0_158], %89 {strides = array<i32>} : memref<128x32xf32, #tpu.memory_space<vmem>>, vector<128x32xf32>,
    %c0_159 = arith.constant 0 : index
    %c1_160 = arith.constant 1 : index
    %c0_161 = arith.constant 0 : index
    %c0_162 = arith.constant 0 : index
    %91 = vector.load %arg2[%c0_159, %c1_160, %c0_161, %c0_162] : memref<1x8x18x32xbf16, #tpu.memory_space<vmem>>, vector<1x1x16x32xbf16>
    %92 = vector.shape_cast %91 : vector<1x1x16x32xbf16> to vector<16x32xbf16>
    %c0_163 = arith.constant 0 : index
    %c0_164 = arith.constant 0 : index
    %93 = vector.load %arg9[%c0_163, %c0_164] : memref<128x32xbf16, #tpu.memory_space<vmem>>, vector<16x32xbf16>
    tpu.vector_store %arg9[%c0_163, %c0_164], %92 {strides = array<i32>} : memref<128x32xbf16, #tpu.memory_space<vmem>>, vector<16x32xbf16>,
    %c0_165 = arith.constant 0 : index
    %c2_166 = arith.constant 2 : index
    %c0_167 = arith.constant 0 : index
    %c0_168 = arith.constant 0 : index
    %94 = vector.load %arg2[%c0_165, %c2_166, %c0_167, %c0_168] : memref<1x8x18x32xbf16, #tpu.memory_space<vmem>>, vector<1x1x16x32xbf16>
    %95 = vector.shape_cast %94 : vector<1x1x16x32xbf16> to vector<16x32xbf16>
    %c16_169 = arith.constant 16 : index
    %c0_170 = arith.constant 0 : index
    %96 = vector.load %arg9[%c16_169, %c0_170] : memref<128x32xbf16, #tpu.memory_space<vmem>>, vector<16x32xbf16>
    tpu.vector_store %arg9[%c16_169, %c0_170], %95 {strides = array<i32>} : memref<128x32xbf16, #tpu.memory_space<vmem>>, vector<16x32xbf16>,
    %c0_171 = arith.constant 0 : index
    %c3_172 = arith.constant 3 : index
    %c0_173 = arith.constant 0 : index
    %c0_174 = arith.constant 0 : index
    %97 = vector.load %arg2[%c0_171, %c3_172, %c0_173, %c0_174] : memref<1x8x18x32xbf16, #tpu.memory_space<vmem>>, vector<1x1x16x32xbf16>
    %98 = vector.shape_cast %97 : vector<1x1x16x32xbf16> to vector<16x32xbf16>
    %c32_175 = arith.constant 32 : index
    %c0_176 = arith.constant 0 : index
    %99 = vector.load %arg9[%c32_175, %c0_176] : memref<128x32xbf16, #tpu.memory_space<vmem>>, vector<16x32xbf16>
    tpu.vector_store %arg9[%c32_175, %c0_176], %98 {strides = array<i32>} : memref<128x32xbf16, #tpu.memory_space<vmem>>, vector<16x32xbf16>,
    %c0_177 = arith.constant 0 : index
    %c4_178 = arith.constant 4 : index
    %c0_179 = arith.constant 0 : index
    %c0_180 = arith.constant 0 : index
    %100 = vector.load %arg2[%c0_177, %c4_178, %c0_179, %c0_180] : memref<1x8x18x32xbf16, #tpu.memory_space<vmem>>, vector<1x1x16x32xbf16>
    %101 = vector.shape_cast %100 : vector<1x1x16x32xbf16> to vector<16x32xbf16>
    %c48_181 = arith.constant 48 : index
    %c0_182 = arith.constant 0 : index
    %102 = vector.load %arg9[%c48_181, %c0_182] : memref<128x32xbf16, #tpu.memory_space<vmem>>, vector<16x32xbf16>
    tpu.vector_store %arg9[%c48_181, %c0_182], %101 {strides = array<i32>} : memref<128x32xbf16, #tpu.memory_space<vmem>>, vector<16x32xbf16>,
    %c0_183 = arith.constant 0 : index
    %c5_184 = arith.constant 5 : index
    %c0_185 = arith.constant 0 : index
    %c0_186 = arith.constant 0 : index
    %103 = vector.load %arg2[%c0_183, %c5_184, %c0_185, %c0_186] : memref<1x8x18x32xbf16, #tpu.memory_space<vmem>>, vector<1x1x16x32xbf16>
    %104 = vector.shape_cast %103 : vector<1x1x16x32xbf16> to vector<16x32xbf16>
    %c64_187 = arith.constant 64 : index
    %c0_188 = arith.constant 0 : index
    %105 = vector.load %arg9[%c64_187, %c0_188] : memref<128x32xbf16, #tpu.memory_space<vmem>>, vector<16x32xbf16>
    tpu.vector_store %arg9[%c64_187, %c0_188], %104 {strides = array<i32>} : memref<128x32xbf16, #tpu.memory_space<vmem>>, vector<16x32xbf16>,
    %c0_189 = arith.constant 0 : index
    %c6_190 = arith.constant 6 : index
    %c0_191 = arith.constant 0 : index
    %c0_192 = arith.constant 0 : index
    %106 = vector.load %arg2[%c0_189, %c6_190, %c0_191, %c0_192] : memref<1x8x18x32xbf16, #tpu.memory_space<vmem>>, vector<1x1x16x32xbf16>
    %107 = vector.shape_cast %106 : vector<1x1x16x32xbf16> to vector<16x32xbf16>
    %c80_193 = arith.constant 80 : index
    %c0_194 = arith.constant 0 : index
    %108 = vector.load %arg9[%c80_193, %c0_194] : memref<128x32xbf16, #tpu.memory_space<vmem>>, vector<16x32xbf16>
    tpu.vector_store %arg9[%c80_193, %c0_194], %107 {strides = array<i32>} : memref<128x32xbf16, #tpu.memory_space<vmem>>, vector<16x32xbf16>,
    %c0_195 = arith.constant 0 : index
    %c7_196 = arith.constant 7 : index
    %c0_197 = arith.constant 0 : index
    %c0_198 = arith.constant 0 : index
    %109 = vector.load %arg2[%c0_195, %c7_196, %c0_197, %c0_198] : memref<1x8x18x32xbf16, #tpu.memory_space<vmem>>, vector<1x1x16x32xbf16>
    %110 = vector.shape_cast %109 : vector<1x1x16x32xbf16> to vector<16x32xbf16>
    %c96_199 = arith.constant 96 : index
    %c0_200 = arith.constant 0 : index
    %111 = vector.load %arg9[%c96_199, %c0_200] : memref<128x32xbf16, #tpu.memory_space<vmem>>, vector<16x32xbf16>
    tpu.vector_store %arg9[%c96_199, %c0_200], %110 {strides = array<i32>} : memref<128x32xbf16, #tpu.memory_space<vmem>>, vector<16x32xbf16>,
    %c0_201 = arith.constant 0 : index
    %c0_202 = arith.constant 0 : index
    %c0_203 = arith.constant 0 : index
    %c0_204 = arith.constant 0 : index
    %112 = vector.load %arg3[%c0_201, %c0_202, %c0_203, %c0_204] : memref<1x1x18x32xbf16, #tpu.memory_space<vmem>>, vector<1x1x16x32xbf16>
    %113 = vector.shape_cast %112 : vector<1x1x16x32xbf16> to vector<16x32xbf16>
    %c112_205 = arith.constant 112 : index
    %c0_206 = arith.constant 0 : index
    %114 = vector.load %arg9[%c112_205, %c0_206] : memref<128x32xbf16, #tpu.memory_space<vmem>>, vector<16x32xbf16>
    tpu.vector_store %arg9[%c112_205, %c0_206], %113 {strides = array<i32>} : memref<128x32xbf16, #tpu.memory_space<vmem>>, vector<16x32xbf16>,
    %c0_207 = arith.constant 0 : index
    %c0_208 = arith.constant 0 : index
    %115 = vector.load %arg9[%c0_207, %c0_208] : memref<128x32xbf16, #tpu.memory_space<vmem>>, vector<128x32xbf16>
    %c1_209 = arith.constant 1 : index
    %c0_210 = arith.constant 0 : index
    %c0_211 = arith.constant 0 : index
    %c0_212 = arith.constant 0 : index
    %116 = vector.load %arg5[%c1_209, %c0_210, %c0_211, %c0_212] : memref<3x3x32x32xbf16, #tpu.memory_space<vmem>>, vector<1x1x32x32xbf16>
    %117 = vector.shape_cast %116 : vector<1x1x32x32xbf16> to vector<32x32xbf16>
    %cst_213 = arith.constant dense<0.000000e+00> : vector<128x32xf32>
    %118 = tpu.matmul %115, %117, %cst_213 {dimension_numbers = #tpu.dot_dimension_numbers<[1], [0], [0], [1], [0, 0, 1, 1], [], []>} : vector<128x32xbf16>, vector<32x32xbf16>, vector<128x32xf32> -> vector<128x32xf32>
    %c0_214 = arith.constant 0 : index
    %c0_215 = arith.constant 0 : index
    %119 = vector.load %arg7[%c0_214, %c0_215] : memref<128x32xf32, #tpu.memory_space<vmem>>, vector<128x32xf32>
    %120 = arith.addf %119, %118 : vector<128x32xf32>
    %c0_216 = arith.constant 0 : index
    %c0_217 = arith.constant 0 : index
    %121 = vector.load %arg7[%c0_216, %c0_217] : memref<128x32xf32, #tpu.memory_space<vmem>>, vector<128x32xf32>
    tpu.vector_store %arg7[%c0_216, %c0_217], %120 {strides = array<i32>} : memref<128x32xf32, #tpu.memory_space<vmem>>, vector<128x32xf32>,
    %c0_218 = arith.constant 0 : index
    %c1_219 = arith.constant 1 : index
    %c1_220 = arith.constant 1 : index
    %c0_221 = arith.constant 0 : index
    %122 = vector.load %arg2[%c0_218, %c1_219, %c1_220, %c0_221] : memref<1x8x18x32xbf16, #tpu.memory_space<vmem>>, vector<1x1x16x32xbf16>
    %123 = vector.shape_cast %122 : vector<1x1x16x32xbf16> to vector<16x32xbf16>
    %c0_222 = arith.constant 0 : index
    %c0_223 = arith.constant 0 : index
    %124 = vector.load %arg9[%c0_222, %c0_223] : memref<128x32xbf16, #tpu.memory_space<vmem>>, vector<16x32xbf16>
    tpu.vector_store %arg9[%c0_222, %c0_223], %123 {strides = array<i32>} : memref<128x32xbf16, #tpu.memory_space<vmem>>, vector<16x32xbf16>,
    %c0_224 = arith.constant 0 : index
    %c2_225 = arith.constant 2 : index
    %c1_226 = arith.constant 1 : index
    %c0_227 = arith.constant 0 : index
    %125 = vector.load %arg2[%c0_224, %c2_225, %c1_226, %c0_227] : memref<1x8x18x32xbf16, #tpu.memory_space<vmem>>, vector<1x1x16x32xbf16>
    %126 = vector.shape_cast %125 : vector<1x1x16x32xbf16> to vector<16x32xbf16>
    %c16_228 = arith.constant 16 : index
    %c0_229 = arith.constant 0 : index
    %127 = vector.load %arg9[%c16_228, %c0_229] : memref<128x32xbf16, #tpu.memory_space<vmem>>, vector<16x32xbf16>
    tpu.vector_store %arg9[%c16_228, %c0_229], %126 {strides = array<i32>} : memref<128x32xbf16, #tpu.memory_space<vmem>>, vector<16x32xbf16>,
    %c0_230 = arith.constant 0 : index
    %c3_231 = arith.constant 3 : index
    %c1_232 = arith.constant 1 : index
    %c0_233 = arith.constant 0 : index
    %128 = vector.load %arg2[%c0_230, %c3_231, %c1_232, %c0_233] : memref<1x8x18x32xbf16, #tpu.memory_space<vmem>>, vector<1x1x16x32xbf16>
    %129 = vector.shape_cast %128 : vector<1x1x16x32xbf16> to vector<16x32xbf16>
    %c32_234 = arith.constant 32 : index
    %c0_235 = arith.constant 0 : index
    %130 = vector.load %arg9[%c32_234, %c0_235] : memref<128x32xbf16, #tpu.memory_space<vmem>>, vector<16x32xbf16>
    tpu.vector_store %arg9[%c32_234, %c0_235], %129 {strides = array<i32>} : memref<128x32xbf16, #tpu.memory_space<vmem>>, vector<16x32xbf16>,
    %c0_236 = arith.constant 0 : index
    %c4_237 = arith.constant 4 : index
    %c1_238 = arith.constant 1 : index
    %c0_239 = arith.constant 0 : index
    %131 = vector.load %arg2[%c0_236, %c4_237, %c1_238, %c0_239] : memref<1x8x18x32xbf16, #tpu.memory_space<vmem>>, vector<1x1x16x32xbf16>
    %132 = vector.shape_cast %131 : vector<1x1x16x32xbf16> to vector<16x32xbf16>
    %c48_240 = arith.constant 48 : index
    %c0_241 = arith.constant 0 : index
    %133 = vector.load %arg9[%c48_240, %c0_241] : memref<128x32xbf16, #tpu.memory_space<vmem>>, vector<16x32xbf16>
    tpu.vector_store %arg9[%c48_240, %c0_241], %132 {strides = array<i32>} : memref<128x32xbf16, #tpu.memory_space<vmem>>, vector<16x32xbf16>,
    %c0_242 = arith.constant 0 : index
    %c5_243 = arith.constant 5 : index
    %c1_244 = arith.constant 1 : index
    %c0_245 = arith.constant 0 : index
    %134 = vector.load %arg2[%c0_242, %c5_243, %c1_244, %c0_245] : memref<1x8x18x32xbf16, #tpu.memory_space<vmem>>, vector<1x1x16x32xbf16>
    %135 = vector.shape_cast %134 : vector<1x1x16x32xbf16> to vector<16x32xbf16>
    %c64_246 = arith.constant 64 : index
    %c0_247 = arith.constant 0 : index
    %136 = vector.load %arg9[%c64_246, %c0_247] : memref<128x32xbf16, #tpu.memory_space<vmem>>, vector<16x32xbf16>
    tpu.vector_store %arg9[%c64_246, %c0_247], %135 {strides = array<i32>} : memref<128x32xbf16, #tpu.memory_space<vmem>>, vector<16x32xbf16>,
    %c0_248 = arith.constant 0 : index
    %c6_249 = arith.constant 6 : index
    %c1_250 = arith.constant 1 : index
    %c0_251 = arith.constant 0 : index
    %137 = vector.load %arg2[%c0_248, %c6_249, %c1_250, %c0_251] : memref<1x8x18x32xbf16, #tpu.memory_space<vmem>>, vector<1x1x16x32xbf16>
    %138 = vector.shape_cast %137 : vector<1x1x16x32xbf16> to vector<16x32xbf16>
    %c80_252 = arith.constant 80 : index
    %c0_253 = arith.constant 0 : index
    %139 = vector.load %arg9[%c80_252, %c0_253] : memref<128x32xbf16, #tpu.memory_space<vmem>>, vector<16x32xbf16>
    tpu.vector_store %arg9[%c80_252, %c0_253], %138 {strides = array<i32>} : memref<128x32xbf16, #tpu.memory_space<vmem>>, vector<16x32xbf16>,
    %c0_254 = arith.constant 0 : index
    %c7_255 = arith.constant 7 : index
    %c1_256 = arith.constant 1 : index
    %c0_257 = arith.constant 0 : index
    %140 = vector.load %arg2[%c0_254, %c7_255, %c1_256, %c0_257] : memref<1x8x18x32xbf16, #tpu.memory_space<vmem>>, vector<1x1x16x32xbf16>
    %141 = vector.shape_cast %140 : vector<1x1x16x32xbf16> to vector<16x32xbf16>
    %c96_258 = arith.constant 96 : index
    %c0_259 = arith.constant 0 : index
    %142 = vector.load %arg9[%c96_258, %c0_259] : memref<128x32xbf16, #tpu.memory_space<vmem>>, vector<16x32xbf16>
    tpu.vector_store %arg9[%c96_258, %c0_259], %141 {strides = array<i32>} : memref<128x32xbf16, #tpu.memory_space<vmem>>, vector<16x32xbf16>,
    %c0_260 = arith.constant 0 : index
    %c0_261 = arith.constant 0 : index
    %c1_262 = arith.constant 1 : index
    %c0_263 = arith.constant 0 : index
    %143 = vector.load %arg3[%c0_260, %c0_261, %c1_262, %c0_263] : memref<1x1x18x32xbf16, #tpu.memory_space<vmem>>, vector<1x1x16x32xbf16>
    %144 = vector.shape_cast %143 : vector<1x1x16x32xbf16> to vector<16x32xbf16>
    %c112_264 = arith.constant 112 : index
    %c0_265 = arith.constant 0 : index
    %145 = vector.load %arg9[%c112_264, %c0_265] : memref<128x32xbf16, #tpu.memory_space<vmem>>, vector<16x32xbf16>
    tpu.vector_store %arg9[%c112_264, %c0_265], %144 {strides = array<i32>} : memref<128x32xbf16, #tpu.memory_space<vmem>>, vector<16x32xbf16>,
    %c0_266 = arith.constant 0 : index
    %c0_267 = arith.constant 0 : index
    %146 = vector.load %arg9[%c0_266, %c0_267] : memref<128x32xbf16, #tpu.memory_space<vmem>>, vector<128x32xbf16>
    %c1_268 = arith.constant 1 : index
    %c1_269 = arith.constant 1 : index
    %c0_270 = arith.constant 0 : index
    %c0_271 = arith.constant 0 : index
    %147 = vector.load %arg5[%c1_268, %c1_269, %c0_270, %c0_271] : memref<3x3x32x32xbf16, #tpu.memory_space<vmem>>, vector<1x1x32x32xbf16>
    %148 = vector.shape_cast %147 : vector<1x1x32x32xbf16> to vector<32x32xbf16>
    %cst_272 = arith.constant dense<0.000000e+00> : vector<128x32xf32>
    %149 = tpu.matmul %146, %148, %cst_272 {dimension_numbers = #tpu.dot_dimension_numbers<[1], [0], [0], [1], [0, 0, 1, 1], [], []>} : vector<128x32xbf16>, vector<32x32xbf16>, vector<128x32xf32> -> vector<128x32xf32>
    %c0_273 = arith.constant 0 : index
    %c0_274 = arith.constant 0 : index
    %150 = vector.load %arg7[%c0_273, %c0_274] : memref<128x32xf32, #tpu.memory_space<vmem>>, vector<128x32xf32>
    %151 = arith.addf %150, %149 : vector<128x32xf32>
    %c0_275 = arith.constant 0 : index
    %c0_276 = arith.constant 0 : index
    %152 = vector.load %arg7[%c0_275, %c0_276] : memref<128x32xf32, #tpu.memory_space<vmem>>, vector<128x32xf32>
    tpu.vector_store %arg7[%c0_275, %c0_276], %151 {strides = array<i32>} : memref<128x32xf32, #tpu.memory_space<vmem>>, vector<128x32xf32>,
    %c0_277 = arith.constant 0 : index
    %c1_278 = arith.constant 1 : index
    %c2_279 = arith.constant 2 : index
    %c0_280 = arith.constant 0 : index
    %153 = vector.load %arg2[%c0_277, %c1_278, %c2_279, %c0_280] : memref<1x8x18x32xbf16, #tpu.memory_space<vmem>>, vector<1x1x16x32xbf16>
    %154 = vector.shape_cast %153 : vector<1x1x16x32xbf16> to vector<16x32xbf16>
    %c0_281 = arith.constant 0 : index
    %c0_282 = arith.constant 0 : index
    %155 = vector.load %arg9[%c0_281, %c0_282] : memref<128x32xbf16, #tpu.memory_space<vmem>>, vector<16x32xbf16>
    tpu.vector_store %arg9[%c0_281, %c0_282], %154 {strides = array<i32>} : memref<128x32xbf16, #tpu.memory_space<vmem>>, vector<16x32xbf16>,
    %c0_283 = arith.constant 0 : index
    %c2_284 = arith.constant 2 : index
    %c2_285 = arith.constant 2 : index
    %c0_286 = arith.constant 0 : index
    %156 = vector.load %arg2[%c0_283, %c2_284, %c2_285, %c0_286] : memref<1x8x18x32xbf16, #tpu.memory_space<vmem>>, vector<1x1x16x32xbf16>
    %157 = vector.shape_cast %156 : vector<1x1x16x32xbf16> to vector<16x32xbf16>
    %c16_287 = arith.constant 16 : index
    %c0_288 = arith.constant 0 : index
    %158 = vector.load %arg9[%c16_287, %c0_288] : memref<128x32xbf16, #tpu.memory_space<vmem>>, vector<16x32xbf16>
    tpu.vector_store %arg9[%c16_287, %c0_288], %157 {strides = array<i32>} : memref<128x32xbf16, #tpu.memory_space<vmem>>, vector<16x32xbf16>,
    %c0_289 = arith.constant 0 : index
    %c3_290 = arith.constant 3 : index
    %c2_291 = arith.constant 2 : index
    %c0_292 = arith.constant 0 : index
    %159 = vector.load %arg2[%c0_289, %c3_290, %c2_291, %c0_292] : memref<1x8x18x32xbf16, #tpu.memory_space<vmem>>, vector<1x1x16x32xbf16>
    %160 = vector.shape_cast %159 : vector<1x1x16x32xbf16> to vector<16x32xbf16>
    %c32_293 = arith.constant 32 : index
    %c0_294 = arith.constant 0 : index
    %161 = vector.load %arg9[%c32_293, %c0_294] : memref<128x32xbf16, #tpu.memory_space<vmem>>, vector<16x32xbf16>
    tpu.vector_store %arg9[%c32_293, %c0_294], %160 {strides = array<i32>} : memref<128x32xbf16, #tpu.memory_space<vmem>>, vector<16x32xbf16>,
    %c0_295 = arith.constant 0 : index
    %c4_296 = arith.constant 4 : index
    %c2_297 = arith.constant 2 : index
    %c0_298 = arith.constant 0 : index
    %162 = vector.load %arg2[%c0_295, %c4_296, %c2_297, %c0_298] : memref<1x8x18x32xbf16, #tpu.memory_space<vmem>>, vector<1x1x16x32xbf16>
    %163 = vector.shape_cast %162 : vector<1x1x16x32xbf16> to vector<16x32xbf16>
    %c48_299 = arith.constant 48 : index
    %c0_300 = arith.constant 0 : index
    %164 = vector.load %arg9[%c48_299, %c0_300] : memref<128x32xbf16, #tpu.memory_space<vmem>>, vector<16x32xbf16>
    tpu.vector_store %arg9[%c48_299, %c0_300], %163 {strides = array<i32>} : memref<128x32xbf16, #tpu.memory_space<vmem>>, vector<16x32xbf16>,
    %c0_301 = arith.constant 0 : index
    %c5_302 = arith.constant 5 : index
    %c2_303 = arith.constant 2 : index
    %c0_304 = arith.constant 0 : index
    %165 = vector.load %arg2[%c0_301, %c5_302, %c2_303, %c0_304] : memref<1x8x18x32xbf16, #tpu.memory_space<vmem>>, vector<1x1x16x32xbf16>
    %166 = vector.shape_cast %165 : vector<1x1x16x32xbf16> to vector<16x32xbf16>
    %c64_305 = arith.constant 64 : index
    %c0_306 = arith.constant 0 : index
    %167 = vector.load %arg9[%c64_305, %c0_306] : memref<128x32xbf16, #tpu.memory_space<vmem>>, vector<16x32xbf16>
    tpu.vector_store %arg9[%c64_305, %c0_306], %166 {strides = array<i32>} : memref<128x32xbf16, #tpu.memory_space<vmem>>, vector<16x32xbf16>,
    %c0_307 = arith.constant 0 : index
    %c6_308 = arith.constant 6 : index
    %c2_309 = arith.constant 2 : index
    %c0_310 = arith.constant 0 : index
    %168 = vector.load %arg2[%c0_307, %c6_308, %c2_309, %c0_310] : memref<1x8x18x32xbf16, #tpu.memory_space<vmem>>, vector<1x1x16x32xbf16>
    %169 = vector.shape_cast %168 : vector<1x1x16x32xbf16> to vector<16x32xbf16>
    %c80_311 = arith.constant 80 : index
    %c0_312 = arith.constant 0 : index
    %170 = vector.load %arg9[%c80_311, %c0_312] : memref<128x32xbf16, #tpu.memory_space<vmem>>, vector<16x32xbf16>
    tpu.vector_store %arg9[%c80_311, %c0_312], %169 {strides = array<i32>} : memref<128x32xbf16, #tpu.memory_space<vmem>>, vector<16x32xbf16>,
    %c0_313 = arith.constant 0 : index
    %c7_314 = arith.constant 7 : index
    %c2_315 = arith.constant 2 : index
    %c0_316 = arith.constant 0 : index
    %171 = vector.load %arg2[%c0_313, %c7_314, %c2_315, %c0_316] : memref<1x8x18x32xbf16, #tpu.memory_space<vmem>>, vector<1x1x16x32xbf16>
    %172 = vector.shape_cast %171 : vector<1x1x16x32xbf16> to vector<16x32xbf16>
    %c96_317 = arith.constant 96 : index
    %c0_318 = arith.constant 0 : index
    %173 = vector.load %arg9[%c96_317, %c0_318] : memref<128x32xbf16, #tpu.memory_space<vmem>>, vector<16x32xbf16>
    tpu.vector_store %arg9[%c96_317, %c0_318], %172 {strides = array<i32>} : memref<128x32xbf16, #tpu.memory_space<vmem>>, vector<16x32xbf16>,
    %c0_319 = arith.constant 0 : index
    %c0_320 = arith.constant 0 : index
    %c2_321 = arith.constant 2 : index
    %c0_322 = arith.constant 0 : index
    %174 = vector.load %arg3[%c0_319, %c0_320, %c2_321, %c0_322] : memref<1x1x18x32xbf16, #tpu.memory_space<vmem>>, vector<1x1x16x32xbf16>
    %175 = vector.shape_cast %174 : vector<1x1x16x32xbf16> to vector<16x32xbf16>
    %c112_323 = arith.constant 112 : index
    %c0_324 = arith.constant 0 : index
    %176 = vector.load %arg9[%c112_323, %c0_324] : memref<128x32xbf16, #tpu.memory_space<vmem>>, vector<16x32xbf16>
    tpu.vector_store %arg9[%c112_323, %c0_324], %175 {strides = array<i32>} : memref<128x32xbf16, #tpu.memory_space<vmem>>, vector<16x32xbf16>,
    %c0_325 = arith.constant 0 : index
    %c0_326 = arith.constant 0 : index
    %177 = vector.load %arg9[%c0_325, %c0_326] : memref<128x32xbf16, #tpu.memory_space<vmem>>, vector<128x32xbf16>
    %c1_327 = arith.constant 1 : index
    %c2_328 = arith.constant 2 : index
    %c0_329 = arith.constant 0 : index
    %c0_330 = arith.constant 0 : index
    %178 = vector.load %arg5[%c1_327, %c2_328, %c0_329, %c0_330] : memref<3x3x32x32xbf16, #tpu.memory_space<vmem>>, vector<1x1x32x32xbf16>
    %179 = vector.shape_cast %178 : vector<1x1x32x32xbf16> to vector<32x32xbf16>
    %cst_331 = arith.constant dense<0.000000e+00> : vector<128x32xf32>
    %180 = tpu.matmul %177, %179, %cst_331 {dimension_numbers = #tpu.dot_dimension_numbers<[1], [0], [0], [1], [0, 0, 1, 1], [], []>} : vector<128x32xbf16>, vector<32x32xbf16>, vector<128x32xf32> -> vector<128x32xf32>
    %c0_332 = arith.constant 0 : index
    %c0_333 = arith.constant 0 : index
    %181 = vector.load %arg7[%c0_332, %c0_333] : memref<128x32xf32, #tpu.memory_space<vmem>>, vector<128x32xf32>
    %182 = arith.addf %181, %180 : vector<128x32xf32>
    %c0_334 = arith.constant 0 : index
    %c0_335 = arith.constant 0 : index
    %183 = vector.load %arg7[%c0_334, %c0_335] : memref<128x32xf32, #tpu.memory_space<vmem>>, vector<128x32xf32>
    tpu.vector_store %arg7[%c0_334, %c0_335], %182 {strides = array<i32>} : memref<128x32xf32, #tpu.memory_space<vmem>>, vector<128x32xf32>,
    %c0_336 = arith.constant 0 : index
    %c2_337 = arith.constant 2 : index
    %c0_338 = arith.constant 0 : index
    %c0_339 = arith.constant 0 : index
    %184 = vector.load %arg2[%c0_336, %c2_337, %c0_338, %c0_339] : memref<1x8x18x32xbf16, #tpu.memory_space<vmem>>, vector<1x1x16x32xbf16>
    %185 = vector.shape_cast %184 : vector<1x1x16x32xbf16> to vector<16x32xbf16>
    %c0_340 = arith.constant 0 : index
    %c0_341 = arith.constant 0 : index
    %186 = vector.load %arg9[%c0_340, %c0_341] : memref<128x32xbf16, #tpu.memory_space<vmem>>, vector<16x32xbf16>
    tpu.vector_store %arg9[%c0_340, %c0_341], %185 {strides = array<i32>} : memref<128x32xbf16, #tpu.memory_space<vmem>>, vector<16x32xbf16>,
    %c0_342 = arith.constant 0 : index
    %c3_343 = arith.constant 3 : index
    %c0_344 = arith.constant 0 : index
    %c0_345 = arith.constant 0 : index
    %187 = vector.load %arg2[%c0_342, %c3_343, %c0_344, %c0_345] : memref<1x8x18x32xbf16, #tpu.memory_space<vmem>>, vector<1x1x16x32xbf16>
    %188 = vector.shape_cast %187 : vector<1x1x16x32xbf16> to vector<16x32xbf16>
    %c16_346 = arith.constant 16 : index
    %c0_347 = arith.constant 0 : index
    %189 = vector.load %arg9[%c16_346, %c0_347] : memref<128x32xbf16, #tpu.memory_space<vmem>>, vector<16x32xbf16>
    tpu.vector_store %arg9[%c16_346, %c0_347], %188 {strides = array<i32>} : memref<128x32xbf16, #tpu.memory_space<vmem>>, vector<16x32xbf16>,
    %c0_348 = arith.constant 0 : index
    %c4_349 = arith.constant 4 : index
    %c0_350 = arith.constant 0 : index
    %c0_351 = arith.constant 0 : index
    %190 = vector.load %arg2[%c0_348, %c4_349, %c0_350, %c0_351] : memref<1x8x18x32xbf16, #tpu.memory_space<vmem>>, vector<1x1x16x32xbf16>
    %191 = vector.shape_cast %190 : vector<1x1x16x32xbf16> to vector<16x32xbf16>
    %c32_352 = arith.constant 32 : index
    %c0_353 = arith.constant 0 : index
    %192 = vector.load %arg9[%c32_352, %c0_353] : memref<128x32xbf16, #tpu.memory_space<vmem>>, vector<16x32xbf16>
    tpu.vector_store %arg9[%c32_352, %c0_353], %191 {strides = array<i32>} : memref<128x32xbf16, #tpu.memory_space<vmem>>, vector<16x32xbf16>,
    %c0_354 = arith.constant 0 : index
    %c5_355 = arith.constant 5 : index
    %c0_356 = arith.constant 0 : index
    %c0_357 = arith.constant 0 : index
    %193 = vector.load %arg2[%c0_354, %c5_355, %c0_356, %c0_357] : memref<1x8x18x32xbf16, #tpu.memory_space<vmem>>, vector<1x1x16x32xbf16>
    %194 = vector.shape_cast %193 : vector<1x1x16x32xbf16> to vector<16x32xbf16>
    %c48_358 = arith.constant 48 : index
    %c0_359 = arith.constant 0 : index
    %195 = vector.load %arg9[%c48_358, %c0_359] : memref<128x32xbf16, #tpu.memory_space<vmem>>, vector<16x32xbf16>
    tpu.vector_store %arg9[%c48_358, %c0_359], %194 {strides = array<i32>} : memref<128x32xbf16, #tpu.memory_space<vmem>>, vector<16x32xbf16>,
    %c0_360 = arith.constant 0 : index
    %c6_361 = arith.constant 6 : index
    %c0_362 = arith.constant 0 : index
    %c0_363 = arith.constant 0 : index
    %196 = vector.load %arg2[%c0_360, %c6_361, %c0_362, %c0_363] : memref<1x8x18x32xbf16, #tpu.memory_space<vmem>>, vector<1x1x16x32xbf16>
    %197 = vector.shape_cast %196 : vector<1x1x16x32xbf16> to vector<16x32xbf16>
    %c64_364 = arith.constant 64 : index
    %c0_365 = arith.constant 0 : index
    %198 = vector.load %arg9[%c64_364, %c0_365] : memref<128x32xbf16, #tpu.memory_space<vmem>>, vector<16x32xbf16>
    tpu.vector_store %arg9[%c64_364, %c0_365], %197 {strides = array<i32>} : memref<128x32xbf16, #tpu.memory_space<vmem>>, vector<16x32xbf16>,
    %c0_366 = arith.constant 0 : index
    %c7_367 = arith.constant 7 : index
    %c0_368 = arith.constant 0 : index
    %c0_369 = arith.constant 0 : index
    %199 = vector.load %arg2[%c0_366, %c7_367, %c0_368, %c0_369] : memref<1x8x18x32xbf16, #tpu.memory_space<vmem>>, vector<1x1x16x32xbf16>
    %200 = vector.shape_cast %199 : vector<1x1x16x32xbf16> to vector<16x32xbf16>
    %c80_370 = arith.constant 80 : index
    %c0_371 = arith.constant 0 : index
    %201 = vector.load %arg9[%c80_370, %c0_371] : memref<128x32xbf16, #tpu.memory_space<vmem>>, vector<16x32xbf16>
    tpu.vector_store %arg9[%c80_370, %c0_371], %200 {strides = array<i32>} : memref<128x32xbf16, #tpu.memory_space<vmem>>, vector<16x32xbf16>,
    %c0_372 = arith.constant 0 : index
    %c0_373 = arith.constant 0 : index
    %c0_374 = arith.constant 0 : index
    %c0_375 = arith.constant 0 : index
    %202 = vector.load %arg3[%c0_372, %c0_373, %c0_374, %c0_375] : memref<1x1x18x32xbf16, #tpu.memory_space<vmem>>, vector<1x1x16x32xbf16>
    %203 = vector.shape_cast %202 : vector<1x1x16x32xbf16> to vector<16x32xbf16>
    %c96_376 = arith.constant 96 : index
    %c0_377 = arith.constant 0 : index
    %204 = vector.load %arg9[%c96_376, %c0_377] : memref<128x32xbf16, #tpu.memory_space<vmem>>, vector<16x32xbf16>
    tpu.vector_store %arg9[%c96_376, %c0_377], %203 {strides = array<i32>} : memref<128x32xbf16, #tpu.memory_space<vmem>>, vector<16x32xbf16>,
    %c0_378 = arith.constant 0 : index
    %c0_379 = arith.constant 0 : index
    %c0_380 = arith.constant 0 : index
    %c0_381 = arith.constant 0 : index
    %205 = vector.load %arg4[%c0_378, %c0_379, %c0_380, %c0_381] : memref<1x1x18x32xbf16, #tpu.memory_space<vmem>>, vector<1x1x16x32xbf16>
    %206 = vector.shape_cast %205 : vector<1x1x16x32xbf16> to vector<16x32xbf16>
    %c112_382 = arith.constant 112 : index
    %c0_383 = arith.constant 0 : index
    %207 = vector.load %arg9[%c112_382, %c0_383] : memref<128x32xbf16, #tpu.memory_space<vmem>>, vector<16x32xbf16>
    tpu.vector_store %arg9[%c112_382, %c0_383], %206 {strides = array<i32>} : memref<128x32xbf16, #tpu.memory_space<vmem>>, vector<16x32xbf16>,
    %c0_384 = arith.constant 0 : index
    %c0_385 = arith.constant 0 : index
    %208 = vector.load %arg9[%c0_384, %c0_385] : memref<128x32xbf16, #tpu.memory_space<vmem>>, vector<128x32xbf16>
    %c2_386 = arith.constant 2 : index
    %c0_387 = arith.constant 0 : index
    %c0_388 = arith.constant 0 : index
    %c0_389 = arith.constant 0 : index
    %209 = vector.load %arg5[%c2_386, %c0_387, %c0_388, %c0_389] : memref<3x3x32x32xbf16, #tpu.memory_space<vmem>>, vector<1x1x32x32xbf16>
    %210 = vector.shape_cast %209 : vector<1x1x32x32xbf16> to vector<32x32xbf16>
    %cst_390 = arith.constant dense<0.000000e+00> : vector<128x32xf32>
    %211 = tpu.matmul %208, %210, %cst_390 {dimension_numbers = #tpu.dot_dimension_numbers<[1], [0], [0], [1], [0, 0, 1, 1], [], []>} : vector<128x32xbf16>, vector<32x32xbf16>, vector<128x32xf32> -> vector<128x32xf32>
    %c0_391 = arith.constant 0 : index
    %c0_392 = arith.constant 0 : index
    %212 = vector.load %arg7[%c0_391, %c0_392] : memref<128x32xf32, #tpu.memory_space<vmem>>, vector<128x32xf32>
    %213 = arith.addf %212, %211 : vector<128x32xf32>
    %c0_393 = arith.constant 0 : index
    %c0_394 = arith.constant 0 : index
    %214 = vector.load %arg7[%c0_393, %c0_394] : memref<128x32xf32, #tpu.memory_space<vmem>>, vector<128x32xf32>
    tpu.vector_store %arg7[%c0_393, %c0_394], %213 {strides = array<i32>} : memref<128x32xf32, #tpu.memory_space<vmem>>, vector<128x32xf32>,
    %c0_395 = arith.constant 0 : index
    %c2_396 = arith.constant 2 : index
    %c1_397 = arith.constant 1 : index
    %c0_398 = arith.constant 0 : index
    %215 = vector.load %arg2[%c0_395, %c2_396, %c1_397, %c0_398] : memref<1x8x18x32xbf16, #tpu.memory_space<vmem>>, vector<1x1x16x32xbf16>
    %216 = vector.shape_cast %215 : vector<1x1x16x32xbf16> to vector<16x32xbf16>
    %c0_399 = arith.constant 0 : index
    %c0_400 = arith.constant 0 : index
    %217 = vector.load %arg9[%c0_399, %c0_400] : memref<128x32xbf16, #tpu.memory_space<vmem>>, vector<16x32xbf16>
    tpu.vector_store %arg9[%c0_399, %c0_400], %216 {strides = array<i32>} : memref<128x32xbf16, #tpu.memory_space<vmem>>, vector<16x32xbf16>,
    %c0_401 = arith.constant 0 : index
    %c3_402 = arith.constant 3 : index
    %c1_403 = arith.constant 1 : index
    %c0_404 = arith.constant 0 : index
    %218 = vector.load %arg2[%c0_401, %c3_402, %c1_403, %c0_404] : memref<1x8x18x32xbf16, #tpu.memory_space<vmem>>, vector<1x1x16x32xbf16>
    %219 = vector.shape_cast %218 : vector<1x1x16x32xbf16> to vector<16x32xbf16>
    %c16_405 = arith.constant 16 : index
    %c0_406 = arith.constant 0 : index
    %220 = vector.load %arg9[%c16_405, %c0_406] : memref<128x32xbf16, #tpu.memory_space<vmem>>, vector<16x32xbf16>
    tpu.vector_store %arg9[%c16_405, %c0_406], %219 {strides = array<i32>} : memref<128x32xbf16, #tpu.memory_space<vmem>>, vector<16x32xbf16>,
    %c0_407 = arith.constant 0 : index
    %c4_408 = arith.constant 4 : index
    %c1_409 = arith.constant 1 : index
    %c0_410 = arith.constant 0 : index
    %221 = vector.load %arg2[%c0_407, %c4_408, %c1_409, %c0_410] : memref<1x8x18x32xbf16, #tpu.memory_space<vmem>>, vector<1x1x16x32xbf16>
    %222 = vector.shape_cast %221 : vector<1x1x16x32xbf16> to vector<16x32xbf16>
    %c32_411 = arith.constant 32 : index
    %c0_412 = arith.constant 0 : index
    %223 = vector.load %arg9[%c32_411, %c0_412] : memref<128x32xbf16, #tpu.memory_space<vmem>>, vector<16x32xbf16>
    tpu.vector_store %arg9[%c32_411, %c0_412], %222 {strides = array<i32>} : memref<128x32xbf16, #tpu.memory_space<vmem>>, vector<16x32xbf16>,
    %c0_413 = arith.constant 0 : index
    %c5_414 = arith.constant 5 : index
    %c1_415 = arith.constant 1 : index
    %c0_416 = arith.constant 0 : index
    %224 = vector.load %arg2[%c0_413, %c5_414, %c1_415, %c0_416] : memref<1x8x18x32xbf16, #tpu.memory_space<vmem>>, vector<1x1x16x32xbf16>
    %225 = vector.shape_cast %224 : vector<1x1x16x32xbf16> to vector<16x32xbf16>
    %c48_417 = arith.constant 48 : index
    %c0_418 = arith.constant 0 : index
    %226 = vector.load %arg9[%c48_417, %c0_418] : memref<128x32xbf16, #tpu.memory_space<vmem>>, vector<16x32xbf16>
    tpu.vector_store %arg9[%c48_417, %c0_418], %225 {strides = array<i32>} : memref<128x32xbf16, #tpu.memory_space<vmem>>, vector<16x32xbf16>,
    %c0_419 = arith.constant 0 : index
    %c6_420 = arith.constant 6 : index
    %c1_421 = arith.constant 1 : index
    %c0_422 = arith.constant 0 : index
    %227 = vector.load %arg2[%c0_419, %c6_420, %c1_421, %c0_422] : memref<1x8x18x32xbf16, #tpu.memory_space<vmem>>, vector<1x1x16x32xbf16>
    %228 = vector.shape_cast %227 : vector<1x1x16x32xbf16> to vector<16x32xbf16>
    %c64_423 = arith.constant 64 : index
    %c0_424 = arith.constant 0 : index
    %229 = vector.load %arg9[%c64_423, %c0_424] : memref<128x32xbf16, #tpu.memory_space<vmem>>, vector<16x32xbf16>
    tpu.vector_store %arg9[%c64_423, %c0_424], %228 {strides = array<i32>} : memref<128x32xbf16, #tpu.memory_space<vmem>>, vector<16x32xbf16>,
    %c0_425 = arith.constant 0 : index
    %c7_426 = arith.constant 7 : index
    %c1_427 = arith.constant 1 : index
    %c0_428 = arith.constant 0 : index
    %230 = vector.load %arg2[%c0_425, %c7_426, %c1_427, %c0_428] : memref<1x8x18x32xbf16, #tpu.memory_space<vmem>>, vector<1x1x16x32xbf16>
    %231 = vector.shape_cast %230 : vector<1x1x16x32xbf16> to vector<16x32xbf16>
    %c80_429 = arith.constant 80 : index
    %c0_430 = arith.constant 0 : index
    %232 = vector.load %arg9[%c80_429, %c0_430] : memref<128x32xbf16, #tpu.memory_space<vmem>>, vector<16x32xbf16>
    tpu.vector_store %arg9[%c80_429, %c0_430], %231 {strides = array<i32>} : memref<128x32xbf16, #tpu.memory_space<vmem>>, vector<16x32xbf16>,
    %c0_431 = arith.constant 0 : index
    %c0_432 = arith.constant 0 : index
    %c1_433 = arith.constant 1 : index
    %c0_434 = arith.constant 0 : index
    %233 = vector.load %arg3[%c0_431, %c0_432, %c1_433, %c0_434] : memref<1x1x18x32xbf16, #tpu.memory_space<vmem>>, vector<1x1x16x32xbf16>
    %234 = vector.shape_cast %233 : vector<1x1x16x32xbf16> to vector<16x32xbf16>
    %c96_435 = arith.constant 96 : index
    %c0_436 = arith.constant 0 : index
    %235 = vector.load %arg9[%c96_435, %c0_436] : memref<128x32xbf16, #tpu.memory_space<vmem>>, vector<16x32xbf16>
    tpu.vector_store %arg9[%c96_435, %c0_436], %234 {strides = array<i32>} : memref<128x32xbf16, #tpu.memory_space<vmem>>, vector<16x32xbf16>,
    %c0_437 = arith.constant 0 : index
    %c0_438 = arith.constant 0 : index
    %c1_439 = arith.constant 1 : index
    %c0_440 = arith.constant 0 : index
    %236 = vector.load %arg4[%c0_437, %c0_438, %c1_439, %c0_440] : memref<1x1x18x32xbf16, #tpu.memory_space<vmem>>, vector<1x1x16x32xbf16>
    %237 = vector.shape_cast %236 : vector<1x1x16x32xbf16> to vector<16x32xbf16>
    %c112_441 = arith.constant 112 : index
    %c0_442 = arith.constant 0 : index
    %238 = vector.load %arg9[%c112_441, %c0_442] : memref<128x32xbf16, #tpu.memory_space<vmem>>, vector<16x32xbf16>
    tpu.vector_store %arg9[%c112_441, %c0_442], %237 {strides = array<i32>} : memref<128x32xbf16, #tpu.memory_space<vmem>>, vector<16x32xbf16>,
    %c0_443 = arith.constant 0 : index
    %c0_444 = arith.constant 0 : index
    %239 = vector.load %arg9[%c0_443, %c0_444] : memref<128x32xbf16, #tpu.memory_space<vmem>>, vector<128x32xbf16>
    %c2_445 = arith.constant 2 : index
    %c1_446 = arith.constant 1 : index
    %c0_447 = arith.constant 0 : index
    %c0_448 = arith.constant 0 : index
    %240 = vector.load %arg5[%c2_445, %c1_446, %c0_447, %c0_448] : memref<3x3x32x32xbf16, #tpu.memory_space<vmem>>, vector<1x1x32x32xbf16>
    %241 = vector.shape_cast %240 : vector<1x1x32x32xbf16> to vector<32x32xbf16>
    %cst_449 = arith.constant dense<0.000000e+00> : vector<128x32xf32>
    %242 = tpu.matmul %239, %241, %cst_449 {dimension_numbers = #tpu.dot_dimension_numbers<[1], [0], [0], [1], [0, 0, 1, 1], [], []>} : vector<128x32xbf16>, vector<32x32xbf16>, vector<128x32xf32> -> vector<128x32xf32>
    %c0_450 = arith.constant 0 : index
    %c0_451 = arith.constant 0 : index
    %243 = vector.load %arg7[%c0_450, %c0_451] : memref<128x32xf32, #tpu.memory_space<vmem>>, vector<128x32xf32>
    %244 = arith.addf %243, %242 : vector<128x32xf32>
    %c0_452 = arith.constant 0 : index
    %c0_453 = arith.constant 0 : index
    %245 = vector.load %arg7[%c0_452, %c0_453] : memref<128x32xf32, #tpu.memory_space<vmem>>, vector<128x32xf32>
    tpu.vector_store %arg7[%c0_452, %c0_453], %244 {strides = array<i32>} : memref<128x32xf32, #tpu.memory_space<vmem>>, vector<128x32xf32>,
    %c0_454 = arith.constant 0 : index
    %c2_455 = arith.constant 2 : index
    %c2_456 = arith.constant 2 : index
    %c0_457 = arith.constant 0 : index
    %246 = vector.load %arg2[%c0_454, %c2_455, %c2_456, %c0_457] : memref<1x8x18x32xbf16, #tpu.memory_space<vmem>>, vector<1x1x16x32xbf16>
    %247 = vector.shape_cast %246 : vector<1x1x16x32xbf16> to vector<16x32xbf16>
    %c0_458 = arith.constant 0 : index
    %c0_459 = arith.constant 0 : index
    %248 = vector.load %arg9[%c0_458, %c0_459] : memref<128x32xbf16, #tpu.memory_space<vmem>>, vector<16x32xbf16>
    tpu.vector_store %arg9[%c0_458, %c0_459], %247 {strides = array<i32>} : memref<128x32xbf16, #tpu.memory_space<vmem>>, vector<16x32xbf16>,
    %c0_460 = arith.constant 0 : index
    %c3_461 = arith.constant 3 : index
    %c2_462 = arith.constant 2 : index
    %c0_463 = arith.constant 0 : index
    %249 = vector.load %arg2[%c0_460, %c3_461, %c2_462, %c0_463] : memref<1x8x18x32xbf16, #tpu.memory_space<vmem>>, vector<1x1x16x32xbf16>
    %250 = vector.shape_cast %249 : vector<1x1x16x32xbf16> to vector<16x32xbf16>
    %c16_464 = arith.constant 16 : index
    %c0_465 = arith.constant 0 : index
    %251 = vector.load %arg9[%c16_464, %c0_465] : memref<128x32xbf16, #tpu.memory_space<vmem>>, vector<16x32xbf16>
    tpu.vector_store %arg9[%c16_464, %c0_465], %250 {strides = array<i32>} : memref<128x32xbf16, #tpu.memory_space<vmem>>, vector<16x32xbf16>,
    %c0_466 = arith.constant 0 : index
    %c4_467 = arith.constant 4 : index
    %c2_468 = arith.constant 2 : index
    %c0_469 = arith.constant 0 : index
    %252 = vector.load %arg2[%c0_466, %c4_467, %c2_468, %c0_469] : memref<1x8x18x32xbf16, #tpu.memory_space<vmem>>, vector<1x1x16x32xbf16>
    %253 = vector.shape_cast %252 : vector<1x1x16x32xbf16> to vector<16x32xbf16>
    %c32_470 = arith.constant 32 : index
    %c0_471 = arith.constant 0 : index
    %254 = vector.load %arg9[%c32_470, %c0_471] : memref<128x32xbf16, #tpu.memory_space<vmem>>, vector<16x32xbf16>
    tpu.vector_store %arg9[%c32_470, %c0_471], %253 {strides = array<i32>} : memref<128x32xbf16, #tpu.memory_space<vmem>>, vector<16x32xbf16>,
    %c0_472 = arith.constant 0 : index
    %c5_473 = arith.constant 5 : index
    %c2_474 = arith.constant 2 : index
    %c0_475 = arith.constant 0 : index
    %255 = vector.load %arg2[%c0_472, %c5_473, %c2_474, %c0_475] : memref<1x8x18x32xbf16, #tpu.memory_space<vmem>>, vector<1x1x16x32xbf16>
    %256 = vector.shape_cast %255 : vector<1x1x16x32xbf16> to vector<16x32xbf16>
    %c48_476 = arith.constant 48 : index
    %c0_477 = arith.constant 0 : index
    %257 = vector.load %arg9[%c48_476, %c0_477] : memref<128x32xbf16, #tpu.memory_space<vmem>>, vector<16x32xbf16>
    tpu.vector_store %arg9[%c48_476, %c0_477], %256 {strides = array<i32>} : memref<128x32xbf16, #tpu.memory_space<vmem>>, vector<16x32xbf16>,
    %c0_478 = arith.constant 0 : index
    %c6_479 = arith.constant 6 : index
    %c2_480 = arith.constant 2 : index
    %c0_481 = arith.constant 0 : index
    %258 = vector.load %arg2[%c0_478, %c6_479, %c2_480, %c0_481] : memref<1x8x18x32xbf16, #tpu.memory_space<vmem>>, vector<1x1x16x32xbf16>
    %259 = vector.shape_cast %258 : vector<1x1x16x32xbf16> to vector<16x32xbf16>
    %c64_482 = arith.constant 64 : index
    %c0_483 = arith.constant 0 : index
    %260 = vector.load %arg9[%c64_482, %c0_483] : memref<128x32xbf16, #tpu.memory_space<vmem>>, vector<16x32xbf16>
    tpu.vector_store %arg9[%c64_482, %c0_483], %259 {strides = array<i32>} : memref<128x32xbf16, #tpu.memory_space<vmem>>, vector<16x32xbf16>,
    %c0_484 = arith.constant 0 : index
    %c7_485 = arith.constant 7 : index
    %c2_486 = arith.constant 2 : index
    %c0_487 = arith.constant 0 : index
    %261 = vector.load %arg2[%c0_484, %c7_485, %c2_486, %c0_487] : memref<1x8x18x32xbf16, #tpu.memory_space<vmem>>, vector<1x1x16x32xbf16>
    %262 = vector.shape_cast %261 : vector<1x1x16x32xbf16> to vector<16x32xbf16>
    %c80_488 = arith.constant 80 : index
    %c0_489 = arith.constant 0 : index
    %263 = vector.load %arg9[%c80_488, %c0_489] : memref<128x32xbf16, #tpu.memory_space<vmem>>, vector<16x32xbf16>
    tpu.vector_store %arg9[%c80_488, %c0_489], %262 {strides = array<i32>} : memref<128x32xbf16, #tpu.memory_space<vmem>>, vector<16x32xbf16>,
    %c0_490 = arith.constant 0 : index
    %c0_491 = arith.constant 0 : index
    %c2_492 = arith.constant 2 : index
    %c0_493 = arith.constant 0 : index
    %264 = vector.load %arg3[%c0_490, %c0_491, %c2_492, %c0_493] : memref<1x1x18x32xbf16, #tpu.memory_space<vmem>>, vector<1x1x16x32xbf16>
    %265 = vector.shape_cast %264 : vector<1x1x16x32xbf16> to vector<16x32xbf16>
    %c96_494 = arith.constant 96 : index
    %c0_495 = arith.constant 0 : index
    %266 = vector.load %arg9[%c96_494, %c0_495] : memref<128x32xbf16, #tpu.memory_space<vmem>>, vector<16x32xbf16>
    tpu.vector_store %arg9[%c96_494, %c0_495], %265 {strides = array<i32>} : memref<128x32xbf16, #tpu.memory_space<vmem>>, vector<16x32xbf16>,
    %c0_496 = arith.constant 0 : index
    %c0_497 = arith.constant 0 : index
    %c2_498 = arith.constant 2 : index
    %c0_499 = arith.constant 0 : index
    %267 = vector.load %arg4[%c0_496, %c0_497, %c2_498, %c0_499] : memref<1x1x18x32xbf16, #tpu.memory_space<vmem>>, vector<1x1x16x32xbf16>
    %268 = vector.shape_cast %267 : vector<1x1x16x32xbf16> to vector<16x32xbf16>
    %c112_500 = arith.constant 112 : index
    %c0_501 = arith.constant 0 : index
    %269 = vector.load %arg9[%c112_500, %c0_501] : memref<128x32xbf16, #tpu.memory_space<vmem>>, vector<16x32xbf16>
    tpu.vector_store %arg9[%c112_500, %c0_501], %268 {strides = array<i32>} : memref<128x32xbf16, #tpu.memory_space<vmem>>, vector<16x32xbf16>,
    %c0_502 = arith.constant 0 : index
    %c0_503 = arith.constant 0 : index
    %270 = vector.load %arg9[%c0_502, %c0_503] : memref<128x32xbf16, #tpu.memory_space<vmem>>, vector<128x32xbf16>
    %c2_504 = arith.constant 2 : index
    %c2_505 = arith.constant 2 : index
    %c0_506 = arith.constant 0 : index
    %c0_507 = arith.constant 0 : index
    %271 = vector.load %arg5[%c2_504, %c2_505, %c0_506, %c0_507] : memref<3x3x32x32xbf16, #tpu.memory_space<vmem>>, vector<1x1x32x32xbf16>
    %272 = vector.shape_cast %271 : vector<1x1x32x32xbf16> to vector<32x32xbf16>
    %cst_508 = arith.constant dense<0.000000e+00> : vector<128x32xf32>
    %273 = tpu.matmul %270, %272, %cst_508 {dimension_numbers = #tpu.dot_dimension_numbers<[1], [0], [0], [1], [0, 0, 1, 1], [], []>} : vector<128x32xbf16>, vector<32x32xbf16>, vector<128x32xf32> -> vector<128x32xf32>
    %c0_509 = arith.constant 0 : index
    %c0_510 = arith.constant 0 : index
    %274 = vector.load %arg7[%c0_509, %c0_510] : memref<128x32xf32, #tpu.memory_space<vmem>>, vector<128x32xf32>
    %275 = arith.addf %274, %273 : vector<128x32xf32>
    %c0_511 = arith.constant 0 : index
    %c0_512 = arith.constant 0 : index
    %276 = vector.load %arg7[%c0_511, %c0_512] : memref<128x32xf32, #tpu.memory_space<vmem>>, vector<128x32xf32>
    tpu.vector_store %arg7[%c0_511, %c0_512], %275 {strides = array<i32>} : memref<128x32xf32, #tpu.memory_space<vmem>>, vector<128x32xf32>,
    %c0_513 = arith.constant 0 : index
    %c0_514 = arith.constant 0 : index
    %277 = vector.load %arg7[%c0_513, %c0_514] : memref<128x32xf32, #tpu.memory_space<vmem>>, vector<128x32xf32>
    %c0_515 = arith.constant 0 : index
    %c0_516 = arith.constant 0 : index
    %278 = vector.load %arg6[%c0_515, %c0_516] : memref<1x32xf32, #tpu.memory_space<vmem>>, vector<1x32xf32>
    %279 = vector.broadcast %278 : vector<1x32xf32> to vector<128x32xf32>
    %280 = arith.addf %277, %279 : vector<128x32xf32>
    %cst_517 = arith.constant 0.000000e+00 : f32
    %281 = vector.broadcast %cst_517 : f32 to vector<128x32xf32>
    %282 = arith.maximumf %280, %281 : vector<128x32xf32>
    %c0_518 = arith.constant 0 : index
    %c0_519 = arith.constant 0 : index
    %283 = vector.load %arg7[%c0_518, %c0_519] : memref<128x32xf32, #tpu.memory_space<vmem>>, vector<128x32xf32>
    tpu.vector_store %arg7[%c0_518, %c0_519], %282 {strides = array<i32>} : memref<128x32xf32, #tpu.memory_space<vmem>>, vector<128x32xf32>,
    %cst_520 = arith.constant dense<0.000000e+00> : vector<32xf32>
    %284 = vector.multi_reduction <add>, %282, %cst_520 [0] : vector<128x32xf32> to vector<32xf32>
    %285 = vector.shape_cast %284 : vector<32xf32> to vector<1x32xf32>
    %c0_521 = arith.constant 0 : index
    %c0_522 = arith.constant 0 : index
    %c0_523 = arith.constant 0 : index
    %c0_524 = arith.constant 0 : index
    %286 = vector.load %arg8[%c0_521, %c0_522, %c0_523, %c0_524] : memref<1x1x8x32xf32, #tpu.memory_space<vmem>>, vector<1x1x1x32xf32>
    %287 = vector.shape_cast %286 : vector<1x1x1x32xf32> to vector<1x32xf32>
    %288 = vector.shape_cast %285 : vector<1x32xf32> to vector<1x1x1x32xf32>
    tpu.vector_store %arg8[%c0_521, %c0_522, %c0_523, %c0_524], %288 {strides = array<i32>} : memref<1x1x8x32xf32, #tpu.memory_space<vmem>>, vector<1x1x1x32xf32>,
    %289 = arith.mulf %282, %282 : vector<128x32xf32>
    %cst_525 = arith.constant dense<0.000000e+00> : vector<32xf32>
    %290 = vector.multi_reduction <add>, %289, %cst_525 [0] : vector<128x32xf32> to vector<32xf32>
    %291 = vector.shape_cast %290 : vector<32xf32> to vector<1x32xf32>
    %c0_526 = arith.constant 0 : index
    %c0_527 = arith.constant 0 : index
    %c1_528 = arith.constant 1 : index
    %c0_529 = arith.constant 0 : index
    %292 = vector.load %arg8[%c0_526, %c0_527, %c1_528, %c0_529] : memref<1x1x8x32xf32, #tpu.memory_space<vmem>>, vector<1x1x1x32xf32>
    %293 = vector.shape_cast %292 : vector<1x1x1x32xf32> to vector<1x32xf32>
    %294 = vector.shape_cast %291 : vector<1x32xf32> to vector<1x1x1x32xf32>
    tpu.vector_store %arg8[%c0_526, %c0_527, %c1_528, %c0_529], %294 {strides = array<i32>} : memref<1x1x8x32xf32, #tpu.memory_space<vmem>>, vector<1x1x1x32xf32>,
    %cst_530 = arith.constant 0.000000e+00 : f32
    %295 = vector.broadcast %cst_530 : f32 to vector<6x32xf32>
    %c0_531 = arith.constant 0 : index
    %c0_532 = arith.constant 0 : index
    %c2_533 = arith.constant 2 : index
    %c0_534 = arith.constant 0 : index
    %296 = vector.load %arg8[%c0_531, %c0_532, %c2_533, %c0_534] : memref<1x1x8x32xf32, #tpu.memory_space<vmem>>, vector<1x1x6x32xf32>
    %297 = vector.shape_cast %296 : vector<1x1x6x32xf32> to vector<6x32xf32>
    %298 = vector.shape_cast %295 : vector<6x32xf32> to vector<1x1x6x32xf32>
    tpu.vector_store %arg8[%c0_531, %c0_532, %c2_533, %c0_534], %298 {strides = array<i32>} : memref<1x1x8x32xf32, #tpu.memory_space<vmem>>, vector<1x1x6x32xf32>,
    return
  }
  func.func @transform_0(%arg0: i32, %arg1: i32) -> (i32, i32, i32, i32) {
    %c0_i32 = arith.constant 0 : i32
    %c0_i32_0 = arith.constant 0 : i32
    %c0_i32_1 = arith.constant 0 : i32
    return %arg0, %arg1, %c0_i32, %c0_i32_0 : i32, i32, i32, i32
  }
  func.func @transform_1(%arg0: i32, %arg1: i32) -> (i32, i32, i32, i32) {
    %c8_i32 = arith.constant 8 : i32
    %0 = arith.muli %arg1, %c8_i32 : i32
    %c8_i32_0 = arith.constant 8 : i32
    %1 = arith.addi %0, %c8_i32_0 : i32
    %c0_i32 = arith.constant 0 : i32
    %c0_i32_1 = arith.constant 0 : i32
    %c0_i32_2 = arith.constant 0 : i32
    return %arg0, %1, %c0_i32, %c0_i32_1 : i32, i32, i32, i32
  }
  func.func @transform_2(%arg0: i32, %arg1: i32) -> (i32, i32, i32, i32) {
    %c8_i32 = arith.constant 8 : i32
    %0 = arith.muli %arg1, %c8_i32 : i32
    %c8_i32_0 = arith.constant 8 : i32
    %1 = arith.addi %0, %c8_i32_0 : i32
    %c1_i32 = arith.constant 1 : i32
    %2 = arith.addi %1, %c1_i32 : i32
    %c0_i32 = arith.constant 0 : i32
    %c0_i32_1 = arith.constant 0 : i32
    %c0_i32_2 = arith.constant 0 : i32
    return %arg0, %2, %c0_i32, %c0_i32_1 : i32, i32, i32, i32
  }
  func.func @transform_3(%arg0: i32, %arg1: i32) -> (i32, i32, i32, i32) {
    %c0_i32 = arith.constant 0 : i32
    %c0_i32_0 = arith.constant 0 : i32
    %c0_i32_1 = arith.constant 0 : i32
    %c0_i32_2 = arith.constant 0 : i32
    %c0_i32_3 = arith.constant 0 : i32
    return %c0_i32, %c0_i32_0, %c0_i32_1, %c0_i32_2 : i32, i32, i32, i32
  }
  func.func @transform_4(%arg0: i32, %arg1: i32) -> (i32, i32) {
    %c0_i32 = arith.constant 0 : i32
    %c0_i32_0 = arith.constant 0 : i32
    %c0_i32_1 = arith.constant 0 : i32
    return %c0_i32, %c0_i32_0 : i32, i32
  }
  func.func @transform_5(%arg0: i32, %arg1: i32) -> (i32, i32) {
    %c2_i32 = arith.constant 2 : i32
    %0 = arith.muli %arg0, %c2_i32 : i32
    %1 = arith.addi %0, %arg1 : i32
    %c0_i32 = arith.constant 0 : i32
    %c0_i32_0 = arith.constant 0 : i32
    return %1, %c0_i32 : i32, i32
  }
  func.func @transform_6(%arg0: i32, %arg1: i32) -> (i32, i32, i32, i32) {
    %c0_i32 = arith.constant 0 : i32
    %c0_i32_0 = arith.constant 0 : i32
    %c0_i32_1 = arith.constant 0 : i32
    return %arg0, %arg1, %c0_i32, %c0_i32_0 : i32, i32, i32, i32
  }
}

module attributes {stable_mosaic.version = 11 : i64} {
  func.func @_conv1x1_kernel(%arg0: i32, %arg1: memref<128x128xbf16, #tpu.memory_space<vmem>>, %arg2: memref<128x128xbf16, #tpu.memory_space<vmem>>, %arg3: memref<128x128xf32, #tpu.memory_space<vmem>>, %arg4: memref<1x8x128xf32, #tpu.memory_space<vmem>>) attributes {dimension_semantics = [#tpu.dimension_semantics<parallel>], iteration_bounds = array<i64: 1>, scalar_prefetch = 0 : i64, scratch_operands = 0 : i64, tpu.core_type = #tpu.core_type<tc>, window_params = [{transform_indices = @transform_0, window_bounds = array<i64: 128, 128>}, {pipeline_mode = #tpu.pipeline_mode<synchronous>, transform_indices = @transform_1, window_bounds = array<i64: 128, 128>}, {transform_indices = @transform_2, window_bounds = array<i64: 128, 128>}, {transform_indices = @transform_3, window_bounds = array<i64: 1, 8, 128>}]} {
    %c0 = arith.constant 0 : index
    %c0_0 = arith.constant 0 : index
    %0 = vector.load %arg1[%c0, %c0_0] : memref<128x128xbf16, #tpu.memory_space<vmem>>, vector<128x128xbf16>
    %c0_1 = arith.constant 0 : index
    %c0_2 = arith.constant 0 : index
    %1 = vector.load %arg2[%c0_1, %c0_2] : memref<128x128xbf16, #tpu.memory_space<vmem>>, vector<128x128xbf16>
    %cst = arith.constant dense<0.000000e+00> : vector<128x128xf32>
    %2 = tpu.matmul %0, %1, %cst {dimension_numbers = #tpu.dot_dimension_numbers<[1], [0], [0], [1], [0, 0, 1, 1], [], []>} : vector<128x128xbf16>, vector<128x128xbf16>, vector<128x128xf32> -> vector<128x128xf32>
    %c0_3 = arith.constant 0 : index
    %c0_4 = arith.constant 0 : index
    %3 = vector.load %arg3[%c0_3, %c0_4] : memref<128x128xf32, #tpu.memory_space<vmem>>, vector<128x128xf32>
    tpu.vector_store %arg3[%c0_3, %c0_4], %2 {strides = array<i32>} : memref<128x128xf32, #tpu.memory_space<vmem>>, vector<128x128xf32>,
    %cst_5 = arith.constant dense<0.000000e+00> : vector<128xf32>
    %4 = vector.multi_reduction <add>, %2, %cst_5 [0] : vector<128x128xf32> to vector<128xf32>
    %5 = vector.shape_cast %4 : vector<128xf32> to vector<1x128xf32>
    %c0_6 = arith.constant 0 : index
    %c0_7 = arith.constant 0 : index
    %c0_8 = arith.constant 0 : index
    %6 = vector.load %arg4[%c0_6, %c0_7, %c0_8] : memref<1x8x128xf32, #tpu.memory_space<vmem>>, vector<1x1x128xf32>
    %7 = vector.shape_cast %6 : vector<1x1x128xf32> to vector<1x128xf32>
    %8 = vector.shape_cast %5 : vector<1x128xf32> to vector<1x1x128xf32>
    tpu.vector_store %arg4[%c0_6, %c0_7, %c0_8], %8 {strides = array<i32>} : memref<1x8x128xf32, #tpu.memory_space<vmem>>, vector<1x1x128xf32>,
    %9 = arith.mulf %2, %2 : vector<128x128xf32>
    %cst_9 = arith.constant dense<0.000000e+00> : vector<128xf32>
    %10 = vector.multi_reduction <add>, %9, %cst_9 [0] : vector<128x128xf32> to vector<128xf32>
    %11 = vector.shape_cast %10 : vector<128xf32> to vector<1x128xf32>
    %c0_10 = arith.constant 0 : index
    %c1 = arith.constant 1 : index
    %c0_11 = arith.constant 0 : index
    %12 = vector.load %arg4[%c0_10, %c1, %c0_11] : memref<1x8x128xf32, #tpu.memory_space<vmem>>, vector<1x1x128xf32>
    %13 = vector.shape_cast %12 : vector<1x1x128xf32> to vector<1x128xf32>
    %14 = vector.shape_cast %11 : vector<1x128xf32> to vector<1x1x128xf32>
    tpu.vector_store %arg4[%c0_10, %c1, %c0_11], %14 {strides = array<i32>} : memref<1x8x128xf32, #tpu.memory_space<vmem>>, vector<1x1x128xf32>,
    %cst_12 = arith.constant 0.000000e+00 : f32
    %15 = vector.broadcast %cst_12 : f32 to vector<6x128xf32>
    %c0_13 = arith.constant 0 : index
    %c2 = arith.constant 2 : index
    %c0_14 = arith.constant 0 : index
    %16 = vector.load %arg4[%c0_13, %c2, %c0_14] : memref<1x8x128xf32, #tpu.memory_space<vmem>>, vector<1x6x128xf32>
    %17 = vector.shape_cast %16 : vector<1x6x128xf32> to vector<6x128xf32>
    %18 = vector.shape_cast %15 : vector<6x128xf32> to vector<1x6x128xf32>
    tpu.vector_store %arg4[%c0_13, %c2, %c0_14], %18 {strides = array<i32>} : memref<1x8x128xf32, #tpu.memory_space<vmem>>, vector<1x6x128xf32>,
    return
  }
  func.func @transform_0(%arg0: i32) -> (i32, i32) {
    %c0_i32 = arith.constant 0 : i32
    %c0_i32_0 = arith.constant 0 : i32
    return %arg0, %c0_i32 : i32, i32
  }
  func.func @transform_1(%arg0: i32) -> (i32, i32) {
    %c0_i32 = arith.constant 0 : i32
    %c0_i32_0 = arith.constant 0 : i32
    %c0_i32_1 = arith.constant 0 : i32
    return %c0_i32, %c0_i32_0 : i32, i32
  }
  func.func @transform_2(%arg0: i32) -> (i32, i32) {
    %c0_i32 = arith.constant 0 : i32
    %c0_i32_0 = arith.constant 0 : i32
    return %arg0, %c0_i32 : i32, i32
  }
  func.func @transform_3(%arg0: i32) -> (i32, i32, i32) {
    %c0_i32 = arith.constant 0 : i32
    %c0_i32_0 = arith.constant 0 : i32
    %c0_i32_1 = arith.constant 0 : i32
    return %arg0, %c0_i32, %c0_i32_0 : i32, i32, i32
  }
}

</mosaic_0001>

<bundles_post_ra>
// kernel: tile.43
= control target key start
LH: loop header
LB: loop body
LE: loop exit
PB: predicated region body
PF: predicated region fallthrough
CT: control target
= control target key end

     0   :  { %s22_s0 = inlined_call_operand.vmem [shape: f32[32], index: 0, kind: input, shape index: {}]   ;;  %s23_s1 = inlined_call_operand.vmem [shape: f32[4,32], index: 1, kind: output, shape index: {}]  }
   0x1   :  { %v4_v0 = vld [vmem:[%s22_s0] ss:$0 sm:$0xff] }
   0x2   :  { %5 = vst [vmem:[%s23_s1] sm:$0xf] %v4_v0 }

// kernel: tile.44
= control target key start
LH: loop header
LB: loop body
LE: loop exit
PB: predicated region body
PF: predicated region fallthrough
CT: control target
= control target key end

     0   :  { %s37_s8 = smov 32   ;;  %s38_s9 = smov 64   ;;  %vm7_vm0 = vcmask 261120   ;;  %vm13_vm1 = vcmask 1048320   ;;  %vm19_vm2 = vcmask 785920   ;;  %vm25_vm3 = vcmask 523520   ;;  %s55_s0 = inlined_call_operand.vmem [shape: f32[4,32], index: 0, kind: input, shape index: {}]   ;;  %s56_s1 = inlined_call_operand.vmem [shape: f32[1,128], index: 1, kind: output, shape index: {}]  }
   0x1   :  { %v4_v0 = vld [vmem:[%s55_s0] sm:$0xf]  ;;  %s36_s0 = smov 96  }
   0x2   :  { %5 = vst [vmem:[#allocation1] sm:$0xf] %v4_v0 }
   0x9   :  { %v10_v1 = vld [vmem:[#allocation1 + $0x3] sm:$0x1]   ;;  %v22_v2 = vld [vmem:[#allocation1 + $0x1] sm:$0x1]   ;;  %v16_v3 = vld [vmem:[#allocation1 + $0x2] sm:$0x1]  }
   0xa   :  { %11 = vrot.lane.b32.xlu0 %v10_v1, %s36_s0  ;;  %23 = vrot.lane.b32.xlu1 %v22_v2, %s37_s8  ;;  %v6_v4 = vld [vmem:[#allocation1] sm:$0x1]  }
   0xb   :  { %8 = vst.msk [vmem:[#allocation0] sm:$0x1] %vm7_vm0, %v6_v4  }
  0x12   :  { %17 = vrot.lane.b32.xlu0 %v16_v3, %s38_s9 }
  0x7c   :  { %v12_v5 = vpop.permute.xlu0 %11   ;;  %v24_v6 = vpop.permute.xlu1 %23  }
  0x7d   :  { %14 = vst.msk [vmem:[#allocation0] sm:$0x1] %vm13_vm1, %v12_v5  }
  0x84   :  { %v18_v7 = vpop.permute.xlu0 %17  }
  0x85   :  { %20 = vst.msk [vmem:[#allocation0] sm:$0x1] %vm19_vm2, %v18_v7  }
  0x86   :  { %26 = vst.msk [vmem:[#allocation0] sm:$0x1] %vm25_vm3, %v24_v6  }
  0x8d   :  { %v29_v8 = vld [vmem:[#allocation0] sm:$0x1] }
  0x8e   :  { %32 = vst [vmem:[%s56_s1] sm:$0x1] %v29_v8 }

// kernel: mynet_forward.9
= control target key start
LH: loop header
LB: loop body
LE: loop exit
PB: predicated region body
PF: predicated region fallthrough
CT: control target
= control target key end

     0   :  { %s214_s0 = inlined_call_operand.vmem [shape: f32[128,128], index: 0, kind: input, shape index: {}]   ;;  %s215_s1 = inlined_call_operand.vmem [shape: f32[1,128], index: 1, kind: input, shape index: {}]   ;;  %s216_s2 = inlined_call_operand.vmem [shape: f32[1,128], index: 2, kind: input, shape index: {}]   ;;  %s217_s3 = inlined_call_operand.vmem [shape: f32[128,128], index: 3, kind: output, shape index: {}]  }
   0x1   :  { %v14_v0 = vld [vmem:[%s214_s0] sm:$0xff]  ;;  %v15_v3 = vld [vmem:[%s214_s0 + $0x8] sm:$0xff]  ;;  %v16_v6 = vld [vmem:[%s214_s0 + $0x10] sm:$0xff] }
   0x2   :  { %v90_v1 = vld [vmem:[%s215_s1] ss:$0 sm:$0xff]  ;;  %v17_v7 = vld [vmem:[%s214_s0 + $0x18] sm:$0xff]  ;;  %v19_v12 = vld [vmem:[%s214_s0 + $0x28] sm:$0xff] }
   0x3   :  { %v91_v2 = vld [vmem:[%s216_s2] ss:$0 sm:$0xff]  ;;  %v34_v4 = vmul.f32 %v90_v1, %v14_v0  ;;  %v35_v5 = vmul.f32 %v90_v1, %v15_v3  ;;  %v36_v9 = vmul.f32 %v90_v1, %v16_v6  ;;  %v37_v10 = vmul.f32 %v90_v1, %v17_v7  ;;  %v20_v13 = vld [vmem:[%s214_s0 + $0x30] sm:$0xff]  ;;  %v21_v14 = vld [vmem:[%s214_s0 + $0x38] sm:$0xff] }
   0x4   :  { %v18_v8 = vld [vmem:[%s214_s0 + $0x20] sm:$0xff]  ;;  %v39_v17 = vmul.f32 %v90_v1, %v19_v12  ;;  %v40_v18 = vmul.f32 %v90_v1, %v20_v13  ;;  %v23_v20 = vld [vmem:[%s214_s0 + $0x48] sm:$0xff]  ;;  %v41_v23 = vmul.f32 %v90_v1, %v21_v14  ;;  %v24_v24 = vld [vmem:[%s214_s0 + $0x50] sm:$0xff] }
   0x5   :  { %v38_v11 = vmul.f32 %v90_v1, %v18_v8  ;;  %v54_v15 = vadd.f32 %v91_v2, %v34_v4  ;;  %v55_v16 = vadd.f32 %v91_v2, %v35_v5  ;;  %v22_v19 = vld [vmem:[%s214_s0 + $0x40] sm:$0xff]  ;;  %v56_v21 = vadd.f32 %v91_v2, %v36_v9  ;;  %v25_v27 = vld [vmem:[%s214_s0 + $0x58] sm:$0xff]  ;;  %v27_v33 = vld [vmem:[%s214_s0 + $0x68] sm:$0xff] }
   0x6   :  { %v57_v22 = vadd.f32 %v91_v2, %v37_v10  ;;  %v42_v26 = vmul.f32 %v90_v1, %v22_v19  ;;  %v59_v28 = vadd.f32 %v91_v2, %v39_v17  ;;  %v43_v29 = vmul.f32 %v90_v1, %v23_v20  ;;  %v26_v30 = vld [vmem:[%s214_s0 + $0x60] sm:$0xff]  ;;  %v28_v36 = vld [vmem:[%s214_s0 + $0x70] sm:$0xff]  ;;  %v29_v39 = vld [vmem:[%s214_s0 + $0x78] sm:$0xff] }
   0x7   :  { %70 = vst [vmem:[%s217_s3] sm:$0xff] %v54_v15  ;;  %v58_v25 = vadd.f32 %v91_v2, %v38_v11  ;;  %v60_v31 = vadd.f32 %v91_v2, %v40_v18  ;;  %v44_v32 = vmul.f32 %v90_v1, %v24_v24  ;;  %v61_v34 = vadd.f32 %v91_v2, %v41_v23 }
   0x8   :  { %71 = vst [vmem:[%s217_s3 + $0x8] sm:$0xff] %v55_v16  ;;  %v45_v35 = vmul.f32 %v90_v1, %v25_v27  ;;  %v62_v37 = vadd.f32 %v91_v2, %v42_v26  ;;  %v46_v38 = vmul.f32 %v90_v1, %v26_v30  ;;  %v63_v40 = vadd.f32 %v91_v2, %v43_v29 }
   0x9   :  { %72 = vst [vmem:[%s217_s3 + $0x10] sm:$0xff] %v56_v21  ;;  %v47_v41 = vmul.f32 %v90_v1, %v27_v33  ;;  %v64_v42 = vadd.f32 %v91_v2, %v44_v32  ;;  %v48_v43 = vmul.f32 %v90_v1, %v28_v36  ;;  %v49_v45 = vmul.f32 %v90_v1, %v29_v39 }
   0xa   :  { %73 = vst [vmem:[%s217_s3 + $0x18] sm:$0xff] %v57_v22  ;;  %v65_v44 = vadd.f32 %v91_v2, %v45_v35  ;;  %v66_v46 = vadd.f32 %v91_v2, %v46_v38 }
   0xb   :  { %74 = vst [vmem:[%s217_s3 + $0x20] sm:$0xff] %v58_v25  ;;  %v67_v47 = vadd.f32 %v91_v2, %v47_v41  ;;  %v68_v48 = vadd.f32 %v91_v2, %v48_v43  ;;  %v69_v49 = vadd.f32 %v91_v2, %v49_v45 }
   0xc   :  { %75 = vst [vmem:[%s217_s3 + $0x28] sm:$0xff] %v59_v28 }
   0xd   :  { %76 = vst [vmem:[%s217_s3 + $0x30] sm:$0xff] %v60_v31 }
   0xe   :  { %77 = vst [vmem:[%s217_s3 + $0x38] sm:$0xff] %v61_v34 }
   0xf   :  { %78 = vst [vmem:[%s217_s3 + $0x40] sm:$0xff] %v62_v37 }
  0x10   :  { %79 = vst [vmem:[%s217_s3 + $0x48] sm:$0xff] %v63_v40 }
  0x11   :  { %80 = vst [vmem:[%s217_s3 + $0x50] sm:$0xff] %v64_v42 }
  0x12   :  { %81 = vst [vmem:[%s217_s3 + $0x58] sm:$0xff] %v65_v44 }
  0x13   :  { %82 = vst [vmem:[%s217_s3 + $0x60] sm:$0xff] %v66_v46 }
  0x14   :  { %83 = vst [vmem:[%s217_s3 + $0x68] sm:$0xff] %v67_v47 }
  0x15   :  { %84 = vst [vmem:[%s217_s3 + $0x70] sm:$0xff] %v68_v48 }
  0x16   :  { %85 = vst [vmem:[%s217_s3 + $0x78] sm:$0xff] %v69_v49 }

// kernel: squeeze.2
= control target key start
LH: loop header
LB: loop body
LE: loop exit
PB: predicated region body
PF: predicated region fallthrough
CT: control target
= control target key end

     0   :  { %s37_s8 = smov 32   ;;  %s38_s9 = smov 64   ;;  %vm7_vm0 = vcmask 261120   ;;  %s55_s0 = inlined_call_operand.vmem [shape: f32[128], index: 0, kind: input, shape index: {}]   ;;  %s56_s1 = inlined_call_operand.vmem [shape: f32[4,32], index: 1, kind: output, shape index: {}]  }
   0x1   :  { %v4_v0 = vld [vmem:[%s55_s0] sm:$0x1]  ;;  %s36_s0 = smov 96  }
   0x2   :  { %5 = vst [vmem:[#allocation1] sm:$0x1] %v4_v0 }
   0x9   :  { %v9_v1 = vld [vmem:[#allocation1] sm:$0x1]  }
   0xa   :  { %v21_v2 = vld [vmem:[#allocation1] sm:$0x1]   ;;  %10 = vrot.lane.b32.xlu0 %v9_v1, %s36_s0 }
   0xb   :  { %22 = vrot.lane.b32.xlu1 %v21_v2, %s37_s8  ;;  %v15_v3 = vld [vmem:[#allocation1] sm:$0x1]  }
   0xc   :  { %v6_v4 = vld [vmem:[#allocation1] sm:$0x1]  }
   0xd   :  { %8 = vst.msk [vmem:[#allocation0] sm:$0x1] %vm7_vm0, %v6_v4  }
  0x12   :  { %16 = vrot.lane.b32.xlu0 %v15_v3, %s38_s9 }
  0x7c   :  { %v11_v5 = vpop.permute.xlu0 %10  }
  0x7d   :  { %v23_v6 = vpop.permute.xlu1 %22   ;;  %14 = vst.msk [vmem:[#allocation0 + $0x1] sm:$0x1] %vm7_vm0, %v11_v5  }
  0x7e   :  { %26 = vst.msk [vmem:[#allocation0 + $0x3] sm:$0x1] %vm7_vm0, %v23_v6  }
  0x84   :  { %v17_v7 = vpop.permute.xlu0 %16  }
  0x85   :  { %20 = vst.msk [vmem:[#allocation0 + $0x2] sm:$0x1] %vm7_vm0, %v17_v7  }
  0x8c   :  { %v29_v8 = vld [vmem:[#allocation0] sm:$0xf] }
  0x8d   :  { %32 = vst [vmem:[%s56_s1] sm:$0xf] %v29_v8 }

// kernel: mynet_forward.14
= control target key start
LH: loop header
LB: loop body
LE: loop exit
PB: predicated region body
PF: predicated region fallthrough
CT: control target
= control target key end

     0   :  { %v380_v53 = vmov 0.0   ;;  %s512_s1 = inlined_call_operand.vmem [shape: bf16[128,128], index: 1, kind: input, shape index: {}]   ;;  %s513_s0 = inlined_call_operand.vmem [shape: bf16[128,128], index: 0, kind: input, shape index: {}]   ;;  %s514_s2 = inlined_call_operand.vmem [shape: f32[128,128], index: 2, kind: output, shape index: {0}]   ;;  %s515_s3 = inlined_call_operand.vmem [shape: f32[1,8,128], index: 3, kind: output, shape index: {1}]  }
   0x1   :  { %v354_v0 = vld [vmem:[%s512_s1 + $0x38] sm:$0xff]  ;;  %v353_v1 = vld [vmem:[%s512_s1 + $0x30] sm:$0xff]  ;;  %v352_v2 = vld [vmem:[%s512_s1 + $0x28] sm:$0xff]  ;;  %266 = vst [vmem:[%s515_s3 + $0x2] sm:$0x3f] %v380_v53 }
   0x2   :  { %141 = vmatpush.bf16.msra.mxu0 %v354_v0  ;;  %355 = vmatpush.bf16.msra.mxu1 %v354_v0  ;;  %v351_v3 = vld [vmem:[%s512_s1 + $0x20] sm:$0xff]  ;;  %v350_v4 = vld [vmem:[%s512_s1 + $0x18] sm:$0xff]  ;;  %v349_v5 = vld [vmem:[%s512_s1 + $0x10] sm:$0xff] }
   0x3   :  { %356 = vmatpush.bf16.msra.mxu2 %v354_v0  ;;  %357 = vmatpush.bf16.msra.mxu3 %v354_v0  ;;  %v348_v6 = vld [vmem:[%s512_s1 + $0x8] sm:$0xff]  ;;  %v347_v7 = vld [vmem:[%s512_s1] sm:$0xff]  ;;  %v341_v9 = vld [vmem:[%s513_s0 + $0x10] sm:$0xff] }
   0x4   :  { %v339_v8 = vld [vmem:[%s513_s0] sm:$0xff]  ;;  %v345_v11 = vld [vmem:[%s513_s0 + $0x30] sm:$0xff]  ;;  %v340_v12 = vld [vmem:[%s513_s0 + $0x8] sm:$0xff] }
   0x5   :  { %v343_v10 = vld [vmem:[%s513_s0 + $0x20] sm:$0xff]  ;;  %v342_v13 = vld [vmem:[%s513_s0 + $0x18] sm:$0xff]  ;;  %v344_v14 = vld [vmem:[%s513_s0 + $0x28] sm:$0xff] }
   0x6   :  { %142 = vmatpush.bf16.msra.mxu0 %v353_v1  ;;  %358 = vmatpush.bf16.msra.mxu1 %v353_v1  ;;  %v346_v15 = vld [vmem:[%s513_s0 + $0x38] sm:$0xff] }
   0x7   :  { %359 = vmatpush.bf16.msra.mxu2 %v353_v1  ;;  %360 = vmatpush.bf16.msra.mxu3 %v353_v1 }
   0xa   :  { %143 = vmatpush.bf16.msra.mxu0 %v352_v2  ;;  %361 = vmatpush.bf16.msra.mxu1 %v352_v2 }
   0xb   :  { %362 = vmatpush.bf16.msra.mxu2 %v352_v2  ;;  %363 = vmatpush.bf16.msra.mxu3 %v352_v2 }
   0xe   :  { %144 = vmatpush.bf16.msra.mxu0 %v351_v3  ;;  %364 = vmatpush.bf16.msra.mxu1 %v351_v3 }
   0xf   :  { %365 = vmatpush.bf16.msra.mxu2 %v351_v3  ;;  %366 = vmatpush.bf16.msra.mxu3 %v351_v3 }
  0x12   :  { %145 = vmatpush.bf16.msra.mxu0 %v350_v4  ;;  %367 = vmatpush.bf16.msra.mxu1 %v350_v4 }
  0x13   :  { %368 = vmatpush.bf16.msra.mxu2 %v350_v4  ;;  %369 = vmatpush.bf16.msra.mxu3 %v350_v4 }
  0x16   :  { %146 = vmatpush.bf16.msra.mxu0 %v349_v5  ;;  %370 = vmatpush.bf16.msra.mxu1 %v349_v5 }
  0x17   :  { %371 = vmatpush.bf16.msra.mxu2 %v349_v5  ;;  %372 = vmatpush.bf16.msra.mxu3 %v349_v5 }
  0x1a   :  { %147 = vmatpush.bf16.msra.mxu0 %v348_v6  ;;  %373 = vmatpush.bf16.msra.mxu1 %v348_v6 }
  0x1b   :  { %374 = vmatpush.bf16.msra.mxu2 %v348_v6  ;;  %375 = vmatpush.bf16.msra.mxu3 %v348_v6 }
  0x1e   :  { %148 = vmatpush.bf16.msra.mxu0 %v347_v7  ;;  %376 = vmatpush.bf16.msra.mxu1 %v347_v7 }
  0x1f   :  { %377 = vmatpush.bf16.msra.mxu2 %v347_v7  ;;  %378 = vmatpush.bf16.msra.mxu3 %v347_v7 }
  0x21   :  { %149 = vmatmul.bf16.vlgmr.msra.gmra.mxu0 %v339_v8  ;;  %159 = vmatmul.bf16.vlgmr.msra.gmra.mxu1 %v341_v9 }
  0x22   :  { %169 = vmatmul.bf16.vlgmr.msra.gmra.mxu2 %v343_v10  ;;  %179 = vmatmul.bf16.vlgmr.msra.gmra.mxu3 %v345_v11 }
  0x31   :  { %154 = vmatmul.bf16.gmra.mxu0 %v340_v12  ;;  %164 = vmatmul.bf16.gmra.mxu1 %v342_v13 }
  0x32   :  { %174 = vmatmul.bf16.gmra.mxu2 %v344_v14  ;;  %184 = vmatmul.bf16.gmra.mxu3 %v346_v15 }
  0x9e   :  { %v150_v16 = vpop.f32.mrf.mxu0  ;;  %v160_v17 = vpop.f32.mrf.mxu1 }
  0x9f   :  { %190 = vst [vmem:[%s514_s2] sm:$0xff] %v150_v16  ;;  %v228_v27 = vmul.f32 %v150_v16, %v150_v16  ;;  %v232_v39 = vmul.f32 %v160_v17, %v160_v17 }
  0xa0   :  { %194 = vst [vmem:[%s514_s2 + $0x20] sm:$0xff] %v160_v17 }
  0xa5   :  { %v170_v18 = vpop.f32.mrf.mxu2  ;;  %v455_v19 = vpop.f32.mrf.mxu3 }
  0xa6   :  { %v152_v20 = vpop.f32.mrf.mxu0  ;;  %v162_v21 = vpop.f32.mrf.mxu1  ;;  %198 = vst [vmem:[%s514_s2 + $0x40] sm:$0xff] %v170_v18  ;;  %v236_v54 = vmul.f32 %v170_v18, %v170_v18  ;;  %v240_v2 = vmul.f32 %v455_v19, %v455_v19 }
  0xa7   :  { %191 = vst [vmem:[%s514_s2 + $0x8] sm:$0xff] %v152_v20  ;;  %v229_v26 = vmul.f32 %v152_v20, %v152_v20  ;;  %v206_v28 = vadd.f32 %v152_v20, %v150_v16  ;;  %v233_v42 = vmul.f32 %v162_v21, %v162_v21 }
  0xa8   :  { %195 = vst [vmem:[%s514_s2 + $0x28] sm:$0xff] %v162_v21 }
  0xa9   :  { %202 = vst [vmem:[%s514_s2 + $0x60] sm:$0xff] %v455_v19  ;;  %v244_v30 = vadd.f32 %v229_v26, %v228_v27 }
  0xad   :  { %v172_v22 = vpop.f32.mrf.mxu2  ;;  %v182_v23 = vpop.f32.mrf.mxu3 }
  0xae   :  { %v155_v24 = vpop.f32.mrf.mxu0  ;;  %v165_v25 = vpop.f32.mrf.mxu1  ;;  %199 = vst [vmem:[%s514_s2 + $0x48] sm:$0xff] %v172_v22  ;;  %v237_v57 = vmul.f32 %v172_v22, %v172_v22  ;;  %v241_v5 = vmul.f32 %v182_v23, %v182_v23 }
  0xaf   :  { %192 = vst [vmem:[%s514_s2 + $0x10] sm:$0xff] %v155_v24  ;;  %v230_v29 = vmul.f32 %v155_v24, %v155_v24  ;;  %v207_v31 = vadd.f32 %v206_v28, %v155_v24  ;;  %v234_v45 = vmul.f32 %v165_v25, %v165_v25 }
  0xb0   :  { %196 = vst [vmem:[%s514_s2 + $0x30] sm:$0xff] %v165_v25 }
  0xb1   :  { %203 = vst [vmem:[%s514_s2 + $0x68] sm:$0xff] %v182_v23  ;;  %v245_v36 = vadd.f32 %v244_v30, %v230_v29 }
  0xb5   :  { %v175_v32 = vpop.f32.mrf.mxu2  ;;  %v185_v33 = vpop.f32.mrf.mxu3 }
  0xb6   :  { %v157_v34 = vpop.f32.mrf.mxu0  ;;  %v167_v35 = vpop.f32.mrf.mxu1  ;;  %200 = vst [vmem:[%s514_s2 + $0x50] sm:$0xff] %v175_v32  ;;  %v238_v61 = vmul.f32 %v175_v32, %v175_v32  ;;  %v242_v9 = vmul.f32 %v185_v33, %v185_v33 }
  0xb7   :  { %193 = vst [vmem:[%s514_s2 + $0x18] sm:$0xff] %v157_v34  ;;  %v208_v37 = vadd.f32 %v207_v31, %v157_v34  ;;  %v231_v38 = vmul.f32 %v157_v34, %v157_v34  ;;  %v235_v51 = vmul.f32 %v167_v35, %v167_v35 }
  0xb8   :  { %197 = vst [vmem:[%s514_s2 + $0x38] sm:$0xff] %v167_v35 }
  0xb9   :  { %v209_v40 = vadd.f32 %v208_v37, %v160_v17  ;;  %v246_v41 = vadd.f32 %v245_v36, %v231_v38  ;;  %204 = vst [vmem:[%s514_s2 + $0x70] sm:$0xff] %v185_v33 }
  0xbb   :  { %v247_v43 = vadd.f32 %v246_v41, %v232_v39  ;;  %v210_v44 = vadd.f32 %v209_v40, %v162_v21 }
  0xbd   :  { %v211_v46 = vadd.f32 %v210_v44, %v165_v25  ;;  %v248_v47 = vadd.f32 %v247_v43, %v233_v42  ;;  %v177_v48 = vpop.f32.mrf.mxu2  ;;  %v187_v49 = vpop.f32.mrf.mxu3 }
  0xbe   :  { %201 = vst [vmem:[%s514_s2 + $0x58] sm:$0xff] %v177_v48  ;;  %v239_v1 = vmul.f32 %v177_v48, %v177_v48  ;;  %v243_v13 = vmul.f32 %v187_v49, %v187_v49 }
  0xbf   :  { %v212_v50 = vadd.f32 %v211_v46, %v167_v35  ;;  %v249_v52 = vadd.f32 %v248_v47, %v234_v45  ;;  %205 = vst [vmem:[%s514_s2 + $0x78] sm:$0xff] %v187_v49 }
  0xc1   :  { %v213_v55 = vadd.f32 %v212_v50, %v170_v18  ;;  %v250_v56 = vadd.f32 %v249_v52, %v235_v51 }
  0xc3   :  { %v251_v58 = vadd.f32 %v250_v56, %v236_v54  ;;  %v214_v59 = vadd.f32 %v213_v55, %v172_v22 }
  0xc5   :  { %v215_v60 = vadd.f32 %v214_v59, %v175_v32  ;;  %v252_v62 = vadd.f32 %v251_v58, %v237_v57 }
  0xc7   :  { %v253_v63 = vadd.f32 %v252_v62, %v238_v61  ;;  %v216_v0 = vadd.f32 %v215_v60, %v177_v48 }
  0xc9   :  { %v217_v3 = vadd.f32 %v216_v0, %v455_v19  ;;  %v254_v4 = vadd.f32 %v253_v63, %v239_v1 }
  0xcb   :  { %v255_v6 = vadd.f32 %v254_v4, %v240_v2  ;;  %v218_v7 = vadd.f32 %v217_v3, %v182_v23 }
  0xcd   :  { %v219_v8 = vadd.f32 %v218_v7, %v185_v33  ;;  %v256_v10 = vadd.f32 %v255_v6, %v241_v5 }
  0xcf   :  { %v257_v11 = vadd.f32 %v256_v10, %v242_v9  ;;  %v220_v12 = vadd.f32 %v219_v8, %v187_v49 }
  0xd1   :  { %v221_v14 = vrot.slane %v220_v12, 4  ;;  %v258_v15 = vadd.f32 %v257_v11, %v243_v13 }
  0xd3   :  { %v222_v16 = vadd.f32 %v221_v14, %v220_v12  ;;  %v259_v17 = vrot.slane %v258_v15, 4 }
  0xd5   :  { %v223_v18 = vrot.slane %v222_v16, 2  ;;  %v260_v20 = vadd.f32 %v259_v17, %v258_v15 }
  0xd7   :  { %v224_v21 = vadd.f32 %v223_v18, %v222_v16  ;;  %v261_v22 = vrot.slane %v260_v20, 2 }
  0xd9   :  { %v225_v24 = vrot.slane %v224_v21, 1  ;;  %v262_v19 = vadd.f32 %v261_v22, %v260_v20 }
  0xdb   :  { %v226_v25 = vadd.f32 %v225_v24, %v224_v21  ;;  %v263_v26 = vrot.slane %v262_v19, 1 }
  0xdd   :  { %227 = vst [vmem:[%s515_s3] sm:$0x1] %v226_v25  ;;  %v264_v23 = vadd.f32 %v263_v26, %v262_v19 }
  0xdf   :  { %265 = vst [vmem:[%s515_s3 + $0x1] sm:$0x1] %v264_v23 }

// kernel: mynet_forward.8
= control target key start
LH: loop header
LB: loop body
LE: loop exit
PB: predicated region body
PF: predicated region fallthrough
CT: control target
= control target key end

     0   :  { %s4415_s21 = smov 0   ;;  %s4417_s22 = smov 0   ;;  %s5938_s0 = inlined_call_operand.vmem [shape: bf16[2,18,18,4], index: 0, kind: input, shape index: {}, may-alias: {0,1,2}]   ;;  %s5939_s1 = inlined_call_operand.vmem [shape: bf16[2,18,18,4], index: 1, kind: input, shape index: {}, may-alias: {0,1,2}]   ;;  %s5940_s2 = inlined_call_operand.vmem [shape: bf16[2,18,18,4], index: 2, kind: input, shape index: {}, may-alias: {0,1,2}]   ;;  %s5941_s3 = inlined_call_operand.vmem [shape: bf16[3,3,4,32], index: 3, kind: input, shape index: {}]   ;;  %s5942_s4 = inlined_call_operand.vmem [shape: f32[1,32], index: 4, kind: input, shape index: {}]   ;;  %s5943_s5 = inlined_call_operand.vmem [shape: f32[512,32], index: 5, kind: output, shape index: {0}]   ;;  %s5944_s6 = inlined_call_operand.vmem [shape: f32[2,2,8,32], index: 6, kind: output, shape index: {1}]  }
   0x1   :  { %s4419_s23 = smov 0   ;;  %s4421_s24 = smov 0  }
   0x2   :  { %s4423_s25 = smov 0  }
   0x3 LB: > { %s26_s26 = sadd.s32 1, %s4369_s23  ;;  %s29_s27 = sadd.s32 1, %s4373_s24  ;;  %s4377_s25 = sphi %s4423_s25, %s17_s25   ;;  %s4373_s24 = sphi %s4421_s24, %s5954_s24   ;;  %s4369_s23 = sphi %s4419_s23, %s5953_s23   ;;  %s4365_s22 = sphi %s4417_s22, %s5952_s22   ;;  %s4361_s21 = sphi %s4415_s21, %s5951_s21  }
   0x4   : > { %p27_p0 = scmp.ge.s32.totalorder %s26_s26, 2  ;;  %p3652_p1 = scmp.ge.s32.totalorder %s4377_s25, 1 }
   0x5   : > { %p299_p2 = scmp.lt.s32.totalorder %s4377_s25, 5 }
   0x6   : > { %s5956_s26 = smov (%p27_p0, %s26_s26), 0  ;;  %s5958_s27 = smov (!%p27_p0, %s29_s27), %s4373_s24 }
   0x7   : > { %p300_p3 = pnand %p3652_p1, %p299_p2  ;;  %p31_p4 = scmp.ge.s32.totalorder %s5958_s27, 2 }
   0x8   : > { %s4453_s30 = sshll.u32 (!%p300_p3), %s4361_s21, 3  ;;  %p377_p5 = scmp.lt.s32.totalorder (!%p300_p3), %s4365_s22, 1 }
   0x9   : > { %s5960_s27 = smov (%p31_p4, %s5958_s27), 0  ;;  %303 = sbr.rel (%p300_p3) target bundleno = 503 (0x1f7), region = 40 }
   0xa   : > { %p379_p6 = scmp.lt.s32.totalorder (!%p300_p3), %s4453_s30, 17  ;;  %s3659_s29 = sshll.u32 (!%p300_p3), %s4365_s22, 1 }
   0xb   : > { %s4916_s8 = sadd.s32 (!%p300_p3), %s4361_s21, %s3659_s29  ;;  %s406_s19 = sadd.s32 (!%p300_p3), 9, %s4453_s30 }
   0xc   : > { %s3660_s10 = sshll.u32 (!%p300_p3), %s4916_s8, 4  ;;  %p5300_p9 = scmp.lt.s32.totalorder (!%p300_p3), %s406_s19, 17 }
   0xd   : > { %p421_p8 = scmp.lt.s32.totalorder (!%p300_p3), %s3660_s10, 63  ;;  %p430_p10 = scmp.lt.s32.totalorder (!%p300_p3), %s4361_s21, 1 }
   0xe   : > { %v493_v0 = vld [vmem:[%s5941_s3] sm:$0x3]  ;;  %vm559_vm0 = vcmask 1041408   ;;  %v3739_v2 = vld [vmem:[%s5941_s3 + $0x2] sm:$0x3]  ;;  %s4462_s9 = scalar_select %p377_p5, %s4365_s22, 1 }
   0xf   : > { %v561_v1 = vsel %vm559_vm0, %v493_v0, 0  ;;  %v963_v3 = vsel %vm559_vm0, %v3739_v2, 0  ;;  %v3809_v4 = vld [vmem:[%s5941_s3 + $0x4] sm:$0x3]  ;;  %v3864_v5 = vld [vmem:[%s5941_s3 + $0x6] sm:$0x3] }
  0x10   : > { %4290 = vmatpush.bf16.msra.mxu1 %v561_v1  ;;  %4291 = vmatpush.bf16.msra.mxu2 %v561_v1  ;;  %s380_s14 = scalar_select %p379_p6, %s4453_s30, 17  ;;  %v1284_v6 = vsel %vm559_vm0, %v3809_v4, 0  ;;  %v1498_v7 = vsel %vm559_vm0, %v3864_v5, 0  ;;  %vm439_vm1 = vcmask 27648   ;;  %vm534_vm2 = vcmask 31744  }
  0x11   : > { %4292 = vmatpush.bf16.msra.mxu3 %v561_v1  ;;  %s4475_s15 = smul.u32 54, %s4462_s9  ;;  %570 = vmatpush.bf16.msra.mxu0 %v561_v1  ;;  %vm632_vm3 = vsmask.f32 3328  ;;  %vm633_vm4 = vsmask.f32 7440  ;;  %vm1068_vm5 = vcmask 1042432  }
  0x12   : > { %s4293_s16 = smul.u32 3, %s380_s14  ;;  %vm1069_vm6 = vcmask 1046532   ;;  %v3926_v15 = vld [vmem:[%s5941_s3 + $0x8] sm:$0x3]  ;;  %vm4518_vm7 = vmor %vm632_vm3, %vm633_vm4  ;;  %v3996_v54 = vld [vmem:[%s5941_s3 + $0xa] sm:$0x3] }
  0x13   : > { %v1928_v30 = vsel %vm559_vm0, %v3926_v15, 0  ;;  %vm4527_vm8 = vmor %vm1068_vm5, %vm1069_vm6  ;;  %v2246_v55 = vsel %vm559_vm0, %v3996_v54, 0  ;;  %v4049_v56 = vld [vmem:[%s5941_s3 + $0xc] sm:$0x3]  ;;  %s5964_s10 = smov (!%p421_p8, %s3660_s10), 63  ;;  %vm612_vm9 = vcmask 261120  }
  0x14   : > { %972 = vmatpush.bf16.msrb.mxu1 %v963_v3  ;;  %1293 = vmatpush.bf16.msrb.mxu2 %v1284_v6  ;;  %s383_s17 = sadd.s32 %s4475_s15, %s4293_s16  ;;  %v2460_v58 = vsel %vm559_vm0, %v4049_v56, 0  ;;  %s3661_s14 = sshll.u32 %s5964_s10, 3  ;;  %vm3468_vm10 = vcmask 259072   ;;  %vm3412_vm11 = vcmask 253952  }
  0x15   : > { %1507 = vmatpush.bf16.msrb.mxu3 %v1498_v7  ;;  %s3654_s18 = sshll.u32 %s383_s17, 2  ;;  %1937 = vmatpush.bf16.msrb.mxu0 %v1928_v30  ;;  %s5966_s19 = smov (!%p5300_p9, %s406_s19), 17 }
  0x16   : > { %s4481_s28 = scalar_lea.vmem %s5938_s0, %s3654_s18  ;;  %s393_s18 = sadd.s32 8, %s4453_s30 }
  0x17   : > { %v3666_v8 = vld [vmem:[%s4481_s28 + $0x18] sm:$0xf]  ;;  %v3667_v9 = vld [vmem:[%s4481_s28 + $0x1c] sm:$0xf]  ;;  %v3670_v10 = vld [vmem:[%s4481_s28 + $0x30] sm:$0xf] }
  0x18   : > { %450 = vst.msk [vmem:[#allocation2 + $0x10] sm:$0xf] %vm439_vm1, %v3666_v8  ;;  %v3671_v11 = vld [vmem:[%s4481_s28 + $0x34] sm:$0xf]  ;;  %v3674_v12 = vld [vmem:[%s4481_s28 + $0x48] sm:$0xf] }
  0x19   : > { %451 = vst.msk [vmem:[#allocation2 + $0x14] sm:$0xf] %vm439_vm1, %v3667_v9  ;;  %v3675_v13 = vld [vmem:[%s4481_s28 + $0x4c] sm:$0xf]  ;;  %v3668_v14 = vld [vmem:[%s4481_s28 + $0x24] sm:$0xf] }
  0x1a   : > { %460 = vst.msk [vmem:[#allocation2 + $0x20] sm:$0xf] %vm439_vm1, %v3670_v10  ;;  %v3669_v16 = vld [vmem:[%s4481_s28 + $0x28] sm:$0xf]  ;;  %v3672_v17 = vld [vmem:[%s4481_s28 + $0x3c] sm:$0xf] }
  0x1b   : > { %461 = vst.msk [vmem:[#allocation2 + $0x24] sm:$0xf] %vm439_vm1, %v3671_v11  ;;  %v3673_v18 = vld [vmem:[%s4481_s28 + $0x40] sm:$0xf]  ;;  %v630_v21 = vld [vmem:[%s4481_s28 + $0x4] sm:$0xf] }
  0x1c   : > { %470 = vst.msk [vmem:[#allocation2 + $0x30] sm:$0xf] %vm439_vm1, %v3674_v12  ;;  %v629_v19 = vld [vmem:[%s4481_s28] sm:$0xf]  ;;  %v631_v22 = vld [vmem:[%s4481_s28 + $0x8] sm:$0x1] }
  0x1d   : > { %471 = vst.msk [vmem:[#allocation2 + $0x34] sm:$0xf] %vm439_vm1, %v3675_v13  ;;  %v437_v20 = vld [vmem:[%s4481_s28] sm:$0xf]  ;;  %v438_v23 = vld [vmem:[%s4481_s28 + $0x4] sm:$0xf] }
  0x1e   : > { %455 = vst.msk [vmem:[#allocation2 + $0x18] sm:$0xf] %vm439_vm1, %v3668_v14  ;;  %v636_v24 = vshrl.u32 %v629_v19, 16  ;;  %v639_v25 = vshll.u32 %v629_v19, 16  ;;  %v645_v26 = vshll.u32 %v630_v21, 16  ;;  %v649_v27 = vshrl.u32 %v630_v21, 16 }
  0x1f   : > { %456 = vst.msk [vmem:[#allocation2 + $0x1c] sm:$0xf] %vm439_vm1, %v3669_v16  ;;  %v655_v28 = vshll.u32 %v631_v22, 16  ;;  %v3676_v29 = vld [vmem:[%s4481_s28 + $0x54] sm:$0xf]  ;;  %p4837_p7 = scmp.lt.s32.totalorder %s393_s18, 17 }
  0x20   : > { %v4220_v31 = vld [vmem:[#allocation2 + $0x10] sm:$0xff]  ;;  %465 = vst.msk [vmem:[#allocation2 + $0x28] sm:$0xf] %vm439_vm1, %v3672_v17  ;;  %v638_v32 = vrot.slane %v636_v24, 4  ;;  %v641_v33 = vrot.slane %v639_v25, 5  ;;  %v647_v34 = vrot.slane %v645_v26, 5 }
  0x21   : > { %466 = vst.msk [vmem:[#allocation2 + $0x2c] sm:$0xf] %vm439_vm1, %v3673_v18  ;;  %v651_v35 = vrot.slane %v649_v27, 4  ;;  %v3677_v36 = vld [vmem:[%s4481_s28 + $0x58] sm:$0xf]  ;;  %3712 = vmatmul.msk.bf16.vlgmr.msra.gmra.mxu1 %vm534_vm2, %v4220_v31  ;;  %v657_v42 = vrot.slane %v655_v28, 5 }
  0x22   : > { %v4222_v37 = vld [vmem:[#allocation2 + $0x20] sm:$0xff]  ;;  %440 = vst.msk [vmem:[#allocation2] sm:$0xf] %vm439_vm1, %v437_v20  ;;  %v642_v39 = vor.u32 %v641_v33, %v638_v32  ;;  %v1064_v51 = vld [vmem:[%s4481_s28 + $0x8] sm:$0x1]  ;;  %2255 = vmatpush.bf16.msra.mxu1 %v2246_v55  ;;  %s5962_s18 = smov (!%p4837_p7, %s393_s18), 17 }
  0x23   : > { %v1062_v40 = vld [vmem:[%s4481_s28] sm:$0xe]  ;;  %441 = vst.msk [vmem:[#allocation2 + $0x4] sm:$0xf] %vm439_vm1, %v438_v23  ;;  %v652_v41 = vor.u32 %v651_v35, %v647_v34  ;;  %v1063_v43 = vld [vmem:[%s4481_s28 + $0x4] sm:$0xf]  ;;  %3714 = vmatmul.msk.bf16.vlgmr.msra.gmra.mxu2 %vm534_vm2, %v4222_v37 }
  0x24   : > { %v4224_v45 = vld [vmem:[#allocation2 + $0x30] sm:$0xff]  ;;  %v643_v46 = vrot.slane %v642_v39, 4  ;;  %475 = vst.msk [vmem:[#allocation2 + $0x38] sm:$0xf] %vm439_vm1, %v3676_v29  ;;  %v3780_v47 = vrot.slane %v1062_v40, 9  ;;  %v1073_v48 = vrot.slane %v1063_v43, 5  ;;  %2469 = vmatpush.bf16.msra.mxu2 %v2460_v58 }
  0x25   : > { %v653_v49 = vrot.slane %v652_v41, 4  ;;  %476 = vst.msk [vmem:[#allocation2 + $0x3c] sm:$0xf] %vm439_vm1, %v3677_v36  ;;  %3716 = vmatmul.msk.bf16.vlgmr.msra.gmra.mxu3 %vm534_vm2, %v4224_v45  ;;  %v3850_v53 = vld [vmem:[%s4481_s28 + $0xc] sm:$0xf]  ;;  %v1076_v2 = vrot.slane %v1064_v51, 5 }
  0x26   : > { %v648_v50 = vsel %vm4518_vm7, %v643_v46, %v647_v34  ;;  %v1074_v52 = vsel %vm4527_vm8, %v3780_v47, %v1073_v48  ;;  %v3664_v59 = vld [vmem:[%s4481_s28 + $0xc] sm:$0xf]  ;;  %v3665_v60 = vld [vmem:[%s4481_s28 + $0x10] sm:$0xf]  ;;  %v1075_v1 = vrot.slane %v1073_v48, 4  ;;  %v4221_v8 = vld [vmem:[#allocation2 + $0x18] sm:$0xff] }
  0x27   : > { %661 = vst.msk [vmem:[#allocation2] sm:$0xf] %vm439_vm1, %v648_v50  ;;  %v658_v57 = vsel %vm4518_vm7, %v653_v49, %v657_v42  ;;  %v3905_v61 = vld [vmem:[%s4481_s28 + $0xc] sm:$0xf]  ;;  %v3906_v63 = vld [vmem:[%s4481_s28 + $0x10] sm:$0xf] }
  0x28   : > { %1080 = vst.msk [vmem:[#allocation2] sm:$0xf] %vm439_vm1, %v1074_v52  ;;  %v1601_v0 = vshrl.u32 %v3905_v61, 16  ;;  %v1604_v3 = vshll.u32 %v3905_v61, 16  ;;  %v1610_v4 = vshll.u32 %v3906_v63, 16  ;;  %v1614_v7 = vshrl.u32 %v3906_v63, 16 }
  0x29   : > { %1385 = vst.msk [vmem:[#allocation2] sm:$0xf] %vm439_vm1, %v3850_v53  ;;  %v3907_v5 = vld [vmem:[%s4481_s28 + $0x14] sm:$0x1]  ;;  %v4108_v10 = vld [vmem:[%s5941_s3 + $0xe] sm:$0x3]  ;;  %v1077_v23 = vsel %vm4527_vm8, %v1075_v1, %v1076_v2 }
  0x2a   : > { %445 = vst.msk [vmem:[#allocation2 + $0x8] sm:$0xf] %vm439_vm1, %v3664_v59  ;;  %v1603_v6 = vrot.slane %v1601_v0, 4  ;;  %v1606_v9 = vrot.slane %v1604_v3, 5  ;;  %v3718_v11 = vld [vmem:[%s4481_s28 + $0xc] sm:$0xf] }
  0x2b   : > { %446 = vst.msk [vmem:[#allocation2 + $0xc] sm:$0xf] %vm439_vm1, %v3665_v60  ;;  %v1612_v12 = vrot.slane %v1610_v4, 5  ;;  %v1616_v13 = vrot.slane %v1614_v7, 4  ;;  %v2890_v14 = vsel %vm559_vm0, %v4108_v10, 0  ;;  %v667_v16 = vshrl.u32 %v3718_v11, 16 }
  0x2c   : > { %v3719_v15 = vld [vmem:[%s4481_s28 + $0x10] sm:$0xf]  ;;  %v1607_v17 = vor.u32 %v1606_v9, %v1603_v6  ;;  %2899 = vmatpush.bf16.msra.mxu3 %v2890_v14  ;;  %v3720_v18 = vld [vmem:[%s4481_s28 + $0x14] sm:$0x1]  ;;  %v670_v19 = vshll.u32 %v3718_v11, 16  ;;  %v4223_v22 = vld [vmem:[#allocation2 + $0x28] sm:$0xff] }
  0x2d   : > { %v676_v20 = vshll.u32 %v3719_v15, 16  ;;  %v680_v21 = vshrl.u32 %v3719_v15, 16  ;;  %v1620_v24 = vshll.u32 %v3907_v5, 16  ;;  %v669_v25 = vrot.slane %v667_v16, 4  ;;  %v3781_v27 = vld [vmem:[%s4481_s28 + $0xc] sm:$0xe] }
  0x2e   : > { %v686_v26 = vshll.u32 %v3720_v18, 16  ;;  %v1608_v28 = vrot.slane %v1607_v17, 4  ;;  %v672_v29 = vrot.slane %v670_v19, 5  ;;  %v3782_v32 = vld [vmem:[%s4481_s28 + $0x10] sm:$0xf]  ;;  %v4225_v33 = vld [vmem:[#allocation2 + $0x38] sm:$0xff]  ;;  %v1617_v35 = vor.u32 %v1616_v13, %v1612_v12 }
  0x2f   : > { %v678_v30 = vrot.slane %v676_v20, 5  ;;  %v682_v31 = vrot.slane %v680_v21, 4  ;;  %v3784_v36 = vrot.slane %v3781_v27, 9  ;;  %v1090_v42 = vrot.slane %v3782_v32, 5  ;;  %v3783_v47 = vld [vmem:[%s4481_s28 + $0x14] sm:$0x1] }
  0x30   : > { %v4218_v62 = vld [vmem:[#allocation2] sm:$0xff]  ;;  %v1613_v37 = vsel %vm4518_vm7, %v1608_v28, %v1612_v12  ;;  %v673_v39 = vor.u32 %v672_v29, %v669_v25  ;;  %v688_v41 = vrot.slane %v686_v26, 5  ;;  %v4582_v43 = vrot.slane %v1620_v24, 5  ;;  %v3851_v48 = vld [vmem:[%s4481_s28 + $0x10] sm:$0xf]  ;;  %s4295_s20 = smul.u32 3, %s5962_s18  ;;  %s4984_s18 = scalar_lea.vmem %s5943_s5, %s3661_s14 }
  0x31   : > { %662 = vst.msk [vmem:[#allocation2 + $0x4] sm:$0xf] %vm439_vm1, %v658_v57  ;;  %3710 = vmatmul.msk.bf16.vlgmr.msra.gmra.mxu0 %vm534_vm2, %v4218_v62  ;;  %3713 = vmatmul.msk.bf16.gmra.mxu1 %vm534_vm2, %v4221_v8  ;;  %v683_v40 = vor.u32 %v682_v31, %v678_v30  ;;  %v4587_v50 = vrot.slane %v1617_v35, 4  ;;  %v1091_v51 = vsel %vm4527_vm8, %v3784_v36, %v1090_v42  ;;  %v3908_v52 = vld [vmem:[%s4481_s28 + $0x18] sm:$0xf]  ;;  %v1093_v61 = vrot.slane %v3783_v47, 5 }
  0x32   : > { %v674_v45 = vrot.slane %v673_v39, 4  ;;  %v4219_v49 = vld [vmem:[#allocation2 + $0x8] sm:$0xff]  ;;  %v3909_v53 = vld [vmem:[%s4481_s28 + $0x1c] sm:$0xf]  ;;  %v3852_v56 = vld [vmem:[%s4481_s28 + $0x18] sm:$0xf]  ;;  %s4907_s7 = sadd.s32 %s4295_s20, %s4475_s15 }
  0x33   : > { %3715 = vmatmul.msk.bf16.gmra.mxu2 %vm534_vm2, %v4223_v22  ;;  %v684_v46 = vrot.slane %v683_v40, 4  ;;  %v1632_v57 = vshrl.u32 %v3908_v52, 16  ;;  %v1635_v58 = vshll.u32 %v3908_v52, 16  ;;  %v3967_v59 = vld [vmem:[%s4481_s28 + $0xc] sm:$0xe]  ;;  %v1641_v62 = vshll.u32 %v3909_v53, 16 }
  0x34   : > { %v679_v54 = vsel %vm4518_vm7, %v674_v45, %v678_v30  ;;  %v3721_v60 = vld [vmem:[%s4481_s28 + $0x18] sm:$0xf]  ;;  %v3968_v63 = vld [vmem:[%s4481_s28 + $0x10] sm:$0xf]  ;;  %v1645_v2 = vshrl.u32 %v3909_v53, 16  ;;  %v3970_v3 = vrot.slane %v3967_v59, 9  ;;  %v1623_v28 = vsel %vm4518_vm7, %v4587_v50, %v4582_v43 }
  0x35   : > { %3717 = vmatmul.msk.bf16.gmra.mxu3 %vm534_vm2, %v4225_v33  ;;  %v689_v55 = vsel %vm4518_vm7, %v684_v46, %v688_v41  ;;  %692 = vst.msk [vmem:[#allocation2 + $0x8] sm:$0xf] %vm439_vm1, %v679_v54  ;;  %v1634_v0 = vrot.slane %v1632_v57, 4  ;;  %v1637_v1 = vrot.slane %v1635_v58, 5  ;;  %v1092_v5 = vrot.slane %v1090_v42, 4  ;;  %s3656_s22 = sshll.u32 %s4907_s7, 2 }
  0x36   : > { %693 = vst.msk [vmem:[#allocation2 + $0xc] sm:$0xf] %vm439_vm1, %v689_v55  ;;  %v3722_v6 = vld [vmem:[%s4481_s28 + $0x1c] sm:$0xf]  ;;  %v3910_v7 = vld [vmem:[%s4481_s28 + $0x20] sm:$0x1]  ;;  %s4935_s13 = scalar_lea.vmem %s5939_s1, %s3656_s22 }
  0x37   : > { %1097 = vst.msk [vmem:[#allocation2 + $0x8] sm:$0xf] %vm439_vm1, %v1091_v51  ;;  %v1638_v8 = vor.u32 %v1637_v1, %v1634_v0  ;;  %v1643_v9 = vrot.slane %v1641_v62, 5  ;;  %v2035_v10 = vrot.slane %v3968_v63, 5  ;;  %v4175_v11 = vld [vmem:[%s5941_s3 + $0x10] sm:$0x3]  ;;  %v1094_v20 = vsel %vm4527_vm8, %v1092_v5, %v1093_v61 }
  0x38   : > { %v4575_v34 = vld [vmem:[#allocation2] sm:$0xff]  ;;  %1389 = vst.msk [vmem:[#allocation2 + $0x8] sm:$0xf] %vm439_vm1, %v3852_v56  ;;  %v3208_v12 = vsel %vm559_vm0, %v4175_v11, 0  ;;  %v698_v14 = vshrl.u32 %v3721_v60, 16  ;;  %v1647_v16 = vrot.slane %v1645_v2, 4 }
  0x39   : > { %1081 = vst.msk [vmem:[#allocation2 + $0x4] sm:$0xf] %vm439_vm1, %v1077_v23  ;;  %v3723_v13 = vld [vmem:[%s4481_s28 + $0x20] sm:$0x1]  ;;  %v1639_v15 = vrot.slane %v1638_v8, 4  ;;  %v2036_v17 = vsel %vm4527_vm8, %v3970_v3, %v2035_v10  ;;  %3217 = vmatpush.bf16.msra.mxu0 %v3208_v12  ;;  %v701_v18 = vshll.u32 %v3721_v60, 16 }
  0x3a   : > { %1626 = vst.msk [vmem:[#allocation2] sm:$0xf] %vm439_vm1, %v1613_v37  ;;  %v3785_v19 = vld [vmem:[%s4481_s28 + $0x18] sm:$0xe]  ;;  %v700_v21 = vrot.slane %v698_v14, 4  ;;  %v707_v22 = vshll.u32 %v3722_v6, 16  ;;  %v1648_v33 = vor.u32 %v1647_v16, %v1643_v9 }
  0x3b   : > { %v711_v23 = vshrl.u32 %v3722_v6, 16  ;;  %v1644_v24 = vsel %vm4518_vm7, %v1639_v15, %v1643_v9  ;;  %v703_v25 = vrot.slane %v701_v18, 5  ;;  %v717_v26 = vshll.u32 %v3723_v13, 16  ;;  %v3786_v27 = vld [vmem:[%s4481_s28 + $0x1c] sm:$0xf]  ;;  %s4296_s30 = smul.u32 3, %s5966_s19 }
  0x3c   : > { %v1651_v30 = vshll.u32 %v3910_v7, 16  ;;  %v709_v31 = vrot.slane %v707_v22, 5  ;;  %v3969_v35 = vld [vmem:[%s4481_s28 + $0x14] sm:$0x1]  ;;  %v3788_v37 = vrot.slane %v3785_v19, 9  ;;  %v1107_v45 = vrot.slane %v3786_v27, 5 }
  0x3d   : > { %v713_v32 = vrot.slane %v711_v23, 4  ;;  %v704_v36 = vor.u32 %v703_v25, %v700_v21  ;;  %v719_v41 = vrot.slane %v717_v26, 5  ;;  %v3787_v42 = vld [vmem:[%s4481_s28 + $0x20] sm:$0x1]  ;;  %v3853_v46 = vld [vmem:[%s4481_s28 + $0x1c] sm:$0xf]  ;;  %s413_s29 = sadd.s32 %s4296_s30, %s4475_s15 }
  0x3e   : > { %v4638_v47 = vrot.slane %v1651_v30, 5  ;;  %v3724_v50 = vld [vmem:[%s4481_s28 + $0x24] sm:$0xf]  ;;  %v4641_v51 = vrot.slane %v1648_v33, 4  ;;  %v1108_v53 = vsel %vm4527_vm8, %v3788_v37, %v1107_v45  ;;  %v1110_v54 = vrot.slane %v3787_v42, 5  ;;  %s3658_s15 = sshll.u32 %s413_s29, 2 }
  0x3f   : > { %v4627_v29 = vld [vmem:[#allocation2 + $0x8] sm:$0xff]  ;;  %v714_v40 = vor.u32 %v713_v32, %v709_v31  ;;  %v705_v43 = vrot.slane %v704_v36, 4  ;;  %v3854_v55 = vld [vmem:[%s4481_s28 + $0x24] sm:$0xf]  ;;  %v1109_v60 = vrot.slane %v1107_v45, 4  ;;  %v729_v63 = vshrl.u32 %v3724_v50, 16  ;;  %s5391_s22 = scalar_lea.vmem %s5940_s2, %s3658_s15 }
  0x40   : > { %1657 = vst.msk [vmem:[#allocation2 + $0x8] sm:$0xf] %vm439_vm1, %v1644_v24  ;;  %v3725_v56 = vld [vmem:[%s4481_s28 + $0x28] sm:$0xf]  ;;  %v3911_v58 = vld [vmem:[%s4481_s28 + $0x24] sm:$0xf]  ;;  %v1654_v25 = vsel %vm4518_vm7, %v4641_v51, %v4638_v47 }
  0x41   : > { %v4234_v4 = vld [vmem:[#allocation2] sm:$0xff]  ;;  %3711 = vmatmul.msk.bf16.gmra.mxu0 %vm534_vm2, %v4219_v49  ;;  %1098 = vst.msk [vmem:[#allocation2 + $0xc] sm:$0xf] %vm439_vm1, %v1094_v20  ;;  %3772 = vmatmul.msk.bf16.vlgmr.msrb.gmra.mxu1 %vm534_vm2, %v4575_v34  ;;  %v2038_v49 = vrot.slane %v3969_v35, 5  ;;  %v715_v34 = vrot.slane %v714_v40, 4  ;;  %v710_v52 = vsel %vm4518_vm7, %v705_v43, %v709_v31  ;;  %v1663_v61 = vshrl.u32 %v3911_v58, 16 }
  0x42   : > { %1386 = vst.msk [vmem:[#allocation2 + $0x4] sm:$0xf] %vm439_vm1, %v3851_v48  ;;  %v2037_v48 = vrot.slane %v2035_v10, 4  ;;  %v3912_v59 = vld [vmem:[%s4481_s28 + $0x28] sm:$0xf]  ;;  %v1666_v62 = vshll.u32 %v3911_v58, 16  ;;  %v1111_v12 = vsel %vm4527_vm8, %v1109_v60, %v1110_v54 }
  0x43   : > { %2042 = vst.msk [vmem:[#allocation2] sm:$0xf] %vm439_vm1, %v2036_v17  ;;  %3842 = vmatmul.msk.bf16.vlgmr.msrb.gmra.mxu2 %vm534_vm2, %v4234_v4  ;;  %v720_v57 = vsel %vm4518_vm7, %v715_v34, %v719_v41  ;;  %v1672_v2 = vshll.u32 %v3912_v59, 16  ;;  %v1676_v3 = vshrl.u32 %v3912_v59, 16  ;;  %v732_v4 = vshll.u32 %v3724_v50, 16  ;;  %s5968_s21 = smov (!%p430_p10, %s4361_s21), 1 }
  0x44   : > { %723 = vst.msk [vmem:[#allocation2 + $0x10] sm:$0xf] %vm439_vm1, %v710_v52  ;;  %v2039_v1 = vsel %vm4527_vm8, %v2037_v48, %v2038_v49  ;;  %v1665_v5 = vrot.slane %v1663_v61, 4  ;;  %v1668_v6 = vrot.slane %v1666_v62, 5  ;;  %v3971_v7 = vld [vmem:[%s4481_s28 + $0x18] sm:$0xe] }
  0x45   : > { %724 = vst.msk [vmem:[#allocation2 + $0x14] sm:$0xf] %vm439_vm1, %v720_v57  ;;  %v3726_v9 = vld [vmem:[%s4481_s28 + $0x2c] sm:$0x1]  ;;  %v738_v10 = vshll.u32 %v3725_v56, 16  ;;  %v1674_v17 = vrot.slane %v1672_v2, 5 }
  0x46   : > { %1114 = vst.msk [vmem:[#allocation2 + $0x10] sm:$0xf] %vm439_vm1, %v1108_v53  ;;  %v3789_v11 = vld [vmem:[%s4481_s28 + $0x24] sm:$0xe]  ;;  %v1669_v13 = vor.u32 %v1668_v6, %v1665_v5  ;;  %v3972_v14 = vld [vmem:[%s4481_s28 + $0x1c] sm:$0xf] }
  0x47   : > { %1393 = vst.msk [vmem:[#allocation2 + $0x10] sm:$0xf] %vm439_vm1, %v3854_v55  ;;  %v4671_v15 = vld [vmem:[%s4481_s28 + $0x28] sm:$0xf]  ;;  %v3913_v16 = vld [vmem:[%s4481_s28 + $0x2c] sm:$0x1] }
  0x48   : > { %v4656_v0 = vld [vmem:[#allocation2 + $0x8] sm:$0xff]  ;;  %v1678_v18 = vrot.slane %v1676_v3, 4  ;;  %v3974_v19 = vrot.slane %v3971_v7, 9  ;;  %v2052_v20 = vrot.slane %v3972_v14, 5  ;;  %v1670_v21 = vrot.slane %v1669_v13, 4  ;;  %s3662_s11 = sshll.u32 %s4462_s9, 1 }
  0x49   : > { %1390 = vst.msk [vmem:[#allocation2 + $0xc] sm:$0xf] %vm439_vm1, %v3853_v46  ;;  %v3973_v22 = vld [vmem:[%s4481_s28 + $0x20] sm:$0x1]  ;;  %v731_v23 = vrot.slane %v729_v63, 4  ;;  %v734_v24 = vrot.slane %v732_v4, 5  ;;  %s433_s12 = sadd.s32 %s3662_s11, %s5968_s21 }
  0x4a   : > { %v4242_v39 = vld [vmem:[#allocation2] sm:$0xff]  ;;  %v2053_v27 = vsel %vm4527_vm8, %v3974_v19, %v2052_v20  ;;  %v742_v30 = vshrl.u32 %v3725_v56, 16  ;;  %v3727_v31 = vld [vmem:[%s4481_s28 + $0x30] sm:$0xf]  ;;  %v1675_v32 = vsel %vm4518_vm7, %v1670_v21, %v1674_v17  ;;  %v748_v35 = vshll.u32 %v3726_v9, 16  ;;  %s3663_s21 = sshll.u32 %s433_s12, 3 }
  0x4b   : > { %1627 = vst.msk [vmem:[#allocation2 + $0x4] sm:$0xf] %vm439_vm1, %v1623_v28  ;;  %3897 = vmatmul.msk.bf16.vlgmr.msrb.gmra.mxu3 %vm534_vm2, %v4242_v39  ;;  %v740_v28 = vrot.slane %v738_v10, 5  ;;  %v735_v33 = vor.u32 %v734_v24, %v731_v23  ;;  %v3792_v36 = vrot.slane %v3789_v11, 9  ;;  %v3728_v37 = vld [vmem:[%s4481_s28 + $0x34] sm:$0xf]  ;;  %v1679_v40 = vor.u32 %v1678_v18, %v1674_v17  ;;  %s5885_s14 = scalar_lea.vmem %s5944_s6, %s3663_s21 }
  0x4c   : > { %v1682_v41 = vshll.u32 %v3913_v16, 16  ;;  %v744_v42 = vrot.slane %v742_v30, 4  ;;  %v1124_v43 = vrot.slane %v4671_v15, 5  ;;  %v2054_v45 = vrot.slane %v2052_v20, 4  ;;  %v3855_v49 = vld [vmem:[%s4481_s28 + $0x28] sm:$0xf] }
  0x4d   : > { %v2055_v46 = vrot.slane %v3973_v22, 5  ;;  %v736_v47 = vrot.slane %v735_v33, 4  ;;  %v760_v48 = vshrl.u32 %v3727_v31, 16  ;;  %v750_v50 = vrot.slane %v748_v35, 5  ;;  %v3791_v51 = vld [vmem:[%s4481_s28 + $0x2c] sm:$0x1] }
  0x4e   : > { %v4680_v26 = vld [vmem:[#allocation2 + $0x10] sm:$0xff]  ;;  %v745_v34 = vor.u32 %v744_v42, %v740_v28  ;;  %v1125_v52 = vsel %vm4527_vm8, %v3792_v36, %v1124_v43  ;;  %v763_v53 = vshll.u32 %v3727_v31, 16  ;;  %v769_v57 = vshll.u32 %v3728_v37, 16  ;;  %v3729_v59 = vld [vmem:[%s4481_s28 + $0x38] sm:$0x1] }
  0x4f   : > { %1115 = vst.msk [vmem:[#allocation2 + $0x14] sm:$0xf] %vm439_vm1, %v1111_v12  ;;  %v741_v54 = vsel %vm4518_vm7, %v736_v47, %v740_v28  ;;  %v3856_v55 = vld [vmem:[%s4481_s28 + $0x30] sm:$0xf]  ;;  %v762_v56 = vrot.slane %v760_v48, 4  ;;  %v773_v58 = vshrl.u32 %v3728_v37, 16 }
  0x50   : > { %v4243_v39 = vld [vmem:[#allocation2 + $0x8] sm:$0xff]  ;;  %1688 = vst.msk [vmem:[#allocation2 + $0x10] sm:$0xf] %vm439_vm1, %v1675_v32  ;;  %v765_v60 = vrot.slane %v763_v53, 5  ;;  %v1684_v61 = vrot.slane %v1682_v41, 5  ;;  %v4707_v62 = vrot.slane %v769_v57, 5 }
  0x51   : > { %1658 = vst.msk [vmem:[#allocation2 + $0xc] sm:$0xf] %vm439_vm1, %v1654_v25  ;;  %3773 = vmatmul.msk.bf16.gmra.mxu1 %vm534_vm2, %v4627_v29  ;;  %v746_v29 = vrot.slane %v745_v34, 4  ;;  %v775_v63 = vrot.slane %v773_v58, 4  ;;  %v1680_v2 = vrot.slane %v1679_v40, 4  ;;  %v1127_v5 = vrot.slane %v3791_v51, 5 }
  0x52   : > { %v4250_v8 = vld [vmem:[#allocation2] sm:$0xff]  ;;  %2059 = vst.msk [vmem:[#allocation2 + $0x8] sm:$0xf] %vm439_vm1, %v2053_v27  ;;  %v3914_v4 = vld [vmem:[%s4481_s28 + $0x30] sm:$0xf]  ;;  %v766_v7 = vor.u32 %v765_v60, %v762_v56  ;;  %v1126_v15 = vrot.slane %v1124_v43, 4 }
  0x53   : > { %2043 = vst.msk [vmem:[#allocation2 + $0x4] sm:$0xf] %vm439_vm1, %v2039_v1  ;;  %3959 = vmatmul.msk.bf16.vlgmr.msrb.gmra.mxu0 %vm534_vm2, %v4250_v8  ;;  %3843 = vmatmul.msk.bf16.gmra.mxu2 %vm534_vm2, %v4656_v0  ;;  %v2056_v0 = vsel %vm4527_vm8, %v2054_v45, %v2055_v46  ;;  %v751_v3 = vsel %vm4518_vm7, %v746_v29, %v750_v50  ;;  %v3915_v6 = vld [vmem:[%s4481_s28 + $0x34] sm:$0xf]  ;;  %v779_v8 = vshll.u32 %v3729_v59, 16  ;;  %v1694_v11 = vshrl.u32 %v3914_v4, 16 }
  0x54   : > { %754 = vst.msk [vmem:[#allocation2 + $0x18] sm:$0xf] %vm439_vm1, %v741_v54  ;;  %v3916_v10 = vld [vmem:[%s4481_s28 + $0x38] sm:$0x1]  ;;  %v1697_v12 = vshll.u32 %v3914_v4, 16  ;;  %v1703_v13 = vshll.u32 %v3915_v6, 16  ;;  %v776_v14 = vor.u32 %v775_v63, %v4707_v62  ;;  %v1685_v30 = vsel %vm4518_vm7, %v1680_v2, %v1684_v61 }
  0x55   : > { %1131 = vst.msk [vmem:[#allocation2 + $0x18] sm:$0xf] %vm439_vm1, %v1125_v52  ;;  %v1707_v16 = vshrl.u32 %v3915_v6, 16  ;;  %v3975_v17 = vld [vmem:[%s4481_s28 + $0x24] sm:$0xe]  ;;  %v1696_v19 = vrot.slane %v1694_v11, 4  ;;  %v1128_v36 = vsel %vm4527_vm8, %v1126_v15, %v1127_v5 }
  0x56   : > { %1397 = vst.msk [vmem:[#allocation2 + $0x18] sm:$0xf] %vm439_vm1, %v3856_v55  ;;  %v3793_v18 = vld [vmem:[%s4481_s28 + $0x30] sm:$0xe]  ;;  %v1699_v20 = vrot.slane %v1697_v12, 5  ;;  %v3978_v22 = vrot.slane %v3975_v17, 9 }
  0x57   : > { %v4710_v1 = vld [vmem:[#allocation2 + $0x10] sm:$0xff]  ;;  %755 = vst.msk [vmem:[#allocation2 + $0x1c] sm:$0xf] %vm439_vm1, %v751_v3  ;;  %v3976_v21 = vld [vmem:[%s4481_s28 + $0x28] sm:$0xf]  ;;  %v1705_v23 = vrot.slane %v1703_v13, 5 }
  0x58   : > { %1394 = vst.msk [vmem:[#allocation2 + $0x14] sm:$0xf] %vm439_vm1, %v3855_v49  ;;  %v1709_v24 = vrot.slane %v1707_v16, 4  ;;  %v3977_v25 = vld [vmem:[%s4481_s28 + $0x2c] sm:$0x1]  ;;  %v2069_v27 = vrot.slane %v3976_v21, 5  ;;  %v1700_v31 = vor.u32 %v1699_v20, %v1696_v19 }
  0x59   : > { %v4251_v9 = vld [vmem:[#allocation2 + $0x8] sm:$0xff]  ;;  %v767_v28 = vrot.slane %v766_v7, 4  ;;  %v777_v32 = vrot.slane %v776_v14, 4  ;;  %v781_v33 = vrot.slane %v779_v8, 5  ;;  %v3794_v35 = vld [vmem:[%s4481_s28 + $0x34] sm:$0xf] }
  0x5a   : > { %2060 = vst.msk [vmem:[#allocation2 + $0xc] sm:$0xf] %vm439_vm1, %v2056_v0  ;;  %v1713_v37 = vshll.u32 %v3916_v10, 16  ;;  %v3730_v40 = vld [vmem:[%s4481_s28 + $0x3c] sm:$0xf]  ;;  %v1701_v43 = vrot.slane %v1700_v31, 4  ;;  %v1710_v48 = vor.u32 %v1709_v24, %v1705_v23 }
  0x5b   : > { %3898 = vmatmul.msk.bf16.gmra.mxu3 %vm534_vm2, %v4243_v39  ;;  %v2070_v39 = vsel %vm4527_vm8, %v3978_v22, %v2069_v27  ;;  %v3731_v41 = vld [vmem:[%s4481_s28 + $0x40] sm:$0xf]  ;;  %v2072_v45 = vrot.slane %v3977_v25, 5  ;;  %v3796_v46 = vrot.slane %v3793_v18, 9  ;;  %v772_v49 = vsel %vm4518_vm7, %v767_v28, %v4707_v62  ;;  %v3795_v54 = vld [vmem:[%s4481_s28 + $0x38] sm:$0x1] }
  0x5c   : > { %v1141_v34 = vrot.slane %v3794_v35, 5  ;;  %v791_v50 = vshrl.u32 %v3730_v40, 16  ;;  %v1706_v51 = vsel %vm4518_vm7, %v1701_v43, %v1705_v23  ;;  %v2071_v52 = vrot.slane %v2069_v27, 4  ;;  %v3858_v57 = vld [vmem:[%s4481_s28 + $0x3c] sm:$0xf] }
  0x5d   : > { %v782_v53 = vsel %vm4518_vm7, %v777_v32, %v781_v33  ;;  %v794_v55 = vshll.u32 %v3730_v40, 16  ;;  %v3732_v58 = vld [vmem:[%s4481_s28 + $0x44] sm:$0x1]  ;;  %v4758_v29 = vrot.slane %v1713_v37, 5  ;;  %785 = vst.msk [vmem:[#allocation2 + $0x20] sm:$0xf] %vm439_vm1, %v772_v49 }
  0x5e   : > { %v4740_v47 = vld [vmem:[#allocation2 + $0x18] sm:$0xff]  ;;  %v1142_v56 = vsel %vm4527_vm8, %v3796_v46, %v1141_v34  ;;  %v793_v59 = vrot.slane %v791_v50, 4  ;;  %v800_v61 = vshll.u32 %v3731_v41, 16  ;;  %786 = vst.msk [vmem:[#allocation2 + $0x24] sm:$0xf] %vm439_vm1, %v782_v53  ;;  %v1143_v62 = vrot.slane %v1141_v34, 4 }
  0x5f   : > { %v4244_v42 = vld [vmem:[#allocation2 + $0x10] sm:$0xff]  ;;  %1132 = vst.msk [vmem:[#allocation2 + $0x1c] sm:$0xf] %vm439_vm1, %v1128_v36  ;;  %v796_v60 = vrot.slane %v794_v55, 5  ;;  %v1144_v63 = vrot.slane %v3795_v54, 5  ;;  %v804_v2 = vshrl.u32 %v3731_v41, 16  ;;  %v2073_v4 = vsel %vm4527_vm8, %v2071_v52, %v2072_v45 }
  0x60   : > { %2076 = vst.msk [vmem:[#allocation2 + $0x10] sm:$0xf] %vm439_vm1, %v2070_v39  ;;  %v810_v0 = vshll.u32 %v3732_v58, 16  ;;  %v1711_v3 = vrot.slane %v1710_v48, 4  ;;  %v802_v6 = vrot.slane %v800_v61, 5 }
  0x61   : > { %1689 = vst.msk [vmem:[#allocation2 + $0x14] sm:$0xf] %vm439_vm1, %v1685_v30  ;;  %3774 = vmatmul.msk.bf16.gmra.mxu1 %vm534_vm2, %v4680_v26  ;;  %v3857_v26 = vld [vmem:[%s4481_s28 + $0x34] sm:$0xf]  ;;  %v797_v5 = vor.u32 %v796_v60, %v793_v59  ;;  %v806_v7 = vrot.slane %v804_v2, 4  ;;  %v1145_v14 = vsel %vm4527_vm8, %v1143_v62, %v1144_v63 }
  0x62   : > { %1719 = vst.msk [vmem:[#allocation2 + $0x18] sm:$0xf] %vm439_vm1, %v1706_v51  ;;  %v812_v8 = vrot.slane %v810_v0, 5  ;;  %v3918_v11 = vld [vmem:[%s4481_s28 + $0x40] sm:$0xf] }
  0x63   : > { %3960 = vmatmul.msk.bf16.gmra.mxu0 %vm534_vm2, %v4251_v9  ;;  %3844 = vmatmul.msk.bf16.gmra.mxu2 %vm534_vm2, %v4710_v1  ;;  %1148 = vst.msk [vmem:[#allocation2 + $0x20] sm:$0xf] %vm439_vm1, %v1142_v56  ;;  %v3798_v9 = vld [vmem:[%s4481_s28 + $0x40] sm:$0xf]  ;;  %v3917_v1 = vld [vmem:[%s4481_s28 + $0x3c] sm:$0xf]  ;;  %v807_v16 = vor.u32 %v806_v7, %v802_v6 }
  0x64   : > { %1401 = vst.msk [vmem:[#allocation2 + $0x20] sm:$0xf] %vm439_vm1, %v3858_v57  ;;  %v798_v12 = vrot.slane %v797_v5, 4  ;;  %v1725_v15 = vshrl.u32 %v3917_v1, 16  ;;  %v3797_v17 = vld [vmem:[%s4481_s28 + $0x3c] sm:$0xe] }
  0x65   : > { %v1728_v18 = vshll.u32 %v3917_v1, 16  ;;  %v1734_v19 = vshll.u32 %v3918_v11, 16  ;;  %v1738_v20 = vshrl.u32 %v3918_v11, 16  ;;  %v1158_v21 = vrot.slane %v3798_v9, 5  ;;  %v3979_v23 = vld [vmem:[%s4481_s28 + $0x30] sm:$0xe] }
  0x66   : > { %v1727_v22 = vrot.slane %v1725_v15, 4  ;;  %v3980_v24 = vld [vmem:[%s4481_s28 + $0x34] sm:$0xf]  ;;  %v803_v25 = vsel %vm4518_vm7, %v798_v12, %v802_v6  ;;  %v808_v27 = vrot.slane %v807_v16, 4  ;;  %v3919_v30 = vld [vmem:[%s4481_s28 + $0x44] sm:$0x1] }
  0x67   : > { %v1730_v31 = vrot.slane %v1728_v18, 5  ;;  %v1736_v32 = vrot.slane %v1734_v19, 5  ;;  %v3982_v33 = vrot.slane %v3979_v23, 9  ;;  %v2086_v35 = vrot.slane %v3980_v24, 5  ;;  %816 = vst.msk [vmem:[#allocation2 + $0x28] sm:$0xf] %vm439_vm1, %v803_v25 }
  0x68   : > { %v4252_v10 = vld [vmem:[#allocation2 + $0x10] sm:$0xff]  ;;  %v813_v36 = vsel %vm4518_vm7, %v808_v27, %v812_v8  ;;  %v1740_v39 = vrot.slane %v1738_v20, 4  ;;  %v3799_v40 = vld [vmem:[%s4481_s28 + $0x44] sm:$0x1]  ;;  %v3800_v41 = vrot.slane %v3797_v17, 9  ;;  %v1744_v43 = vshll.u32 %v3919_v30, 16 }
  0x69   : > { %v4773_v13 = vld [vmem:[#allocation2 + $0x18] sm:$0xff]  ;;  %2077 = vst.msk [vmem:[#allocation2 + $0x14] sm:$0xf] %vm439_vm1, %v2073_v4  ;;  %v1731_v37 = vor.u32 %v1730_v31, %v1727_v22  ;;  %v2087_v46 = vsel %vm4527_vm8, %v3982_v33, %v2086_v35  ;;  %v1160_v48 = vrot.slane %v1158_v21, 4  ;;  %v3859_v49 = vld [vmem:[%s4481_s28 + $0x40] sm:$0xf] }
  0x6a   : > { %1398 = vst.msk [vmem:[#allocation2 + $0x1c] sm:$0xf] %vm439_vm1, %v3857_v26  ;;  %v3981_v45 = vld [vmem:[%s4481_s28 + $0x38] sm:$0x1]  ;;  %v1159_v50 = vsel %vm4527_vm8, %v3800_v41, %v1158_v21  ;;  %v1161_v51 = vrot.slane %v3799_v40, 5  ;;  %v1741_v57 = vor.u32 %v1740_v39, %v1736_v32  ;;  %v2088_v58 = vrot.slane %v2086_v35, 4 }
  0x6b   : > { %3899 = vmatmul.msk.bf16.gmra.mxu3 %vm534_vm2, %v4244_v42  ;;  %v4784_v28 = vld [vmem:[#allocation2 + $0x20] sm:$0xff]  ;;  %v1716_v42 = vsel %vm4518_vm7, %v1711_v3, %v4758_v29  ;;  %817 = vst.msk [vmem:[#allocation2 + $0x2c] sm:$0xf] %vm439_vm1, %v813_v36  ;;  %v1732_v34 = vrot.slane %v1731_v37, 4  ;;  %v3733_v52 = vld [vmem:[%s4481_s28 + $0x48] sm:$0xf] }
  0x6c   : > { %1149 = vst.msk [vmem:[#allocation2 + $0x24] sm:$0xf] %vm439_vm1, %v1145_v14  ;;  %v3734_v54 = vld [vmem:[%s4481_s28 + $0x4c] sm:$0xf]  ;;  %v822_v55 = vshrl.u32 %v3733_v52, 16  ;;  %v2089_v29 = vrot.slane %v3981_v45, 5  ;;  %v1162_v2 = vsel %vm4527_vm8, %v1160_v48, %v1161_v51 }
  0x6d   : > { %2093 = vst.msk [vmem:[#allocation2 + $0x18] sm:$0xf] %vm439_vm1, %v2087_v46  ;;  %v1737_v56 = vsel %vm4518_vm7, %v1732_v34, %v1736_v32  ;;  %v3860_v59 = vld [vmem:[%s4481_s28 + $0x48] sm:$0xf]  ;;  %v3735_v60 = vld [vmem:[%s4481_s28 + $0x50] sm:$0x1] }
  0x6e   : > { %1165 = vst.msk [vmem:[#allocation2 + $0x28] sm:$0xf] %vm439_vm1, %v1159_v50  ;;  %v824_v61 = vrot.slane %v822_v55, 4  ;;  %v825_v62 = vshll.u32 %v3733_v52, 16  ;;  %v831_v0 = vshll.u32 %v3734_v54, 16  ;;  %v835_v26 = vshrl.u32 %v3734_v54, 16 }
  0x6f   : > { %1750 = vst.msk [vmem:[#allocation2 + $0x20] sm:$0xf] %vm439_vm1, %v1737_v56  ;;  %v1746_v3 = vrot.slane %v1744_v43, 5  ;;  %v841_v8 = vshll.u32 %v3735_v60, 16  ;;  %v2090_v9 = vsel %vm4527_vm8, %v2088_v58, %v2089_v29  ;;  %v3920_v1 = vld [vmem:[%s4481_s28 + $0x48] sm:$0xf] }
  0x70   : > { %1405 = vst.msk [vmem:[#allocation2 + $0x28] sm:$0xf] %vm439_vm1, %v3860_v59  ;;  %v827_v4 = vrot.slane %v825_v62, 5  ;;  %v833_v6 = vrot.slane %v831_v0, 5  ;;  %v837_v7 = vrot.slane %v835_v26, 4  ;;  %v1756_v16 = vshrl.u32 %v3920_v1, 16 }
  0x71   : > { %3775 = vmatmul.msk.bf16.gmra.mxu1 %vm534_vm2, %v4740_v47  ;;  %v1742_v47 = vrot.slane %v1741_v57, 4  ;;  %v3921_v11 = vld [vmem:[%s4481_s28 + $0x4c] sm:$0xf]  ;;  %v3922_v12 = vld [vmem:[%s4481_s28 + $0x50] sm:$0x1]  ;;  %v1759_v17 = vshll.u32 %v3920_v1, 16 }
  0x72   : > { %v3802_v14 = vld [vmem:[%s4481_s28 + $0x4c] sm:$0xf]  ;;  %v1765_v18 = vshll.u32 %v3921_v11, 16  ;;  %v1769_v19 = vshrl.u32 %v3921_v11, 16  ;;  %v3801_v20 = vld [vmem:[%s4481_s28 + $0x48] sm:$0xe] }
  0x73   : > { %3961 = vmatmul.msk.bf16.gmra.mxu0 %vm534_vm2, %v4252_v10  ;;  %3845 = vmatmul.msk.bf16.gmra.mxu2 %vm534_vm2, %v4773_v13  ;;  %v828_v10 = vor.u32 %v827_v4, %v824_v61  ;;  %v838_v13 = vor.u32 %v837_v7, %v833_v6  ;;  %v1747_v21 = vsel %vm4518_vm7, %v1742_v47, %v1746_v3  ;;  %v3861_v22 = vld [vmem:[%s4481_s28 + $0x4c] sm:$0xf]  ;;  %v3983_v23 = vld [vmem:[%s4481_s28 + $0x3c] sm:$0xe]  ;;  %v843_v25 = vrot.slane %v841_v8, 5 }
  0x74   : > { %v4245_v53 = vld [vmem:[#allocation2 + $0x18] sm:$0xff]  ;;  %v1758_v27 = vrot.slane %v1756_v16, 4  ;;  %v1761_v30 = vrot.slane %v1759_v17, 5  ;;  %v1767_v31 = vrot.slane %v1765_v18, 5  ;;  %v1771_v32 = vrot.slane %v1769_v19, 4 }
  0x75   : > { %1720 = vst.msk [vmem:[#allocation2 + $0x1c] sm:$0xf] %vm439_vm1, %v1716_v42  ;;  %v829_v24 = vrot.slane %v828_v10, 4  ;;  %v3984_v33 = vld [vmem:[%s4481_s28 + $0x40] sm:$0xf]  ;;  %v1775_v36 = vshll.u32 %v3922_v12, 16 }
  0x76   : > { %v4815_v63 = vld [vmem:[#allocation2 + $0x20] sm:$0xff]  ;;  %v3986_v39 = vrot.slane %v3983_v23, 9  ;;  %v2103_v40 = vrot.slane %v3984_v33, 5  ;;  %v1762_v42 = vor.u32 %v1761_v30, %v1758_v27  ;;  %v1772_v43 = vor.u32 %v1771_v32, %v1767_v31  ;;  %v3803_v46 = vld [vmem:[%s4481_s28 + $0x50] sm:$0x1] }
  0x77   : > { %1402 = vst.msk [vmem:[#allocation2 + $0x24] sm:$0xf] %vm439_vm1, %v3859_v49  ;;  %v4823_v5 = vld [vmem:[#allocation2 + $0x28] sm:$0xff]  ;;  %v3985_v37 = vld [vmem:[%s4481_s28 + $0x44] sm:$0x1]  ;;  %v834_v41 = vsel %vm4518_vm7, %v829_v24, %v833_v6  ;;  %v839_v45 = vrot.slane %v838_v13, 4 }
  0x78   : > { %1166 = vst.msk [vmem:[#allocation2 + $0x2c] sm:$0xf] %vm439_vm1, %v1162_v2  ;;  %v1175_v48 = vrot.slane %v3802_v14, 5  ;;  %v2104_v34 = vsel %vm4527_vm8, %v3986_v39, %v2103_v40  ;;  %v2105_v50 = vrot.slane %v2103_v40, 4  ;;  %v2106_v51 = vrot.slane %v3985_v37, 5 }
  0x79   : > { %847 = vst.msk [vmem:[#allocation2 + $0x30] sm:$0xf] %vm439_vm1, %v834_v41  ;;  %v3804_v52 = vrot.slane %v3801_v20, 9  ;;  %v844_v54 = vsel %vm4518_vm7, %v839_v45, %v843_v25  ;;  %v3736_v55 = vld [vmem:[%s4481_s28 + $0x54] sm:$0xf]  ;;  %v1773_v56 = vrot.slane %v1772_v43, 4 }
  0x7a   : > { %v1777_v57 = vrot.slane %v1775_v36, 5  ;;  %v3737_v29 = vld [vmem:[%s4481_s28 + $0x58] sm:$0xf]  ;;  %848 = vst.msk [vmem:[#allocation2 + $0x34] sm:$0xf] %vm439_vm1, %v844_v54  ;;  %v2107_v61 = vsel %vm4527_vm8, %v2105_v50, %v2106_v51  ;;  %v1177_v62 = vrot.slane %v1175_v48, 4 }
  0x7b   : > { %3900 = vmatmul.msk.bf16.gmra.mxu3 %vm534_vm2, %v4245_v53  ;;  %v1763_v53 = vrot.slane %v1762_v42, 4  ;;  %v1176_v58 = vsel %vm4527_vm8, %v3804_v52, %v1175_v48  ;;  %v3738_v60 = vld [vmem:[%s4481_s28 + $0x5c] sm:$0x1]  ;;  %v1178_v2 = vrot.slane %v3803_v46, 5  ;;  %v3862_v0 = vld [vmem:[%s4481_s28 + $0x54] sm:$0xf] }
  0x7c   : > { %v4253_v15 = vld [vmem:[#allocation2 + $0x18] sm:$0xff]  ;;  %1182 = vst.msk [vmem:[#allocation2 + $0x30] sm:$0xf] %vm439_vm1, %v1176_v58  ;;  %v853_v26 = vshrl.u32 %v3736_v55, 16  ;;  %v856_v3 = vshll.u32 %v3736_v55, 16  ;;  %v862_v4 = vshll.u32 %v3737_v29, 16  ;;  %v1778_v6 = vsel %vm4518_vm7, %v1773_v56, %v1777_v57 }
  0x7d   : > { %2094 = vst.msk [vmem:[#allocation2 + $0x1c] sm:$0xf] %vm439_vm1, %v2090_v9  ;;  %v1768_v59 = vsel %vm4518_vm7, %v1763_v53, %v1767_v31  ;;  %v866_v47 = vshrl.u32 %v3737_v29, 16  ;;  %v872_v8 = vshll.u32 %v3738_v60, 16  ;;  %v1179_v12 = vsel %vm4527_vm8, %v1177_v62, %v1178_v2  ;;  %v3925_v23 = vld [vmem:[%s4481_s28 + $0x5c] sm:$0x1] }
  0x7e   : > { %v4246_v35 = vld [vmem:[#allocation2 + $0x20] sm:$0xff]  ;;  %1409 = vst.msk [vmem:[#allocation2 + $0x30] sm:$0xf] %vm439_vm1, %v3862_v0  ;;  %v855_v9 = vrot.slane %v853_v26, 4  ;;  %v858_v10 = vrot.slane %v856_v3, 5  ;;  %v4887_v1 = vrot.slane %v862_v4, 5 }
  0x7f   : > { %1751 = vst.msk [vmem:[#allocation2 + $0x24] sm:$0xf] %vm439_vm1, %v1747_v21  ;;  %v4853_v49 = vld [vmem:[#allocation2 + $0x28] sm:$0xff]  ;;  %v868_v11 = vrot.slane %v866_v47, 4  ;;  %v874_v14 = vrot.slane %v872_v8, 5 }
  0x80   : > { %1406 = vst.msk [vmem:[#allocation2 + $0x2c] sm:$0xf] %vm439_vm1, %v3861_v22  ;;  %v859_v16 = vor.u32 %v858_v10, %v855_v9  ;;  %v3805_v22 = vld [vmem:[%s4481_s28 + $0x54] sm:$0xe]  ;;  %v3987_v24 = vld [vmem:[%s4481_s28 + $0x48] sm:$0xe] }
  0x81   : > { %2110 = vst.msk [vmem:[#allocation2 + $0x20] sm:$0xf] %vm439_vm1, %v2104_v34  ;;  %3776 = vmatmul.msk.bf16.gmra.mxu1 %vm534_vm2, %v4784_v28  ;;  %v869_v17 = vor.u32 %v868_v11, %v4887_v1  ;;  %v3988_v25 = vld [vmem:[%s4481_s28 + $0x4c] sm:$0xf]  ;;  %v3989_v33 = vld [vmem:[%s4481_s28 + $0x50] sm:$0x1] }
  0x82   : > { %1781 = vst.msk [vmem:[#allocation2 + $0x28] sm:$0xf] %vm439_vm1, %v1768_v59  ;;  %v3990_v36 = vrot.slane %v3987_v24, 9  ;;  %v2120_v37 = vrot.slane %v3988_v25, 5  ;;  %v2123_v39 = vrot.slane %v3989_v33, 5  ;;  %v860_v43 = vrot.slane %v859_v16, 4 }
  0x83   : > { %3962 = vmatmul.msk.bf16.gmra.mxu0 %vm534_vm2, %v4253_v15  ;;  %3846 = vmatmul.msk.bf16.gmra.mxu2 %vm534_vm2, %v4815_v63  ;;  %v3923_v63 = vld [vmem:[%s4481_s28 + $0x54] sm:$0xf]  ;;  %v3924_v15 = vld [vmem:[%s4481_s28 + $0x58] sm:$0xf]  ;;  %v870_v45 = vrot.slane %v869_v17, 4  ;;  %v3808_v50 = vrot.slane %v3805_v22, 9 }
  0x84   : > { %v1787_v18 = vshrl.u32 %v3923_v63, 16  ;;  %v1790_v19 = vshll.u32 %v3923_v63, 16  ;;  %v1796_v20 = vshll.u32 %v3924_v15, 16  ;;  %v1800_v21 = vshrl.u32 %v3924_v15, 16  ;;  %v3863_v40 = vld [vmem:[%s4481_s28 + $0x58] sm:$0xf] }
  0x85   : > { %v4899_v13 = vld [vmem:[#allocation2 + $0x30] sm:$0xff]  ;;  %v3806_v46 = vld [vmem:[%s4481_s28 + $0x58] sm:$0xf]  ;;  %v2121_v48 = vsel %vm4527_vm8, %v3990_v36, %v2120_v37  ;;  %v2122_v34 = vrot.slane %v2120_v37, 4  ;;  %v865_v55 = vsel %vm4518_vm7, %v860_v43, %v4887_v1  ;;  %v875_v59 = vsel %vm4518_vm7, %v870_v45, %v874_v14  ;;  %v3807_v60 = vld [vmem:[%s4481_s28 + $0x5c] sm:$0x1] }
  0x86   : > { %1183 = vst.msk [vmem:[#allocation2 + $0x34] sm:$0xf] %vm439_vm1, %v1179_v12  ;;  %v1789_v27 = vrot.slane %v1787_v18, 4  ;;  %v1792_v30 = vrot.slane %v1790_v19, 5  ;;  %v1798_v31 = vrot.slane %v1796_v20, 5  ;;  %v1802_v32 = vrot.slane %v1800_v21, 4 }
  0x87   : > { %v2124_v54 = vsel %vm4527_vm8, %v2122_v34, %v2123_v39  ;;  %v1192_v56 = vrot.slane %v3806_v46, 5  ;;  %878 = vst.msk [vmem:[#allocation2 + $0x38] sm:$0xf] %vm439_vm1, %v865_v55  ;;  %v1411_v62 = vld [vmem:[%s4935_s13] sm:$0xf]  ;;  %v1195_v26 = vrot.slane %v3807_v60, 5 }
  0x88   : > { %v4254_v7 = vld [vmem:[#allocation2 + $0x20] sm:$0xff]  ;;  %v1793_v41 = vor.u32 %v1792_v30, %v1789_v27  ;;  %v1803_v42 = vor.u32 %v1802_v32, %v1798_v31  ;;  %879 = vst.msk [vmem:[#allocation2 + $0x3c] sm:$0xf] %vm439_vm1, %v875_v59  ;;  %v3991_v9 = vld [vmem:[%s4481_s28 + $0x54] sm:$0xe] }
  0x89   : > { %2111 = vst.msk [vmem:[#allocation2 + $0x24] sm:$0xf] %vm439_vm1, %v2107_v61  ;;  %v4891_v28 = vld [vmem:[#allocation2 + $0x28] sm:$0xff]  ;;  %v1193_v61 = vsel %vm4527_vm8, %v3808_v50, %v1192_v56  ;;  %v1194_v0 = vrot.slane %v1192_v56, 4  ;;  %v1815_v3 = vld [vmem:[%s4935_s13 + $0x4] sm:$0xf] }
  0x8a   : > { %1782 = vst.msk [vmem:[#allocation2 + $0x2c] sm:$0xf] %vm439_vm1, %v1778_v6  ;;  %v1794_v52 = vrot.slane %v1793_v41, 4  ;;  %v1804_v58 = vrot.slane %v1803_v42, 4  ;;  %v1831_v8 = vshrl.u32 %v1815_v3, 16  ;;  %v3994_v63 = vrot.slane %v3991_v9, 9 }
  0x8b   : > { %3901 = vmatmul.msk.bf16.gmra.mxu3 %vm534_vm2, %v4246_v35  ;;  %v1806_v35 = vshll.u32 %v3925_v23, 16  ;;  %2127 = vst.msk [vmem:[#allocation2 + $0x28] sm:$0xf] %vm439_vm1, %v2121_v48  ;;  %v1196_v4 = vsel %vm4527_vm8, %v1194_v0, %v1195_v26  ;;  %v3992_v10 = vld [vmem:[%s4481_s28 + $0x58] sm:$0xf]  ;;  %v4976_v15 = vld [vmem:[#allocation2] sm:$0xff] }
  0x8c   : > { %v1799_v57 = vsel %vm4518_vm7, %v1794_v52, %v1798_v31  ;;  %1199 = vst.msk [vmem:[#allocation2 + $0x38] sm:$0xf] %vm439_vm1, %v1193_v61  ;;  %v1816_v12 = vld [vmem:[%s4935_s13 + $0x8] sm:$0x1]  ;;  %v3993_v14 = vld [vmem:[%s4481_s28 + $0x5c] sm:$0x1] }
  0x8d   : > { %v4922_v51 = vld [vmem:[#allocation2 + $0x30] sm:$0xff]  ;;  %v1808_v29 = vrot.slane %v1806_v35, 5  ;;  %1413 = vst.msk [vmem:[#allocation2 + $0x38] sm:$0xf] %vm439_vm1, %v1411_v62  ;;  %v2137_v17 = vrot.slane %v3992_v10, 5  ;;  %v2140_v18 = vrot.slane %v3993_v14, 5 }
  0x8e   : > { %1410 = vst.msk [vmem:[#allocation2 + $0x34] sm:$0xf] %vm439_vm1, %v3863_v40  ;;  %v4037_v19 = vld [vmem:[%s4481_s28 + $0x18] sm:$0xf]  ;;  %v4038_v20 = vld [vmem:[%s4481_s28 + $0x1c] sm:$0xf] }
  0x8f   : > { %1812 = vst.msk [vmem:[#allocation2 + $0x30] sm:$0xf] %vm439_vm1, %v1799_v57  ;;  %v1809_v2 = vsel %vm4518_vm7, %v1804_v58, %v1808_v29  ;;  %v1833_v22 = vrot.slane %v1831_v8, 4  ;;  %v4090_v23 = vld [vmem:[%s4481_s28 + $0x18] sm:$0xf]  ;;  %v2138_v25 = vsel %vm4527_vm8, %v3994_v63, %v2137_v17  ;;  %v2139_v27 = vrot.slane %v2137_v17, 4 }
  0x90   : > { %2347 = vst.msk [vmem:[#allocation2] sm:$0xf] %vm439_vm1, %v4037_v19  ;;  %v1412_v31 = vld [vmem:[%s4935_s13 + $0x4] sm:$0xf]  ;;  %v4091_v32 = vld [vmem:[%s4481_s28 + $0x1c] sm:$0xf] }
  0x91   : > { %3777 = vmatmul.msk.bf16.gmra.mxu1 %vm534_vm2, %v4823_v5  ;;  %2348 = vst.msk [vmem:[#allocation2 + $0x4] sm:$0xf] %vm439_vm1, %v4038_v20  ;;  %v1837_v35 = vshll.u32 %v1816_v12, 16  ;;  %v2141_v36 = vsel %vm4527_vm8, %v2139_v27, %v2140_v18  ;;  %v4092_v37 = vld [vmem:[%s4481_s28 + $0x20] sm:$0x1]  ;;  %v2563_v39 = vshrl.u32 %v4090_v23, 16 }
  0x92   : > { %v4255_v53 = vld [vmem:[#allocation2 + $0x28] sm:$0xff]  ;;  %v2566_v42 = vshll.u32 %v4090_v23, 16  ;;  %v2572_v43 = vshll.u32 %v4091_v32, 16  ;;  %v2576_v45 = vshrl.u32 %v4091_v32, 16  ;;  %v4093_v61 = vld [vmem:[%s4481_s28 + $0x24] sm:$0xf] }
  0x93   : > { %3963 = vmatmul.msk.bf16.gmra.mxu0 %vm534_vm2, %v4254_v7  ;;  %2128 = vst.msk [vmem:[#allocation2 + $0x2c] sm:$0xf] %vm439_vm1, %v2124_v54  ;;  %3847 = vmatmul.msk.bf16.gmra.mxu2 %vm534_vm2, %v4853_v49  ;;  %v1814_v49 = vld [vmem:[%s4935_s13] sm:$0xf]  ;;  %v1827_v7 = vshll.u32 %v1815_v3, 16  ;;  %v2565_v48 = vrot.slane %v2563_v39, 4 }
  0x94   : > { %v1818_v47 = vshrl.u32 %v1814_v49, 16  ;;  %v1821_v6 = vshll.u32 %v1814_v49, 16  ;;  %v4971_v1 = vld [vmem:[#allocation2 + $0x38] sm:$0xff]  ;;  %v2568_v34 = vrot.slane %v2566_v42, 5  ;;  %v2574_v50 = vrot.slane %v2572_v43, 5 }
  0x95   : > { %1200 = vst.msk [vmem:[#allocation2 + $0x3c] sm:$0xf] %vm439_vm1, %v1196_v4  ;;  %v1829_v21 = vrot.slane %v1827_v7, 5  ;;  %v2578_v52 = vrot.slane %v2576_v45, 4  ;;  %v1839_v55 = vrot.slane %v1837_v35, 5  ;;  %v2594_v0 = vshrl.u32 %v4093_v61, 16 }
  0x96   : > { %v4961_v5 = vld [vmem:[#allocation2 + $0x30] sm:$0xff]  ;;  %v1820_v11 = vrot.slane %v1818_v47, 4  ;;  %v4039_v49 = vld [vmem:[%s4481_s28 + $0x24] sm:$0xf]  ;;  %v4150_v47 = vld [vmem:[%s4481_s28 + $0x1c] sm:$0xf] }
  0x97   : > { %1813 = vst.msk [vmem:[#allocation2 + $0x34] sm:$0xf] %vm439_vm1, %v1809_v2  ;;  %v1834_v40 = vor.u32 %v1833_v22, %v1829_v21  ;;  %v2579_v56 = vor.u32 %v2578_v52, %v2574_v50  ;;  %v2597_v7 = vshll.u32 %v4093_v61, 16  ;;  %v2146_v8 = vld [vmem:[%s4935_s13] sm:$0xe] }
  0x98   : > { %2144 = vst.msk [vmem:[#allocation2 + $0x30] sm:$0xf] %vm439_vm1, %v2138_v25  ;;  %v5021_v26 = vld [vmem:[#allocation2] sm:$0xff]  ;;  %v2148_v10 = vld [vmem:[%s4935_s13 + $0x8] sm:$0x1] }
  0x99   : > { %v1835_v54 = vrot.slane %v1834_v40, 4  ;;  %v2580_v59 = vrot.slane %v2579_v56, 4  ;;  %v2147_v9 = vld [vmem:[%s4935_s13 + $0x4] sm:$0xf]  ;;  %v4094_v12 = vld [vmem:[%s4481_s28 + $0x28] sm:$0xf] }
  0x9a   : > { %v2157_v14 = vrot.slane %v2148_v10, 5  ;;  %v4149_v63 = vld [vmem:[%s4481_s28 + $0x18] sm:$0xe]  ;;  %v4151_v20 = vld [vmem:[%s4481_s28 + $0x20] sm:$0x1]  ;;  %v2607_v35 = vshrl.u32 %v4094_v12, 16 }
  0x9b   : > { %3902 = vmatmul.msk.bf16.gmra.mxu3 %vm534_vm2, %v4891_v28  ;;  %v1823_v28 = vrot.slane %v1821_v6, 5  ;;  %v1840_v2 = vsel %vm4518_vm7, %v1835_v54, %v1839_v55  ;;  %v2596_v6 = vrot.slane %v2594_v0, 4  ;;  %2351 = vst.msk [vmem:[#allocation2 + $0x8] sm:$0xf] %vm439_vm1, %v4039_v49  ;;  %v3000_v23 = vrot.slane %v4151_v20, 5  ;;  %v5091_v0 = vld [vmem:[#allocation2 + $0x10] sm:$0xff] }
  0x9c   : > { %v4095_v39 = vld [vmem:[%s4481_s28 + $0x2c] sm:$0x1]  ;;  %v2609_v43 = vrot.slane %v2607_v35, 4  ;;  %v4042_v61 = vld [vmem:[%s4481_s28 + $0x34] sm:$0xf] }
  0x9d   : > { %v1824_v16 = vor.u32 %v1823_v28, %v1820_v11  ;;  %v3995_v11 = vrot.slane %v2146_v8, 9  ;;  %v2154_v28 = vrot.slane %v2147_v9, 5  ;;  %v2613_v52 = vshll.u32 %v4095_v39, 16  ;;  %2356 = vst.msk [vmem:[#allocation2 + $0x14] sm:$0xf] %vm439_vm1, %v4042_v61  ;;  %v5132_v39 = vld [vmem:[#allocation2 + $0x18] sm:$0xff] }
  0x9e   : > { %v582_v30 = vpop.f32.mrf.mxu1  ;;  %v4157_v61 = vld [vmem:[%s4481_s28 + $0x30] sm:$0xe] }
  0x9f   : > { %v1825_v24 = vrot.slane %v1824_v16, 4  ;;  %617 = vst.msk [vmem:[%s4984_s18 + $0x20] sm:$0xff] %vm612_vm9, %v582_v30  ;;  %v4256_v41 = vld [vmem:[#allocation2 + $0x30] sm:$0xff]  ;;  %v2997_v16 = vrot.slane %v4150_v47, 5  ;;  %v2156_v19 = vrot.slane %v2154_v28, 4  ;;  %v2155_v30 = vsel %vm4527_vm8, %v3995_v11, %v2154_v28 }
  0xa0   : > { %2145 = vst.msk [vmem:[#allocation2 + $0x34] sm:$0xf] %vm439_vm1, %v2141_v36  ;;  %v2615_v47 = vrot.slane %v2613_v52, 5 }
  0xa1   : > { %v1830_v33 = vsel %vm4518_vm7, %v1825_v24, %v1829_v21  ;;  %3778 = vmatmul.msk.bf16.gmra.mxu1 %vm534_vm2, %v4899_v13  ;;  %v2569_v13 = vor.u32 %v2568_v34, %v2565_v48  ;;  %v4152_v21 = vrot.slane %v4149_v63, 9  ;;  %v2999_v22 = vrot.slane %v2997_v16, 4  ;;  %v4096_v48 = vld [vmem:[%s4481_s28 + $0x30] sm:$0xf]  ;;  %v4097_v34 = vld [vmem:[%s4481_s28 + $0x34] sm:$0xf] }
  0xa2   : > { %1843 = vst.msk [vmem:[#allocation2 + $0x38] sm:$0xf] %vm439_vm1, %v1830_v33  ;;  %v2599_v24 = vrot.slane %v2597_v7, 5  ;;  %v2603_v33 = vshll.u32 %v4094_v12, 16  ;;  %v5077_v55 = vld [vmem:[#allocation2 + $0x8] sm:$0xff]  ;;  %v2628_v56 = vshll.u32 %v4096_v48, 16 }
  0xa3   : > { %3964 = vmatmul.msk.bf16.gmra.mxu0 %vm534_vm2, %v4255_v53  ;;  %v2582_v53 = vshll.u32 %v4092_v37, 16  ;;  %3848 = vmatmul.msk.bf16.gmra.mxu2 %vm534_vm2, %v4922_v51  ;;  %v2570_v29 = vrot.slane %v2569_v13, 4  ;;  %v2998_v36 = vsel %vm4527_vm8, %v4152_v21, %v2997_v16  ;;  %v2625_v13 = vshrl.u32 %v4096_v48, 16 }
  0xa4   : > { %v2600_v32 = vor.u32 %v2599_v24, %v2596_v6  ;;  %v2605_v42 = vrot.slane %v2603_v33, 5  ;;  %v4153_v6 = vld [vmem:[%s4481_s28 + $0x24] sm:$0xe]  ;;  %v4155_v24 = vld [vmem:[%s4481_s28 + $0x2c] sm:$0x1] }
  0xa5   : > { %v2584_v60 = vrot.slane %v2582_v53, 5  ;;  %v4156_v8 = vrot.slane %v4153_v6, 9 }
  0xa6   : > { %v592_v57 = vpop.f32.mrf.mxu2  ;;  %v584_v58 = vpop.f32.mrf.mxu1 }
  0xa7   : > { %621 = vst.msk [vmem:[%s4984_s18 + $0x40] sm:$0xff] %vm612_vm9, %v592_v57  ;;  %v2585_v4 = vsel %vm4518_vm7, %v2580_v59, %v2584_v60  ;;  %v2634_v57 = vshll.u32 %v4097_v34, 16  ;;  %v2610_v59 = vor.u32 %v2609_v43, %v2605_v42  ;;  %v4041_v60 = vld [vmem:[%s4481_s28 + $0x30] sm:$0xf] }
  0xa8   : > { %618 = vst.msk [vmem:[%s4984_s18 + $0x28] sm:$0xff] %vm612_vm9, %v584_v58  ;;  %v602_v51 = vpop.f32.mrf.mxu3  ;;  %v2638_v58 = vshrl.u32 %v4097_v34, 16 }
  0xa9   : > { %v5004_v46 = vld [vmem:[#allocation2 + $0x38] sm:$0xff]  ;;  %625 = vst.msk [vmem:[%s4984_s18 + $0x60] sm:$0xff] %vm612_vm9, %v602_v51  ;;  %v4154_v51 = vld [vmem:[%s4481_s28 + $0x28] sm:$0xf]  ;;  %v2636_v49 = vrot.slane %v2634_v57, 5  ;;  %v2611_v7 = vrot.slane %v2610_v59, 4 }
  0xaa   : > { %1414 = vst.msk [vmem:[#allocation2 + $0x3c] sm:$0xf] %vm439_vm1, %v1412_v31  ;;  %v2158_v31 = vsel %vm4527_vm8, %v2156_v19, %v2157_v14  ;;  %v3014_v9 = vrot.slane %v4154_v51, 5  ;;  %v4101_v59 = vld [vmem:[%s4481_s28 + $0x44] sm:$0x1] }
  0xab   : > { %3903 = vmatmul.msk.bf16.gmra.mxu3 %vm534_vm2, %v4961_v5  ;;  %v2575_v5 = vsel %vm4518_vm7, %v2570_v29, %v2574_v50  ;;  %2589 = vst.msk [vmem:[#allocation2 + $0x4] sm:$0xf] %vm439_vm1, %v2585_v4  ;;  %v4040_v50 = vld [vmem:[%s4481_s28 + $0x28] sm:$0xf]  ;;  %v4159_v51 = vld [vmem:[%s4481_s28 + $0x38] sm:$0x1] }
  0xac   : > { %2588 = vst.msk [vmem:[#allocation2] sm:$0xf] %vm439_vm1, %v2575_v5  ;;  %v2630_v5 = vrot.slane %v2628_v56, 5  ;;  %v3015_v16 = vsel %vm4527_vm8, %v4156_v8, %v3014_v9  ;;  %v4158_v56 = vld [vmem:[%s4481_s28 + $0x34] sm:$0xf] }
  0xad   : > { %2352 = vst.msk [vmem:[#allocation2 + $0xc] sm:$0xf] %vm439_vm1, %v4040_v50 }
  0xae   : > { %v572_v62 = vpop.f32.mrf.mxu0  ;;  %v594_v17 = vpop.f32.mrf.mxu2  ;;  %2355 = vst.msk [vmem:[#allocation2 + $0x10] sm:$0xf] %vm439_vm1, %v4041_v60 }
  0xaf   : > { %613 = vst.msk [vmem:[%s4984_s18] sm:$0xff] %vm612_vm9, %v572_v62  ;;  %v587_v18 = vpop.f32.mrf.mxu1  ;;  %v4098_v62 = vld [vmem:[%s4481_s28 + $0x38] sm:$0x1] }
  0xb0   : > { %622 = vst.msk [vmem:[%s4984_s18 + $0x48] sm:$0xff] %vm612_vm9, %v594_v17  ;;  %v604_v25 = vpop.f32.mrf.mxu3  ;;  %v2644_v14 = vshll.u32 %v4098_v62, 16 }
  0xb1   : > { %v4249_v3 = vld [vmem:[#allocation2 + $0x38] sm:$0xff]  ;;  %619 = vst.msk [vmem:[%s4984_s18 + $0x30] sm:$0xff] %vm612_vm9, %v587_v18  ;;  %3779 = vmatmul.msk.bf16.gmra.mxu1 %vm534_vm2, %v4971_v1  ;;  %v3001_v1 = vsel %vm4527_vm8, %v2999_v22, %v3000_v23  ;;  %v2616_v22 = vsel %vm4518_vm7, %v2611_v7, %v2615_v47  ;;  %v2675_v7 = vshll.u32 %v4101_v59, 16  ;;  %v4163_v59 = vld [vmem:[%s4481_s28 + $0x44] sm:$0x1] }
  0xb2   : > { %1844 = vst.msk [vmem:[#allocation2 + $0x3c] sm:$0xf] %vm439_vm1, %v1840_v2  ;;  %v2627_v2 = vrot.slane %v2625_v13, 4  ;;  %v2646_v21 = vrot.slane %v2644_v14, 5 }
  0xb3   : > { %3965 = vmatmul.msk.bf16.gmra.mxu0 %vm534_vm2, %v4256_v41  ;;  %626 = vst.msk [vmem:[%s4984_s18 + $0x68] sm:$0xff] %vm612_vm9, %v604_v25  ;;  %3849 = vmatmul.msk.bf16.gmra.mxu2 %vm534_vm2, %v5004_v46  ;;  %v5066_v40 = vld [vmem:[#allocation2] sm:$0xff]  ;;  %v2601_v41 = vrot.slane %v2600_v32, 4 }
  0xb4   : > { %3004 = vst.msk [vmem:[#allocation2] sm:$0xf] %vm439_vm1, %v2998_v36  ;;  %v2631_v10 = vor.u32 %v2630_v5, %v2627_v2  ;;  %v4099_v36 = vld [vmem:[%s4481_s28 + $0x3c] sm:$0xf]  ;;  %v4160_v2 = vrot.slane %v4157_v61, 9 }
  0xb5   : > { %3005 = vst.msk [vmem:[#allocation2 + $0x4] sm:$0xf] %vm439_vm1, %v3001_v1  ;;  %v2606_v29 = vsel %vm4518_vm7, %v2601_v41, %v2605_v42  ;;  %v5126_v33 = vld [vmem:[#allocation2 + $0x10] sm:$0xff]  ;;  %v4044_v41 = vld [vmem:[%s4481_s28 + $0x40] sm:$0xf]  ;;  %v2656_v42 = vshrl.u32 %v4099_v36, 16 }
  0xb6   : > { %v574_v27 = vpop.f32.mrf.mxu0  ;;  %v597_v45 = vpop.f32.mrf.mxu2  ;;  %v1014_v4 = vld [vmem:[%s4984_s18] sm:$0xff]  ;;  %2619 = vst.msk [vmem:[#allocation2 + $0x8] sm:$0xf] %vm439_vm1, %v2606_v29  ;;  %v2632_v17 = vrot.slane %v2631_v10, 4  ;;  %v2659_v48 = vshll.u32 %v4099_v36, 16  ;;  %v3031_v29 = vrot.slane %v4158_v56, 5 }
  0xb7   : > { %614 = vst.msk [vmem:[%s4984_s18 + $0x8] sm:$0xff] %vm612_vm9, %v574_v27  ;;  %v589_v46 = vpop.f32.mrf.mxu1 }
  0xb8   : > { %623 = vst.msk [vmem:[%s4984_s18 + $0x50] sm:$0xff] %vm612_vm9, %v597_v45  ;;  %v607_v53 = vpop.f32.mrf.mxu3  ;;  %v2637_v25 = vsel %vm4518_vm7, %v2632_v17, %v2636_v49  ;;  %v2661_v57 = vrot.slane %v2659_v48, 5  ;;  %v3033_v5 = vrot.slane %v3031_v29, 4 }
  0xb9   : > { %v4257_v37 = vld [vmem:[#allocation2 + $0x38] sm:$0xff]  ;;  %620 = vst.msk [vmem:[%s4984_s18 + $0x38] sm:$0xff] %vm612_vm9, %v589_v46 }
  0xba   : > { %2161 = vst.msk [vmem:[#allocation2 + $0x38] sm:$0xf] %vm439_vm1, %v2155_v30  ;;  %v3016_v30 = vrot.slane %v3014_v9, 4  ;;  %v3032_v9 = vsel %vm4527_vm8, %v4160_v2, %v3031_v29  ;;  %v4161_v29 = vld [vmem:[%s4481_s28 + $0x3c] sm:$0xe] }
  0xbb   : > { %2162 = vst.msk [vmem:[#allocation2 + $0x3c] sm:$0xf] %vm439_vm1, %v2158_v31  ;;  %3904 = vmatmul.msk.bf16.gmra.mxu3 %vm534_vm2, %v4249_v3  ;;  %v2640_v3 = vrot.slane %v2638_v58, 4  ;;  %v3017_v31 = vrot.slane %v4155_v24, 5 }
  0xbc   : > { %627 = vst.msk [vmem:[%s4984_s18 + $0x70] sm:$0xff] %vm612_vm9, %v607_v53  ;;  %v4282_v32 = vld [vmem:[#allocation2] sm:$0xff]  ;;  %v2658_v53 = vrot.slane %v2656_v42, 4 }
  0xbd   : > { %v2641_v12 = vor.u32 %v2640_v3, %v2636_v49  ;;  %3021 = vst.msk [vmem:[#allocation2 + $0x8] sm:$0xf] %vm439_vm1, %v3015_v16  ;;  %v3018_v52 = vsel %vm4527_vm8, %v3016_v30, %v3017_v31  ;;  %v3034_v49 = vrot.slane %v4159_v51, 5  ;;  %v4103_v30 = vld [vmem:[%s4481_s28 + $0x4c] sm:$0xf] }
  0xbe   : > { %v577_v54 = vpop.f32.mrf.mxu0  ;;  %v599_v11 = vpop.f32.mrf.mxu2  ;;  %v1015_v27 = vld [vmem:[%s4984_s18 + $0x8] sm:$0xff]  ;;  %2650 = vst.msk [vmem:[#allocation2 + $0x10] sm:$0xf] %vm439_vm1, %v2637_v25  ;;  %v2662_v62 = vor.u32 %v2661_v57, %v2658_v53  ;;  %v2696_v42 = vshll.u32 %v4103_v30, 16 }
  0xbf   : > { %615 = vst.msk [vmem:[%s4984_s18 + $0x10] sm:$0xff] %vm612_vm9, %v577_v54  ;;  %v974_v28 = vpop.f32.mrf.mxu1  ;;  %v2642_v20 = vrot.slane %v2641_v12, 4  ;;  %v3035_v10 = vsel %vm4527_vm8, %v3033_v5, %v3034_v49  ;;  %v3051_v5 = vrot.slane %v4163_v59, 5  ;;  %v1020_v59 = vld [vmem:[%s4984_s18 + $0x30] sm:$0xff] }
  0xc0   : > { %624 = vst.msk [vmem:[%s4984_s18 + $0x58] sm:$0xff] %vm612_vm9, %v599_v11  ;;  %v1030_v63 = vadd.f32 %v1014_v4, %v974_v28  ;;  %v609_v18 = vpop.f32.mrf.mxu3  ;;  %v2663_v6 = vrot.slane %v2662_v62, 4  ;;  %v2698_v56 = vrot.slane %v2696_v42, 5  ;;  %v4164_v62 = vrot.slane %v4161_v29, 9 }
  0xc1   : > { %4029 = vmatmul.msk.bf16.vlgmr.msra.gmra.mxu1 %vm534_vm2, %v4976_v15  ;;  %628 = vst.msk [vmem:[%s4984_s18 + $0x78] sm:$0xff] %vm612_vm9, %v609_v18  ;;  %v2647_v15 = vsel %vm4518_vm7, %v2642_v20, %v2646_v21 }
  0xc2   : > { %1046 = vst.msk [vmem:[%s4984_s18] sm:$0xff] %vm612_vm9, %v1030_v63  ;;  %v2677_v63 = vrot.slane %v2675_v7, 5 }
  0xc3   : > { %3966 = vmatmul.msk.bf16.gmra.mxu0 %vm534_vm2, %v4257_v37  ;;  %4082 = vmatmul.msk.bf16.vlgmr.msra.gmra.mxu2 %vm534_vm2, %v5021_v26  ;;  %2651 = vst.msk [vmem:[#allocation2 + $0x14] sm:$0xf] %vm439_vm1, %v2647_v15  ;;  %v4100_v37 = vld [vmem:[%s4481_s28 + $0x40] sm:$0xf] }
  0xc4   : > { %v5111_v23 = vld [vmem:[#allocation2 + $0x8] sm:$0xff]  ;;  %v2665_v34 = vshll.u32 %v4100_v37, 16  ;;  %v2669_v54 = vshrl.u32 %v4100_v37, 16  ;;  %2360 = vst.msk [vmem:[#allocation2 + $0x1c] sm:$0xf] %vm439_vm1, %v4044_v41 }
  0xc5   : > { %2620 = vst.msk [vmem:[#allocation2 + $0xc] sm:$0xf] %vm439_vm1, %v2616_v22 }
  0xc6   : > { %v579_v19 = vpop.f32.mrf.mxu0  ;;  %v1295_v26 = vpop.f32.mrf.mxu2  ;;  %v1016_v13 = vld [vmem:[%s4984_s18 + $0x10] sm:$0xff]  ;;  %v2667_v60 = vrot.slane %v2665_v34, 5  ;;  %v2671_v3 = vrot.slane %v2669_v54, 4  ;;  %3038 = vst.msk [vmem:[#allocation2 + $0x10] sm:$0xf] %vm439_vm1, %v3032_v9 }
  0xc7   : > { %616 = vst.msk [vmem:[%s4984_s18 + $0x18] sm:$0xff] %vm612_vm9, %v579_v19  ;;  %v976_v35 = vpop.f32.mrf.mxu1 }
  0xc8   : > { %v1031_v1 = vadd.f32 %v1015_v27, %v976_v35  ;;  %v2672_v11 = vor.u32 %v2671_v3, %v2667_v60  ;;  %v2668_v18 = vsel %vm4518_vm7, %v2663_v6, %v2667_v60  ;;  %v4046_v35 = vld [vmem:[%s4481_s28 + $0x4c] sm:$0xf] }
  0xc9   : > { %v1335_v43 = vld [vmem:[%s4984_s18] sm:$0xff] }
  0xca   : > { %v1351_v50 = vadd.f32 %v1335_v43, %v1295_v26  ;;  %1047 = vst.msk [vmem:[%s4984_s18 + $0x8] sm:$0xff] %vm612_vm9, %v1031_v1  ;;  %v2673_v19 = vrot.slane %v2672_v11, 4  ;;  %v4045_v26 = vld [vmem:[%s4481_s28 + $0x48] sm:$0xf]  ;;  %v2700_v43 = vshrl.u32 %v4103_v30, 16 }
  0xcb   : > { %4141 = vmatmul.msk.bf16.vlgmr.msra.gmra.mxu3 %vm534_vm2, %v5066_v40  ;;  %v4043_v40 = vld [vmem:[%s4481_s28 + $0x3c] sm:$0xf] }
  0xcc   : > { %2359 = vst.msk [vmem:[#allocation2 + $0x18] sm:$0xf] %vm439_vm1, %v4043_v40  ;;  %v4275_v58 = vld [vmem:[#allocation2 + $0x8] sm:$0xff]  ;;  %v2678_v22 = vsel %vm4518_vm7, %v2673_v19, %v2677_v63  ;;  %v2702_v57 = vrot.slane %v2700_v43, 4 }
  0xcd   : > { %1367 = vst.msk [vmem:[%s4984_s18] sm:$0xff] %vm612_vm9, %v1351_v50  ;;  %v5166_v17 = vld [vmem:[#allocation2 + $0x10] sm:$0xff]  ;;  %v4162_v50 = vld [vmem:[%s4481_s28 + $0x40] sm:$0xf] }
  0xce   : > { %v1509_v45 = vpop.f32.mrf.mxu3  ;;  %3022 = vst.msk [vmem:[#allocation2 + $0xc] sm:$0xf] %vm439_vm1, %v3018_v52  ;;  %v1297_v4 = vpop.f32.mrf.mxu2  ;;  %v1017_v24 = vld [vmem:[%s4984_s18 + $0x18] sm:$0xff]  ;;  %v3048_v54 = vrot.slane %v4162_v50, 5  ;;  %v2703_v6 = vor.u32 %v2702_v57, %v2698_v56 }
  0xcf   : > { %v979_v47 = vpop.f32.mrf.mxu1  ;;  %3039 = vst.msk [vmem:[#allocation2 + $0x14] sm:$0xf] %vm439_vm1, %v3035_v10 }
  0xd0   : > { %v5137_v46 = vpop.f32.mrf.mxu0  ;;  %v1032_v8 = vadd.f32 %v1016_v13, %v979_v47  ;;  %v4104_v13 = vld [vmem:[%s4481_s28 + $0x50] sm:$0x1]  ;;  %v3050_v2 = vrot.slane %v3048_v54, 4 }
  0xd1   : > { %v1336_v28 = vld [vmem:[%s4984_s18 + $0x8] sm:$0xff]  ;;  %4030 = vmatmul.msk.bf16.gmra.mxu1 %vm534_vm2, %v5077_v55  ;;  %v2706_v61 = vshll.u32 %v4104_v13, 16 }
  0xd2   : > { %v1352_v16 = vadd.f32 %v1336_v28, %v1297_v4  ;;  %1048 = vst.msk [vmem:[%s4984_s18 + $0x10] sm:$0xff] %vm612_vm9, %v1032_v8  ;;  %v1018_v4 = vld [vmem:[%s4984_s18 + $0x20] sm:$0xff]  ;;  %v3049_v8 = vsel %vm4527_vm8, %v4164_v62, %v3048_v54  ;;  %v4166_v13 = vld [vmem:[%s4481_s28 + $0x4c] sm:$0xf] }
  0xd3   : > { %4208 = vmatmul.msk.bf16.vlgmr.msra.gmra.mxu0 %vm534_vm2, %v4282_v32  ;;  %4083 = vmatmul.msk.bf16.gmra.mxu2 %vm534_vm2, %v5111_v23  ;;  %v5176_v55 = vld [vmem:[#allocation2 + $0x18] sm:$0xff]  ;;  %v4102_v23 = vld [vmem:[%s4481_s28 + $0x48] sm:$0xf]  ;;  %v5188_v32 = vld [vmem:[#allocation2 + $0x20] sm:$0xff]  ;;  %v2708_v9 = vrot.slane %v2706_v61, 5 }
  0xd4   : > { %v1549_v20 = vld [vmem:[%s4984_s18] sm:$0xff]  ;;  %1368 = vst.msk [vmem:[%s4984_s18 + $0x8] sm:$0xff] %vm612_vm9, %v1352_v16  ;;  %v2687_v36 = vshrl.u32 %v4102_v23, 16  ;;  %v2690_v41 = vshll.u32 %v4102_v23, 16 }
  0xd5   : > { %v1565_v21 = vadd.f32 %v1549_v20, %v1509_v45  ;;  %2681 = vst.msk [vmem:[#allocation2 + $0x18] sm:$0xf] %vm439_vm1, %v2668_v18  ;;  %v4283_v25 = vld [vmem:[#allocation2 + $0x8] sm:$0xff] }
  0xd6   : > { %v1511_v12 = vpop.f32.mrf.mxu3  ;;  %v1300_v15 = vpop.f32.mrf.mxu2  ;;  %2682 = vst.msk [vmem:[#allocation2 + $0x1c] sm:$0xf] %vm439_vm1, %v2678_v22  ;;  %v2689_v48 = vrot.slane %v2687_v36, 4  ;;  %v2692_v52 = vrot.slane %v2690_v41, 5  ;;  %v4284_v23 = vld [vmem:[#allocation2 + $0x10] sm:$0xff] }
  0xd7   : > { %1581 = vst.msk [vmem:[%s4984_s18] sm:$0xff] %vm612_vm9, %v1565_v21  ;;  %v981_v27 = vpop.f32.mrf.mxu1 }
  0xd8   : > { %v5159_v14 = vpop.f32.mrf.mxu0  ;;  %v1033_v31 = vadd.f32 %v1017_v24, %v981_v27  ;;  %2363 = vst.msk [vmem:[#allocation2 + $0x20] sm:$0xf] %vm439_vm1, %v4045_v26  ;;  %v2693_v60 = vor.u32 %v2692_v52, %v2689_v48  ;;  %v4048_v48 = vld [vmem:[%s4481_s28 + $0x58] sm:$0xf] }
  0xd9   : > { %v1337_v37 = vld [vmem:[%s4984_s18 + $0x10] sm:$0xff]  ;;  %2364 = vst.msk [vmem:[#allocation2 + $0x24] sm:$0xf] %vm439_vm1, %v4046_v35  ;;  %v4106_v35 = vld [vmem:[%s4481_s28 + $0x58] sm:$0xf] }
  0xda   : > { %v1353_v45 = vadd.f32 %v1337_v37, %v1300_v15  ;;  %1049 = vst.msk [vmem:[%s4984_s18 + $0x18] sm:$0xff] %vm612_vm9, %v1033_v31  ;;  %v2694_v47 = vrot.slane %v2693_v60, 4  ;;  %v1019_v15 = vld [vmem:[%s4984_s18 + $0x28] sm:$0xff]  ;;  %v2727_v42 = vshll.u32 %v4106_v35, 16  ;;  %v3065_v60 = vrot.slane %v4166_v13, 5 }
  0xdb   : > { %4142 = vmatmul.msk.bf16.gmra.mxu3 %vm534_vm2, %v4275_v58  ;;  %v1550_v34 = vld [vmem:[%s4984_s18 + $0x8] sm:$0xff]  ;;  %3055 = vst.msk [vmem:[#allocation2 + $0x18] sm:$0xf] %vm439_vm1, %v3049_v8 }
  0xdc   : > { %v1566_v53 = vadd.f32 %v1550_v34, %v1511_v12  ;;  %1369 = vst.msk [vmem:[%s4984_s18 + $0x10] sm:$0xff] %vm612_vm9, %v1353_v45  ;;  %v2704_v12 = vrot.slane %v2703_v6, 4  ;;  %v2699_v18 = vsel %vm4518_vm7, %v2694_v47, %v2698_v56  ;;  %v5259_v37 = vld [vmem:[#allocation2 + $0x28] sm:$0xff]  ;;  %v4047_v45 = vld [vmem:[%s4481_s28 + $0x54] sm:$0xf]  ;;  %v2731_v34 = vshrl.u32 %v4106_v35, 16 }
  0xdd   : > { %2367 = vst.msk [vmem:[#allocation2 + $0x28] sm:$0xf] %vm439_vm1, %v4047_v45  ;;  %v4107_v56 = vld [vmem:[%s4481_s28 + $0x5c] sm:$0x1]  ;;  %v2729_v57 = vrot.slane %v2727_v42, 5  ;;  %v3067_v6 = vrot.slane %v3065_v60, 4 }
  0xde   : > { %v1514_v1 = vpop.f32.mrf.mxu3  ;;  %v1979_v58 = vld [vmem:[%s4984_s18] sm:$0xff]  ;;  %1582 = vst.msk [vmem:[%s4984_s18 + $0x8] sm:$0xff] %vm612_vm9, %v1566_v53  ;;  %v1302_v49 = vpop.f32.mrf.mxu2  ;;  %v2747_v13 = vld [vmem:[%s4935_s13 + $0x8] sm:$0x1] }
  0xdf   : > { %v1995_v51 = vadd.f32 %v1979_v58, %v5137_v46  ;;  %v984_v3 = vpop.f32.mrf.mxu1  ;;  %v3052_v46 = vsel %vm4527_vm8, %v3050_v2, %v3051_v5  ;;  %2368 = vst.msk [vmem:[#allocation2 + $0x2c] sm:$0xf] %vm439_vm1, %v4048_v48  ;;  %v4165_v2 = vld [vmem:[%s4481_s28 + $0x48] sm:$0xe]  ;;  %v2737_v5 = vshll.u32 %v4107_v56, 16 }
  0xe0   : > { %v5193_v40 = vpop.f32.mrf.mxu0  ;;  %v1034_v7 = vadd.f32 %v1018_v4, %v984_v3  ;;  %v5236_v21 = vld [vmem:[#allocation2 + $0x20] sm:$0xff]  ;;  %v4168_v47 = vrot.slane %v4165_v2, 9 }
  0xe1   : > { %2011 = vst.msk [vmem:[%s4984_s18] sm:$0xff] %vm612_vm9, %v1995_v51  ;;  %v1338_v10 = vld [vmem:[%s4984_s18 + $0x18] sm:$0xff]  ;;  %4031 = vmatmul.msk.bf16.gmra.mxu1 %vm534_vm2, %v5091_v0  ;;  %v2709_v0 = vsel %vm4518_vm7, %v2704_v12, %v2708_v9  ;;  %v2733_v51 = vrot.slane %v2731_v34, 4  ;;  %v2370_v42 = vld [vmem:[%s4935_s13 + $0x4] sm:$0xf] }
  0xe2   : > { %v1354_v63 = vadd.f32 %v1338_v10, %v1302_v49  ;;  %1050 = vst.msk [vmem:[%s4984_s18 + $0x20] sm:$0xff] %vm612_vm9, %v1034_v7  ;;  %v5226_v16 = vld [vmem:[#allocation2 + $0x18] sm:$0xff] }
  0xe3   : > { %4209 = vmatmul.msk.bf16.gmra.mxu0 %vm534_vm2, %v4283_v25  ;;  %v1551_v19 = vld [vmem:[%s4984_s18 + $0x10] sm:$0xff]  ;;  %3056 = vst.msk [vmem:[#allocation2 + $0x1c] sm:$0xf] %vm439_vm1, %v3052_v46  ;;  %4084 = vmatmul.msk.bf16.gmra.mxu2 %vm534_vm2, %v5126_v33  ;;  %v2734_v9 = vor.u32 %v2733_v51, %v2729_v57 }
  0xe4   : > { %v1567_v20 = vadd.f32 %v1551_v19, %v1514_v1  ;;  %1370 = vst.msk [vmem:[%s4984_s18 + $0x18] sm:$0xff] %vm612_vm9, %v1354_v63  ;;  %v4169_v51 = vld [vmem:[%s4481_s28 + $0x54] sm:$0xe] }
  0xe5   : > { %v1980_v22 = vld [vmem:[%s4984_s18 + $0x8] sm:$0xff]  ;;  %2712 = vst.msk [vmem:[#allocation2 + $0x20] sm:$0xf] %vm439_vm1, %v2699_v18  ;;  %v2735_v18 = vrot.slane %v2734_v9, 4 }
  0xe6   : > { %v1516_v11 = vpop.f32.mrf.mxu3  ;;  %1583 = vst.msk [vmem:[%s4984_s18 + $0x10] sm:$0xff] %vm612_vm9, %v1567_v20  ;;  %v1996_v24 = vadd.f32 %v1980_v22, %v5159_v14  ;;  %v1305_v33 = vpop.f32.mrf.mxu2 }
  0xe7   : > { %v986_v25 = vpop.f32.mrf.mxu1  ;;  %2713 = vst.msk [vmem:[#allocation2 + $0x24] sm:$0xf] %vm439_vm1, %v2709_v0 }
  0xe8   : > { %v5219_v28 = vpop.f32.mrf.mxu0  ;;  %2012 = vst.msk [vmem:[%s4984_s18 + $0x8] sm:$0xff] %vm612_vm9, %v1996_v24  ;;  %v1035_v27 = vadd.f32 %v1019_v15, %v986_v25  ;;  %v5317_v25 = vld [vmem:[#allocation2 + $0x28] sm:$0xff] }
  0xe9   : > { %v1339_v30 = vld [vmem:[%s4984_s18 + $0x20] sm:$0xff] }
  0xea   : > { %v1355_v14 = vadd.f32 %v1339_v30, %v1305_v33  ;;  %1051 = vst.msk [vmem:[%s4984_s18 + $0x28] sm:$0xff] %vm612_vm9, %v1035_v27  ;;  %v1021_v33 = vld [vmem:[%s4984_s18 + $0x38] sm:$0xff] }
  0xeb   : > { %4143 = vmatmul.msk.bf16.gmra.mxu3 %vm534_vm2, %v5166_v17  ;;  %v4105_v17 = vld [vmem:[%s4481_s28 + $0x54] sm:$0xf]  ;;  %v1552_v36 = vld [vmem:[%s4984_s18 + $0x18] sm:$0xff] }
  0xec   : > { %v2718_v1 = vshrl.u32 %v4105_v17, 16  ;;  %v2721_v41 = vshll.u32 %v4105_v17, 16  ;;  %v1568_v43 = vadd.f32 %v1552_v36, %v1516_v11  ;;  %1371 = vst.msk [vmem:[%s4984_s18 + $0x20] sm:$0xff] %vm612_vm9, %v1355_v14  ;;  %v3066_v11 = vsel %vm4527_vm8, %v4168_v47, %v3065_v60  ;;  %v2745_v14 = vld [vmem:[%s4935_s13] sm:$0xf]  ;;  %v5337_v36 = vld [vmem:[#allocation2 + $0x30] sm:$0xff] }
  0xed   : > { %v1981_v50 = vld [vmem:[%s4984_s18 + $0x10] sm:$0xff]  ;;  %3072 = vst.msk [vmem:[#allocation2 + $0x20] sm:$0xf] %vm439_vm1, %v3066_v11  ;;  %v2746_v17 = vld [vmem:[%s4935_s13 + $0x4] sm:$0xf]  ;;  %v2752_v45 = vshll.u32 %v2745_v14, 16 }
  0xee   : > { %v1519_v31 = vpop.f32.mrf.mxu3  ;;  %v2720_v52 = vrot.slane %v2718_v1, 4  ;;  %v2723_v53 = vrot.slane %v2721_v41, 5  ;;  %1584 = vst.msk [vmem:[%s4984_s18 + $0x18] sm:$0xff] %vm612_vm9, %v1568_v43  ;;  %v1997_v54 = vadd.f32 %v1981_v50, %v5193_v40  ;;  %v1307_v58 = vpop.f32.mrf.mxu2  ;;  %v4167_v40 = vld [vmem:[%s4481_s28 + $0x50] sm:$0x1]  ;;  %v2749_v43 = vshrl.u32 %v2745_v14, 16 }
  0xef   : > { %v989_v29 = vpop.f32.mrf.mxu1  ;;  %v3068_v7 = vrot.slane %v4167_v40, 5  ;;  %v2369_v1 = vld [vmem:[%s4935_s13] sm:$0xf]  ;;  %v2758_v48 = vshll.u32 %v2746_v17, 16  ;;  %v2762_v50 = vshrl.u32 %v2746_v17, 16 }
  0xf0   : > { %v5252_v26 = vpop.f32.mrf.mxu0  ;;  %v2724_v61 = vor.u32 %v2723_v53, %v2720_v52  ;;  %2013 = vst.msk [vmem:[%s4984_s18 + $0x10] sm:$0xff] %vm612_vm9, %v1997_v54  ;;  %v1036_v62 = vadd.f32 %v1020_v59, %v989_v29  ;;  %v1022_v53 = vld [vmem:[%s4984_s18 + $0x40] sm:$0xff]  ;;  %v4170_v54 = vld [vmem:[%s4481_s28 + $0x58] sm:$0xf]  ;;  %v2751_v29 = vrot.slane %v2749_v43, 4  ;;  %v2754_v59 = vrot.slane %v2752_v45, 5 }
  0xf1   : > { %v1340_v49 = vld [vmem:[%s4984_s18 + $0x28] sm:$0xff]  ;;  %4032 = vmatmul.msk.bf16.gmra.mxu1 %vm534_vm2, %v5132_v39  ;;  %v3069_v63 = vsel %vm4527_vm8, %v3067_v6, %v3068_v7  ;;  %v2739_v39 = vrot.slane %v2737_v5, 5  ;;  %2371 = vst.msk [vmem:[#allocation2 + $0x30] sm:$0xf] %vm439_vm1, %v2369_v1  ;;  %v2760_v60 = vrot.slane %v2758_v48, 5 }
  0xf2   : > { %v1356_v8 = vadd.f32 %v1340_v49, %v1307_v58  ;;  %1052 = vst.msk [vmem:[%s4984_s18 + $0x30] sm:$0xff] %vm612_vm9, %v1036_v62  ;;  %v2725_v46 = vrot.slane %v2724_v61, 4  ;;  %v3082_v58 = vrot.slane %v4170_v54, 5  ;;  %v2764_v62 = vrot.slane %v2762_v50, 4  ;;  %v2777_v14 = vld [vmem:[%s5391_s22 + $0x4] sm:$0xf] }
  0xf3   : > { %4210 = vmatmul.msk.bf16.gmra.mxu0 %vm534_vm2, %v4284_v23  ;;  %v1553_v10 = vld [vmem:[%s4984_s18 + $0x20] sm:$0xff]  ;;  %4085 = vmatmul.msk.bf16.gmra.mxu2 %vm534_vm2, %v5176_v55  ;;  %v2740_v15 = vsel %vm4518_vm7, %v2735_v18, %v2739_v39  ;;  %2372 = vst.msk [vmem:[#allocation2 + $0x34] sm:$0xf] %vm439_vm1, %v2370_v42  ;;  %v4172_v49 = vrot.slane %v4169_v51, 9  ;;  %v2755_v6 = vor.u32 %v2754_v59, %v2751_v29  ;;  %v2789_v48 = vshll.u32 %v2777_v14, 16 }
  0xf4   : > { %v1569_v12 = vadd.f32 %v1553_v10, %v1519_v31  ;;  %1372 = vst.msk [vmem:[%s4984_s18 + $0x28] sm:$0xff] %vm612_vm9, %v1356_v8  ;;  %v5309_v55 = vld [vmem:[#allocation2 + $0x20] sm:$0xff]  ;;  %v2730_v0 = vsel %vm4518_vm7, %v2725_v46, %v2729_v57  ;;  %v2765_v8 = vor.u32 %v2764_v62, %v2760_v60  ;;  %v2768_v46 = vshll.u32 %v2747_v13, 16  ;;  %v2778_v13 = vld [vmem:[%s5391_s22 + $0x8] sm:$0x1] }
  0xf5   : > { %v1982_v19 = vld [vmem:[%s4984_s18 + $0x18] sm:$0xff]  ;;  %3073 = vst.msk [vmem:[#allocation2 + $0x24] sm:$0xf] %vm439_vm1, %v3069_v63  ;;  %v3083_v10 = vsel %vm4527_vm8, %v4172_v49, %v3082_v58  ;;  %v2756_v11 = vrot.slane %v2755_v6, 4  ;;  %v2373_v1 = vld [vmem:[%s5391_s22] sm:$0xf] }
  0xf6   : > { %v1521_v3 = vpop.f32.mrf.mxu3  ;;  %1585 = vst.msk [vmem:[%s4984_s18 + $0x20] sm:$0xff] %vm612_vm9, %v1569_v12  ;;  %v1998_v20 = vadd.f32 %v1982_v19, %v5219_v28  ;;  %v1310_v22 = vpop.f32.mrf.mxu2  ;;  %v2766_v18 = vrot.slane %v2765_v8, 4  ;;  %v2374_v42 = vld [vmem:[%s5391_s22 + $0x4] sm:$0xf]  ;;  %v2793_v50 = vshrl.u32 %v2777_v14, 16 }
  0xf7   : > { %v991_v24 = vpop.f32.mrf.mxu1  ;;  %2743 = vst.msk [vmem:[#allocation2 + $0x28] sm:$0xf] %vm439_vm1, %v2730_v0  ;;  %v3092_v54 = vld [vmem:[%s4935_s13 + $0x4] sm:$0xf]  ;;  %v3091_v51 = vld [vmem:[%s4935_s13] sm:$0xe] }
  0xf8   : > { %v5280_v4 = vpop.f32.mrf.mxu0  ;;  %2014 = vst.msk [vmem:[%s4984_s18 + $0x18] sm:$0xff] %vm612_vm9, %v1998_v20  ;;  %v1037_v28 = vadd.f32 %v1021_v33, %v991_v24  ;;  %v1023_v24 = vld [vmem:[%s4984_s18 + $0x48] sm:$0xff]  ;;  %v4173_v49 = vrot.slane %v3091_v51, 9 }
  0xf9   : > { %v1341_v27 = vld [vmem:[%s4984_s18 + $0x30] sm:$0xff]  ;;  %2744 = vst.msk [vmem:[#allocation2 + $0x2c] sm:$0xf] %vm439_vm1, %v2740_v15 }
  0xfa   : > { %v1357_v31 = vadd.f32 %v1341_v27, %v1310_v22  ;;  %1053 = vst.msk [vmem:[%s4984_s18 + $0x38] sm:$0xff] %vm612_vm9, %v1037_v28  ;;  %v5395_v33 = vld [vmem:[#allocation2 + $0x30] sm:$0xff] }
  0xfb   : > { %4144 = vmatmul.msk.bf16.gmra.mxu3 %vm534_vm2, %v5226_v16  ;;  %v4285_v16 = vld [vmem:[#allocation2 + $0x18] sm:$0xff]  ;;  %v1554_v35 = vld [vmem:[%s4984_s18 + $0x28] sm:$0xff]  ;;  %3089 = vst.msk [vmem:[#allocation2 + $0x28] sm:$0xf] %vm439_vm1, %v3083_v10 }
  0xfc   : > { %v1570_v41 = vadd.f32 %v1554_v35, %v1521_v3  ;;  %1373 = vst.msk [vmem:[%s4984_s18 + $0x30] sm:$0xff] %vm612_vm9, %v1357_v31  ;;  %v3084_v3 = vrot.slane %v3082_v58, 4  ;;  %v2776_v31 = vld [vmem:[%s5391_s22] sm:$0xf]  ;;  %v5409_v35 = vld [vmem:[#allocation2 + $0x38] sm:$0xff]  ;;  %v3099_v58 = vrot.slane %v3092_v54, 5 }
  0xfd   : > { %v1983_v34 = vld [vmem:[%s4984_s18 + $0x20] sm:$0xff]  ;;  %v2780_v43 = vshrl.u32 %v2776_v31, 16  ;;  %v2783_v45 = vshll.u32 %v2776_v31, 16  ;;  %2375 = vst.msk [vmem:[#allocation2 + $0x38] sm:$0xf] %vm439_vm1, %v2373_v1 }
  0xfe   : > { %v1524_v23 = vpop.f32.mrf.mxu3  ;;  %1586 = vst.msk [vmem:[%s4984_s18 + $0x28] sm:$0xff] %vm612_vm9, %v1570_v41  ;;  %v1999_v52 = vadd.f32 %v1983_v34, %v5252_v26  ;;  %v1312_v56 = vpop.f32.mrf.mxu2  ;;  %v4171_v26 = vld [vmem:[%s4481_s28 + $0x5c] sm:$0x1]  ;;  %v3100_v10 = vsel %vm4527_vm8, %v4173_v49, %v3099_v58 }
  0xff   : > { %v994_v57 = vpop.f32.mrf.mxu1  ;;  %v3085_v47 = vrot.slane %v4171_v26, 5  ;;  %2376 = vst.msk [vmem:[#allocation2 + $0x3c] sm:$0xf] %vm439_vm1, %v2374_v42  ;;  %v2782_v29 = vrot.slane %v2780_v43, 4  ;;  %v2785_v59 = vrot.slane %v2783_v45, 5  ;;  %v1026_v42 = vld [vmem:[%s4984_s18 + $0x60] sm:$0xff] }
 0x100   : > { %v5322_v30 = vpop.f32.mrf.mxu0  ;;  %2015 = vst.msk [vmem:[%s4984_s18 + $0x20] sm:$0xff] %vm612_vm9, %v1999_v52  ;;  %v1038_v61 = vadd.f32 %v1022_v53, %v994_v57  ;;  %v1024_v53 = vld [vmem:[%s4984_s18 + $0x50] sm:$0xff]  ;;  %v3093_v26 = vld [vmem:[%s4935_s13 + $0x8] sm:$0x1] }
 0x101   : > { %v1342_v2 = vld [vmem:[%s4984_s18 + $0x38] sm:$0xff]  ;;  %4033 = vmatmul.msk.bf16.gmra.mxu1 %vm534_vm2, %v5188_v32  ;;  %v3086_v63 = vsel %vm4527_vm8, %v3084_v3, %v3085_v47  ;;  %v2770_v32 = vrot.slane %v2768_v46, 5  ;;  %v3101_v3 = vrot.slane %v3099_v58, 4  ;;  %v3102_v47 = vrot.slane %v3093_v26, 5 }
 0x102   : > { %v1358_v7 = vadd.f32 %v1342_v2, %v1312_v56  ;;  %1054 = vst.msk [vmem:[%s4984_s18 + $0x40] sm:$0xff] %vm612_vm9, %v1038_v61  ;;  %v5382_v20 = vld [vmem:[#allocation2 + $0x28] sm:$0xff]  ;;  %v2786_v6 = vor.u32 %v2785_v59, %v2782_v29  ;;  %v2799_v46 = vshll.u32 %v2778_v13, 16 }
 0x103   : > { %4211 = vmatmul.msk.bf16.gmra.mxu0 %vm534_vm2, %v4285_v16  ;;  %v1555_v9 = vld [vmem:[%s4984_s18 + $0x30] sm:$0xff]  ;;  %4086 = vmatmul.msk.bf16.gmra.mxu2 %vm534_vm2, %v5236_v21  ;;  %v2761_v21 = vsel %vm4518_vm7, %v2756_v11, %v2760_v60  ;;  %3090 = vst.msk [vmem:[#allocation2 + $0x2c] sm:$0xf] %vm439_vm1, %v3086_v63  ;;  %v2771_v28 = vsel %vm4518_vm7, %v2766_v18, %v2770_v32  ;;  %v2791_v60 = vrot.slane %v2789_v48, 5  ;;  %v3108_v48 = vld [vmem:[%s5391_s22] sm:$0xe] }
 0x104   : > { %v1571_v12 = vadd.f32 %v1555_v9, %v1524_v23  ;;  %1374 = vst.msk [vmem:[%s4984_s18 + $0x38] sm:$0xff] %vm612_vm9, %v1358_v7  ;;  %v2787_v11 = vrot.slane %v2786_v6, 4  ;;  %v3103_v63 = vsel %vm4527_vm8, %v3101_v3, %v3102_v47  ;;  %v4174_v54 = vrot.slane %v3108_v48, 9 }
 0x105   : > { %v1984_v39 = vld [vmem:[%s4984_s18 + $0x28] sm:$0xff]  ;;  %2774 = vst.msk [vmem:[#allocation2 + $0x30] sm:$0xf] %vm439_vm1, %v2761_v21 }
 0x106   : > { %v1526_v40 = vpop.f32.mrf.mxu3  ;;  %1587 = vst.msk [vmem:[%s4984_s18 + $0x30] sm:$0xff] %vm612_vm9, %v1571_v12  ;;  %v2000_v19 = vadd.f32 %v1984_v39, %v5280_v4  ;;  %v1315_v0 = vpop.f32.mrf.mxu2 }
 0x107   : > { %v996_v22 = vpop.f32.mrf.mxu1  ;;  %2775 = vst.msk [vmem:[#allocation2 + $0x34] sm:$0xf] %vm439_vm1, %v2771_v28 }
 0x108   : > { %v5359_v5 = vpop.f32.mrf.mxu0  ;;  %2016 = vst.msk [vmem:[%s4984_s18 + $0x28] sm:$0xff] %vm612_vm9, %v2000_v19  ;;  %v1039_v4 = vadd.f32 %v1023_v24, %v996_v22  ;;  %v1025_v22 = vld [vmem:[%s4984_s18 + $0x58] sm:$0xff] }
 0x109   : > { %v1343_v16 = vld [vmem:[%s4984_s18 + $0x40] sm:$0xff]  ;;  %3106 = vst.msk [vmem:[#allocation2 + $0x30] sm:$0xf] %vm439_vm1, %v3100_v10 }
 0x10a   : > { %v1359_v23 = vadd.f32 %v1343_v16, %v1315_v0  ;;  %1055 = vst.msk [vmem:[%s4984_s18 + $0x48] sm:$0xff] %vm612_vm9, %v1039_v4  ;;  %v5458_v4 = vld [vmem:[#allocation2 + $0x38] sm:$0xff] }
 0x10b   : > { %4145 = vmatmul.msk.bf16.gmra.mxu3 %vm534_vm2, %v5309_v55  ;;  %v4286_v55 = vld [vmem:[#allocation2 + $0x20] sm:$0xff]  ;;  %v1556_v17 = vld [vmem:[%s4984_s18 + $0x38] sm:$0xff] }
 0x10c   : > { %v1572_v41 = vadd.f32 %v1556_v17, %v1526_v40  ;;  %1375 = vst.msk [vmem:[%s4984_s18 + $0x40] sm:$0xff] %vm612_vm9, %v1359_v23  ;;  %v3109_v17 = vld [vmem:[%s5391_s22 + $0x4] sm:$0xf] }
 0x10d   : > { %v1985_v34 = vld [vmem:[%s4984_s18 + $0x30] sm:$0xff]  ;;  %v3116_v43 = vrot.slane %v3109_v17, 5 }
 0x10e   : > { %v1529_v15 = vpop.f32.mrf.mxu3  ;;  %1588 = vst.msk [vmem:[%s4984_s18 + $0x38] sm:$0xff] %vm612_vm9, %v1572_v41  ;;  %v2001_v52 = vadd.f32 %v1985_v34, %v5322_v30  ;;  %v1317_v56 = vpop.f32.mrf.mxu2  ;;  %v2795_v30 = vrot.slane %v2793_v50, 4  ;;  %v3110_v34 = vld [vmem:[%s5391_s22 + $0x8] sm:$0x1] }
 0x10f   : > { %v999_v57 = vpop.f32.mrf.mxu1  ;;  %v3119_v13 = vrot.slane %v3110_v34, 5  ;;  %v3117_v58 = vsel %vm4527_vm8, %v4174_v54, %v3116_v43 }
 0x110   : > { %v5400_v27 = vpop.f32.mrf.mxu0  ;;  %2017 = vst.msk [vmem:[%s4984_s18 + $0x30] sm:$0xff] %vm612_vm9, %v2001_v52  ;;  %v1040_v61 = vadd.f32 %v1024_v53, %v999_v57  ;;  %v2796_v8 = vor.u32 %v2795_v30, %v2791_v60  ;;  %v4280_v19 = vld [vmem:[#allocation2 + $0x30] sm:$0xff] }
 0x111   : > { %v1344_v62 = vld [vmem:[%s4984_s18 + $0x48] sm:$0xff]  ;;  %4034 = vmatmul.msk.bf16.gmra.mxu1 %vm534_vm2, %v5259_v37  ;;  %v2801_v37 = vrot.slane %v2799_v46, 5  ;;  %3107 = vst.msk [vmem:[#allocation2 + $0x34] sm:$0xf] %vm439_vm1, %v3103_v63 }
 0x112   : > { %v1360_v7 = vadd.f32 %v1344_v62, %v1317_v56  ;;  %1056 = vst.msk [vmem:[%s4984_s18 + $0x50] sm:$0xff] %vm612_vm9, %v1040_v61  ;;  %v2797_v18 = vrot.slane %v2796_v8, 4 }
 0x113   : > { %4212 = vmatmul.msk.bf16.gmra.mxu0 %vm534_vm2, %v4286_v55  ;;  %v1557_v9 = vld [vmem:[%s4984_s18 + $0x40] sm:$0xff]  ;;  %4087 = vmatmul.msk.bf16.gmra.mxu2 %vm534_vm2, %v5317_v25  ;;  %v2792_v25 = vsel %vm4518_vm7, %v2787_v11, %v2791_v60 }
 0x114   : > { %v1573_v12 = vadd.f32 %v1557_v9, %v1529_v15  ;;  %1376 = vst.msk [vmem:[%s4984_s18 + $0x48] sm:$0xff] %vm612_vm9, %v1360_v7  ;;  %v1028_v9 = vld [vmem:[%s4984_s18 + $0x70] sm:$0xff] }
 0x115   : > { %v1986_v32 = vld [vmem:[%s4984_s18 + $0x38] sm:$0xff]  ;;  %2805 = vst.msk [vmem:[#allocation2 + $0x38] sm:$0xf] %vm439_vm1, %v2792_v25 }
 0x116   : > { %v1531_v2 = vpop.f32.mrf.mxu3  ;;  %1589 = vst.msk [vmem:[%s4984_s18 + $0x40] sm:$0xff] %vm612_vm9, %v1573_v12  ;;  %v2002_v39 = vadd.f32 %v1986_v32, %v5359_v5  ;;  %v1320_v21 = vpop.f32.mrf.mxu2  ;;  %v4287_v5 = vld [vmem:[#allocation2 + $0x28] sm:$0xff] }
 0x117   : > { %v1001_v0 = vpop.f32.mrf.mxu1  ;;  %3123 = vst.msk [vmem:[#allocation2 + $0x38] sm:$0xf] %vm439_vm1, %v3117_v58 }
 0x118   : > { %v5430_v40 = vpop.f32.mrf.mxu0  ;;  %2018 = vst.msk [vmem:[%s4984_s18 + $0x38] sm:$0xff] %vm612_vm9, %v2002_v39  ;;  %v1041_v24 = vadd.f32 %v1025_v22, %v1001_v0  ;;  %v4288_v30 = vld [vmem:[#allocation2 + $0x30] sm:$0xff] }
 0x119   : > { %v1345_v55 = vld [vmem:[%s4984_s18 + $0x50] sm:$0xff] }
 0x11a   : > { %v1361_v15 = vadd.f32 %v1345_v55, %v1320_v21  ;;  %1057 = vst.msk [vmem:[%s4984_s18 + $0x58] sm:$0xff] %vm612_vm9, %v1041_v24  ;;  %v1029_v21 = vld [vmem:[%s4984_s18 + $0x78] sm:$0xff] }
 0x11b   : > { %4146 = vmatmul.msk.bf16.gmra.mxu3 %vm534_vm2, %v5382_v20  ;;  %v2802_v20 = vsel %vm4518_vm7, %v2797_v18, %v2801_v37  ;;  %v1558_v23 = vld [vmem:[%s4984_s18 + $0x48] sm:$0xff] }
 0x11c   : > { %2806 = vst.msk [vmem:[#allocation2 + $0x3c] sm:$0xf] %vm439_vm1, %v2802_v20  ;;  %v1574_v31 = vadd.f32 %v1558_v23, %v1531_v2 }
 0x11d   : > { %1377 = vst.msk [vmem:[%s4984_s18 + $0x50] sm:$0xff] %vm612_vm9, %v1361_v15  ;;  %v1987_v38 = vld [vmem:[%s4984_s18 + $0x40] sm:$0xff] }
 0x11e   : > { %v1534_v28 = vpop.f32.mrf.mxu3  ;;  %1590 = vst.msk [vmem:[%s4984_s18 + $0x48] sm:$0xff] %vm612_vm9, %v1574_v31  ;;  %v2003_v14 = vadd.f32 %v1987_v38, %v5400_v27  ;;  %v1322_v1 = vpop.f32.mrf.mxu2  ;;  %v3118_v27 = vrot.slane %v3116_v43, 4  ;;  %v2297_v38 = vld [vmem:[%s4984_s18] sm:$0xff] }
 0x11f   : > { %v1004_v41 = vpop.f32.mrf.mxu1 }
 0x120   : > { %v1964_v16 = vpop.f32.mrf.mxu0  ;;  %2019 = vst.msk [vmem:[%s4984_s18 + $0x40] sm:$0xff] %vm612_vm9, %v2003_v14  ;;  %v1042_v45 = vadd.f32 %v1026_v42, %v1004_v41  ;;  %v3120_v59 = vsel %vm4527_vm8, %v3118_v27, %v3119_v13 }
 0x121   : > { %v1346_v50 = vld [vmem:[%s4984_s18 + $0x58] sm:$0xff]  ;;  %4035 = vmatmul.msk.bf16.gmra.mxu1 %vm534_vm2, %v5337_v36 }
 0x122   : > { %v1362_v56 = vadd.f32 %v1346_v50, %v1322_v1  ;;  %1058 = vst.msk [vmem:[%s4984_s18 + $0x60] sm:$0xff] %vm612_vm9, %v1042_v45 }
 0x123   : > { %4213 = vmatmul.msk.bf16.gmra.mxu0 %vm534_vm2, %v4287_v5  ;;  %4088 = vmatmul.msk.bf16.gmra.mxu2 %vm534_vm2, %v5395_v33  ;;  %v4281_v61 = vld [vmem:[#allocation2 + $0x38] sm:$0xff]  ;;  %v1027_v33 = vld [vmem:[%s4984_s18 + $0x68] sm:$0xff] }
 0x124   : > { %v1559_v57 = vld [vmem:[%s4984_s18 + $0x50] sm:$0xff]  ;;  %1378 = vst.msk [vmem:[%s4984_s18 + $0x58] sm:$0xff] %vm612_vm9, %v1362_v56 }
 0x125   : > { %v1575_v29 = vadd.f32 %v1559_v57, %v1534_v28  ;;  %v1988_v60 = vld [vmem:[%s4984_s18 + $0x48] sm:$0xff]  ;;  %3124 = vst.msk [vmem:[#allocation2 + $0x3c] sm:$0xf] %vm439_vm1, %v3120_v59 }
 0x126   : > { %v1536_v52 = vpop.f32.mrf.mxu3  ;;  %v2004_v36 = vadd.f32 %v1988_v60, %v5430_v40  ;;  %v1325_v51 = vpop.f32.mrf.mxu2 }
 0x127   : > { %1591 = vst.msk [vmem:[%s4984_s18 + $0x50] sm:$0xff] %vm612_vm9, %v1575_v29  ;;  %v1006_v26 = vpop.f32.mrf.mxu1 }
 0x128   : > { %v1966_v53 = vpop.f32.mrf.mxu0  ;;  %2020 = vst.msk [vmem:[%s4984_s18 + $0x48] sm:$0xff] %vm612_vm9, %v2004_v36  ;;  %v1043_v44 = vadd.f32 %v1027_v33, %v1006_v26 }
 0x129   : > { %v1347_v62 = vld [vmem:[%s4984_s18 + $0x60] sm:$0xff] }
 0x12a   : > { %v1363_v49 = vadd.f32 %v1347_v62, %v1325_v51  ;;  %1059 = vst.msk [vmem:[%s4984_s18 + $0x68] sm:$0xff] %vm612_vm9, %v1043_v44  ;;  %v2299_v51 = vld [vmem:[%s4984_s18 + $0x10] sm:$0xff] }
 0x12b   : > { %4147 = vmatmul.msk.bf16.gmra.mxu3 %vm534_vm2, %v4280_v19  ;;  %v1560_v3 = vld [vmem:[%s4984_s18 + $0x58] sm:$0xff] }
 0x12c   : > { %v1576_v47 = vadd.f32 %v1560_v3, %v1536_v52  ;;  %1379 = vst.msk [vmem:[%s4984_s18 + $0x60] sm:$0xff] %vm612_vm9, %v1363_v49  ;;  %v4289_v22 = vld [vmem:[#allocation2 + $0x38] sm:$0xff] }
 0x12e   : > { %v1539_v2 = vpop.f32.mrf.mxu3  ;;  %v1989_v6 = vld [vmem:[%s4984_s18 + $0x50] sm:$0xff]  ;;  %1592 = vst.msk [vmem:[%s4984_s18 + $0x58] sm:$0xff] %vm612_vm9, %v1576_v47  ;;  %v1327_v8 = vpop.f32.mrf.mxu2 }
 0x12f   : > { %v2005_v7 = vadd.f32 %v1989_v6, %v1964_v16  ;;  %v1009_v46 = vpop.f32.mrf.mxu1 }
 0x130   : > { %v1969_v40 = vpop.f32.mrf.mxu0  ;;  %v1044_v10 = vadd.f32 %v1028_v9, %v1009_v46 }
 0x131   : > { %2021 = vst.msk [vmem:[%s4984_s18 + $0x50] sm:$0xff] %vm612_vm9, %v2005_v7  ;;  %v1348_v11 = vld [vmem:[%s4984_s18 + $0x68] sm:$0xff]  ;;  %4036 = vmatmul.msk.bf16.gmra.mxu1 %vm534_vm2, %v5409_v35  ;;  %v2300_v7 = vld [vmem:[%s4984_s18 + $0x18] sm:$0xff] }
 0x132   : > { %v1364_v18 = vadd.f32 %v1348_v11, %v1327_v8  ;;  %1060 = vst.msk [vmem:[%s4984_s18 + $0x70] sm:$0xff] %vm612_vm9, %v1044_v10 }
 0x133   : > { %4214 = vmatmul.msk.bf16.gmra.mxu0 %vm534_vm2, %v4288_v30  ;;  %v1561_v37 = vld [vmem:[%s4984_s18 + $0x60] sm:$0xff]  ;;  %4089 = vmatmul.msk.bf16.gmra.mxu2 %vm534_vm2, %v5458_v4 }
 0x134   : > { %v1577_v32 = vadd.f32 %v1561_v37, %v1539_v2  ;;  %1380 = vst.msk [vmem:[%s4984_s18 + $0x68] sm:$0xff] %vm612_vm9, %v1364_v18 }
 0x135   : > { %v1990_v39 = vld [vmem:[%s4984_s18 + $0x58] sm:$0xff] }
 0x136   : > { %v1541_v12 = vpop.f32.mrf.mxu3  ;;  %1593 = vst.msk [vmem:[%s4984_s18 + $0x60] sm:$0xff] %vm612_vm9, %v1577_v32  ;;  %v2006_v19 = vadd.f32 %v1990_v39, %v1966_v53  ;;  %v1330_v25 = vpop.f32.mrf.mxu2  ;;  %v2298_v53 = vld [vmem:[%s4984_s18 + $0x8] sm:$0xff] }
 0x137   : > { %v1011_v35 = vpop.f32.mrf.mxu1 }
 0x138   : > { %v1971_v63 = vpop.f32.mrf.mxu0  ;;  %2022 = vst.msk [vmem:[%s4984_s18 + $0x58] sm:$0xff] %vm612_vm9, %v2006_v19  ;;  %v1045_v0 = vadd.f32 %v1029_v21, %v1011_v35  ;;  %v2301_v19 = vld [vmem:[%s4984_s18 + $0x20] sm:$0xff] }
 0x139   : > { %v1349_v24 = vld [vmem:[%s4984_s18 + $0x70] sm:$0xff] }
 0x13a   : > { %v1365_v20 = vadd.f32 %v1349_v24, %v1330_v25  ;;  %1061 = vst.msk [vmem:[%s4984_s18 + $0x78] sm:$0xff] %vm612_vm9, %v1045_v0 }
 0x13b   : > { %4148 = vmatmul.msk.bf16.gmra.mxu3 %vm534_vm2, %v4281_v61  ;;  %v1562_v55 = vld [vmem:[%s4984_s18 + $0x68] sm:$0xff] }
 0x13c   : > { %v1578_v28 = vadd.f32 %v1562_v55, %v1541_v12  ;;  %1381 = vst.msk [vmem:[%s4984_s18 + $0x70] sm:$0xff] %vm612_vm9, %v1365_v20 }
 0x13d   : > { %v1991_v16 = vld [vmem:[%s4984_s18 + $0x60] sm:$0xff] }
 0x13e   : > { %v1544_v5 = vpop.f32.mrf.mxu3  ;;  %1594 = vst.msk [vmem:[%s4984_s18 + $0x68] sm:$0xff] %vm612_vm9, %v1578_v28  ;;  %v2007_v15 = vadd.f32 %v1991_v16, %v1969_v40  ;;  %v1332_v23 = vpop.f32.mrf.mxu2 }
 0x13f   : > { %v2257_v31 = vpop.f32.mrf.mxu1 }
 0x140   : > { %v1974_v4 = vpop.f32.mrf.mxu0  ;;  %2023 = vst.msk [vmem:[%s4984_s18 + $0x60] sm:$0xff] %vm612_vm9, %v2007_v15  ;;  %v2313_v14 = vadd.f32 %v2297_v38, %v2257_v31 }
 0x141   : > { %v1350_v17 = vld [vmem:[%s4984_s18 + $0x78] sm:$0xff] }
 0x142   : > { %v1366_v42 = vadd.f32 %v1350_v17, %v1332_v23  ;;  %2329 = vst.msk [vmem:[%s4984_s18] sm:$0xff] %vm612_vm9, %v2313_v14  ;;  %v2302_v23 = vld [vmem:[%s4984_s18 + $0x28] sm:$0xff] }
 0x143   : > { %4215 = vmatmul.msk.bf16.gmra.mxu0 %vm534_vm2, %v4289_v22  ;;  %v1563_v43 = vld [vmem:[%s4984_s18 + $0x70] sm:$0xff] }
 0x144   : > { %v1579_v45 = vadd.f32 %v1563_v43, %v1544_v5  ;;  %1382 = vst.msk [vmem:[%s4984_s18 + $0x78] sm:$0xff] %vm612_vm9, %v1366_v42  ;;  %v5603_v5 = vld [vmem:[%s5942_s4] ss:$0 sm:$0xff] }
 0x145   : > { %v1992_v48 = vld [vmem:[%s4984_s18 + $0x68] sm:$0xff] }
 0x146   : > { %v1546_v1 = vpop.f32.mrf.mxu3  ;;  %1595 = vst.msk [vmem:[%s4984_s18 + $0x70] sm:$0xff] %vm612_vm9, %v1579_v45  ;;  %v2008_v34 = vadd.f32 %v1992_v48, %v1971_v63  ;;  %v2471_v50 = vpop.f32.mrf.mxu2 }
 0x147   : > { %v2259_v52 = vpop.f32.mrf.mxu1 }
 0x148   : > { %v1976_v41 = vpop.f32.mrf.mxu0  ;;  %2024 = vst.msk [vmem:[%s4984_s18 + $0x68] sm:$0xff] %vm612_vm9, %v2008_v34  ;;  %v2314_v54 = vadd.f32 %v2298_v53, %v2259_v52 }
 0x149   : > { %v2511_v27 = vld [vmem:[%s4984_s18] sm:$0xff] }
 0x14a   : > { %v2527_v57 = vadd.f32 %v2511_v27, %v2471_v50  ;;  %2330 = vst.msk [vmem:[%s4984_s18 + $0x8] sm:$0xff] %vm612_vm9, %v2314_v54  ;;  %v2303_v54 = vld [vmem:[%s4984_s18 + $0x30] sm:$0xff] }
 0x14b   : > { %v1564_v58 = vld [vmem:[%s4984_s18 + $0x78] sm:$0xff] }
 0x14c   : > { %v1580_v29 = vadd.f32 %v1564_v58, %v1546_v1  ;;  %2543 = vst.msk [vmem:[%s4984_s18] sm:$0xff] %vm612_vm9, %v2527_v57 }
 0x14d   : > { %v1993_v59 = vld [vmem:[%s4984_s18 + $0x70] sm:$0xff] }
 0x14e   : > { %v2901_v13 = vpop.f32.mrf.mxu3  ;;  %1596 = vst.msk [vmem:[%s4984_s18 + $0x78] sm:$0xff] %vm612_vm9, %v1580_v29  ;;  %v2009_v60 = vadd.f32 %v1993_v59, %v1974_v4  ;;  %v2473_v36 = vpop.f32.mrf.mxu2 }
 0x14f   : > { %v2262_v61 = vpop.f32.mrf.mxu1 }
 0x150   : > { %v3219_v56 = vpop.f32.mrf.mxu0  ;;  %2025 = vst.msk [vmem:[%s4984_s18 + $0x70] sm:$0xff] %vm612_vm9, %v2009_v60  ;;  %v2315_v26 = vadd.f32 %v2299_v51, %v2262_v61 }
 0x151   : > { %v2512_v33 = vld [vmem:[%s4984_s18 + $0x8] sm:$0xff] }
 0x152   : > { %v2528_v62 = vadd.f32 %v2512_v33, %v2473_v36  ;;  %2331 = vst.msk [vmem:[%s4984_s18 + $0x10] sm:$0xff] %vm612_vm9, %v2315_v26 }
 0x153   : > { %v2941_v2 = vld [vmem:[%s4984_s18] sm:$0xff] }
 0x154   : > { %v2957_v40 = vadd.f32 %v2941_v2, %v2901_v13  ;;  %2544 = vst.msk [vmem:[%s4984_s18 + $0x8] sm:$0xff] %vm612_vm9, %v2528_v62 }
 0x155   : > { %v1994_v49 = vld [vmem:[%s4984_s18 + $0x78] sm:$0xff] }
 0x156   : > { %v2903_v44 = vpop.f32.mrf.mxu3  ;;  %2973 = vst.msk [vmem:[%s4984_s18] sm:$0xff] %vm612_vm9, %v2957_v40  ;;  %v2010_v3 = vadd.f32 %v1994_v49, %v1976_v41  ;;  %v2476_v47 = vpop.f32.mrf.mxu2 }
 0x157   : > { %v2264_v6 = vpop.f32.mrf.mxu1 }
 0x158   : > { %v3221_v30 = vpop.f32.mrf.mxu0  ;;  %2026 = vst.msk [vmem:[%s4984_s18 + $0x78] sm:$0xff] %vm612_vm9, %v2010_v3  ;;  %v2316_v8 = vadd.f32 %v2300_v7, %v2264_v6  ;;  %v2304_v7 = vld [vmem:[%s4984_s18 + $0x38] sm:$0xff] }
 0x159   : > { %v2513_v46 = vld [vmem:[%s4984_s18 + $0x10] sm:$0xff] }
 0x15a   : > { %v2529_v11 = vadd.f32 %v2513_v46, %v2476_v47  ;;  %2332 = vst.msk [vmem:[%s4984_s18 + $0x18] sm:$0xff] %vm612_vm9, %v2316_v8 }
 0x15b   : > { %v2942_v12 = vld [vmem:[%s4984_s18 + $0x8] sm:$0xff] }
 0x15c   : > { %v2958_v63 = vadd.f32 %v2942_v12, %v2903_v44  ;;  %2545 = vst.msk [vmem:[%s4984_s18 + $0x10] sm:$0xff] %vm612_vm9, %v2529_v11 }
 0x15d   : > { %v3259_v18 = vld [vmem:[%s4984_s18] sm:$0xff] }
 0x15e   : > { %v2906_v9 = vpop.f32.mrf.mxu3  ;;  %2974 = vst.msk [vmem:[%s4984_s18 + $0x8] sm:$0xff] %vm612_vm9, %v2958_v63  ;;  %v3275_v37 = vadd.f32 %v3259_v18, %v3219_v56  ;;  %v2478_v32 = vpop.f32.mrf.mxu2 }
 0x15f   : > { %v2267_v39 = vpop.f32.mrf.mxu1 }
 0x160   : > { %v3224_v10 = vpop.f32.mrf.mxu0  ;;  %3291 = vst.msk [vmem:[%s4984_s18] sm:$0xff] %vm612_vm9, %v3275_v37  ;;  %v2317_v25 = vadd.f32 %v2301_v19, %v2267_v39 }
 0x161   : > { %v2514_v35 = vld [vmem:[%s4984_s18 + $0x18] sm:$0xff] }
 0x162   : > { %v2530_v22 = vadd.f32 %v2514_v35, %v2478_v32  ;;  %2333 = vst.msk [vmem:[%s4984_s18 + $0x20] sm:$0xff] %vm612_vm9, %v2317_v25 }
 0x163   : > { %v2943_v24 = vld [vmem:[%s4984_s18 + $0x10] sm:$0xff] }
 0x164   : > { %v2959_v4 = vadd.f32 %v2943_v24, %v2906_v9  ;;  %2546 = vst.msk [vmem:[%s4984_s18 + $0x18] sm:$0xff] %vm612_vm9, %v2530_v22 }
 0x165   : > { %v3260_v20 = vld [vmem:[%s4984_s18 + $0x8] sm:$0xff] }
 0x166   : > { %v2908_v21 = vpop.f32.mrf.mxu3  ;;  %2975 = vst.msk [vmem:[%s4984_s18 + $0x10] sm:$0xff] %vm612_vm9, %v2959_v4  ;;  %v3276_v55 = vadd.f32 %v3260_v20, %v3221_v30  ;;  %v2481_v16 = vpop.f32.mrf.mxu2  ;;  %v2305_v20 = vld [vmem:[%s4984_s18 + $0x40] sm:$0xff] }
 0x167   : > { %v3307_v28 = vld [vmem:[%s4984_s18] sm:$0xff]  ;;  %v2269_v15 = vpop.f32.mrf.mxu1 }
 0x168   : > { %v3226_v0 = vpop.f32.mrf.mxu0  ;;  %v3327_v31 = vadd.f32 %v5603_v5, %v3307_v28  ;;  %3292 = vst.msk [vmem:[%s4984_s18 + $0x8] sm:$0xff] %vm612_vm9, %v3276_v55  ;;  %v2318_v38 = vadd.f32 %v2302_v23, %v2269_v15 }
 0x169   : > { %v2515_v14 = vld [vmem:[%s4984_s18 + $0x20] sm:$0xff] }
 0x16a   : > { %v3343_v41 = vmax.f32 %v3327_v31, 0.0  ;;  %v2531_v42 = vadd.f32 %v2515_v14, %v2481_v16  ;;  %2334 = vst.msk [vmem:[%s4984_s18 + $0x28] sm:$0xff] %vm612_vm9, %v2318_v38 }
 0x16b   : > { %v2944_v43 = vld [vmem:[%s4984_s18 + $0x18] sm:$0xff] }
 0x16c   : > { %3359 = vst.msk [vmem:[%s4984_s18] sm:$0xff] %vm612_vm9, %v3343_v41  ;;  %v2960_v45 = vadd.f32 %v2944_v43, %v2908_v21  ;;  %v3414_v58 = vmul.f32 %v3343_v41, %v3343_v41  ;;  %v3375_v36 = vsel %vm612_vm9, %v3343_v41, 0.0 }
 0x16d   : > { %2547 = vst.msk [vmem:[%s4984_s18 + $0x20] sm:$0xff] %vm612_vm9, %v2531_v42  ;;  %v3261_v48 = vld [vmem:[%s4984_s18 + $0x10] sm:$0xff] }
 0x16e   : > { %v2911_v17 = vpop.f32.mrf.mxu3  ;;  %2976 = vst.msk [vmem:[%s4984_s18 + $0x18] sm:$0xff] %vm612_vm9, %v2960_v45  ;;  %v3277_v34 = vadd.f32 %v3261_v48, %v3224_v10  ;;  %v2483_v52 = vpop.f32.mrf.mxu2  ;;  %v3430_v62 = vsel %vm612_vm9, %v3414_v58, 0.0 }
 0x16f   : > { %v3308_v50 = vld [vmem:[%s4984_s18 + $0x8] sm:$0xff]  ;;  %v2272_v53 = vpop.f32.mrf.mxu1 }
 0x170   : > { %v5616_v1 = vpop.f32.mrf.mxu0  ;;  %v3328_v27 = vadd.f32 %v5603_v5, %v3308_v50  ;;  %3293 = vst.msk [vmem:[%s4984_s18 + $0x10] sm:$0xff] %vm612_vm9, %v3277_v34  ;;  %v2319_v13 = vadd.f32 %v2303_v54, %v2272_v53  ;;  %v2306_v53 = vld [vmem:[%s4984_s18 + $0x48] sm:$0xff] }
 0x171   : > { %v2516_v56 = vld [vmem:[%s4984_s18 + $0x28] sm:$0xff] }
 0x172   : > { %v3344_v29 = vmax.f32 %v3328_v27, 0.0  ;;  %v2532_v59 = vadd.f32 %v2516_v56, %v2483_v52  ;;  %2335 = vst.msk [vmem:[%s4984_s18 + $0x30] sm:$0xff] %vm612_vm9, %v2319_v13 }
 0x174   : > { %3360 = vst.msk [vmem:[%s4984_s18 + $0x8] sm:$0xff] %vm612_vm9, %v3344_v29  ;;  %v3376_v61 = vsel %vm612_vm9, %v3344_v29, 0.0  ;;  %v3415_v51 = vmul.f32 %v3344_v29, %v3344_v29  ;;  %v2945_v26 = vld [vmem:[%s4984_s18 + $0x20] sm:$0xff] }
 0x175   : > { %v3377_v33 = vadd.f32 %v3376_v61, %v3375_v36  ;;  %v2961_v44 = vadd.f32 %v2945_v26, %v2911_v17  ;;  %2548 = vst.msk [vmem:[%s4984_s18 + $0x28] sm:$0xff] %vm612_vm9, %v2532_v59  ;;  %v3262_v30 = vld [vmem:[%s4984_s18 + $0x18] sm:$0xff] }
 0x176   : > { %v2913_v57 = vpop.f32.mrf.mxu3  ;;  %v3431_v2 = vsel %vm612_vm9, %v3415_v51, 0.0  ;;  %v3278_v40 = vadd.f32 %v3262_v30, %v3226_v0  ;;  %v2486_v47 = vpop.f32.mrf.mxu2 }
 0x177   : > { %v3432_v49 = vadd.f32 %v3431_v2, %v3430_v62  ;;  %v3309_v3 = vld [vmem:[%s4984_s18 + $0x10] sm:$0xff]  ;;  %2977 = vst.msk [vmem:[%s4984_s18 + $0x20] sm:$0xff] %vm612_vm9, %v2961_v44  ;;  %v2274_v6 = vpop.f32.mrf.mxu1 }
 0x178   : > { %v5636_v60 = vpop.f32.mrf.mxu0  ;;  %v3329_v8 = vadd.f32 %v5603_v5, %v3309_v3  ;;  %3294 = vst.msk [vmem:[%s4984_s18 + $0x18] sm:$0xff] %vm612_vm9, %v3278_v40  ;;  %v2320_v46 = vadd.f32 %v2304_v7, %v2274_v6  ;;  %v2307_v2 = vld [vmem:[%s4984_s18 + $0x50] sm:$0xff] }
 0x179   : > { %v2517_v9 = vld [vmem:[%s4984_s18 + $0x30] sm:$0xff] }
 0x17a   : > { %v3345_v11 = vmax.f32 %v3329_v8, 0.0  ;;  %v2533_v12 = vadd.f32 %v2517_v9, %v2486_v47  ;;  %2336 = vst.msk [vmem:[%s4984_s18 + $0x38] sm:$0xff] %vm612_vm9, %v2320_v46 }
 0x17c   : > { %3361 = vst.msk [vmem:[%s4984_s18 + $0x10] sm:$0xff] %vm612_vm9, %v3345_v11  ;;  %v3378_v63 = vsel %vm612_vm9, %v3345_v11, 0.0  ;;  %v3416_v18 = vmul.f32 %v3345_v11, %v3345_v11  ;;  %v2946_v37 = vld [vmem:[%s4984_s18 + $0x28] sm:$0xff] }
 0x17d   : > { %v3379_v39 = vadd.f32 %v3378_v63, %v3377_v33  ;;  %v2962_v19 = vadd.f32 %v2946_v37, %v2913_v57  ;;  %2549 = vst.msk [vmem:[%s4984_s18 + $0x30] sm:$0xff] %vm612_vm9, %v2533_v12 }
 0x17e   : > { %v2916_v10 = vpop.f32.mrf.mxu3  ;;  %v3433_v25 = vsel %vm612_vm9, %v3416_v18, 0.0  ;;  %v3263_v35 = vld [vmem:[%s4984_s18 + $0x20] sm:$0xff]  ;;  %v2488_v24 = vpop.f32.mrf.mxu2 }
 0x17f   : > { %v3434_v21 = vadd.f32 %v3433_v25, %v3432_v49  ;;  %v3310_v0 = vld [vmem:[%s4984_s18 + $0x18] sm:$0xff]  ;;  %2978 = vst.msk [vmem:[%s4984_s18 + $0x28] sm:$0xff] %vm612_vm9, %v2962_v19  ;;  %v3279_v22 = vadd.f32 %v3263_v35, %v5616_v1  ;;  %v2277_v4 = vpop.f32.mrf.mxu1 }
 0x180   : > { %v3234_v32 = vpop.f32.mrf.mxu0  ;;  %v3330_v55 = vadd.f32 %v5603_v5, %v3310_v0  ;;  %v2321_v28 = vadd.f32 %v2305_v20, %v2277_v4 }
 0x181   : > { %3295 = vst.msk [vmem:[%s4984_s18 + $0x20] sm:$0xff] %vm612_vm9, %v3279_v22  ;;  %v2518_v16 = vld [vmem:[%s4984_s18 + $0x38] sm:$0xff] }
 0x182   : > { %v3346_v23 = vmax.f32 %v3330_v55, 0.0  ;;  %v2534_v31 = vadd.f32 %v2518_v16, %v2488_v24  ;;  %2337 = vst.msk [vmem:[%s4984_s18 + $0x40] sm:$0xff] %vm612_vm9, %v2321_v28 }
 0x184   : > { %3362 = vst.msk [vmem:[%s4984_s18 + $0x18] sm:$0xff] %vm612_vm9, %v3346_v23  ;;  %v3380_v38 = vsel %vm612_vm9, %v3346_v23, 0.0  ;;  %v3417_v14 = vmul.f32 %v3346_v23, %v3346_v23  ;;  %v2947_v17 = vld [vmem:[%s4984_s18 + $0x30] sm:$0xff]  ;;  %v2309_v23 = vld [vmem:[%s4984_s18 + $0x60] sm:$0xff] }
 0x185   : > { %v3381_v1 = vadd.f32 %v3380_v38, %v3379_v39  ;;  %v2963_v41 = vadd.f32 %v2947_v17, %v2916_v10  ;;  %2550 = vst.msk [vmem:[%s4984_s18 + $0x38] sm:$0xff] %vm612_vm9, %v2534_v31 }
 0x186   : > { %v2918_v15 = vpop.f32.mrf.mxu3  ;;  %v3435_v42 = vsel %vm612_vm9, %v3417_v14, 0.0  ;;  %v3264_v43 = vld [vmem:[%s4984_s18 + $0x28] sm:$0xff]  ;;  %v2491_v50 = vpop.f32.mrf.mxu2 }
 0x187   : > { %v3436_v48 = vadd.f32 %v3435_v42, %v3434_v21  ;;  %2979 = vst.msk [vmem:[%s4984_s18 + $0x30] sm:$0xff] %vm612_vm9, %v2963_v41  ;;  %v3280_v34 = vadd.f32 %v3264_v43, %v5636_v60  ;;  %v2279_v52 = vpop.f32.mrf.mxu1 }
 0x188   : > { %v3236_v45 = vpop.f32.mrf.mxu0  ;;  %v3311_v54 = vld [vmem:[%s4984_s18 + $0x20] sm:$0xff]  ;;  %v2322_v27 = vadd.f32 %v2306_v53, %v2279_v52 }
 0x189   : > { %v3331_v13 = vadd.f32 %v5603_v5, %v3311_v54  ;;  %3296 = vst.msk [vmem:[%s4984_s18 + $0x28] sm:$0xff] %vm612_vm9, %v3280_v34  ;;  %v2519_v56 = vld [vmem:[%s4984_s18 + $0x40] sm:$0xff] }
 0x18a   : > { %v2535_v58 = vadd.f32 %v2519_v56, %v2491_v50  ;;  %2338 = vst.msk [vmem:[%s4984_s18 + $0x48] sm:$0xff] %vm612_vm9, %v2322_v27  ;;  %v2310_v27 = vld [vmem:[%s4984_s18 + $0x68] sm:$0xff] }
 0x18b   : > { %v3347_v29 = vmax.f32 %v3331_v13, 0.0 }
 0x18c   : > { %v2948_v59 = vld [vmem:[%s4984_s18 + $0x38] sm:$0xff]  ;;  %2551 = vst.msk [vmem:[%s4984_s18 + $0x40] sm:$0xff] %vm612_vm9, %v2535_v58 }
 0x18d   : > { %3363 = vst.msk [vmem:[%s4984_s18 + $0x20] sm:$0xff] %vm612_vm9, %v3347_v29  ;;  %v3382_v60 = vsel %vm612_vm9, %v3347_v29, 0.0  ;;  %v3418_v36 = vmul.f32 %v3347_v29, %v3347_v29  ;;  %v2964_v61 = vadd.f32 %v2948_v59, %v2918_v15 }
 0x18e   : > { %v2921_v57 = vpop.f32.mrf.mxu3  ;;  %v5702_v51 = vadd.f32 %v3382_v60, %v3381_v1  ;;  %v3265_v26 = vld [vmem:[%s4984_s18 + $0x30] sm:$0xff]  ;;  %v2493_v30 = vpop.f32.mrf.mxu2 }
 0x18f   : > { %v3437_v33 = vsel %vm612_vm9, %v3418_v36, 0.0  ;;  %2980 = vst.msk [vmem:[%s4984_s18 + $0x38] sm:$0xff] %vm612_vm9, %v2964_v61  ;;  %v3281_v44 = vadd.f32 %v3265_v26, %v3234_v32  ;;  %v2282_v62 = vpop.f32.mrf.mxu1  ;;  %v2308_v32 = vld [vmem:[%s4984_s18 + $0x58] sm:$0xff] }
 0x190   : > { %v5709_v40 = vadd.f32 %v3437_v33, %v3436_v48  ;;  %v3312_v49 = vld [vmem:[%s4984_s18 + $0x28] sm:$0xff]  ;;  %v2323_v3 = vadd.f32 %v2307_v2, %v2282_v62  ;;  %v3239_v47 = vpop.f32.mrf.mxu0  ;;  %v2311_v2 = vld [vmem:[%s4984_s18 + $0x70] sm:$0xff] }
 0x191   : > { %v3332_v6 = vadd.f32 %v5603_v5, %v3312_v49  ;;  %3297 = vst.msk [vmem:[%s4984_s18 + $0x30] sm:$0xff] %vm612_vm9, %v3281_v44  ;;  %v2520_v7 = vld [vmem:[%s4984_s18 + $0x48] sm:$0xff] }
 0x192   : > { %v2536_v46 = vadd.f32 %v2520_v7, %v2493_v30  ;;  %2339 = vst.msk [vmem:[%s4984_s18 + $0x50] sm:$0xff] %vm612_vm9, %v2323_v3 }
 0x193   : > { %v5718_v9 = vmax.f32 %v3332_v6, 0.0  ;;  %v2949_v10 = vld [vmem:[%s4984_s18 + $0x40] sm:$0xff] }
 0x194   : > { %v2965_v11 = vadd.f32 %v2949_v10, %v2921_v57  ;;  %2552 = vst.msk [vmem:[%s4984_s18 + $0x48] sm:$0xff] %vm612_vm9, %v2536_v46 }
 0x195   : > { %3364 = vst.msk [vmem:[%s4984_s18 + $0x28] sm:$0xff] %vm612_vm9, %v5718_v9 }
 0x196   : > { %v2923_v8 = vpop.f32.mrf.mxu3  ;;  %2981 = vst.msk [vmem:[%s4984_s18 + $0x40] sm:$0xff] %vm612_vm9, %v2965_v11  ;;  %v3266_v12 = vld [vmem:[%s4984_s18 + $0x38] sm:$0xff]  ;;  %v2496_v18 = vpop.f32.mrf.mxu2 }
 0x197   : > { %v3282_v63 = vadd.f32 %v3266_v12, %v3236_v45  ;;  %v2284_v37 = vpop.f32.mrf.mxu1 }
 0x198   : > { %v3313_v39 = vld [vmem:[%s4984_s18 + $0x30] sm:$0xff]  ;;  %v2324_v19 = vadd.f32 %v2308_v32, %v2284_v37  ;;  %v3241_v22 = vpop.f32.mrf.mxu0  ;;  %v2312_v37 = vld [vmem:[%s4984_s18 + $0x78] sm:$0xff] }
 0x199   : > { %v3333_v25 = vadd.f32 %v5603_v5, %v3313_v39  ;;  %3298 = vst.msk [vmem:[%s4984_s18 + $0x38] sm:$0xff] %vm612_vm9, %v3282_v63  ;;  %v2521_v35 = vld [vmem:[%s4984_s18 + $0x50] sm:$0xff] }
 0x19a   : > { %v2537_v21 = vadd.f32 %v2521_v35, %v2496_v18  ;;  %2340 = vst.msk [vmem:[%s4984_s18 + $0x58] sm:$0xff] %vm612_vm9, %v2324_v19 }
 0x19b   : > { %v5737_v24 = vmax.f32 %v3333_v25, 0.0  ;;  %v2950_v4 = vld [vmem:[%s4984_s18 + $0x48] sm:$0xff] }
 0x19c   : > { %v2966_v20 = vadd.f32 %v2950_v4, %v2923_v8  ;;  %2553 = vst.msk [vmem:[%s4984_s18 + $0x50] sm:$0xff] %vm612_vm9, %v2537_v21 }
 0x19d   : > { %3365 = vst.msk [vmem:[%s4984_s18 + $0x30] sm:$0xff] %vm612_vm9, %v5737_v24  ;;  %v3267_v55 = vld [vmem:[%s4984_s18 + $0x40] sm:$0xff] }
 0x19e   : > { %v2926_v0 = vpop.f32.mrf.mxu3  ;;  %2982 = vst.msk [vmem:[%s4984_s18 + $0x48] sm:$0xff] %vm612_vm9, %v2966_v20  ;;  %v3283_v28 = vadd.f32 %v3267_v55, %v3239_v47  ;;  %v2498_v16 = vpop.f32.mrf.mxu2 }
 0x19f   : > { %v2287_v15 = vpop.f32.mrf.mxu1 }
 0x1a0   : > { %v3314_v31 = vld [vmem:[%s4984_s18 + $0x38] sm:$0xff]  ;;  %3299 = vst.msk [vmem:[%s4984_s18 + $0x40] sm:$0xff] %vm612_vm9, %v3283_v28  ;;  %v2325_v38 = vadd.f32 %v2309_v23, %v2287_v15  ;;  %v3244_v48 = vpop.f32.mrf.mxu0 }
 0x1a1   : > { %v3334_v14 = vadd.f32 %v5603_v5, %v3314_v31  ;;  %v2522_v17 = vld [vmem:[%s4984_s18 + $0x58] sm:$0xff] }
 0x1a2   : > { %v2538_v1 = vadd.f32 %v2522_v17, %v2498_v16  ;;  %2341 = vst.msk [vmem:[%s4984_s18 + $0x60] sm:$0xff] %vm612_vm9, %v2325_v38 }
 0x1a3   : > { %v5756_v41 = vmax.f32 %v3334_v14, 0.0  ;;  %v2951_v42 = vld [vmem:[%s4984_s18 + $0x50] sm:$0xff] }
 0x1a4   : > { %v2967_v43 = vadd.f32 %v2951_v42, %v2926_v0  ;;  %2554 = vst.msk [vmem:[%s4984_s18 + $0x58] sm:$0xff] %vm612_vm9, %v2538_v1 }
 0x1a5   : > { %3366 = vst.msk [vmem:[%s4984_s18 + $0x38] sm:$0xff] %vm612_vm9, %v5756_v41  ;;  %v3268_v34 = vld [vmem:[%s4984_s18 + $0x48] sm:$0xff] }
 0x1a6   : > { %v2928_v45 = vpop.f32.mrf.mxu3  ;;  %2983 = vst.msk [vmem:[%s4984_s18 + $0x50] sm:$0xff] %vm612_vm9, %v2967_v43  ;;  %v3284_v50 = vadd.f32 %v3268_v34, %v3241_v22  ;;  %v2501_v53 = vpop.f32.mrf.mxu2 }
 0x1a7   : > { %v3315_v52 = vld [vmem:[%s4984_s18 + $0x40] sm:$0xff]  ;;  %v2289_v54 = vpop.f32.mrf.mxu1 }
 0x1a8   : > { %v3335_v13 = vadd.f32 %v5603_v5, %v3315_v52  ;;  %3300 = vst.msk [vmem:[%s4984_s18 + $0x48] sm:$0xff] %vm612_vm9, %v3284_v50  ;;  %v2326_v56 = vadd.f32 %v2310_v27, %v2289_v54  ;;  %v3246_v33 = vpop.f32.mrf.mxu0  ;;  %v3419_v27 = vmul.f32 %v5718_v9, %v5718_v9 }
 0x1a9   : > { %v2523_v57 = vld [vmem:[%s4984_s18 + $0x60] sm:$0xff] }
 0x1aa   : > { %v5773_v58 = vmax.f32 %v3335_v13, 0.0  ;;  %v2539_v29 = vadd.f32 %v2523_v57, %v2501_v53  ;;  %2342 = vst.msk [vmem:[%s4984_s18 + $0x68] sm:$0xff] %vm612_vm9, %v2326_v56  ;;  %v3384_v57 = vsel %vm612_vm9, %v5718_v9, 0.0 }
 0x1ab   : > { %v2952_v59 = vld [vmem:[%s4984_s18 + $0x58] sm:$0xff]  ;;  %v3385_v9 = vadd.f32 %v3384_v57, %v5702_v51 }
 0x1ac   : > { %3367 = vst.msk [vmem:[%s4984_s18 + $0x40] sm:$0xff] %vm612_vm9, %v5773_v58  ;;  %v2968_v60 = vadd.f32 %v2952_v59, %v2928_v45 }
 0x1ad   : > { %2555 = vst.msk [vmem:[%s4984_s18 + $0x60] sm:$0xff] %vm612_vm9, %v2539_v29  ;;  %v3269_v36 = vld [vmem:[%s4984_s18 + $0x50] sm:$0xff]  ;;  %v3420_v29 = vmul.f32 %v5737_v24, %v5737_v24 }
 0x1ae   : > { %2984 = vst.msk [vmem:[%s4984_s18 + $0x58] sm:$0xff] %vm612_vm9, %v2968_v60  ;;  %v3285_v61 = vadd.f32 %v3269_v36, %v3244_v48  ;;  %v2931_v26 = vpop.f32.mrf.mxu3  ;;  %v2503_v30 = vpop.f32.mrf.mxu2  ;;  %v3439_v36 = vsel %vm612_vm9, %v3419_v27, 0.0 }
 0x1af   : > { %v3316_v44 = vld [vmem:[%s4984_s18 + $0x48] sm:$0xff]  ;;  %v2292_v62 = vpop.f32.mrf.mxu1 }
 0x1b0   : > { %v3336_v49 = vadd.f32 %v5603_v5, %v3316_v44  ;;  %3301 = vst.msk [vmem:[%s4984_s18 + $0x50] sm:$0xff] %vm612_vm9, %v3285_v61  ;;  %v2327_v3 = vadd.f32 %v2311_v2, %v2292_v62  ;;  %v3249_v19 = vpop.f32.mrf.mxu0  ;;  %v3386_v61 = vsel %vm612_vm9, %v5737_v24, 0.0  ;;  %v3441_v44 = vsel %vm612_vm9, %v3420_v29, 0.0 }
 0x1b1   : > { %v2524_v47 = vld [vmem:[%s4984_s18 + $0x68] sm:$0xff]  ;;  %v3422_v62 = vmul.f32 %v5773_v58, %v5773_v58  ;;  %v3440_v24 = vadd.f32 %v3439_v36, %v5709_v40 }
 0x1b2   : > { %v5792_v6 = vmax.f32 %v3336_v49, 0.0  ;;  %v2540_v7 = vadd.f32 %v2524_v47, %v2503_v30  ;;  %2343 = vst.msk [vmem:[%s4984_s18 + $0x70] sm:$0xff] %vm612_vm9, %v2327_v3  ;;  %v3388_v30 = vsel %vm612_vm9, %v5756_v41, 0.0  ;;  %v3387_v49 = vadd.f32 %v3386_v61, %v3385_v9 }
 0x1b3   : > { %v3390_v47 = vsel %vm612_vm9, %v5773_v58, 0.0  ;;  %v3445_v58 = vsel %vm612_vm9, %v3422_v62, 0.0 }
 0x1b4   : > { %3368 = vst.msk [vmem:[%s4984_s18 + $0x48] sm:$0xff] %vm612_vm9, %v5792_v6  ;;  %v2953_v8 = vld [vmem:[%s4984_s18 + $0x60] sm:$0xff]  ;;  %v3423_v51 = vmul.f32 %v5792_v6, %v5792_v6 }
 0x1b5   : > { %v2969_v46 = vadd.f32 %v2953_v8, %v2931_v26  ;;  %2556 = vst.msk [vmem:[%s4984_s18 + $0x68] sm:$0xff] %vm612_vm9, %v2540_v7  ;;  %v3270_v10 = vld [vmem:[%s4984_s18 + $0x58] sm:$0xff]  ;;  %v3421_v26 = vmul.f32 %v5756_v41, %v5756_v41  ;;  %v3442_v41 = vadd.f32 %v3441_v44, %v3440_v24  ;;  %v3389_v7 = vadd.f32 %v3388_v30, %v3387_v49 }
 0x1b6   : > { %v3286_v11 = vadd.f32 %v3270_v10, %v3246_v33  ;;  %v2506_v63 = vpop.f32.mrf.mxu2  ;;  %v2933_v39 = vpop.f32.mrf.mxu3 }
 0x1b7   : > { %v3317_v12 = vld [vmem:[%s4984_s18 + $0x50] sm:$0xff]  ;;  %2985 = vst.msk [vmem:[%s4984_s18 + $0x60] sm:$0xff] %vm612_vm9, %v2969_v46  ;;  %v2294_v18 = vpop.f32.mrf.mxu1  ;;  %v3443_v3 = vsel %vm612_vm9, %v3421_v26, 0.0  ;;  %v3392_v46 = vsel %vm612_vm9, %v5792_v6, 0.0 }
 0x1b8   : > { %v3337_v32 = vadd.f32 %v5603_v5, %v3317_v12  ;;  %3302 = vst.msk [vmem:[%s4984_s18 + $0x58] sm:$0xff] %vm612_vm9, %v3286_v11  ;;  %v2328_v25 = vadd.f32 %v2312_v37, %v2294_v18  ;;  %v3251_v17 = vpop.f32.mrf.mxu0  ;;  %v4379_v12 = vmov 0.0   ;;  %v3391_v18 = vadd.f32 %v3390_v47, %v3389_v7 }
 0x1b9   : > { %v2525_v35 = vld [vmem:[%s4984_s18 + $0x70] sm:$0xff]  ;;  %3469 = vst.msk [vmem:[%s5885_s14 + $0x2] sm:$0x3f] %vm3468_vm10, %v4379_v12 }
 0x1ba   : > { %v5811_v21 = vmax.f32 %v3337_v32, 0.0  ;;  %v2541_v0 = vadd.f32 %v2525_v35, %v2506_v63  ;;  %2344 = vst.msk [vmem:[%s4984_s18 + $0x78] sm:$0xff] %vm612_vm9, %v2328_v25  ;;  %v3444_v63 = vadd.f32 %v3443_v3, %v3442_v41  ;;  %v3447_v32 = vsel %vm612_vm9, %v3423_v51, 0.0 }
 0x1bb   : > { %v3393_v35 = vadd.f32 %v3392_v46, %v3391_v18 }
 0x1bc   : > { %3369 = vst.msk [vmem:[%s4984_s18 + $0x50] sm:$0xff] %vm612_vm9, %v5811_v21  ;;  %v2954_v22 = vld [vmem:[%s4984_s18 + $0x68] sm:$0xff]  ;;  %v3424_v10 = vmul.f32 %v5811_v21, %v5811_v21  ;;  %v3446_v25 = vadd.f32 %v3445_v58, %v3444_v63 }
 0x1bd   : > { %v2970_v4 = vadd.f32 %v2954_v22, %v2933_v39  ;;  %2557 = vst.msk [vmem:[%s4984_s18 + $0x70] sm:$0xff] %vm612_vm9, %v2541_v0  ;;  %v3394_v39 = vsel %vm612_vm9, %v5811_v21, 0.0 }
 0x1be   : > { %v3271_v20 = vld [vmem:[%s4984_s18 + $0x60] sm:$0xff]  ;;  %v2508_v15 = vpop.f32.mrf.mxu2  ;;  %v2936_v38 = vpop.f32.mrf.mxu3  ;;  %v3449_v0 = vsel %vm612_vm9, %v3424_v10, 0.0 }
 0x1bf   : > { %v3318_v55 = vld [vmem:[%s4984_s18 + $0x58] sm:$0xff]  ;;  %2986 = vst.msk [vmem:[%s4984_s18 + $0x68] sm:$0xff] %vm612_vm9, %v2970_v4  ;;  %v3287_v28 = vadd.f32 %v3271_v20, %v3249_v19 }
 0x1c0   : > { %v3338_v16 = vadd.f32 %v5603_v5, %v3318_v55  ;;  %v3254_v54 = vpop.f32.mrf.mxu0  ;;  %v3448_v55 = vadd.f32 %v3447_v32, %v3446_v25 }
 0x1c1   : > { %3303 = vst.msk [vmem:[%s4984_s18 + $0x60] sm:$0xff] %vm612_vm9, %v3287_v28  ;;  %v2526_v23 = vld [vmem:[%s4984_s18 + $0x78] sm:$0xff]  ;;  %v3395_v28 = vadd.f32 %v3394_v39, %v3393_v35 }
 0x1c2   : > { %v5829_v31 = vmax.f32 %v3338_v16, 0.0  ;;  %v2542_v14 = vadd.f32 %v2526_v23, %v2508_v15  ;;  %v3450_v23 = vadd.f32 %v3449_v0, %v3448_v55 }
 0x1c4   : > { %3370 = vst.msk [vmem:[%s4984_s18 + $0x58] sm:$0xff] %vm612_vm9, %v5829_v31  ;;  %v2955_v1 = vld [vmem:[%s4984_s18 + $0x70] sm:$0xff]  ;;  %v3425_v19 = vmul.f32 %v5829_v31, %v5829_v31  ;;  %v3396_v22 = vsel %vm612_vm9, %v5829_v31, 0.0 }
 0x1c5   : > { %v2971_v42 = vadd.f32 %v2955_v1, %v2936_v38  ;;  %2558 = vst.msk [vmem:[%s4984_s18 + $0x78] sm:$0xff] %vm612_vm9, %v2542_v14  ;;  %v3397_v38 = vadd.f32 %v3396_v22, %v3395_v28 }
 0x1c6   : > { %v3272_v43 = vld [vmem:[%s4984_s18 + $0x68] sm:$0xff]  ;;  %v2938_v52 = vpop.f32.mrf.mxu3  ;;  %v3451_v21 = vsel %vm612_vm9, %v3425_v19, 0.0 }
 0x1c7   : > { %2987 = vst.msk [vmem:[%s4984_s18 + $0x70] sm:$0xff] %vm612_vm9, %v2971_v42  ;;  %v3288_v45 = vadd.f32 %v3272_v43, %v3251_v17  ;;  %v3452_v1 = vadd.f32 %v3451_v21, %v3450_v23 }
 0x1c8   : > { %v3319_v48 = vld [vmem:[%s4984_s18 + $0x60] sm:$0xff]  ;;  %v3256_v40 = vpop.f32.mrf.mxu0 }
 0x1c9   : > { %v3339_v34 = vadd.f32 %v5603_v5, %v3319_v48  ;;  %3304 = vst.msk [vmem:[%s4984_s18 + $0x68] sm:$0xff] %vm612_vm9, %v3288_v45 }
 0x1cb   : > { %v3355_v50 = vmax.f32 %v3339_v34, 0.0 }
 0x1cc   : > { %v2956_v53 = vld [vmem:[%s4984_s18 + $0x78] sm:$0xff] }
 0x1cd   : > { %3371 = vst.msk [vmem:[%s4984_s18 + $0x60] sm:$0xff] %vm612_vm9, %v3355_v50  ;;  %v2972_v13 = vadd.f32 %v2956_v53, %v2938_v52  ;;  %v3426_v4 = vmul.f32 %v3355_v50, %v3355_v50  ;;  %v3398_v16 = vsel %vm612_vm9, %v3355_v50, 0.0 }
 0x1ce   : > { %v3273_v56 = vld [vmem:[%s4984_s18 + $0x70] sm:$0xff]  ;;  %v3399_v42 = vadd.f32 %v3398_v16, %v3397_v38 }
 0x1cf   : > { %2988 = vst.msk [vmem:[%s4984_s18 + $0x78] sm:$0xff] %vm612_vm9, %v2972_v13  ;;  %v3289_v59 = vadd.f32 %v3273_v56, %v3254_v54  ;;  %v3453_v14 = vsel %vm612_vm9, %v3426_v4, 0.0 }
 0x1d0   : > { %v3320_v60 = vld [vmem:[%s4984_s18 + $0x68] sm:$0xff]  ;;  %v3454_v50 = vadd.f32 %v3453_v14, %v3452_v1 }
 0x1d1   : > { %v3340_v33 = vadd.f32 %v5603_v5, %v3320_v60  ;;  %3305 = vst.msk [vmem:[%s4984_s18 + $0x70] sm:$0xff] %vm612_vm9, %v3289_v59 }
 0x1d3   : > { %v3356_v2 = vmax.f32 %v3340_v33, 0.0 }
 0x1d5   : > { %3372 = vst.msk [vmem:[%s4984_s18 + $0x68] sm:$0xff] %vm612_vm9, %v3356_v2  ;;  %v3427_v15 = vmul.f32 %v3356_v2, %v3356_v2  ;;  %v3400_v17 = vsel %vm612_vm9, %v3356_v2, 0.0 }
 0x1d6   : > { %v3274_v8 = vld [vmem:[%s4984_s18 + $0x78] sm:$0xff]  ;;  %v3401_v52 = vadd.f32 %v3400_v17, %v3399_v42 }
 0x1d7   : > { %v3290_v11 = vadd.f32 %v3274_v8, %v3256_v40  ;;  %v3455_v45 = vsel %vm612_vm9, %v3427_v15, 0.0 }
 0x1d8   : > { %v3321_v37 = vld [vmem:[%s4984_s18 + $0x70] sm:$0xff]  ;;  %v3456_v27 = vadd.f32 %v3455_v45, %v3454_v50 }
 0x1d9   : > { %v3341_v6 = vadd.f32 %v5603_v5, %v3321_v37  ;;  %3306 = vst.msk [vmem:[%s4984_s18 + $0x78] sm:$0xff] %vm612_vm9, %v3290_v11 }
 0x1db   : > { %v3357_v20 = vmax.f32 %v3341_v6, 0.0 }
 0x1dd   : > { %3373 = vst.msk [vmem:[%s4984_s18 + $0x70] sm:$0xff] %vm612_vm9, %v3357_v20  ;;  %v3428_v31 = vmul.f32 %v3357_v20, %v3357_v20  ;;  %v3402_v48 = vsel %vm612_vm9, %v3357_v20, 0.0 }
 0x1de   : > { %v3403_v13 = vadd.f32 %v3402_v48, %v3401_v52 }
 0x1df   : > { %v3457_v53 = vsel %vm612_vm9, %v3428_v31, 0.0 }
 0x1e0   : > { %v3322_v43 = vld [vmem:[%s4984_s18 + $0x78] sm:$0xff]  ;;  %v3458_v29 = vadd.f32 %v3457_v53, %v3456_v27 }
 0x1e1   : > { %v3342_v34 = vadd.f32 %v5603_v5, %v3322_v43 }
 0x1e3   : > { %v3358_v54 = vmax.f32 %v3342_v34, 0.0 }
 0x1e5   : > { %3374 = vst.msk [vmem:[%s4984_s18 + $0x78] sm:$0xff] %vm612_vm9, %v3358_v54  ;;  %v3404_v56 = vsel %vm612_vm9, %v3358_v54, 0.0  ;;  %v3429_v57 = vmul.f32 %v3358_v54, %v3358_v54 }
 0x1e6   : > { %v3405_v59 = vadd.f32 %v3404_v56, %v3403_v13 }
 0x1e7   : > { %v3459_v60 = vsel %vm612_vm9, %v3429_v57, 0.0 }
 0x1e8   : > { %v3406_v36 = vrot.slane %v3405_v59, 4  ;;  %v3460_v5 = vadd.f32 %v3459_v60, %v3458_v29 }
 0x1ea   : > { %v3407_v61 = vadd.f32 %v3406_v36, %v3405_v59  ;;  %v3461_v26 = vrot.slane %v3460_v5, 4 }
 0x1ec   : > { %v3408_v33 = vrot.slane %v3407_v61, 2  ;;  %v3462_v9 = vadd.f32 %v3461_v26, %v3460_v5 }
 0x1ee   : > { %v3409_v44 = vadd.f32 %v3408_v33, %v3407_v61  ;;  %v3463_v30 = vrot.slane %v3462_v9, 2 }
 0x1f0   : > { %v3410_v62 = vrot.slane %v3409_v44, 1  ;;  %v3464_v2 = vadd.f32 %v3463_v30, %v3462_v9 }
 0x1f2   : > { %v3411_v24 = vadd.f32 %v3410_v62, %v3409_v44  ;;  %v3465_v49 = vrot.slane %v3464_v2, 1 }
 0x1f4   : > { %3413 = vst.msk [vmem:[%s5885_s14] sm:$0x1] %vm3412_vm11, %v3411_v24  ;;  %v3466_v3 = vadd.f32 %v3465_v49, %v3464_v2 }
 0x1f6   : > { %3467 = vst.msk [vmem:[%s5885_s14 + $0x1] sm:$0x1] %vm3412_vm11, %v3466_v3 }
 0x1f7 PF: > { %s17_s25 = sadd.s32 1, %s4377_s25   ;;  %s5951_s21 = smov %s4369_s23 }
 0x1f8   : > { %p14_p11 = scmp.ge.s32.totalorder %s17_s25, 6   ;;  %s5952_s22 = smov %s4373_s24 }
 0x1f9   : > { %s5953_s23 = smov %s5956_s26  ;;  %s5954_s24 = smov %s5960_s27 }
 0x1fa   :  { %16 = sbr.rel (!%p14_p11) target bundleno = 3 (0x3), region = 103 }

// kernel: mynet_forward.10
= control target key start
LH: loop header
LB: loop body
LE: loop exit
PB: predicated region body
PF: predicated region fallthrough
CT: control target
= control target key end

     0   :  { %s4638_s21 = smov 0   ;;  %s4640_s22 = smov 0   ;;  %s6190_s0 = inlined_call_operand.vmem [shape: bf16[2,18,18,32], index: 0, kind: input, shape index: {}, may-alias: {0,1,2}]   ;;  %s6191_s1 = inlined_call_operand.vmem [shape: bf16[2,18,18,32], index: 1, kind: input, shape index: {}, may-alias: {0,1,2}]   ;;  %s6192_s2 = inlined_call_operand.vmem [shape: bf16[2,18,18,32], index: 2, kind: input, shape index: {}, may-alias: {0,1,2}]   ;;  %s6193_s3 = inlined_call_operand.vmem [shape: bf16[3,3,32,32], index: 3, kind: input, shape index: {}]   ;;  %s6194_s4 = inlined_call_operand.vmem [shape: f32[1,32], index: 4, kind: input, shape index: {}]   ;;  %s6195_s5 = inlined_call_operand.vmem [shape: f32[512,32], index: 5, kind: output, shape index: {0}]   ;;  %s6196_s6 = inlined_call_operand.vmem [shape: f32[2,2,8,32], index: 6, kind: output, shape index: {1}]  }
   0x1   :  { %s4642_s23 = smov 0   ;;  %s4644_s24 = smov 0  }
   0x2   :  { %s4646_s25 = smov 0  }
   0x3 LB: > { %s26_s26 = sadd.s32 1, %s4592_s23  ;;  %s29_s27 = sadd.s32 1, %s4596_s24  ;;  %s4600_s25 = sphi %s4646_s25, %s17_s25   ;;  %s4596_s24 = sphi %s4644_s24, %s6206_s24   ;;  %s4592_s23 = sphi %s4642_s23, %s6205_s23   ;;  %s4588_s22 = sphi %s4640_s22, %s6204_s22   ;;  %s4584_s21 = sphi %s4638_s21, %s6203_s21  }
   0x4   : > { %p27_p0 = scmp.ge.s32.totalorder %s26_s26, 2  ;;  %p3758_p1 = scmp.ge.s32.totalorder %s4600_s25, 1 }
   0x5   : > { %p299_p2 = scmp.lt.s32.totalorder %s4600_s25, 5 }
   0x6   : > { %s6208_s26 = smov (%p27_p0, %s26_s26), 0  ;;  %s6210_s27 = smov (!%p27_p0, %s29_s27), %s4596_s24 }
   0x7   : > { %p300_p3 = pnand %p3758_p1, %p299_p2  ;;  %p31_p4 = scmp.ge.s32.totalorder %s6210_s27, 2 }
   0x8   : > { %s4676_s30 = sshll.u32 (!%p300_p3), %s4584_s21, 3  ;;  %p377_p5 = scmp.lt.s32.totalorder (!%p300_p3), %s4588_s22, 1 }
   0x9   : > { %s6212_s27 = smov (%p31_p4, %s6210_s27), 0  ;;  %303 = sbr.rel (%p300_p3) target bundleno = 502 (0x1f6), region = 40 }
   0xa   : > { %p379_p6 = scmp.lt.s32.totalorder (!%p300_p3), %s4676_s30, 17  ;;  %s393_s28 = sadd.s32 (!%p300_p3), 8, %s4676_s30 }
   0xb   : > { %p5066_p7 = scmp.lt.s32.totalorder (!%p300_p3), %s393_s28, 17  ;;  %s3765_s14 = sshll.u32 (!%p300_p3), %s4588_s22, 1 }
   0xc   : > { %s406_s8 = sadd.s32 (!%p300_p3), 9, %s4676_s30  ;;  %p430_p10 = scmp.lt.s32.totalorder (!%p300_p3), %s4584_s21, 1 }
   0xd   : > { %p5552_p9 = scmp.lt.s32.totalorder (!%p300_p3), %s406_s8, 17 }
   0xe   : > { %v4429_v0 = vld [vmem:[%s6193_s3 + $0x8] sm:$0xff]  ;;  %v4428_v1 = vld [vmem:[%s6193_s3] sm:$0xff]  ;;  %s4684_s9 = scalar_select %p377_p5, %s4588_s22, 1  ;;  %v4439_v2 = vld [vmem:[%s6193_s3 + $0x18] sm:$0xff]  ;;  %vm439_vm0 = vcmask 257024   ;;  %vm549_vm3 = vcmask 261120  }
   0xf   : > { %4510 = vmatpush.bf16.msra.mxu1 %v4429_v0  ;;  %4511 = vmatpush.bf16.msra.mxu2 %v4429_v0  ;;  %s380_s10 = scalar_select %p379_p6, %s4676_s30, 17  ;;  %v4449_v3 = vld [vmem:[%s6193_s3 + $0x28] sm:$0xff]  ;;  %v4459_v4 = vld [vmem:[%s6193_s3 + $0x38] sm:$0xff]  ;;  %v4438_v5 = vld [vmem:[%s6193_s3 + $0x10] sm:$0xff]  ;;  %vm642_vm1 = vsmask.f32 3328 }
  0x10   : > { %4512 = vmatpush.bf16.msra.mxu3 %v4429_v0  ;;  %580 = vmatpush.bf16.msra.mxu0 %v4429_v0  ;;  %s4691_s13 = smul.u32 54, %s4684_s9  ;;  %v4448_v6 = vld [vmem:[%s6193_s3 + $0x20] sm:$0xff]  ;;  %v4458_v7 = vld [vmem:[%s6193_s3 + $0x30] sm:$0xff]  ;;  %v4469_v8 = vld [vmem:[%s6193_s3 + $0x48] sm:$0xff]  ;;  %vm643_vm2 = vsmask.f32 7440  ;;  %s5164_s22 = sadd.s32 %s4584_s21, %s3765_s14 }
  0x11   : > { %s4516_s18 = smul.u32 3, %s380_s10  ;;  %vm1090_vm4 = vcmask 1042432   ;;  %vm1091_vm5 = vcmask 1046532   ;;  %vm4748_vm6 = vmor %vm642_vm1, %vm643_vm2  ;;  %v4479_v54 = vld [vmem:[%s6193_s3 + $0x58] sm:$0xff]  ;;  %v4489_v55 = vld [vmem:[%s6193_s3 + $0x68] sm:$0xff]  ;;  %s6214_s28 = smov (!%p5066_p7, %s393_s28), 17 }
  0x12   : > { %vm4758_vm7 = vmor %vm1090_vm4, %vm1091_vm5  ;;  %v4468_v57 = vld [vmem:[%s6193_s3 + $0x40] sm:$0xff]  ;;  %v4499_v61 = vld [vmem:[%s6193_s3 + $0x78] sm:$0xff]  ;;  %s4518_s7 = smul.u32 3, %s6214_s28  ;;  %s3766_s16 = sshll.u32 %s5164_s22, 4  ;;  %vm3574_vm8 = vcmask 259072   ;;  %vm3518_vm9 = vcmask 253952  }
  0x13   : > { %4513 = vmatpush.bf16.msra.mxu1 %v4428_v1  ;;  %4514 = vmatpush.bf16.msra.mxu2 %v4428_v1  ;;  %s383_s19 = sadd.s32 %s4691_s13, %s4516_s18  ;;  %p421_p8 = scmp.lt.s32.totalorder %s3766_s16, 63 }
  0x14   : > { %4515 = vmatpush.bf16.msra.mxu3 %v4428_v1  ;;  %s3760_s29 = sshll.u32 %s383_s19, 2  ;;  %581 = vmatpush.bf16.msra.mxu0 %v4428_v1  ;;  %s5143_s12 = sadd.s32 %s4518_s7, %s4691_s13 }
  0x15   : > { %s4709_s10 = scalar_lea.vmem %s6190_s0, %s3760_s29  ;;  %s3762_s15 = sshll.u32 %s5143_s12, 2 }
  0x16   : > { %v3772_v9 = vld [vmem:[%s4709_s10 + $0x18] sm:$0xf]  ;;  %v3773_v10 = vld [vmem:[%s4709_s10 + $0x1c] sm:$0xf]  ;;  %v3776_v11 = vld [vmem:[%s4709_s10 + $0x30] sm:$0xf]  ;;  %s5187_s19 = scalar_lea.vmem %s6191_s1, %s3762_s15 }
  0x17   : > { %993 = vmatpush.bf16.msrb.mxu1 %v4439_v2  ;;  %1326 = vmatpush.bf16.msrb.mxu2 %v4449_v3  ;;  %450 = vst.msk [vmem:[#allocation2 + $0x10] sm:$0xf] %vm439_vm0, %v3772_v9  ;;  %v3777_v12 = vld [vmem:[%s4709_s10 + $0x34] sm:$0xf]  ;;  %v3780_v13 = vld [vmem:[%s4709_s10 + $0x48] sm:$0xf] }
  0x18   : > { %1552 = vmatpush.bf16.msrb.mxu3 %v4459_v4  ;;  %1994 = vmatpush.bf16.msrb.mxu0 %v4469_v8  ;;  %451 = vst.msk [vmem:[#allocation2 + $0x14] sm:$0xf] %vm439_vm0, %v3773_v10  ;;  %v3781_v14 = vld [vmem:[%s4709_s10 + $0x4c] sm:$0xf]  ;;  %v3774_v15 = vld [vmem:[%s4709_s10 + $0x24] sm:$0xf] }
  0x19   : > { %460 = vst.msk [vmem:[#allocation2 + $0x20] sm:$0xf] %vm439_vm0, %v3776_v11  ;;  %v3775_v16 = vld [vmem:[%s4709_s10 + $0x28] sm:$0xf]  ;;  %v3778_v17 = vld [vmem:[%s4709_s10 + $0x3c] sm:$0xf] }
  0x1a   : > { %461 = vst.msk [vmem:[#allocation2 + $0x24] sm:$0xf] %vm439_vm0, %v3777_v12  ;;  %v3779_v18 = vld [vmem:[%s4709_s10 + $0x40] sm:$0xf]  ;;  %v640_v21 = vld [vmem:[%s4709_s10 + $0x4] sm:$0xf] }
  0x1b   : > { %994 = vmatpush.bf16.msrb.mxu1 %v4438_v5  ;;  %1327 = vmatpush.bf16.msrb.mxu2 %v4448_v6  ;;  %470 = vst.msk [vmem:[#allocation2 + $0x30] sm:$0xf] %vm439_vm0, %v3780_v13  ;;  %v639_v19 = vld [vmem:[%s4709_s10] sm:$0xf]  ;;  %v641_v22 = vld [vmem:[%s4709_s10 + $0x8] sm:$0x1] }
  0x1c   : > { %1553 = vmatpush.bf16.msrb.mxu3 %v4458_v7  ;;  %471 = vst.msk [vmem:[#allocation2 + $0x34] sm:$0xf] %vm439_vm0, %v3781_v14  ;;  %v437_v20 = vld [vmem:[%s4709_s10] sm:$0xf]  ;;  %v438_v23 = vld [vmem:[%s4709_s10 + $0x4] sm:$0xf]  ;;  %1995 = vmatpush.bf16.msrb.mxu0 %v4468_v57 }
  0x1d   : > { %455 = vst.msk [vmem:[#allocation2 + $0x18] sm:$0xf] %vm439_vm0, %v3774_v15  ;;  %v646_v24 = vshrl.u32 %v639_v19, 16  ;;  %v649_v25 = vshll.u32 %v639_v19, 16  ;;  %v655_v26 = vshll.u32 %v640_v21, 16  ;;  %v659_v27 = vshrl.u32 %v640_v21, 16 }
  0x1e   : > { %456 = vst.msk [vmem:[#allocation2 + $0x1c] sm:$0xf] %vm439_vm0, %v3775_v16  ;;  %v665_v28 = vshll.u32 %v641_v22, 16  ;;  %v3782_v29 = vld [vmem:[%s4709_s10 + $0x54] sm:$0xf]  ;;  %s6216_s16 = smov (!%p421_p8, %s3766_s16), 63 }
  0x1f   : > { %v4422_v30 = vld [vmem:[#allocation2 + $0x10] sm:$0xff]  ;;  %465 = vst.msk [vmem:[#allocation2 + $0x28] sm:$0xf] %vm439_vm0, %v3778_v17  ;;  %v648_v31 = vrot.slane %v646_v24, 4  ;;  %v651_v32 = vrot.slane %v649_v25, 5  ;;  %v657_v33 = vrot.slane %v655_v26, 5 }
  0x20   : > { %466 = vst.msk [vmem:[#allocation2 + $0x2c] sm:$0xf] %vm439_vm0, %v3779_v18  ;;  %v661_v34 = vrot.slane %v659_v27, 4  ;;  %v3783_v35 = vld [vmem:[%s4709_s10 + $0x58] sm:$0xf]  ;;  %3826 = vmatmul.msk.bf16.vlgmr.msra.gmra.mxu1 %vm549_vm3, %v4422_v30  ;;  %v667_v39 = vrot.slane %v665_v28, 5 }
  0x21   : > { %v4424_v36 = vld [vmem:[#allocation2 + $0x20] sm:$0xff]  ;;  %440 = vst.msk [vmem:[#allocation2] sm:$0xf] %vm439_vm0, %v437_v20  ;;  %v652_v38 = vor.u32 %v651_v32, %v648_v31  ;;  %v1086_v43 = vld [vmem:[%s4709_s10 + $0x8] sm:$0x1]  ;;  %2324 = vmatpush.bf16.msra.mxu1 %v4479_v54  ;;  %s3767_s20 = sshll.u32 %s6216_s16, 3 }
  0x22   : > { %v1084_v40 = vld [vmem:[%s4709_s10] sm:$0xe]  ;;  %441 = vst.msk [vmem:[#allocation2 + $0x4] sm:$0xf] %vm439_vm0, %v438_v23  ;;  %v662_v41 = vor.u32 %v661_v34, %v657_v33  ;;  %v1085_v42 = vld [vmem:[%s4709_s10 + $0x4] sm:$0xf]  ;;  %3828 = vmatmul.msk.bf16.vlgmr.msra.gmra.mxu2 %vm549_vm3, %v4424_v36  ;;  %s5234_s7 = scalar_lea.vmem %s6195_s5, %s3767_s20 }
  0x23   : > { %v4426_v45 = vld [vmem:[#allocation2 + $0x30] sm:$0xff]  ;;  %v653_v46 = vrot.slane %v652_v38, 4  ;;  %475 = vst.msk [vmem:[#allocation2 + $0x38] sm:$0xf] %vm439_vm0, %v3782_v29  ;;  %v3905_v47 = vrot.slane %v1084_v40, 9  ;;  %v1095_v48 = vrot.slane %v1085_v42, 5  ;;  %2550 = vmatpush.bf16.msra.mxu2 %v4489_v55 }
  0x24   : > { %v663_v49 = vrot.slane %v662_v41, 4  ;;  %476 = vst.msk [vmem:[#allocation2 + $0x3c] sm:$0xf] %vm439_vm0, %v3783_v35  ;;  %3830 = vmatmul.msk.bf16.vlgmr.msra.gmra.mxu3 %vm549_vm3, %v4426_v45  ;;  %v1098_v52 = vrot.slane %v1086_v43, 5  ;;  %v3986_v53 = vld [vmem:[%s4709_s10 + $0xc] sm:$0xf] }
  0x25   : > { %v658_v50 = vsel %vm4748_vm6, %v653_v46, %v657_v33  ;;  %v1096_v51 = vsel %vm4758_vm7, %v3905_v47, %v1095_v48  ;;  %v3770_v56 = vld [vmem:[%s4709_s10 + $0xc] sm:$0xf]  ;;  %v1097_v59 = vrot.slane %v1095_v48, 4  ;;  %v3771_v60 = vld [vmem:[%s4709_s10 + $0x10] sm:$0xf]  ;;  %2992 = vmatpush.bf16.msra.mxu3 %v4499_v61  ;;  %v4423_v8 = vld [vmem:[#allocation2 + $0x18] sm:$0xff] }
  0x26   : > { %671 = vst.msk [vmem:[#allocation2] sm:$0xf] %vm439_vm0, %v658_v50  ;;  %v668_v58 = vsel %vm4748_vm6, %v663_v49, %v667_v39  ;;  %v4052_v62 = vld [vmem:[%s4709_s10 + $0xc] sm:$0xf]  ;;  %v4053_v63 = vld [vmem:[%s4709_s10 + $0x10] sm:$0xf] }
  0x27   : > { %1102 = vst.msk [vmem:[#allocation2] sm:$0xf] %vm439_vm0, %v1096_v51  ;;  %v4054_v1 = vld [vmem:[%s4709_s10 + $0x14] sm:$0x1]  ;;  %v1647_v2 = vshrl.u32 %v4052_v62, 16  ;;  %v1650_v3 = vshll.u32 %v4052_v62, 16  ;;  %v1099_v9 = vsel %vm4758_vm7, %v1097_v59, %v1098_v52 }
  0x28   : > { %1419 = vst.msk [vmem:[#allocation2] sm:$0xf] %vm439_vm0, %v3986_v53  ;;  %v1656_v4 = vshll.u32 %v4053_v63, 16  ;;  %v1660_v5 = vshrl.u32 %v4053_v63, 16  ;;  %v3832_v7 = vld [vmem:[%s4709_s10 + $0xc] sm:$0xf] }
  0x29   : > { %445 = vst.msk [vmem:[#allocation2 + $0x8] sm:$0xf] %vm439_vm0, %v3770_v56  ;;  %v1649_v6 = vrot.slane %v1647_v2, 4  ;;  %v1652_v10 = vrot.slane %v1650_v3, 5  ;;  %v3833_v13 = vld [vmem:[%s4709_s10 + $0x10] sm:$0xf] }
  0x2a   : > { %446 = vst.msk [vmem:[#allocation2 + $0xc] sm:$0xf] %vm439_vm0, %v3771_v60  ;;  %v1658_v11 = vrot.slane %v1656_v4, 5  ;;  %v1662_v12 = vrot.slane %v1660_v5, 4  ;;  %v3834_v14 = vld [vmem:[%s4709_s10 + $0x14] sm:$0x1] }
  0x2b   : > { %v677_v15 = vshrl.u32 %v3832_v7, 16  ;;  %v680_v16 = vshll.u32 %v3832_v7, 16  ;;  %v686_v17 = vshll.u32 %v3833_v13, 16  ;;  %v690_v18 = vshrl.u32 %v3833_v13, 16  ;;  %v3906_v23 = vld [vmem:[%s4709_s10 + $0xc] sm:$0xe] }
  0x2c   : > { %v1653_v19 = vor.u32 %v1652_v10, %v1649_v6  ;;  %v1663_v20 = vor.u32 %v1662_v12, %v1658_v11  ;;  %v1666_v21 = vshll.u32 %v4054_v1, 16  ;;  %v696_v22 = vshll.u32 %v3834_v14, 16  ;;  %v3907_v24 = vld [vmem:[%s4709_s10 + $0x10] sm:$0xf]  ;;  %v4425_v25 = vld [vmem:[#allocation2 + $0x28] sm:$0xff]  ;;  %v4427_v32 = vld [vmem:[#allocation2 + $0x38] sm:$0xff] }
  0x2d   : > { %v679_v26 = vrot.slane %v677_v15, 4  ;;  %v682_v27 = vrot.slane %v680_v16, 5  ;;  %v688_v28 = vrot.slane %v686_v17, 5  ;;  %v692_v29 = vrot.slane %v690_v18, 4  ;;  %v3908_v36 = vld [vmem:[%s4709_s10 + $0x14] sm:$0x1] }
  0x2e   : > { %v1654_v30 = vrot.slane %v1653_v19, 4  ;;  %v698_v31 = vrot.slane %v696_v22, 5  ;;  %v3909_v38 = vrot.slane %v3906_v23, 9  ;;  %v1112_v39 = vrot.slane %v3907_v24, 5  ;;  %v3835_v41 = vld [vmem:[%s4709_s10 + $0x18] sm:$0xf] }
  0x2f   : > { %v4420_v0 = vld [vmem:[#allocation2] sm:$0xff]  ;;  %v683_v34 = vor.u32 %v682_v27, %v679_v26  ;;  %v693_v35 = vor.u32 %v692_v29, %v688_v28  ;;  %v4813_v42 = vrot.slane %v1663_v20, 4  ;;  %v4815_v43 = vrot.slane %v1666_v21, 5  ;;  %v3988_v50 = vld [vmem:[%s4709_s10 + $0x18] sm:$0xf]  ;;  %v4509_v1 = vld [vmem:[%s6193_s3 + $0x88] sm:$0xff] }
  0x30   : > { %672 = vst.msk [vmem:[#allocation2 + $0x4] sm:$0xf] %vm439_vm0, %v668_v58  ;;  %3824 = vmatmul.msk.bf16.vlgmr.msra.gmra.mxu0 %vm549_vm3, %v4420_v0  ;;  %3827 = vmatmul.msk.bf16.gmra.mxu1 %vm549_vm3, %v4423_v8  ;;  %v1659_v40 = vsel %vm4748_vm6, %v1654_v30, %v1658_v11  ;;  %v1114_v48 = vrot.slane %v1112_v39, 4  ;;  %v1115_v49 = vrot.slane %v3908_v36, 5  ;;  %v708_v51 = vshrl.u32 %v3835_v41, 16  ;;  %s6218_s8 = smov (!%p5552_p9, %s406_s8), 17 }
  0x31   : > { %v684_v45 = vrot.slane %v683_v34, 4  ;;  %v694_v46 = vrot.slane %v693_v35, 4  ;;  %v4421_v47 = vld [vmem:[#allocation2 + $0x8] sm:$0xff]  ;;  %v3987_v52 = vld [vmem:[%s4709_s10 + $0x10] sm:$0xf]  ;;  %v1113_v55 = vsel %vm4758_vm7, %v3909_v38, %v1112_v39  ;;  %v711_v2 = vshll.u32 %v3835_v41, 16  ;;  %3322 = vmatpush.bf16.msra.mxu0 %v4509_v1 }
  0x32   : > { %3829 = vmatmul.msk.bf16.gmra.mxu2 %vm549_vm3, %v4425_v25  ;;  %v4055_v56 = vld [vmem:[%s4709_s10 + $0x18] sm:$0xf]  ;;  %v4056_v57 = vld [vmem:[%s4709_s10 + $0x1c] sm:$0xf]  ;;  %v4057_v58 = vld [vmem:[%s4709_s10 + $0x20] sm:$0x1]  ;;  %v1669_v20 = vsel %vm4748_vm6, %v4813_v42, %v4815_v43  ;;  %v1116_v21 = vsel %vm4758_vm7, %v1114_v48, %v1115_v49 }
  0x33   : > { %v689_v53 = vsel %vm4748_vm6, %v684_v45, %v688_v28  ;;  %v699_v54 = vsel %vm4748_vm6, %v694_v46, %v698_v31  ;;  %v1678_v59 = vshrl.u32 %v4055_v56, 16  ;;  %v1681_v60 = vshll.u32 %v4055_v56, 16  ;;  %v3836_v63 = vld [vmem:[%s4709_s10 + $0x1c] sm:$0xf]  ;;  %v4125_v0 = vld [vmem:[%s4709_s10 + $0xc] sm:$0xe] }
  0x34   : > { %3831 = vmatmul.msk.bf16.gmra.mxu3 %vm549_vm3, %v4427_v32  ;;  %702 = vst.msk [vmem:[#allocation2 + $0x8] sm:$0xf] %vm439_vm0, %v689_v53  ;;  %v1687_v61 = vshll.u32 %v4056_v57, 16  ;;  %v1691_v62 = vshrl.u32 %v4056_v57, 16  ;;  %v3837_v7 = vld [vmem:[%s4709_s10 + $0x20] sm:$0x1] }
  0x35   : > { %703 = vst.msk [vmem:[#allocation2 + $0xc] sm:$0xf] %vm439_vm0, %v699_v54  ;;  %v1680_v3 = vrot.slane %v1678_v59, 4  ;;  %v1683_v4 = vrot.slane %v1681_v60, 5  ;;  %v4126_v10 = vld [vmem:[%s4709_s10 + $0x10] sm:$0xf] }
  0x36   : > { %1119 = vst.msk [vmem:[#allocation2 + $0x8] sm:$0xf] %vm439_vm0, %v1113_v55  ;;  %v1689_v5 = vrot.slane %v1687_v61, 5  ;;  %v1693_v6 = vrot.slane %v1691_v62, 4  ;;  %v4843_v12 = vld [vmem:[%s4709_s10 + $0x14] sm:$0x1] }
  0x37   : > { %v4805_v33 = vld [vmem:[#allocation2] sm:$0xff]  ;;  %1423 = vst.msk [vmem:[#allocation2 + $0x8] sm:$0xf] %vm439_vm0, %v3988_v50  ;;  %v1684_v11 = vor.u32 %v1683_v4, %v1680_v3  ;;  %v4128_v13 = vrot.slane %v4125_v0, 9  ;;  %v2093_v14 = vrot.slane %v4126_v10, 5  ;;  %v710_v16 = vrot.slane %v708_v51, 4 }
  0x38   : > { %1103 = vst.msk [vmem:[#allocation2 + $0x4] sm:$0xf] %vm439_vm0, %v1099_v9  ;;  %v1697_v9 = vshll.u32 %v4057_v58, 16  ;;  %v1694_v15 = vor.u32 %v1693_v6, %v1689_v5  ;;  %v713_v17 = vrot.slane %v711_v2, 5  ;;  %v717_v18 = vshll.u32 %v3836_v63, 16  ;;  %s4519_s30 = smul.u32 3, %s6218_s8 }
  0x39   : > { %1672 = vst.msk [vmem:[#allocation2] sm:$0xf] %vm439_vm0, %v1659_v40  ;;  %v3910_v19 = vld [vmem:[%s4709_s10 + $0x18] sm:$0xe]  ;;  %v1685_v22 = vrot.slane %v1684_v11, 4  ;;  %v2094_v23 = vsel %vm4758_vm7, %v4128_v13, %v2093_v14  ;;  %v721_v27 = vshrl.u32 %v3836_v63, 16 }
  0x3a   : > { %v3911_v24 = vld [vmem:[%s4709_s10 + $0x1c] sm:$0xf]  ;;  %v714_v25 = vor.u32 %v713_v17, %v710_v16  ;;  %v719_v26 = vrot.slane %v717_v18, 5  ;;  %v727_v28 = vshll.u32 %v3837_v7, 16  ;;  %v4861_v31 = vrot.slane %v1697_v9, 5  ;;  %s413_s12 = sadd.s32 %s4519_s30, %s4691_s13  ;;  %s6220_s21 = smov (!%p430_p10, %s4584_s21), 1 }
  0x3b   : > { %v1690_v30 = vsel %vm4748_vm6, %v1685_v22, %v1689_v5  ;;  %v2096_v32 = vrot.slane %v4843_v12, 5  ;;  %v3913_v34 = vrot.slane %v3910_v19, 9  ;;  %v3838_v35 = vld [vmem:[%s4709_s10 + $0x24] sm:$0xf]  ;;  %v4866_v36 = vrot.slane %v1694_v15, 4  ;;  %s3764_s13 = sshll.u32 %s413_s12, 2 }
  0x3c   : > { %v715_v38 = vrot.slane %v714_v25, 4  ;;  %v723_v39 = vrot.slane %v721_v27, 4  ;;  %v1129_v40 = vrot.slane %v3911_v24, 5  ;;  %v2095_v41 = vrot.slane %v2093_v14, 4  ;;  %v3912_v42 = vld [vmem:[%s4709_s10 + $0x20] sm:$0x1]  ;;  %s5643_s15 = scalar_lea.vmem %s6192_s2, %s3764_s13 }
  0x3d   : > { %v739_v43 = vshrl.u32 %v3838_v35, 16  ;;  %v729_v48 = vrot.slane %v727_v28, 5  ;;  %v3839_v50 = vld [vmem:[%s4709_s10 + $0x28] sm:$0xf]  ;;  %v3989_v51 = vld [vmem:[%s4709_s10 + $0x1c] sm:$0xf] }
  0x3e   : > { %v4857_v29 = vld [vmem:[#allocation2 + $0x8] sm:$0xff]  ;;  %v720_v46 = vsel %vm4748_vm6, %v715_v38, %v719_v26  ;;  %v1130_v49 = vsel %vm4758_vm7, %v3913_v34, %v1129_v40  ;;  %v742_v54 = vshll.u32 %v3838_v35, 16  ;;  %v1132_v55 = vrot.slane %v3912_v42, 5  ;;  %v4058_v62 = vld [vmem:[%s4709_s10 + $0x24] sm:$0xf]  ;;  %s3768_s17 = sshll.u32 %s4684_s9, 1 }
  0x3f   : > { %1120 = vst.msk [vmem:[#allocation2 + $0xc] sm:$0xf] %vm439_vm0, %v1116_v21  ;;  %v741_v53 = vrot.slane %v739_v43, 4  ;;  %v3840_v56 = vld [vmem:[%s4709_s10 + $0x2c] sm:$0x1]  ;;  %v1131_v57 = vrot.slane %v1129_v40, 4  ;;  %v2097_v1 = vsel %vm4758_vm7, %v2095_v41, %v2096_v32  ;;  %v1700_v21 = vsel %vm4748_vm6, %v4866_v36, %v4861_v31  ;;  %s433_s18 = sadd.s32 %s3768_s17, %s6220_s21 }
  0x40   : > { %v4440_v8 = vld [vmem:[#allocation2] sm:$0xff]  ;;  %3825 = vmatmul.msk.bf16.gmra.mxu0 %vm549_vm3, %v4421_v47  ;;  %1703 = vst.msk [vmem:[#allocation2 + $0x8] sm:$0xf] %vm439_vm0, %v1690_v30  ;;  %3897 = vmatmul.msk.bf16.vlgmr.msrb.gmra.mxu1 %vm549_vm3, %v4805_v33  ;;  %v724_v47 = vor.u32 %v723_v39, %v719_v26  ;;  %v744_v58 = vrot.slane %v742_v54, 5  ;;  %v748_v59 = vshll.u32 %v3839_v50, 16  ;;  %v752_v60 = vshrl.u32 %v3839_v50, 16 }
  0x41   : > { %1420 = vst.msk [vmem:[#allocation2 + $0x4] sm:$0xf] %vm439_vm0, %v3987_v52  ;;  %v3990_v52 = vld [vmem:[%s4709_s10 + $0x24] sm:$0xf]  ;;  %v4059_v63 = vld [vmem:[%s4709_s10 + $0x28] sm:$0xf]  ;;  %v1133_v22 = vsel %vm4758_vm7, %v1131_v57, %v1132_v55 }
  0x42   : > { %2100 = vst.msk [vmem:[#allocation2] sm:$0xf] %vm439_vm0, %v2094_v23  ;;  %3978 = vmatmul.msk.bf16.vlgmr.msrb.gmra.mxu2 %vm549_vm3, %v4440_v8  ;;  %v725_v33 = vrot.slane %v724_v47, 4  ;;  %v4060_v2 = vld [vmem:[%s4709_s10 + $0x2c] sm:$0x1]  ;;  %v1709_v3 = vshrl.u32 %v4058_v62, 16  ;;  %v745_v4 = vor.u32 %v744_v58, %v741_v53 }
  0x43   : > { %733 = vst.msk [vmem:[#allocation2 + $0x10] sm:$0xf] %vm439_vm0, %v720_v46  ;;  %v1712_v5 = vshll.u32 %v4058_v62, 16  ;;  %v1718_v6 = vshll.u32 %v4059_v63, 16  ;;  %v1722_v7 = vshrl.u32 %v4059_v63, 16  ;;  %v758_v8 = vshll.u32 %v3840_v56, 16 }
  0x44   : > { %1136 = vst.msk [vmem:[#allocation2 + $0x10] sm:$0xf] %vm439_vm0, %v1130_v49  ;;  %v730_v61 = vsel %vm4748_vm6, %v725_v33, %v729_v48  ;;  %v1711_v9 = vrot.slane %v1709_v3, 4  ;;  %v1728_v10 = vshll.u32 %v4060_v2, 16  ;;  %v4129_v11 = vld [vmem:[%s4709_s10 + $0x18] sm:$0xe] }
  0x45   : > { %1427 = vst.msk [vmem:[#allocation2 + $0x10] sm:$0xf] %vm439_vm0, %v3990_v52  ;;  %v4130_v12 = vld [vmem:[%s4709_s10 + $0x1c] sm:$0xf]  ;;  %v1714_v14 = vrot.slane %v1712_v5, 5  ;;  %v1720_v15 = vrot.slane %v1718_v6, 5 }
  0x46   : > { %734 = vst.msk [vmem:[#allocation2 + $0x14] sm:$0xf] %vm439_vm0, %v730_v61  ;;  %v1724_v16 = vrot.slane %v1722_v7, 4  ;;  %v3914_v17 = vld [vmem:[%s4709_s10 + $0x24] sm:$0xe]  ;;  %v4132_v18 = vrot.slane %v4129_v11, 9 }
  0x47   : > { %v4890_v0 = vld [vmem:[#allocation2 + $0x8] sm:$0xff]  ;;  %v2110_v19 = vrot.slane %v4130_v12, 5  ;;  %v1715_v23 = vor.u32 %v1714_v14, %v1711_v9  ;;  %v750_v24 = vrot.slane %v748_v59, 5  ;;  %v4909_v27 = vrot.slane %v1728_v10, 5  ;;  %v4131_v28 = vld [vmem:[%s4709_s10 + $0x20] sm:$0x1] }
  0x48   : > { %1424 = vst.msk [vmem:[#allocation2 + $0xc] sm:$0xf] %vm439_vm0, %v3989_v51  ;;  %v3915_v25 = vld [vmem:[%s4709_s10 + $0x28] sm:$0xf]  ;;  %v1725_v26 = vor.u32 %v1724_v16, %v1720_v15  ;;  %v754_v32 = vrot.slane %v752_v60, 4  ;;  %v760_v35 = vrot.slane %v758_v8, 5 }
  0x49   : > { %v4450_v45 = vld [vmem:[#allocation2] sm:$0xff]  ;;  %v2111_v30 = vsel %vm4758_vm7, %v4132_v18, %v2110_v19  ;;  %v1716_v31 = vrot.slane %v1715_v23, 4  ;;  %v3917_v36 = vrot.slane %v3914_v17, 9  ;;  %v1146_v41 = vrot.slane %v3915_v25, 5  ;;  %v3841_v42 = vld [vmem:[%s4709_s10 + $0x30] sm:$0xf] }
  0x4a   : > { %1673 = vst.msk [vmem:[#allocation2 + $0x4] sm:$0xf] %vm439_vm0, %v1669_v20  ;;  %4044 = vmatmul.msk.bf16.vlgmr.msrb.gmra.mxu3 %vm549_vm3, %v4450_v45  ;;  %v746_v20 = vrot.slane %v745_v4, 4  ;;  %v755_v40 = vor.u32 %v754_v32, %v750_v24  ;;  %v2112_v45 = vrot.slane %v2110_v19, 4  ;;  %v2113_v46 = vrot.slane %v4131_v28, 5  ;;  %s3769_s21 = sshll.u32 %s433_s18, 3 }
  0x4b   : > { %2117 = vst.msk [vmem:[#allocation2 + $0x8] sm:$0xf] %vm439_vm0, %v2111_v30  ;;  %v1721_v43 = vsel %vm4748_vm6, %v1716_v31, %v1720_v15  ;;  %v3916_v47 = vld [vmem:[%s4709_s10 + $0x2c] sm:$0x1]  ;;  %v4925_v48 = vrot.slane %v1725_v26, 4  ;;  %v1147_v50 = vsel %vm4758_vm7, %v3917_v36, %v1146_v41  ;;  %v770_v54 = vshrl.u32 %v3841_v42, 16  ;;  %s6137_s20 = scalar_lea.vmem %s6196_s6, %s3769_s21 }
  0x4c   : > { %v751_v39 = vsel %vm4748_vm6, %v746_v20, %v750_v24  ;;  %v756_v49 = vrot.slane %v755_v40, 4  ;;  %v3842_v51 = vld [vmem:[%s4709_s10 + $0x34] sm:$0xf]  ;;  %v3991_v52 = vld [vmem:[%s4709_s10 + $0x28] sm:$0xf]  ;;  %v773_v33 = vshll.u32 %v3841_v42, 16  ;;  %v2114_v62 = vsel %vm4758_vm7, %v2112_v45, %v2113_v46 }
  0x4d   : > { %v4914_v34 = vld [vmem:[#allocation2 + $0x10] sm:$0xff]  ;;  %764 = vst.msk [vmem:[#allocation2 + $0x18] sm:$0xf] %vm439_vm0, %v751_v39  ;;  %v3843_v56 = vld [vmem:[%s4709_s10 + $0x38] sm:$0x1]  ;;  %v779_v57 = vshll.u32 %v3842_v51, 16  ;;  %v1731_v15 = vsel %vm4748_vm6, %v4925_v48, %v4909_v27 }
  0x4e   : > { %1137 = vst.msk [vmem:[#allocation2 + $0x14] sm:$0xf] %vm439_vm0, %v1133_v22  ;;  %v3992_v53 = vld [vmem:[%s4709_s10 + $0x30] sm:$0xf]  ;;  %v761_v55 = vsel %vm4748_vm6, %v756_v49, %v760_v35  ;;  %v783_v58 = vshrl.u32 %v3842_v51, 16  ;;  %v1149_v59 = vrot.slane %v3916_v47, 5 }
  0x4f   : > { %1734 = vst.msk [vmem:[#allocation2 + $0x10] sm:$0xf] %vm439_vm0, %v1721_v43  ;;  %v772_v60 = vrot.slane %v770_v54, 4  ;;  %v775_v61 = vrot.slane %v773_v33, 5  ;;  %v781_v63 = vrot.slane %v779_v57, 5  ;;  %v789_v6 = vshll.u32 %v3843_v56, 16 }
  0x50   : > { %3898 = vmatmul.msk.bf16.gmra.mxu1 %vm549_vm3, %v4857_v29  ;;  %1153 = vst.msk [vmem:[#allocation2 + $0x18] sm:$0xf] %vm439_vm0, %v1147_v50  ;;  %v1148_v29 = vrot.slane %v1146_v41, 4  ;;  %v3919_v2 = vld [vmem:[%s4709_s10 + $0x34] sm:$0xf] }
  0x51   : > { %v4460_v13 = vld [vmem:[#allocation2] sm:$0xff]  ;;  %765 = vst.msk [vmem:[#allocation2 + $0x1c] sm:$0xf] %vm439_vm0, %v761_v55  ;;  %v4062_v4 = vld [vmem:[%s4709_s10 + $0x34] sm:$0xf]  ;;  %v776_v5 = vor.u32 %v775_v61, %v772_v60  ;;  %v791_v23 = vrot.slane %v789_v6, 5 }
  0x52   : > { %2101 = vst.msk [vmem:[#allocation2 + $0x4] sm:$0xf] %vm439_vm0, %v2097_v1  ;;  %4117 = vmatmul.msk.bf16.vlgmr.msrb.gmra.mxu0 %vm549_vm3, %v4460_v13  ;;  %v4451_v38 = vld [vmem:[#allocation2 + $0x8] sm:$0xff]  ;;  %3979 = vmatmul.msk.bf16.gmra.mxu2 %vm549_vm3, %v4890_v0  ;;  %v785_v1 = vrot.slane %v783_v58, 4  ;;  %v4061_v0 = vld [vmem:[%s4709_s10 + $0x30] sm:$0xf]  ;;  %v1150_v16 = vsel %vm4758_vm7, %v1148_v29, %v1149_v59 }
  0x53   : > { %1704 = vst.msk [vmem:[#allocation2 + $0xc] sm:$0xf] %vm439_vm0, %v1700_v21  ;;  %v4954_v8 = vld [vmem:[%s4709_s10 + $0x38] sm:$0x1]  ;;  %v1740_v9 = vshrl.u32 %v4061_v0, 16  ;;  %v1743_v11 = vshll.u32 %v4061_v0, 16 }
  0x54   : > { %1431 = vst.msk [vmem:[#allocation2 + $0x18] sm:$0xf] %vm439_vm0, %v3992_v53  ;;  %v3918_v10 = vld [vmem:[%s4709_s10 + $0x30] sm:$0xe]  ;;  %v1749_v12 = vshll.u32 %v4062_v4, 16  ;;  %v1753_v13 = vshrl.u32 %v4062_v4, 16  ;;  %v786_v14 = vor.u32 %v785_v1, %v781_v63 }
  0x55   : > { %v1742_v17 = vrot.slane %v1740_v9, 4  ;;  %v4133_v18 = vld [vmem:[%s4709_s10 + $0x24] sm:$0xe]  ;;  %v4134_v19 = vld [vmem:[%s4709_s10 + $0x28] sm:$0xf]  ;;  %v777_v20 = vrot.slane %v776_v5, 4 }
  0x56   : > { %v4948_v3 = vld [vmem:[#allocation2 + $0x10] sm:$0xff]  ;;  %v1745_v21 = vrot.slane %v1743_v11, 5  ;;  %v1759_v22 = vshll.u32 %v4954_v8, 16  ;;  %v1163_v24 = vrot.slane %v3919_v2, 5  ;;  %v1751_v26 = vrot.slane %v1749_v12, 5  ;;  %v4488_v1 = vld [vmem:[%s6193_s3 + $0x60] sm:$0xff] }
  0x57   : > { %1428 = vst.msk [vmem:[#allocation2 + $0x14] sm:$0xf] %vm439_vm0, %v3991_v52  ;;  %v4135_v28 = vld [vmem:[%s4709_s10 + $0x2c] sm:$0x1]  ;;  %v4136_v30 = vrot.slane %v4133_v18, 9  ;;  %v2127_v27 = vrot.slane %v4134_v19, 5  ;;  %v782_v32 = vsel %vm4748_vm6, %v777_v20, %v781_v63  ;;  %2551 = vmatpush.bf16.msra.mxu2 %v4488_v1 }
  0x58   : > { %v1746_v31 = vor.u32 %v1745_v21, %v1742_v17  ;;  %v1755_v35 = vrot.slane %v1753_v13, 4  ;;  %v787_v36 = vrot.slane %v786_v14, 4  ;;  %795 = vst.msk [vmem:[#allocation2 + $0x20] sm:$0xf] %vm439_vm0, %v782_v32  ;;  %v3920_v40 = vld [vmem:[%s4709_s10 + $0x38] sm:$0x1] }
  0x59   : > { %v2128_v39 = vsel %vm4758_vm7, %v4136_v30, %v2127_v27  ;;  %v3844_v41 = vld [vmem:[%s4709_s10 + $0x3c] sm:$0xf]  ;;  %v2129_v45 = vrot.slane %v2127_v27, 4  ;;  %v2130_v46 = vrot.slane %v4135_v28, 5  ;;  %v3993_v48 = vld [vmem:[%s4709_s10 + $0x34] sm:$0xf] }
  0x5a   : > { %4045 = vmatmul.msk.bf16.gmra.mxu3 %vm549_vm3, %v4451_v38  ;;  %v4461_v7 = vld [vmem:[#allocation2 + $0x8] sm:$0xff]  ;;  %v3921_v38 = vrot.slane %v3918_v10, 9  ;;  %v1747_v43 = vrot.slane %v1746_v31, 4  ;;  %v792_v47 = vsel %vm4748_vm6, %v787_v36, %v791_v23  ;;  %v3845_v50 = vld [vmem:[%s4709_s10 + $0x40] sm:$0xf]  ;;  %v1756_v53 = vor.u32 %v1755_v35, %v1751_v26  ;;  %v4478_v63 = vld [vmem:[%s6193_s3 + $0x50] sm:$0xff] }
  0x5b   : > { %2118 = vst.msk [vmem:[#allocation2 + $0xc] sm:$0xf] %vm439_vm0, %v2114_v62  ;;  %v4967_v25 = vld [vmem:[#allocation2 + $0x18] sm:$0xff]  ;;  %v3846_v51 = vld [vmem:[%s4709_s10 + $0x44] sm:$0x1]  ;;  %v1165_v54 = vrot.slane %v1163_v24, 4  ;;  %2325 = vmatpush.bf16.msra.mxu1 %v4478_v63 }
  0x5c   : > { %1154 = vst.msk [vmem:[#allocation2 + $0x1c] sm:$0xf] %vm439_vm0, %v1150_v16  ;;  %v1164_v49 = vsel %vm4758_vm7, %v3921_v38, %v1163_v24  ;;  %v1752_v52 = vsel %vm4748_vm6, %v1747_v43, %v1751_v26  ;;  %v1166_v33 = vrot.slane %v3920_v40, 5  ;;  %v3994_v55 = vld [vmem:[%s4709_s10 + $0x3c] sm:$0xf]  ;;  %v801_v56 = vshrl.u32 %v3844_v41, 16 }
  0x5d   : > { %796 = vst.msk [vmem:[#allocation2 + $0x24] sm:$0xf] %vm439_vm0, %v792_v47  ;;  %v804_v57 = vshll.u32 %v3844_v41, 16  ;;  %v810_v58 = vshll.u32 %v3845_v50, 16  ;;  %v814_v29 = vshrl.u32 %v3845_v50, 16  ;;  %v820_v59 = vshll.u32 %v3846_v51, 16 }
  0x5e   : > { %v4452_v42 = vld [vmem:[#allocation2 + $0x10] sm:$0xff]  ;;  %1765 = vst.msk [vmem:[#allocation2 + $0x18] sm:$0xf] %vm439_vm0, %v1752_v52  ;;  %v803_v61 = vrot.slane %v801_v56, 4  ;;  %v1757_v4 = vrot.slane %v1756_v53, 4  ;;  %v1761_v5 = vrot.slane %v1759_v22, 5 }
  0x5f   : > { %2134 = vst.msk [vmem:[#allocation2 + $0x10] sm:$0xf] %vm439_vm0, %v2128_v39  ;;  %v806_v62 = vrot.slane %v804_v57, 5  ;;  %v812_v2 = vrot.slane %v810_v58, 5  ;;  %v816_v0 = vrot.slane %v814_v29, 4  ;;  %v5015_v9 = vrot.slane %v820_v59, 5 }
  0x60   : > { %1735 = vst.msk [vmem:[#allocation2 + $0x14] sm:$0xf] %vm439_vm0, %v1731_v15  ;;  %3899 = vmatmul.msk.bf16.gmra.mxu1 %vm549_vm3, %v4914_v34  ;;  %v2131_v34 = vsel %vm4758_vm7, %v2129_v45, %v2130_v46  ;;  %v4065_v8 = vld [vmem:[%s4709_s10 + $0x40] sm:$0xf]  ;;  %v3922_v10 = vld [vmem:[%s4709_s10 + $0x3c] sm:$0xe]  ;;  %v1762_v20 = vsel %vm4748_vm6, %v1757_v4, %v1761_v5 }
  0x61   : > { %1170 = vst.msk [vmem:[#allocation2 + $0x20] sm:$0xf] %vm439_vm0, %v1164_v49  ;;  %v4066_v12 = vld [vmem:[%s4709_s10 + $0x44] sm:$0x1]  ;;  %v807_v14 = vor.u32 %v806_v62, %v803_v61  ;;  %v1780_v16 = vshll.u32 %v4065_v8, 16  ;;  %v1784_v17 = vshrl.u32 %v4065_v8, 16  ;;  %v817_v18 = vor.u32 %v816_v0, %v812_v2 }
  0x62   : > { %4118 = vmatmul.msk.bf16.gmra.mxu0 %vm549_vm3, %v4461_v7  ;;  %1435 = vst.msk [vmem:[#allocation2 + $0x20] sm:$0xf] %vm439_vm0, %v3994_v55  ;;  %3980 = vmatmul.msk.bf16.gmra.mxu2 %vm549_vm3, %v4948_v3  ;;  %v1167_v3 = vsel %vm4758_vm7, %v1165_v54, %v1166_v33  ;;  %v4064_v7 = vld [vmem:[%s4709_s10 + $0x3c] sm:$0xf]  ;;  %v3923_v19 = vld [vmem:[%s4709_s10 + $0x40] sm:$0xf] }
  0x63   : > { %v1771_v13 = vshrl.u32 %v4064_v7, 16  ;;  %v1774_v15 = vshll.u32 %v4064_v7, 16  ;;  %v4137_v22 = vld [vmem:[%s4709_s10 + $0x30] sm:$0xe]  ;;  %v4138_v23 = vld [vmem:[%s4709_s10 + $0x34] sm:$0xf] }
  0x64   : > { %v4498_v24 = vld [vmem:[%s6193_s3 + $0x70] sm:$0xff]  ;;  %v1782_v28 = vrot.slane %v1780_v16, 5  ;;  %v1786_v30 = vrot.slane %v1784_v17, 4  ;;  %v1790_v27 = vshll.u32 %v4066_v12, 16  ;;  %v4139_v32 = vld [vmem:[%s4709_s10 + $0x38] sm:$0x1] }
  0x65   : > { %v4996_v60 = vld [vmem:[#allocation2 + $0x18] sm:$0xff]  ;;  %v1773_v21 = vrot.slane %v1771_v13, 4  ;;  %v1776_v26 = vrot.slane %v1774_v15, 5  ;;  %v3924_v31 = vld [vmem:[%s4709_s10 + $0x44] sm:$0x1]  ;;  %v4140_v36 = vrot.slane %v4137_v22, 9  ;;  %2993 = vmatpush.bf16.msra.mxu3 %v4498_v24 }
  0x66   : > { %1432 = vst.msk [vmem:[#allocation2 + $0x1c] sm:$0xf] %vm439_vm0, %v3993_v48  ;;  %v2144_v38 = vrot.slane %v4138_v23, 5  ;;  %v808_v39 = vrot.slane %v807_v14, 4  ;;  %v3925_v40 = vrot.slane %v3922_v10, 9  ;;  %v2147_v43 = vrot.slane %v4139_v32, 5 }
  0x67   : > { %v4462_v6 = vld [vmem:[#allocation2 + $0x10] sm:$0xff]  ;;  %v1777_v41 = vor.u32 %v1776_v26, %v1773_v21  ;;  %v818_v45 = vrot.slane %v817_v18, 4  ;;  %v3847_v46 = vld [vmem:[%s4709_s10 + $0x48] sm:$0xf]  ;;  %v3995_v47 = vld [vmem:[%s4709_s10 + $0x40] sm:$0xf] }
  0x68   : > { %2135 = vst.msk [vmem:[#allocation2 + $0x14] sm:$0xf] %vm439_vm0, %v2131_v34  ;;  %v2145_v48 = vsel %vm4758_vm7, %v4140_v36, %v2144_v38  ;;  %v2146_v49 = vrot.slane %v2144_v38, 4  ;;  %v813_v50 = vsel %vm4748_vm6, %v808_v39, %v812_v2  ;;  %v1180_v51 = vrot.slane %v3923_v19, 5  ;;  %v3848_v52 = vld [vmem:[%s4709_s10 + $0x4c] sm:$0xf] }
  0x69   : > { %v5019_v11 = vld [vmem:[#allocation2 + $0x20] sm:$0xff]  ;;  %v1778_v53 = vrot.slane %v1777_v41, 4  ;;  %v1792_v54 = vrot.slane %v1790_v27, 5  ;;  %v3849_v33 = vld [vmem:[%s4709_s10 + $0x50] sm:$0x1]  ;;  %v823_v56 = vsel %vm4748_vm6, %v818_v45, %v5015_v9  ;;  %v1183_v57 = vrot.slane %v3924_v31, 5 }
  0x6a   : > { %4046 = vmatmul.msk.bf16.gmra.mxu3 %vm549_vm3, %v4452_v42  ;;  %1171 = vst.msk [vmem:[#allocation2 + $0x24] sm:$0xf] %vm439_vm0, %v1167_v3  ;;  %v1787_v42 = vor.u32 %v1786_v30, %v1782_v28  ;;  %v832_v58 = vshrl.u32 %v3847_v46, 16  ;;  %v835_v29 = vshll.u32 %v3847_v46, 16  ;;  %v2148_v62 = vsel %vm4758_vm7, %v2146_v49, %v2147_v43  ;;  %v3996_v4 = vld [vmem:[%s4709_s10 + $0x48] sm:$0xf] }
  0x6b   : > { %826 = vst.msk [vmem:[#allocation2 + $0x28] sm:$0xf] %vm439_vm0, %v813_v50  ;;  %v1783_v59 = vsel %vm4748_vm6, %v1778_v53, %v1782_v28  ;;  %v1181_v34 = vsel %vm4758_vm7, %v3925_v40, %v1180_v51  ;;  %v1182_v63 = vrot.slane %v1180_v51, 4  ;;  %v841_v0 = vshll.u32 %v3848_v52, 16  ;;  %v3927_v13 = vld [vmem:[%s4709_s10 + $0x4c] sm:$0xf] }
  0x6c   : > { %v1788_v61 = vrot.slane %v1787_v42, 4  ;;  %v834_v1 = vrot.slane %v832_v58, 4  ;;  %v837_v2 = vrot.slane %v835_v29, 5  ;;  %827 = vst.msk [vmem:[#allocation2 + $0x2c] sm:$0xf] %vm439_vm0, %v823_v56  ;;  %v845_v5 = vshrl.u32 %v3848_v52, 16 }
  0x6d   : > { %v4453_v35 = vld [vmem:[#allocation2 + $0x18] sm:$0xff]  ;;  %v851_v3 = vshll.u32 %v3849_v33, 16  ;;  %1187 = vst.msk [vmem:[#allocation2 + $0x28] sm:$0xf] %vm439_vm0, %v1181_v34  ;;  %v843_v8 = vrot.slane %v841_v0, 5  ;;  %v1184_v14 = vsel %vm4758_vm7, %v1182_v63, %v1183_v57  ;;  %v1197_v28 = vrot.slane %v3927_v13, 5 }
  0x6e   : > { %1766 = vst.msk [vmem:[#allocation2 + $0x1c] sm:$0xf] %vm439_vm0, %v1762_v20  ;;  %v838_v7 = vor.u32 %v837_v2, %v834_v1  ;;  %v1793_v9 = vsel %vm4748_vm6, %v1788_v61, %v1792_v54  ;;  %v4068_v15 = vld [vmem:[%s4709_s10 + $0x4c] sm:$0xf]  ;;  %v3926_v17 = vld [vmem:[%s4709_s10 + $0x48] sm:$0xe] }
  0x6f   : > { %2151 = vst.msk [vmem:[#allocation2 + $0x18] sm:$0xf] %vm439_vm0, %v2145_v48  ;;  %v853_v12 = vrot.slane %v851_v3, 5  ;;  %v1811_v21 = vshll.u32 %v4068_v15, 16  ;;  %v1815_v22 = vshrl.u32 %v4068_v15, 16  ;;  %v3929_v45 = vrot.slane %v3926_v17, 9 }
  0x70   : > { %3900 = vmatmul.msk.bf16.gmra.mxu1 %vm549_vm3, %v4967_v25  ;;  %v847_v25 = vrot.slane %v845_v5, 4  ;;  %1439 = vst.msk [vmem:[#allocation2 + $0x28] sm:$0xf] %vm439_vm0, %v3996_v4  ;;  %v839_v10 = vrot.slane %v838_v7, 4  ;;  %v4141_v23 = vld [vmem:[%s4709_s10 + $0x3c] sm:$0xe] }
  0x71   : > { %v5044_v55 = vld [vmem:[#allocation2 + $0x20] sm:$0xff]  ;;  %v4069_v27 = vld [vmem:[%s4709_s10 + $0x50] sm:$0x1]  ;;  %v1817_v36 = vrot.slane %v1815_v22, 4  ;;  %v4144_v39 = vrot.slane %v4141_v23, 9  ;;  %v1199_v53 = vrot.slane %v1197_v28, 4  ;;  %v1198_v33 = vsel %vm4758_vm7, %v3929_v45, %v1197_v28 }
  0x72   : > { %4119 = vmatmul.msk.bf16.gmra.mxu0 %vm549_vm3, %v4462_v6  ;;  %1436 = vst.msk [vmem:[#allocation2 + $0x24] sm:$0xf] %vm439_vm0, %v3995_v47  ;;  %3981 = vmatmul.msk.bf16.gmra.mxu2 %vm549_vm3, %v4996_v60  ;;  %v4067_v60 = vld [vmem:[%s4709_s10 + $0x48] sm:$0xf]  ;;  %v848_v16 = vor.u32 %v847_v25, %v843_v8  ;;  %v844_v24 = vsel %vm4748_vm6, %v839_v10, %v843_v8  ;;  %v4142_v38 = vld [vmem:[%s4709_s10 + $0x40] sm:$0xf] }
  0x73   : > { %1796 = vst.msk [vmem:[#allocation2 + $0x20] sm:$0xf] %vm439_vm0, %v1783_v59  ;;  %v1802_v19 = vshrl.u32 %v4067_v60, 16  ;;  %v1805_v20 = vshll.u32 %v4067_v60, 16  ;;  %v4143_v42 = vld [vmem:[%s4709_s10 + $0x44] sm:$0x1] }
  0x74   : > { %v849_v26 = vrot.slane %v848_v16, 4  ;;  %v2161_v43 = vrot.slane %v4142_v38, 5  ;;  %857 = vst.msk [vmem:[#allocation2 + $0x30] sm:$0xf] %vm439_vm0, %v844_v24  ;;  %v1821_v46 = vshll.u32 %v4069_v27, 16  ;;  %v2164_v47 = vrot.slane %v4143_v42, 5 }
  0x75   : > { %v1804_v32 = vrot.slane %v1802_v19, 4  ;;  %v1807_v31 = vrot.slane %v1805_v20, 5  ;;  %v3928_v48 = vld [vmem:[%s4709_s10 + $0x50] sm:$0x1]  ;;  %v3997_v49 = vld [vmem:[%s4709_s10 + $0x4c] sm:$0xf] }
  0x76   : > { %v4463_v6 = vld [vmem:[#allocation2 + $0x18] sm:$0xff]  ;;  %v854_v40 = vsel %vm4748_vm6, %v849_v26, %v853_v12  ;;  %v2162_v51 = vsel %vm4758_vm7, %v4144_v39, %v2161_v43  ;;  %v2163_v52 = vrot.slane %v2161_v43, 4  ;;  %v3850_v54 = vld [vmem:[%s4709_s10 + $0x54] sm:$0xf]  ;;  %v1200_v56 = vrot.slane %v3928_v48, 5  ;;  %v4508_v1 = vld [vmem:[%s6193_s3 + $0x80] sm:$0xff] }
  0x77   : > { %2152 = vst.msk [vmem:[#allocation2 + $0x1c] sm:$0xf] %vm439_vm0, %v2148_v62  ;;  %v5095_v30 = vld [vmem:[#allocation2 + $0x28] sm:$0xff]  ;;  %v1808_v41 = vor.u32 %v1807_v31, %v1804_v32  ;;  %v3851_v57 = vld [vmem:[%s4709_s10 + $0x58] sm:$0xf]  ;;  %v863_v58 = vshrl.u32 %v3850_v54, 16  ;;  %3323 = vmatpush.bf16.msra.mxu0 %v4508_v1 }
  0x78   : > { %1188 = vst.msk [vmem:[#allocation2 + $0x2c] sm:$0xf] %vm439_vm0, %v1184_v14  ;;  %v2165_v62 = vsel %vm4758_vm7, %v2163_v52, %v2164_v47  ;;  %v3852_v34 = vld [vmem:[%s4709_s10 + $0x5c] sm:$0x1]  ;;  %v866_v63 = vshll.u32 %v3850_v54, 16  ;;  %v1201_v5 = vsel %vm4758_vm7, %v1199_v53, %v1200_v56  ;;  %v876_v7 = vshrl.u32 %v3851_v57, 16 }
  0x79   : > { %858 = vst.msk [vmem:[#allocation2 + $0x34] sm:$0xf] %vm439_vm0, %v854_v40  ;;  %v1809_v50 = vrot.slane %v1808_v41, 4  ;;  %v3998_v2 = vld [vmem:[%s4709_s10 + $0x54] sm:$0xf]  ;;  %v865_v0 = vrot.slane %v863_v58, 4 }
  0x7a   : > { %4047 = vmatmul.msk.bf16.gmra.mxu3 %vm549_vm3, %v4453_v35  ;;  %v5083_v18 = vld [vmem:[#allocation2 + $0x20] sm:$0xff]  ;;  %v1813_v35 = vrot.slane %v1811_v21, 5  ;;  %1204 = vst.msk [vmem:[#allocation2 + $0x30] sm:$0xf] %vm439_vm0, %v1198_v33  ;;  %v868_v3 = vrot.slane %v866_v63, 5  ;;  %v882_v8 = vshll.u32 %v3852_v34, 16 }
  0x7b   : > { %1797 = vst.msk [vmem:[#allocation2 + $0x24] sm:$0xf] %vm439_vm0, %v1793_v9  ;;  %v1823_v9 = vrot.slane %v1821_v46, 5  ;;  %v878_v13 = vrot.slane %v876_v7, 4  ;;  %v3931_v14 = vld [vmem:[%s4709_s10 + $0x58] sm:$0xf] }
  0x7c   : > { %2168 = vst.msk [vmem:[#allocation2 + $0x20] sm:$0xf] %vm439_vm0, %v2162_v51  ;;  %v1814_v29 = vsel %vm4748_vm6, %v1809_v50, %v1813_v35  ;;  %v1818_v59 = vor.u32 %v1817_v36, %v1813_v35  ;;  %v869_v12 = vor.u32 %v868_v3, %v865_v0  ;;  %v3930_v15 = vld [vmem:[%s4709_s10 + $0x54] sm:$0xe]  ;;  %v884_v17 = vrot.slane %v882_v8, 5 }
  0x7d   : > { %1827 = vst.msk [vmem:[#allocation2 + $0x28] sm:$0xf] %vm439_vm0, %v1814_v29  ;;  %v3999_v19 = vld [vmem:[%s4709_s10 + $0x58] sm:$0xf]  ;;  %v4070_v20 = vld [vmem:[%s4709_s10 + $0x54] sm:$0xf] }
  0x7e   : > { %v1819_v25 = vrot.slane %v1818_v59, 4  ;;  %v870_v60 = vrot.slane %v869_v12, 4  ;;  %v4071_v21 = vld [vmem:[%s4709_s10 + $0x58] sm:$0xf]  ;;  %v3933_v23 = vrot.slane %v3930_v15, 9  ;;  %v1214_v24 = vrot.slane %v3931_v14, 5 }
  0x7f   : > { %v1836_v26 = vshll.u32 %v4070_v20, 16  ;;  %v1842_v28 = vshll.u32 %v4071_v21, 16  ;;  %v1846_v27 = vshrl.u32 %v4071_v21, 16  ;;  %v3932_v32 = vld [vmem:[%s4709_s10 + $0x5c] sm:$0x1] }
  0x80   : > { %3901 = vmatmul.msk.bf16.gmra.mxu1 %vm549_vm3, %v5019_v11  ;;  %v4072_v35 = vld [vmem:[%s4709_s10 + $0x5c] sm:$0x1]  ;;  %v4145_v36 = vld [vmem:[%s4709_s10 + $0x48] sm:$0xe]  ;;  %v4146_v46 = vld [vmem:[%s4709_s10 + $0x4c] sm:$0xf] }
  0x81   : > { %v5137_v10 = vld [vmem:[#allocation2 + $0x30] sm:$0xff]  ;;  %v1838_v40 = vrot.slane %v1836_v26, 5  ;;  %v1844_v41 = vrot.slane %v1842_v28, 5  ;;  %v1848_v42 = vrot.slane %v1846_v27, 4  ;;  %v1852_v45 = vshll.u32 %v4072_v35, 16 }
  0x82   : > { %4120 = vmatmul.msk.bf16.gmra.mxu0 %vm549_vm3, %v4463_v6  ;;  %v872_v6 = vshll.u32 %v3851_v57, 16  ;;  %1443 = vst.msk [vmem:[#allocation2 + $0x30] sm:$0xf] %vm439_vm0, %v3998_v2  ;;  %3982 = vmatmul.msk.bf16.gmra.mxu2 %vm549_vm3, %v5044_v55  ;;  %v1824_v55 = vsel %vm4748_vm6, %v1819_v25, %v1823_v9  ;;  %v4147_v47 = vld [vmem:[%s4709_s10 + $0x50] sm:$0x1]  ;;  %v4148_v52 = vrot.slane %v4145_v36, 9 }
  0x83   : > { %v5118_v61 = vld [vmem:[#allocation2 + $0x20] sm:$0xff]  ;;  %1205 = vst.msk [vmem:[#allocation2 + $0x34] sm:$0xf] %vm439_vm0, %v1201_v5  ;;  %v1849_v51 = vor.u32 %v1848_v42, %v1844_v41  ;;  %v2178_v53 = vrot.slane %v4146_v46, 5  ;;  %v1854_v54 = vrot.slane %v1852_v45, 5  ;;  %v2181_v33 = vrot.slane %v4147_v47, 5 }
  0x84   : > { %v5129_v4 = vld [vmem:[#allocation2 + $0x28] sm:$0xff]  ;;  %2169 = vst.msk [vmem:[#allocation2 + $0x24] sm:$0xf] %vm439_vm0, %v2165_v62  ;;  %v874_v11 = vrot.slane %v872_v6, 5  ;;  %v1216_v56 = vrot.slane %v1214_v24, 4  ;;  %v1217_v57 = vrot.slane %v3932_v32, 5 }
  0x85   : > { %1440 = vst.msk [vmem:[#allocation2 + $0x2c] sm:$0xf] %vm439_vm0, %v3997_v49  ;;  %v1215_v49 = vsel %vm4758_vm7, %v3933_v23, %v1214_v24  ;;  %v1850_v29 = vrot.slane %v1849_v51, 4  ;;  %v2179_v59 = vsel %vm4758_vm7, %v4148_v52, %v2178_v53  ;;  %v1445_v63 = vld [vmem:[%s5187_s19] sm:$0xf] }
  0x86   : > { %v879_v16 = vor.u32 %v878_v13, %v874_v11  ;;  %v875_v22 = vsel %vm4748_vm6, %v870_v60, %v874_v11  ;;  %v1218_v0 = vsel %vm4758_vm7, %v1216_v56, %v1217_v57  ;;  %v1860_v3 = vld [vmem:[%s5187_s19] sm:$0xf]  ;;  %v1861_v6 = vld [vmem:[%s5187_s19 + $0x4] sm:$0xf]  ;;  %v4270_v11 = vld [vmem:[%s4709_s10 + $0x18] sm:$0xf] }
  0x87   : > { %888 = vst.msk [vmem:[#allocation2 + $0x38] sm:$0xf] %vm439_vm0, %v875_v22  ;;  %v1855_v1 = vsel %vm4748_vm6, %v1850_v29, %v1854_v54  ;;  %v1446_v7 = vld [vmem:[%s5187_s19 + $0x4] sm:$0xf]  ;;  %v1864_v8 = vshrl.u32 %v1860_v3, 16  ;;  %v1867_v25 = vshll.u32 %v1860_v3, 16 }
  0x88   : > { %v880_v38 = vrot.slane %v879_v16, 4  ;;  %1221 = vst.msk [vmem:[#allocation2 + $0x38] sm:$0xf] %vm439_vm0, %v1215_v49  ;;  %v1873_v9 = vshll.u32 %v1861_v6, 16  ;;  %v1877_v12 = vshrl.u32 %v1861_v6, 16  ;;  %v2645_v28 = vshrl.u32 %v4270_v11, 16 }
  0x89   : > { %1447 = vst.msk [vmem:[#allocation2 + $0x38] sm:$0xf] %vm439_vm0, %v1445_v63  ;;  %v4149_v13 = vld [vmem:[%s4709_s10 + $0x54] sm:$0xe]  ;;  %v4150_v14 = vld [vmem:[%s4709_s10 + $0x58] sm:$0xf] }
  0x8a   : > { %4048 = vmatmul.msk.bf16.gmra.mxu3 %vm549_vm3, %v5083_v18  ;;  %v1833_v18 = vshrl.u32 %v4070_v20, 16  ;;  %v5169_v43 = vld [vmem:[#allocation2 + $0x30] sm:$0xff]  ;;  %v885_v48 = vsel %vm4748_vm6, %v880_v38, %v884_v17  ;;  %v1866_v60 = vrot.slane %v1864_v8, 4  ;;  %v1869_v15 = vrot.slane %v1867_v25, 5  ;;  %v4206_v26 = vld [vmem:[%s4709_s10 + $0x18] sm:$0xf] }
  0x8b   : > { %1444 = vst.msk [vmem:[#allocation2 + $0x34] sm:$0xf] %vm439_vm0, %v3999_v19  ;;  %v1875_v16 = vrot.slane %v1873_v9, 5  ;;  %v1879_v17 = vrot.slane %v1877_v12, 4  ;;  %v4152_v20 = vrot.slane %v4149_v13, 9  ;;  %v2195_v21 = vrot.slane %v4150_v14, 5 }
  0x8c   : > { %v4455_v31 = vld [vmem:[#allocation2 + $0x28] sm:$0xff]  ;;  %v1835_v39 = vrot.slane %v1833_v18, 4  ;;  %889 = vst.msk [vmem:[#allocation2 + $0x3c] sm:$0xf] %vm439_vm0, %v885_v48  ;;  %v1870_v24 = vor.u32 %v1869_v15, %v1866_v60  ;;  %v4271_v35 = vld [vmem:[%s4709_s10 + $0x1c] sm:$0xf] }
  0x8d   : > { %1828 = vst.msk [vmem:[#allocation2 + $0x2c] sm:$0xf] %vm439_vm0, %v1824_v55  ;;  %v4151_v55 = vld [vmem:[%s4709_s10 + $0x5c] sm:$0x1]  ;;  %v1880_v18 = vor.u32 %v1879_v17, %v1875_v16  ;;  %v2196_v32 = vsel %vm4758_vm7, %v4152_v20, %v2195_v21  ;;  %v2647_v42 = vrot.slane %v2645_v28, 4  ;;  %v2648_v45 = vshll.u32 %v4270_v11, 16 }
  0x8e   : > { %v1839_v50 = vor.u32 %v1838_v40, %v1835_v39  ;;  %2185 = vst.msk [vmem:[#allocation2 + $0x28] sm:$0xf] %vm439_vm0, %v2179_v59  ;;  %v2198_v22 = vrot.slane %v4151_v55, 5  ;;  %v1871_v36 = vrot.slane %v1870_v24, 4  ;;  %v4272_v39 = vld [vmem:[%s4709_s10 + $0x20] sm:$0x1] }
  0x8f   : > { %v1881_v38 = vrot.slane %v1880_v18, 4  ;;  %2417 = vst.msk [vmem:[#allocation2] sm:$0xf] %vm439_vm0, %v4206_v26  ;;  %v2654_v46 = vshll.u32 %v4271_v35, 16  ;;  %v4207_v49 = vld [vmem:[%s4709_s10 + $0x1c] sm:$0xf] }
  0x90   : > { %v1840_v58 = vrot.slane %v1839_v50, 4  ;;  %3902 = vmatmul.msk.bf16.gmra.mxu1 %vm549_vm3, %v5095_v30  ;;  %v1876_v47 = vsel %vm4748_vm6, %v1871_v36, %v1875_v16  ;;  %v2658_v50 = vshrl.u32 %v4271_v35, 16  ;;  %v2650_v52 = vrot.slane %v2648_v45, 5  ;;  %v4273_v63 = vld [vmem:[%s4709_s10 + $0x24] sm:$0xf] }
  0x91   : > { %v2664_v56 = vshll.u32 %v4272_v39, 16  ;;  %v2676_v3 = vshrl.u32 %v4273_v63, 16  ;;  %v4341_v6 = vld [vmem:[%s4709_s10 + $0x1c] sm:$0xf]  ;;  %v2679_v8 = vshll.u32 %v4273_v63, 16 }
  0x92   : > { %4121 = vmatmul.msk.bf16.gmra.mxu0 %vm549_vm3, %v5118_v61  ;;  %v2180_v61 = vrot.slane %v2178_v53, 4  ;;  %v1845_v62 = vsel %vm4748_vm6, %v1840_v58, %v1844_v41  ;;  %3983 = vmatmul.msk.bf16.gmra.mxu2 %vm549_vm3, %v5129_v4  ;;  %v1862_v4 = vld [vmem:[%s5187_s19 + $0x8] sm:$0x1]  ;;  %v2656_v53 = vrot.slane %v2654_v46, 5  ;;  %v2651_v57 = vor.u32 %v2650_v52, %v2647_v42  ;;  %v2204_v25 = vld [vmem:[%s5187_s19] sm:$0xe] }
  0x93   : > { %1858 = vst.msk [vmem:[#allocation2 + $0x30] sm:$0xf] %vm439_vm0, %v1845_v62  ;;  %v5214_v30 = vld [vmem:[#allocation2 + $0x38] sm:$0xff]  ;;  %v1883_v19 = vshll.u32 %v1862_v4, 16  ;;  %v3091_v9 = vrot.slane %v4341_v6, 5  ;;  %v4153_v13 = vrot.slane %v2204_v25, 9 }
  0x94   : > { %v2182_v34 = vsel %vm4758_vm7, %v2180_v61, %v2181_v33  ;;  %1222 = vst.msk [vmem:[#allocation2 + $0x3c] sm:$0xf] %vm439_vm0, %v1218_v0  ;;  %v2660_v33 = vrot.slane %v2658_v50, 4  ;;  %v2652_v29 = vrot.slane %v2651_v57, 4  ;;  %v2666_v61 = vrot.slane %v2664_v56, 5 }
  0x95   : > { %v4465_v2 = vld [vmem:[#allocation2 + $0x28] sm:$0xff]  ;;  %v1885_v27 = vrot.slane %v1883_v19, 5  ;;  %v2205_v12 = vld [vmem:[%s5187_s19 + $0x4] sm:$0xf]  ;;  %v4340_v15 = vld [vmem:[%s4709_s10 + $0x18] sm:$0xe] }
  0x96   : > { %2186 = vst.msk [vmem:[#allocation2 + $0x2c] sm:$0xf] %vm439_vm0, %v2182_v34  ;;  %v5249_v48 = vld [vmem:[#allocation2] sm:$0xff]  ;;  %v2206_v11 = vld [vmem:[%s5187_s19 + $0x8] sm:$0x1]  ;;  %v2212_v14 = vrot.slane %v2205_v12, 5 }
  0x97   : > { %v1886_v54 = vsel %vm4748_vm6, %v1881_v38, %v1885_v27  ;;  %2418 = vst.msk [vmem:[#allocation2 + $0x4] sm:$0xf] %vm439_vm0, %v4207_v49  ;;  %v4274_v4 = vld [vmem:[%s4709_s10 + $0x28] sm:$0xf]  ;;  %v2215_v60 = vrot.slane %v2206_v11, 5  ;;  %v2678_v16 = vrot.slane %v2676_v3, 4 }
  0x98   : > { %v4342_v19 = vld [vmem:[%s4709_s10 + $0x20] sm:$0x1]  ;;  %v4343_v20 = vrot.slane %v4340_v15, 9  ;;  %v3093_v24 = vrot.slane %v3091_v9, 4  ;;  %v2213_v27 = vsel %vm4758_vm7, %v4153_v13, %v2212_v14  ;;  %v2685_v35 = vshll.u32 %v4274_v4, 16 }
  0x99   : > { %v3094_v18 = vrot.slane %v4342_v19, 5  ;;  %v2689_v36 = vshrl.u32 %v4274_v4, 16  ;;  %v4276_v49 = vld [vmem:[%s4709_s10 + $0x30] sm:$0xf]  ;;  %v4277_v50 = vld [vmem:[%s4709_s10 + $0x34] sm:$0xf] }
  0x9a   : > { %v5208_v5 = vld [vmem:[#allocation2 + $0x30] sm:$0xff]  ;;  %4049 = vmatmul.msk.bf16.gmra.mxu3 %vm549_vm3, %v4455_v31  ;;  %v2197_v31 = vrot.slane %v2195_v21, 4  ;;  %v2681_v21 = vrot.slane %v2679_v8, 5  ;;  %v3092_v38 = vsel %vm4758_vm7, %v4343_v20, %v3091_v9  ;;  %v2687_v42 = vrot.slane %v2685_v35, 5  ;;  %v4278_v63 = vld [vmem:[%s4709_s10 + $0x38] sm:$0x1] }
  0x9b   : > { %1859 = vst.msk [vmem:[#allocation2 + $0x34] sm:$0xf] %vm439_vm0, %v1855_v1  ;;  %v5228_v23 = vld [vmem:[#allocation2 + $0x38] sm:$0xff]  ;;  %v2691_v45 = vrot.slane %v2689_v36, 4  ;;  %v2707_v56 = vshrl.u32 %v4276_v49, 16  ;;  %v2710_v57 = vshll.u32 %v4276_v49, 16 }
  0x9c   : > { %1448 = vst.msk [vmem:[#allocation2 + $0x3c] sm:$0xf] %vm439_vm0, %v1446_v7  ;;  %v2199_v41 = vsel %vm4758_vm7, %v2197_v31, %v2198_v22  ;;  %v4208_v7 = vld [vmem:[%s4709_s10 + $0x24] sm:$0xf]  ;;  %v2214_v22 = vrot.slane %v2212_v14, 4  ;;  %v2682_v31 = vor.u32 %v2681_v21, %v2678_v16 }
  0x9d   : > { %2202 = vst.msk [vmem:[#allocation2 + $0x30] sm:$0xf] %vm439_vm0, %v2196_v32  ;;  %v593_v40 = vpop.f32.mrf.mxu1  ;;  %v4344_v8 = vld [vmem:[%s4709_s10 + $0x24] sm:$0xe] }
  0x9e   : > { %627 = vst.msk [vmem:[%s5234_s7 + $0x20] sm:$0xff] %vm549_vm3, %v593_v40  ;;  %v5275_v0 = vld [vmem:[#allocation2] sm:$0xff]  ;;  %v2216_v32 = vsel %vm4758_vm7, %v2214_v22, %v2215_v60  ;;  %v4275_v40 = vld [vmem:[%s4709_s10 + $0x2c] sm:$0x1]  ;;  %v4347_v9 = vrot.slane %v4344_v8, 9  ;;  %v2726_v60 = vshll.u32 %v4278_v63, 16 }
  0x9f   : > { %1889 = vst.msk [vmem:[#allocation2 + $0x38] sm:$0xf] %vm439_vm0, %v1876_v47  ;;  %v2695_v52 = vshll.u32 %v4275_v40, 16  ;;  %v5384_v40 = vld [vmem:[#allocation2 + $0x18] sm:$0xff] }
  0xa0   : > { %3903 = vmatmul.msk.bf16.gmra.mxu1 %vm549_vm3, %v5137_v10  ;;  %v2661_v10 = vor.u32 %v2660_v33, %v2656_v53  ;;  %2421 = vst.msk [vmem:[#allocation2 + $0x8] sm:$0xf] %vm439_vm0, %v4208_v7  ;;  %v2728_v21 = vrot.slane %v2726_v60, 5 }
  0xa1   : > { %v2697_v7 = vrot.slane %v2695_v52, 5 }
  0xa2   : > { %4122 = vmatmul.msk.bf16.gmra.mxu0 %vm549_vm3, %v4465_v2  ;;  %3984 = vmatmul.msk.bf16.gmra.mxu2 %vm549_vm3, %v5169_v43  ;;  %v2662_v59 = vrot.slane %v2661_v10, 4  ;;  %v2657_v2 = vsel %vm4748_vm6, %v2652_v29, %v2656_v53  ;;  %v2720_v10 = vshrl.u32 %v4277_v50, 16 }
  0xa3   : > { %2670 = vst.msk [vmem:[#allocation2] sm:$0xf] %vm439_vm0, %v2657_v2  ;;  %v2712_v2 = vrot.slane %v2710_v57, 5  ;;  %v4349_v57 = vld [vmem:[%s4709_s10 + $0x34] sm:$0xf] }
  0xa4   : > { %v4466_v51 = vld [vmem:[#allocation2 + $0x30] sm:$0xff]  ;;  %v2722_v3 = vrot.slane %v2720_v10, 4 }
  0xa5   : > { %2203 = vst.msk [vmem:[#allocation2 + $0x34] sm:$0xf] %vm439_vm0, %v2199_v41  ;;  %v603_v62 = vpop.f32.mrf.mxu2  ;;  %v595_v34 = vpop.f32.mrf.mxu1 }
  0xa6   : > { %v5261_v58 = vld [vmem:[#allocation2 + $0x38] sm:$0xff]  ;;  %631 = vst.msk [vmem:[%s5234_s7 + $0x40] sm:$0xff] %vm549_vm3, %v603_v62  ;;  %v4211_v62 = vld [vmem:[%s4709_s10 + $0x34] sm:$0xf] }
  0xa7   : > { %1890 = vst.msk [vmem:[#allocation2 + $0x3c] sm:$0xf] %vm439_vm0, %v1886_v54  ;;  %v613_v43 = vpop.f32.mrf.mxu3  ;;  %v5329_v33 = vld [vmem:[#allocation2 + $0x8] sm:$0xff] }
  0xa8   : > { %628 = vst.msk [vmem:[%s5234_s7 + $0x28] sm:$0xff] %vm549_vm3, %v595_v34  ;;  %v4345_v34 = vld [vmem:[%s4709_s10 + $0x28] sm:$0xf] }
  0xa9   : > { %635 = vst.msk [vmem:[%s5234_s7 + $0x60] sm:$0xff] %vm549_vm3, %v613_v43  ;;  %v2709_v43 = vrot.slane %v2707_v56, 4  ;;  %v3108_v12 = vrot.slane %v4345_v34, 5  ;;  %v4350_v34 = vld [vmem:[%s4709_s10 + $0x38] sm:$0x1] }
  0xaa   : > { %4050 = vmatmul.msk.bf16.gmra.mxu3 %vm549_vm3, %v5208_v5  ;;  %v2667_v5 = vsel %vm4748_vm6, %v2662_v59, %v2666_v61  ;;  %v2692_v59 = vor.u32 %v2691_v45, %v2687_v42  ;;  %v4210_v61 = vld [vmem:[%s4709_s10 + $0x30] sm:$0xf] }
  0xab   : > { %2671 = vst.msk [vmem:[#allocation2 + $0x4] sm:$0xf] %vm439_vm0, %v2667_v5  ;;  %v2713_v11 = vor.u32 %v2712_v2, %v2709_v43  ;;  %v3109_v16 = vsel %vm4758_vm7, %v4347_v9, %v3108_v12 }
  0xac   : > { %v2693_v25 = vrot.slane %v2692_v59, 4  ;;  %v4281_v59 = vld [vmem:[%s4709_s10 + $0x44] sm:$0x1] }
  0xad   : > { %v583_v1 = vpop.f32.mrf.mxu0  ;;  %v605_v17 = vpop.f32.mrf.mxu2 }
  0xae   : > { %623 = vst.msk [vmem:[%s5234_s7] sm:$0xff] %vm549_vm3, %v583_v1  ;;  %v598_v55 = vpop.f32.mrf.mxu1  ;;  %v4467_v39 = vld [vmem:[#allocation2 + $0x38] sm:$0xff]  ;;  %v5343_v1 = vld [vmem:[#allocation2 + $0x10] sm:$0xff]  ;;  %v2698_v22 = vsel %vm4748_vm6, %v2693_v25, %v2697_v7  ;;  %v2757_v25 = vshll.u32 %v4281_v59, 16  ;;  %v4354_v59 = vld [vmem:[%s4709_s10 + $0x44] sm:$0x1] }
  0xaf   : > { %632 = vst.msk [vmem:[%s5234_s7 + $0x48] sm:$0xff] %vm549_vm3, %v605_v17  ;;  %v615_v26 = vpop.f32.mrf.mxu3  ;;  %v2714_v17 = vrot.slane %v2713_v11, 4 }
  0xb0   : > { %629 = vst.msk [vmem:[%s5234_s7 + $0x30] sm:$0xff] %vm549_vm3, %v598_v55  ;;  %3904 = vmatmul.msk.bf16.gmra.mxu1 %vm549_vm3, %v5214_v30  ;;  %v3095_v30 = vsel %vm4758_vm7, %v3093_v24, %v3094_v18  ;;  %v4346_v18 = vld [vmem:[%s4709_s10 + $0x2c] sm:$0x1] }
  0xb1   : > { %636 = vst.msk [vmem:[%s5234_s7 + $0x68] sm:$0xff] %vm549_vm3, %v615_v26 }
  0xb2   : > { %4123 = vmatmul.msk.bf16.gmra.mxu0 %vm549_vm3, %v4466_v51  ;;  %3985 = vmatmul.msk.bf16.gmra.mxu2 %vm549_vm3, %v5228_v23  ;;  %2219 = vst.msk [vmem:[#allocation2 + $0x38] sm:$0xf] %vm439_vm0, %v2213_v27  ;;  %v5318_v41 = vld [vmem:[#allocation2] sm:$0xff]  ;;  %v2683_v23 = vrot.slane %v2682_v31, 4  ;;  %v4209_v51 = vld [vmem:[%s4709_s10 + $0x28] sm:$0xf] }
  0xb3   : > { %2220 = vst.msk [vmem:[#allocation2 + $0x3c] sm:$0xf] %vm439_vm0, %v2216_v32  ;;  %v3110_v27 = vrot.slane %v3108_v12, 4  ;;  %v3111_v32 = vrot.slane %v4346_v18, 5 }
  0xb4   : > { %3098 = vst.msk [vmem:[#allocation2] sm:$0xf] %vm439_vm0, %v3092_v38  ;;  %v2688_v29 = vsel %vm4748_vm6, %v2683_v23, %v2687_v42  ;;  %v4279_v38 = vld [vmem:[%s4709_s10 + $0x3c] sm:$0xf]  ;;  %v4213_v23 = vld [vmem:[%s4709_s10 + $0x40] sm:$0xf] }
  0xb5   : > { %v585_v28 = vpop.f32.mrf.mxu0  ;;  %v608_v46 = vpop.f32.mrf.mxu2  ;;  %3099 = vst.msk [vmem:[#allocation2 + $0x4] sm:$0xf] %vm439_vm0, %v3095_v30  ;;  %v1036_v6 = vld [vmem:[%s5234_s7] sm:$0xff]  ;;  %v2738_v42 = vshrl.u32 %v4279_v38, 16  ;;  %v2741_v49 = vshll.u32 %v4279_v38, 16  ;;  %v3112_v52 = vsel %vm4758_vm7, %v3110_v27, %v3111_v32 }
  0xb6   : > { %624 = vst.msk [vmem:[%s5234_s7 + $0x8] sm:$0xff] %vm549_vm3, %v585_v28  ;;  %v600_v47 = vpop.f32.mrf.mxu1  ;;  %v4283_v27 = vld [vmem:[%s4709_s10 + $0x4c] sm:$0xf] }
  0xb7   : > { %633 = vst.msk [vmem:[%s5234_s7 + $0x50] sm:$0xff] %vm549_vm3, %v608_v46  ;;  %v618_v53 = vpop.f32.mrf.mxu3 }
  0xb8   : > { %630 = vst.msk [vmem:[%s5234_s7 + $0x38] sm:$0xff] %vm549_vm3, %v600_v47 }
  0xb9   : > { %637 = vst.msk [vmem:[%s5234_s7 + $0x70] sm:$0xff] %vm549_vm3, %v618_v53  ;;  %v2740_v53 = vrot.slane %v2738_v42, 4  ;;  %v2778_v42 = vshll.u32 %v4283_v27, 16 }
  0xba   : > { %4051 = vmatmul.msk.bf16.gmra.mxu3 %vm549_vm3, %v5261_v58  ;;  %v2716_v58 = vshll.u32 %v4277_v50, 16  ;;  %2422 = vst.msk [vmem:[#allocation2 + $0xc] sm:$0xf] %vm439_vm0, %v4209_v51 }
  0xbb   : > { %2701 = vst.msk [vmem:[#allocation2 + $0x8] sm:$0xf] %vm439_vm0, %v2688_v29  ;;  %v3125_v29 = vrot.slane %v4349_v57, 5  ;;  %v2780_v57 = vrot.slane %v2778_v42, 5 }
  0xbc   : > { %v2718_v5 = vrot.slane %v2716_v58, 5  ;;  %2425 = vst.msk [vmem:[#allocation2 + $0x10] sm:$0xf] %vm439_vm0, %v4210_v61  ;;  %v4500_v31 = vld [vmem:[#allocation2] sm:$0xff]  ;;  %v2743_v58 = vrot.slane %v2741_v49, 5 }
  0xbd   : > { %v588_v54 = vpop.f32.mrf.mxu0  ;;  %v610_v4 = vpop.f32.mrf.mxu2  ;;  %2426 = vst.msk [vmem:[#allocation2 + $0x14] sm:$0xf] %vm439_vm0, %v4211_v62  ;;  %v1037_v28 = vld [vmem:[%s5234_s7 + $0x8] sm:$0xff]  ;;  %v4348_v62 = vld [vmem:[%s4709_s10 + $0x30] sm:$0xe]  ;;  %v3127_v2 = vrot.slane %v3125_v29, 4 }
  0xbe   : > { %625 = vst.msk [vmem:[%s5234_s7 + $0x10] sm:$0xff] %vm549_vm3, %v588_v54  ;;  %v996_v13 = vpop.f32.mrf.mxu1  ;;  %v2723_v14 = vor.u32 %v2722_v3, %v2718_v5  ;;  %v2719_v26 = vsel %vm4748_vm6, %v2714_v17, %v2718_v5  ;;  %v2744_v63 = vor.u32 %v2743_v58, %v2740_v53  ;;  %v4351_v43 = vrot.slane %v4348_v62, 9 }
  0xbf   : > { %634 = vst.msk [vmem:[%s5234_s7 + $0x58] sm:$0xff] %vm549_vm3, %v610_v4  ;;  %v1052_v15 = vadd.f32 %v1036_v6, %v996_v13  ;;  %v620_v55 = vpop.f32.mrf.mxu3  ;;  %v3128_v5 = vrot.slane %v4350_v34, 5 }
  0xc0   : > { %3115 = vst.msk [vmem:[#allocation2 + $0x8] sm:$0xf] %vm439_vm0, %v3109_v16  ;;  %v2724_v20 = vrot.slane %v2723_v14, 4  ;;  %4198 = vmatmul.msk.bf16.vlgmr.msra.gmra.mxu1 %vm549_vm3, %v5249_v48  ;;  %v2745_v8 = vrot.slane %v2744_v63, 4  ;;  %v3126_v12 = vsel %vm4758_vm7, %v4351_v43, %v3125_v29  ;;  %v4352_v29 = vld [vmem:[%s4709_s10 + $0x3c] sm:$0xe] }
  0xc1   : > { %1068 = vst.msk [vmem:[%s5234_s7] sm:$0xff] %vm549_vm3, %v1052_v15  ;;  %v3129_v11 = vsel %vm4758_vm7, %v3127_v2, %v3128_v5  ;;  %v2759_v15 = vrot.slane %v2757_v25, 5  ;;  %v4355_v63 = vrot.slane %v4352_v29, 9  ;;  %v3145_v2 = vrot.slane %v4354_v59, 5  ;;  %v1042_v59 = vld [vmem:[%s5234_s7 + $0x30] sm:$0xff] }
  0xc2   : > { %4124 = vmatmul.msk.bf16.gmra.mxu0 %vm549_vm3, %v4467_v39  ;;  %638 = vst.msk [vmem:[%s5234_s7 + $0x78] sm:$0xff] %vm549_vm3, %v620_v55  ;;  %4262 = vmatmul.msk.bf16.vlgmr.msra.gmra.mxu2 %vm549_vm3, %v5275_v0  ;;  %v2729_v48 = vsel %vm4748_vm6, %v2724_v20, %v2728_v21  ;;  %v4280_v39 = vld [vmem:[%s4709_s10 + $0x40] sm:$0xf] }
  0xc3   : > { %v2747_v50 = vshll.u32 %v4280_v39, 16  ;;  %v2751_v54 = vshrl.u32 %v4280_v39, 16  ;;  %2430 = vst.msk [vmem:[#allocation2 + $0x1c] sm:$0xf] %vm439_vm0, %v4213_v23 }
  0xc4   : > { %v5378_v35 = vld [vmem:[#allocation2 + $0x10] sm:$0xff] }
  0xc5   : > { %v590_v19 = vpop.f32.mrf.mxu0  ;;  %2732 = vst.msk [vmem:[#allocation2 + $0x10] sm:$0xf] %vm439_vm0, %v2719_v26  ;;  %v1329_v0 = vpop.f32.mrf.mxu2  ;;  %v1038_v56 = vld [vmem:[%s5234_s7 + $0x10] sm:$0xff]  ;;  %v2749_v61 = vrot.slane %v2747_v50, 5  ;;  %v2753_v3 = vrot.slane %v2751_v54, 4 }
  0xc6   : > { %626 = vst.msk [vmem:[%s5234_s7 + $0x18] sm:$0xff] %vm549_vm3, %v590_v19  ;;  %v998_v36 = vpop.f32.mrf.mxu1 }
  0xc7   : > { %v5363_v24 = vld [vmem:[#allocation2 + $0x8] sm:$0xff]  ;;  %2733 = vst.msk [vmem:[#allocation2 + $0x14] sm:$0xf] %vm439_vm0, %v2729_v48  ;;  %v1053_v30 = vadd.f32 %v1037_v28, %v998_v36  ;;  %v2754_v4 = vor.u32 %v2753_v3, %v2749_v61  ;;  %v2750_v55 = vsel %vm4748_vm6, %v2745_v8, %v2749_v61 }
  0xc8   : > { %2702 = vst.msk [vmem:[#allocation2 + $0xc] sm:$0xf] %vm439_vm0, %v2698_v22  ;;  %v1369_v45 = vld [vmem:[%s5234_s7] sm:$0xff]  ;;  %v4215_v36 = vld [vmem:[%s4709_s10 + $0x4c] sm:$0xf] }
  0xc9   : > { %v1385_v51 = vadd.f32 %v1369_v45, %v1329_v0  ;;  %1069 = vst.msk [vmem:[%s5234_s7 + $0x8] sm:$0xff] %vm549_vm3, %v1053_v30  ;;  %v2755_v19 = vrot.slane %v2754_v4, 4  ;;  %v4214_v0 = vld [vmem:[%s4709_s10 + $0x48] sm:$0xf]  ;;  %v2782_v45 = vshrl.u32 %v4283_v27, 16 }
  0xca   : > { %4332 = vmatmul.msk.bf16.vlgmr.msra.gmra.mxu3 %vm549_vm3, %v5318_v41  ;;  %v4212_v41 = vld [vmem:[%s4709_s10 + $0x3c] sm:$0xf]  ;;  %3132 = vst.msk [vmem:[#allocation2 + $0x10] sm:$0xf] %vm439_vm0, %v3126_v12 }
  0xcb   : > { %2429 = vst.msk [vmem:[#allocation2 + $0x18] sm:$0xf] %vm439_vm0, %v4212_v41  ;;  %v2760_v22 = vsel %vm4748_vm6, %v2755_v19, %v2759_v15  ;;  %v2784_v58 = vrot.slane %v2782_v45, 4 }
  0xcc   : > { %1401 = vst.msk [vmem:[%s5234_s7] sm:$0xff] %vm549_vm3, %v1385_v51  ;;  %v4353_v51 = vld [vmem:[%s4709_s10 + $0x40] sm:$0xf] }
  0xcd   : > { %v1555_v46 = vpop.f32.mrf.mxu3  ;;  %v1331_v6 = vpop.f32.mrf.mxu2  ;;  %v1039_v18 = vld [vmem:[%s5234_s7 + $0x18] sm:$0xff]  ;;  %v3142_v54 = vrot.slane %v4353_v51, 5  ;;  %v2785_v8 = vor.u32 %v2784_v58, %v2780_v57 }
  0xce   : > { %v1001_v7 = vpop.f32.mrf.mxu1 }
  0xcf   : > { %v5389_v47 = vpop.f32.mrf.mxu0  ;;  %v4491_v10 = vld [vmem:[#allocation2 + $0x8] sm:$0xff]  ;;  %v1054_v9 = vadd.f32 %v1038_v56, %v1001_v7  ;;  %v4284_v56 = vld [vmem:[%s4709_s10 + $0x50] sm:$0x1]  ;;  %v3144_v43 = vrot.slane %v3142_v54, 4 }
  0xd0   : > { %3116 = vst.msk [vmem:[#allocation2 + $0xc] sm:$0xf] %vm439_vm0, %v3112_v52  ;;  %v1370_v13 = vld [vmem:[%s5234_s7 + $0x8] sm:$0xff]  ;;  %4199 = vmatmul.msk.bf16.gmra.mxu1 %vm549_vm3, %v5329_v33  ;;  %v2788_v62 = vshll.u32 %v4284_v56, 16 }
  0xd1   : > { %v1386_v16 = vadd.f32 %v1370_v13, %v1331_v6  ;;  %1070 = vst.msk [vmem:[%s5234_s7 + $0x10] sm:$0xff] %vm549_vm3, %v1054_v9  ;;  %v5418_v17 = vld [vmem:[#allocation2 + $0x10] sm:$0xff]  ;;  %v1040_v6 = vld [vmem:[%s5234_s7 + $0x20] sm:$0xff]  ;;  %v3143_v9 = vsel %vm4758_vm7, %v4355_v63, %v3142_v54  ;;  %v4357_v56 = vld [vmem:[%s4709_s10 + $0x4c] sm:$0xf] }
  0xd2   : > { %4410 = vmatmul.msk.bf16.vlgmr.msra.gmra.mxu0 %vm549_vm3, %v4500_v31  ;;  %3133 = vst.msk [vmem:[#allocation2 + $0x14] sm:$0xf] %vm439_vm0, %v3129_v11  ;;  %4263 = vmatmul.msk.bf16.gmra.mxu2 %vm549_vm3, %v5363_v24  ;;  %v5428_v33 = vld [vmem:[#allocation2 + $0x18] sm:$0xff]  ;;  %v4282_v24 = vld [vmem:[%s4709_s10 + $0x48] sm:$0xf]  ;;  %v5440_v31 = vld [vmem:[#allocation2 + $0x20] sm:$0xff] }
  0xd3   : > { %v1595_v20 = vld [vmem:[%s5234_s7] sm:$0xff]  ;;  %1402 = vst.msk [vmem:[%s5234_s7 + $0x8] sm:$0xff] %vm549_vm3, %v1386_v16  ;;  %v2769_v38 = vshrl.u32 %v4282_v24, 16  ;;  %v2772_v23 = vshll.u32 %v4282_v24, 16  ;;  %v2790_v12 = vrot.slane %v2788_v62, 5 }
  0xd4   : > { %v1611_v21 = vadd.f32 %v1595_v20, %v1555_v46  ;;  %2763 = vst.msk [vmem:[#allocation2 + $0x18] sm:$0xf] %vm439_vm0, %v2750_v55 }
  0xd5   : > { %v1557_v14 = vpop.f32.mrf.mxu3  ;;  %v1334_v48 = vpop.f32.mrf.mxu2  ;;  %2764 = vst.msk [vmem:[#allocation2 + $0x1c] sm:$0xf] %vm439_vm0, %v2760_v22  ;;  %v2771_v49 = vrot.slane %v2769_v38, 4  ;;  %v2774_v52 = vrot.slane %v2772_v23, 5 }
  0xd6   : > { %1627 = vst.msk [vmem:[%s5234_s7] sm:$0xff] %vm549_vm3, %v1611_v21  ;;  %v1003_v28 = vpop.f32.mrf.mxu1 }
  0xd7   : > { %v5411_v60 = vpop.f32.mrf.mxu0  ;;  %v4501_v26 = vld [vmem:[#allocation2 + $0x8] sm:$0xff]  ;;  %v1055_v32 = vadd.f32 %v1039_v18, %v1003_v28  ;;  %2433 = vst.msk [vmem:[#allocation2 + $0x20] sm:$0xf] %vm439_vm0, %v4214_v0  ;;  %v2775_v61 = vor.u32 %v2774_v52, %v2771_v49  ;;  %v4217_v49 = vld [vmem:[%s4709_s10 + $0x58] sm:$0xf] }
  0xd8   : > { %v1371_v39 = vld [vmem:[%s5234_s7 + $0x10] sm:$0xff]  ;;  %2434 = vst.msk [vmem:[#allocation2 + $0x24] sm:$0xf] %vm439_vm0, %v4215_v36  ;;  %v4286_v36 = vld [vmem:[%s4709_s10 + $0x58] sm:$0xf] }
  0xd9   : > { %v1387_v46 = vadd.f32 %v1371_v39, %v1334_v48  ;;  %1071 = vst.msk [vmem:[%s5234_s7 + $0x18] sm:$0xff] %vm549_vm3, %v1055_v32  ;;  %v2776_v7 = vrot.slane %v2775_v61, 4  ;;  %v1041_v48 = vld [vmem:[%s5234_s7 + $0x28] sm:$0xff]  ;;  %v4502_v24 = vld [vmem:[#allocation2 + $0x10] sm:$0xff]  ;;  %v2809_v42 = vshll.u32 %v4286_v36, 16  ;;  %v3159_v61 = vrot.slane %v4357_v56, 5 }
  0xda   : > { %4333 = vmatmul.msk.bf16.gmra.mxu3 %vm549_vm3, %v4491_v10  ;;  %v1596_v50 = vld [vmem:[%s5234_s7 + $0x8] sm:$0xff]  ;;  %3149 = vst.msk [vmem:[#allocation2 + $0x18] sm:$0xf] %vm439_vm0, %v3143_v9 }
  0xdb   : > { %v1612_v53 = vadd.f32 %v1596_v50, %v1557_v14  ;;  %1403 = vst.msk [vmem:[%s5234_s7 + $0x10] sm:$0xff] %vm549_vm3, %v1387_v46  ;;  %v2786_v14 = vrot.slane %v2785_v8, 4  ;;  %v2781_v55 = vsel %vm4748_vm6, %v2776_v7, %v2780_v57  ;;  %v5511_v39 = vld [vmem:[#allocation2 + $0x28] sm:$0xff]  ;;  %v4216_v46 = vld [vmem:[%s4709_s10 + $0x54] sm:$0xf]  ;;  %v2813_v50 = vshrl.u32 %v4286_v36, 16 }
  0xdc   : > { %2437 = vst.msk [vmem:[#allocation2 + $0x28] sm:$0xf] %vm439_vm0, %v4216_v46  ;;  %v4287_v57 = vld [vmem:[%s4709_s10 + $0x5c] sm:$0x1]  ;;  %v2811_v58 = vrot.slane %v2809_v42, 5  ;;  %v3161_v8 = vrot.slane %v3159_v61, 4 }
  0xdd   : > { %v1560_v30 = vpop.f32.mrf.mxu3  ;;  %v2037_v10 = vld [vmem:[%s5234_s7] sm:$0xff]  ;;  %1628 = vst.msk [vmem:[%s5234_s7 + $0x8] sm:$0xff] %vm549_vm3, %v1612_v53  ;;  %v1336_v5 = vpop.f32.mrf.mxu2  ;;  %v2829_v56 = vld [vmem:[%s5187_s19 + $0x8] sm:$0x1] }
  0xde   : > { %v2053_v34 = vadd.f32 %v2037_v10, %v5389_v47  ;;  %v1006_v3 = vpop.f32.mrf.mxu1  ;;  %v3146_v47 = vsel %vm4758_vm7, %v3144_v43, %v3145_v2  ;;  %2438 = vst.msk [vmem:[#allocation2 + $0x2c] sm:$0xf] %vm439_vm0, %v4217_v49  ;;  %v4356_v43 = vld [vmem:[%s4709_s10 + $0x48] sm:$0xe]  ;;  %v2819_v2 = vshll.u32 %v4287_v57, 16 }
  0xdf   : > { %v5445_v41 = vpop.f32.mrf.mxu0  ;;  %v1056_v25 = vadd.f32 %v1040_v6, %v1006_v3  ;;  %v5488_v21 = vld [vmem:[#allocation2 + $0x20] sm:$0xff]  ;;  %v4359_v7 = vrot.slane %v4356_v43, 9 }
  0xe0   : > { %2069 = vst.msk [vmem:[%s5234_s7] sm:$0xff] %vm549_vm3, %v2053_v34  ;;  %v1372_v11 = vld [vmem:[%s5234_s7 + $0x18] sm:$0xff]  ;;  %4200 = vmatmul.msk.bf16.gmra.mxu1 %vm549_vm3, %v5343_v1  ;;  %v2791_v1 = vsel %vm4748_vm6, %v2786_v14, %v2790_v12  ;;  %v2815_v34 = vrot.slane %v2813_v50, 4  ;;  %v2440_v42 = vld [vmem:[%s5187_s19 + $0x4] sm:$0xf] }
  0xe1   : > { %v1388_v15 = vadd.f32 %v1372_v11, %v1336_v5  ;;  %1072 = vst.msk [vmem:[%s5234_s7 + $0x20] sm:$0xff] %vm549_vm3, %v1056_v25  ;;  %v5478_v16 = vld [vmem:[#allocation2 + $0x18] sm:$0xff] }
  0xe2   : > { %4411 = vmatmul.msk.bf16.gmra.mxu0 %vm549_vm3, %v4501_v26  ;;  %v1597_v19 = vld [vmem:[%s5234_s7 + $0x10] sm:$0xff]  ;;  %3150 = vst.msk [vmem:[#allocation2 + $0x1c] sm:$0xf] %vm439_vm0, %v3146_v47  ;;  %4264 = vmatmul.msk.bf16.gmra.mxu2 %vm549_vm3, %v5378_v35  ;;  %v2816_v12 = vor.u32 %v2815_v34, %v2811_v58 }
  0xe3   : > { %v1613_v20 = vadd.f32 %v1597_v19, %v1560_v30  ;;  %1404 = vst.msk [vmem:[%s5234_s7 + $0x18] sm:$0xff] %vm549_vm3, %v1388_v15  ;;  %v4360_v34 = vld [vmem:[%s4709_s10 + $0x54] sm:$0xe] }
  0xe4   : > { %v2038_v22 = vld [vmem:[%s5234_s7 + $0x8] sm:$0xff]  ;;  %2794 = vst.msk [vmem:[#allocation2 + $0x20] sm:$0xf] %vm439_vm0, %v2781_v55  ;;  %v2817_v55 = vrot.slane %v2816_v12, 4 }
  0xe5   : > { %v1562_v4 = vpop.f32.mrf.mxu3  ;;  %1629 = vst.msk [vmem:[%s5234_s7 + $0x10] sm:$0xff] %vm549_vm3, %v1613_v20  ;;  %v2054_v18 = vadd.f32 %v2038_v22, %v5411_v60  ;;  %v1339_v35 = vpop.f32.mrf.mxu2 }
  0xe6   : > { %v1008_v26 = vpop.f32.mrf.mxu1  ;;  %2795 = vst.msk [vmem:[#allocation2 + $0x24] sm:$0xf] %vm439_vm0, %v2791_v1 }
  0xe7   : > { %v5471_v13 = vpop.f32.mrf.mxu0  ;;  %2070 = vst.msk [vmem:[%s5234_s7 + $0x8] sm:$0xff] %vm549_vm3, %v2054_v18  ;;  %v1057_v28 = vadd.f32 %v1041_v48, %v1008_v26  ;;  %v5569_v26 = vld [vmem:[#allocation2 + $0x28] sm:$0xff] }
  0xe8   : > { %v1373_v27 = vld [vmem:[%s5234_s7 + $0x20] sm:$0xff] }
  0xe9   : > { %v1389_v60 = vadd.f32 %v1373_v27, %v1339_v35  ;;  %1073 = vst.msk [vmem:[%s5234_s7 + $0x28] sm:$0xff] %vm549_vm3, %v1057_v28  ;;  %v1043_v35 = vld [vmem:[%s5234_s7 + $0x38] sm:$0xff] }
  0xea   : > { %4334 = vmatmul.msk.bf16.gmra.mxu3 %vm549_vm3, %v5418_v17  ;;  %v4285_v17 = vld [vmem:[%s4709_s10 + $0x54] sm:$0xf]  ;;  %v1598_v38 = vld [vmem:[%s5234_s7 + $0x18] sm:$0xff] }
  0xeb   : > { %v2800_v30 = vshrl.u32 %v4285_v17, 16  ;;  %v2803_v23 = vshll.u32 %v4285_v17, 16  ;;  %v1614_v45 = vadd.f32 %v1598_v38, %v1562_v4  ;;  %1405 = vst.msk [vmem:[%s5234_s7 + $0x20] sm:$0xff] %vm549_vm3, %v1389_v60  ;;  %v3160_v4 = vsel %vm4758_vm7, %v4359_v7, %v3159_v61  ;;  %v2827_v60 = vld [vmem:[%s5187_s19] sm:$0xf]  ;;  %v5589_v38 = vld [vmem:[#allocation2 + $0x30] sm:$0xff] }
  0xec   : > { %v2039_v51 = vld [vmem:[%s5234_s7 + $0x10] sm:$0xff]  ;;  %3166 = vst.msk [vmem:[#allocation2 + $0x20] sm:$0xf] %vm439_vm0, %v3160_v4  ;;  %v2828_v17 = vld [vmem:[%s5187_s19 + $0x4] sm:$0xf]  ;;  %v2834_v46 = vshll.u32 %v2827_v60, 16 }
  0xed   : > { %v1565_v32 = vpop.f32.mrf.mxu3  ;;  %v2802_v52 = vrot.slane %v2800_v30, 4  ;;  %v2805_v53 = vrot.slane %v2803_v23, 5  ;;  %1630 = vst.msk [vmem:[%s5234_s7 + $0x18] sm:$0xff] %vm549_vm3, %v1614_v45  ;;  %v2055_v54 = vadd.f32 %v2039_v51, %v5445_v41  ;;  %v1341_v10 = vpop.f32.mrf.mxu2  ;;  %v4358_v41 = vld [vmem:[%s4709_s10 + $0x50] sm:$0x1]  ;;  %v2831_v45 = vshrl.u32 %v2827_v60, 16 }
  0xee   : > { %v1011_v29 = vpop.f32.mrf.mxu1  ;;  %v3162_v25 = vrot.slane %v4358_v41, 5  ;;  %v2439_v30 = vld [vmem:[%s5187_s19] sm:$0xf]  ;;  %v2840_v49 = vshll.u32 %v2828_v17, 16  ;;  %v2844_v51 = vshrl.u32 %v2828_v17, 16 }
  0xef   : > { %v5504_v0 = vpop.f32.mrf.mxu0  ;;  %v2806_v62 = vor.u32 %v2805_v53, %v2802_v52  ;;  %2071 = vst.msk [vmem:[%s5234_s7 + $0x10] sm:$0xff] %vm549_vm3, %v2055_v54  ;;  %v1058_v63 = vadd.f32 %v1042_v59, %v1011_v29  ;;  %v1044_v53 = vld [vmem:[%s5234_s7 + $0x40] sm:$0xff]  ;;  %v4361_v54 = vld [vmem:[%s4709_s10 + $0x58] sm:$0xf]  ;;  %v2833_v29 = vrot.slane %v2831_v45, 4  ;;  %v2836_v59 = vrot.slane %v2834_v46, 5 }
  0xf0   : > { %v1374_v5 = vld [vmem:[%s5234_s7 + $0x28] sm:$0xff]  ;;  %4201 = vmatmul.msk.bf16.gmra.mxu1 %vm549_vm3, %v5384_v40  ;;  %v3163_v15 = vsel %vm4758_vm7, %v3161_v8, %v3162_v25  ;;  %v2821_v40 = vrot.slane %v2819_v2, 5  ;;  %2441 = vst.msk [vmem:[#allocation2 + $0x30] sm:$0xf] %vm439_vm0, %v2439_v30  ;;  %v2842_v61 = vrot.slane %v2840_v49, 5 }
  0xf1   : > { %v1390_v9 = vadd.f32 %v1374_v5, %v1341_v10  ;;  %1074 = vst.msk [vmem:[%s5234_s7 + $0x30] sm:$0xff] %vm549_vm3, %v1058_v63  ;;  %v2807_v47 = vrot.slane %v2806_v62, 4  ;;  %v3176_v10 = vrot.slane %v4361_v54, 5  ;;  %v2846_v63 = vrot.slane %v2844_v51, 4  ;;  %v2859_v60 = vld [vmem:[%s5643_s15 + $0x4] sm:$0xf] }
  0xf2   : > { %4412 = vmatmul.msk.bf16.gmra.mxu0 %vm549_vm3, %v4502_v24  ;;  %v1599_v11 = vld [vmem:[%s5234_s7 + $0x20] sm:$0xff]  ;;  %4265 = vmatmul.msk.bf16.gmra.mxu2 %vm549_vm3, %v5428_v33  ;;  %v2822_v48 = vsel %vm4748_vm6, %v2817_v55, %v2821_v40  ;;  %2442 = vst.msk [vmem:[#allocation2 + $0x34] sm:$0xf] %vm439_vm0, %v2440_v42  ;;  %v4363_v5 = vrot.slane %v4360_v34, 9  ;;  %v2837_v8 = vor.u32 %v2836_v59, %v2833_v29  ;;  %v2871_v49 = vshll.u32 %v2859_v60, 16 }
  0xf3   : > { %v1615_v14 = vadd.f32 %v1599_v11, %v1565_v32  ;;  %1406 = vst.msk [vmem:[%s5234_s7 + $0x28] sm:$0xff] %vm549_vm3, %v1390_v9  ;;  %v5561_v33 = vld [vmem:[#allocation2 + $0x20] sm:$0xff]  ;;  %v2812_v1 = vsel %vm4748_vm6, %v2807_v47, %v2811_v58  ;;  %v2847_v9 = vor.u32 %v2846_v63, %v2842_v61  ;;  %v2850_v47 = vshll.u32 %v2829_v56, 16  ;;  %v2860_v56 = vld [vmem:[%s5643_s15 + $0x8] sm:$0x1] }
  0xf4   : > { %v2040_v19 = vld [vmem:[%s5234_s7 + $0x18] sm:$0xff]  ;;  %3167 = vst.msk [vmem:[#allocation2 + $0x24] sm:$0xf] %vm439_vm0, %v3163_v15  ;;  %v3177_v11 = vsel %vm4758_vm7, %v4363_v5, %v3176_v10  ;;  %v2838_v4 = vrot.slane %v2837_v8, 4  ;;  %v2443_v30 = vld [vmem:[%s5643_s15] sm:$0xf] }
  0xf5   : > { %v1567_v3 = vpop.f32.mrf.mxu3  ;;  %1631 = vst.msk [vmem:[%s5234_s7 + $0x20] sm:$0xff] %vm549_vm3, %v1615_v14  ;;  %v2056_v20 = vadd.f32 %v2040_v19, %v5471_v13  ;;  %v1344_v22 = vpop.f32.mrf.mxu2  ;;  %v2848_v55 = vrot.slane %v2847_v9, 4  ;;  %v2444_v42 = vld [vmem:[%s5643_s15 + $0x4] sm:$0xf]  ;;  %v2875_v51 = vshrl.u32 %v2859_v60, 16 }
  0xf6   : > { %v1013_v18 = vpop.f32.mrf.mxu1  ;;  %2825 = vst.msk [vmem:[#allocation2 + $0x28] sm:$0xf] %vm439_vm0, %v2812_v1  ;;  %v3186_v54 = vld [vmem:[%s5187_s19 + $0x4] sm:$0xf]  ;;  %v3185_v34 = vld [vmem:[%s5187_s19] sm:$0xe] }
  0xf7   : > { %v5532_v6 = vpop.f32.mrf.mxu0  ;;  %2072 = vst.msk [vmem:[%s5234_s7 + $0x18] sm:$0xff] %vm549_vm3, %v2056_v20  ;;  %v1059_v13 = vadd.f32 %v1043_v35, %v1013_v18  ;;  %v1045_v18 = vld [vmem:[%s5234_s7 + $0x48] sm:$0xff]  ;;  %v4364_v5 = vrot.slane %v3185_v34, 9 }
  0xf8   : > { %v1375_v28 = vld [vmem:[%s5234_s7 + $0x30] sm:$0xff]  ;;  %2826 = vst.msk [vmem:[#allocation2 + $0x2c] sm:$0xf] %vm439_vm0, %v2822_v48 }
  0xf9   : > { %v1391_v32 = vadd.f32 %v1375_v28, %v1344_v22  ;;  %1075 = vst.msk [vmem:[%s5234_s7 + $0x38] sm:$0xff] %vm549_vm3, %v1059_v13  ;;  %v5647_v35 = vld [vmem:[#allocation2 + $0x30] sm:$0xff] }
  0xfa   : > { %4335 = vmatmul.msk.bf16.gmra.mxu3 %vm549_vm3, %v5478_v16  ;;  %v4503_v16 = vld [vmem:[#allocation2 + $0x18] sm:$0xff]  ;;  %v1600_v36 = vld [vmem:[%s5234_s7 + $0x28] sm:$0xff]  ;;  %3183 = vst.msk [vmem:[#allocation2 + $0x28] sm:$0xf] %vm439_vm0, %v3177_v11 }
  0xfb   : > { %v1616_v23 = vadd.f32 %v1600_v36, %v1567_v3  ;;  %1407 = vst.msk [vmem:[%s5234_s7 + $0x30] sm:$0xff] %vm549_vm3, %v1391_v32  ;;  %v3178_v3 = vrot.slane %v3176_v10, 4  ;;  %v2858_v32 = vld [vmem:[%s5643_s15] sm:$0xf]  ;;  %v5661_v36 = vld [vmem:[#allocation2 + $0x38] sm:$0xff]  ;;  %v3193_v10 = vrot.slane %v3186_v54, 5 }
  0xfc   : > { %v2041_v50 = vld [vmem:[%s5234_s7 + $0x20] sm:$0xff]  ;;  %v2862_v45 = vshrl.u32 %v2858_v32, 16  ;;  %v2865_v46 = vshll.u32 %v2858_v32, 16  ;;  %2445 = vst.msk [vmem:[#allocation2 + $0x38] sm:$0xf] %vm439_vm0, %v2443_v30 }
  0xfd   : > { %v1570_v24 = vpop.f32.mrf.mxu3  ;;  %1632 = vst.msk [vmem:[%s5234_s7 + $0x28] sm:$0xff] %vm549_vm3, %v1616_v23  ;;  %v2057_v52 = vadd.f32 %v2041_v50, %v5504_v0  ;;  %v1346_v57 = vpop.f32.mrf.mxu2  ;;  %v4362_v0 = vld [vmem:[%s4709_s10 + $0x5c] sm:$0x1]  ;;  %v3194_v11 = vsel %vm4758_vm7, %v4364_v5, %v3193_v10 }
  0xfe   : > { %v1016_v58 = vpop.f32.mrf.mxu1  ;;  %v3179_v7 = vrot.slane %v4362_v0, 5  ;;  %2446 = vst.msk [vmem:[#allocation2 + $0x3c] sm:$0xf] %vm439_vm0, %v2444_v42  ;;  %v2864_v29 = vrot.slane %v2862_v45, 4  ;;  %v2867_v59 = vrot.slane %v2865_v46, 5  ;;  %v1048_v42 = vld [vmem:[%s5234_s7 + $0x60] sm:$0xff] }
  0xff   : > { %v5574_v27 = vpop.f32.mrf.mxu0  ;;  %2073 = vst.msk [vmem:[%s5234_s7 + $0x20] sm:$0xff] %vm549_vm3, %v2057_v52  ;;  %v1060_v62 = vadd.f32 %v1044_v53, %v1016_v58  ;;  %v1046_v53 = vld [vmem:[%s5234_s7 + $0x50] sm:$0xff]  ;;  %v3187_v0 = vld [vmem:[%s5187_s19 + $0x8] sm:$0x1] }
 0x100   : > { %v1376_v43 = vld [vmem:[%s5234_s7 + $0x38] sm:$0xff]  ;;  %4202 = vmatmul.msk.bf16.gmra.mxu1 %vm549_vm3, %v5440_v31  ;;  %v3180_v15 = vsel %vm4758_vm7, %v3178_v3, %v3179_v7  ;;  %v2852_v31 = vrot.slane %v2850_v47, 5  ;;  %v3195_v3 = vrot.slane %v3193_v10, 4  ;;  %v3196_v7 = vrot.slane %v3187_v0, 5 }
 0x101   : > { %v1392_v25 = vadd.f32 %v1376_v43, %v1346_v57  ;;  %1076 = vst.msk [vmem:[%s5234_s7 + $0x40] sm:$0xff] %vm549_vm3, %v1060_v62  ;;  %v5634_v20 = vld [vmem:[#allocation2 + $0x28] sm:$0xff]  ;;  %v2868_v8 = vor.u32 %v2867_v59, %v2864_v29  ;;  %v2881_v47 = vshll.u32 %v2860_v56, 16 }
 0x102   : > { %4413 = vmatmul.msk.bf16.gmra.mxu0 %vm549_vm3, %v4503_v16  ;;  %v1601_v12 = vld [vmem:[%s5234_s7 + $0x30] sm:$0xff]  ;;  %4266 = vmatmul.msk.bf16.gmra.mxu2 %vm549_vm3, %v5488_v21  ;;  %v2843_v21 = vsel %vm4748_vm6, %v2838_v4, %v2842_v61  ;;  %3184 = vst.msk [vmem:[#allocation2 + $0x2c] sm:$0xf] %vm439_vm0, %v3180_v15  ;;  %v2853_v13 = vsel %vm4748_vm6, %v2848_v55, %v2852_v31  ;;  %v2873_v61 = vrot.slane %v2871_v49, 5  ;;  %v3202_v49 = vld [vmem:[%s5643_s15] sm:$0xe] }
 0x103   : > { %v1617_v14 = vadd.f32 %v1601_v12, %v1570_v24  ;;  %1408 = vst.msk [vmem:[%s5234_s7 + $0x38] sm:$0xff] %vm549_vm3, %v1392_v25  ;;  %v2869_v4 = vrot.slane %v2868_v8, 4  ;;  %v3197_v15 = vsel %vm4758_vm7, %v3195_v3, %v3196_v7  ;;  %v4365_v54 = vrot.slane %v3202_v49, 9 }
 0x104   : > { %v2042_v40 = vld [vmem:[%s5234_s7 + $0x28] sm:$0xff]  ;;  %2856 = vst.msk [vmem:[#allocation2 + $0x30] sm:$0xf] %vm439_vm0, %v2843_v21 }
 0x105   : > { %v1572_v41 = vpop.f32.mrf.mxu3  ;;  %1633 = vst.msk [vmem:[%s5234_s7 + $0x30] sm:$0xff] %vm549_vm3, %v1617_v14  ;;  %v2058_v19 = vadd.f32 %v2042_v40, %v5532_v6  ;;  %v1349_v1 = vpop.f32.mrf.mxu2 }
 0x106   : > { %v1018_v22 = vpop.f32.mrf.mxu1  ;;  %2857 = vst.msk [vmem:[#allocation2 + $0x34] sm:$0xf] %vm439_vm0, %v2853_v13 }
 0x107   : > { %v5611_v2 = vpop.f32.mrf.mxu0  ;;  %2074 = vst.msk [vmem:[%s5234_s7 + $0x28] sm:$0xff] %vm549_vm3, %v2058_v19  ;;  %v1061_v6 = vadd.f32 %v1045_v18, %v1018_v22  ;;  %v1047_v22 = vld [vmem:[%s5234_s7 + $0x58] sm:$0xff] }
 0x108   : > { %v1377_v16 = vld [vmem:[%s5234_s7 + $0x40] sm:$0xff]  ;;  %3200 = vst.msk [vmem:[#allocation2 + $0x30] sm:$0xf] %vm439_vm0, %v3194_v11 }
 0x109   : > { %v1393_v24 = vadd.f32 %v1377_v16, %v1349_v1  ;;  %1077 = vst.msk [vmem:[%s5234_s7 + $0x48] sm:$0xff] %vm549_vm3, %v1061_v6  ;;  %v5710_v6 = vld [vmem:[#allocation2 + $0x38] sm:$0xff] }
 0x10a   : > { %4336 = vmatmul.msk.bf16.gmra.mxu3 %vm549_vm3, %v5561_v33  ;;  %v4504_v33 = vld [vmem:[#allocation2 + $0x20] sm:$0xff]  ;;  %v1602_v17 = vld [vmem:[%s5234_s7 + $0x38] sm:$0xff] }
 0x10b   : > { %v1618_v23 = vadd.f32 %v1602_v17, %v1572_v41  ;;  %1409 = vst.msk [vmem:[%s5234_s7 + $0x40] sm:$0xff] %vm549_vm3, %v1393_v24  ;;  %v3203_v17 = vld [vmem:[%s5643_s15 + $0x4] sm:$0xf] }
 0x10c   : > { %v2043_v50 = vld [vmem:[%s5234_s7 + $0x30] sm:$0xff]  ;;  %v3210_v45 = vrot.slane %v3203_v17, 5 }
 0x10d   : > { %v1575_v48 = vpop.f32.mrf.mxu3  ;;  %1634 = vst.msk [vmem:[%s5234_s7 + $0x38] sm:$0xff] %vm549_vm3, %v1618_v23  ;;  %v2059_v52 = vadd.f32 %v2043_v50, %v5574_v27  ;;  %v1351_v57 = vpop.f32.mrf.mxu2  ;;  %v2877_v27 = vrot.slane %v2875_v51, 4  ;;  %v3204_v50 = vld [vmem:[%s5643_s15 + $0x8] sm:$0x1] }
 0x10e   : > { %v1021_v58 = vpop.f32.mrf.mxu1  ;;  %v3213_v56 = vrot.slane %v3204_v50, 5  ;;  %v3211_v10 = vsel %vm4758_vm7, %v4365_v54, %v3210_v45 }
 0x10f   : > { %v5652_v28 = vpop.f32.mrf.mxu0  ;;  %2075 = vst.msk [vmem:[%s5234_s7 + $0x30] sm:$0xff] %vm549_vm3, %v2059_v52  ;;  %v1062_v62 = vadd.f32 %v1046_v53, %v1021_v58  ;;  %v2878_v9 = vor.u32 %v2877_v27, %v2873_v61  ;;  %v4496_v19 = vld [vmem:[#allocation2 + $0x30] sm:$0xff] }
 0x110   : > { %v1378_v63 = vld [vmem:[%s5234_s7 + $0x48] sm:$0xff]  ;;  %4203 = vmatmul.msk.bf16.gmra.mxu1 %vm549_vm3, %v5511_v39  ;;  %v2883_v39 = vrot.slane %v2881_v47, 5  ;;  %3201 = vst.msk [vmem:[#allocation2 + $0x34] sm:$0xf] %vm439_vm0, %v3197_v15 }
 0x111   : > { %v1394_v25 = vadd.f32 %v1378_v63, %v1351_v57  ;;  %1078 = vst.msk [vmem:[%s5234_s7 + $0x50] sm:$0xff] %vm549_vm3, %v1062_v62  ;;  %v2879_v55 = vrot.slane %v2878_v9, 4 }
 0x112   : > { %4414 = vmatmul.msk.bf16.gmra.mxu0 %vm549_vm3, %v4504_v33  ;;  %v1603_v12 = vld [vmem:[%s5234_s7 + $0x40] sm:$0xff]  ;;  %4267 = vmatmul.msk.bf16.gmra.mxu2 %vm549_vm3, %v5569_v26  ;;  %v2874_v26 = vsel %vm4748_vm6, %v2869_v4, %v2873_v61 }
 0x113   : > { %v1619_v14 = vadd.f32 %v1603_v12, %v1575_v48  ;;  %1410 = vst.msk [vmem:[%s5234_s7 + $0x48] sm:$0xff] %vm549_vm3, %v1394_v25  ;;  %v1050_v12 = vld [vmem:[%s5234_s7 + $0x70] sm:$0xff] }
 0x114   : > { %v2044_v31 = vld [vmem:[%s5234_s7 + $0x38] sm:$0xff]  ;;  %2887 = vst.msk [vmem:[#allocation2 + $0x38] sm:$0xf] %vm439_vm0, %v2874_v26 }
 0x115   : > { %v1577_v43 = vpop.f32.mrf.mxu3  ;;  %1635 = vst.msk [vmem:[%s5234_s7 + $0x40] sm:$0xff] %vm549_vm3, %v1619_v14  ;;  %v2060_v40 = vadd.f32 %v2044_v31, %v5611_v2  ;;  %v1354_v21 = vpop.f32.mrf.mxu2  ;;  %v4505_v2 = vld [vmem:[#allocation2 + $0x28] sm:$0xff] }
 0x116   : > { %v1023_v1 = vpop.f32.mrf.mxu1  ;;  %3217 = vst.msk [vmem:[#allocation2 + $0x38] sm:$0xf] %vm439_vm0, %v3211_v10 }
 0x117   : > { %v5682_v41 = vpop.f32.mrf.mxu0  ;;  %2076 = vst.msk [vmem:[%s5234_s7 + $0x38] sm:$0xff] %vm549_vm3, %v2060_v40  ;;  %v1063_v18 = vadd.f32 %v1047_v22, %v1023_v1  ;;  %v4506_v27 = vld [vmem:[#allocation2 + $0x30] sm:$0xff] }
 0x118   : > { %v1379_v33 = vld [vmem:[%s5234_s7 + $0x50] sm:$0xff] }
 0x119   : > { %v1395_v48 = vadd.f32 %v1379_v33, %v1354_v21  ;;  %1079 = vst.msk [vmem:[%s5234_s7 + $0x58] sm:$0xff] %vm549_vm3, %v1063_v18  ;;  %v1051_v21 = vld [vmem:[%s5234_s7 + $0x78] sm:$0xff] }
 0x11a   : > { %4337 = vmatmul.msk.bf16.gmra.mxu3 %vm549_vm3, %v5634_v20  ;;  %v2884_v20 = vsel %vm4748_vm6, %v2879_v55, %v2883_v39  ;;  %v1604_v24 = vld [vmem:[%s5234_s7 + $0x48] sm:$0xff] }
 0x11b   : > { %2888 = vst.msk [vmem:[#allocation2 + $0x3c] sm:$0xf] %vm439_vm0, %v2884_v20  ;;  %v1620_v32 = vadd.f32 %v1604_v24, %v1577_v43 }
 0x11c   : > { %1411 = vst.msk [vmem:[%s5234_s7 + $0x50] sm:$0xff] %vm549_vm3, %v1395_v48  ;;  %v2045_v37 = vld [vmem:[%s5234_s7 + $0x40] sm:$0xff] }
 0x11d   : > { %v1580_v13 = vpop.f32.mrf.mxu3  ;;  %1636 = vst.msk [vmem:[%s5234_s7 + $0x48] sm:$0xff] %vm549_vm3, %v1620_v32  ;;  %v2061_v60 = vadd.f32 %v2045_v37, %v5652_v28  ;;  %v1356_v30 = vpop.f32.mrf.mxu2  ;;  %v3212_v28 = vrot.slane %v3210_v45, 4  ;;  %v2367_v37 = vld [vmem:[%s5234_s7] sm:$0xff] }
 0x11e   : > { %v1026_v23 = vpop.f32.mrf.mxu1 }
 0x11f   : > { %v2022_v16 = vpop.f32.mrf.mxu0  ;;  %2077 = vst.msk [vmem:[%s5234_s7 + $0x40] sm:$0xff] %vm549_vm3, %v2061_v60  ;;  %v1064_v46 = vadd.f32 %v1048_v42, %v1026_v23  ;;  %v3214_v59 = vsel %vm4758_vm7, %v3212_v28, %v3213_v56 }
 0x120   : > { %v1380_v51 = vld [vmem:[%s5234_s7 + $0x58] sm:$0xff]  ;;  %4204 = vmatmul.msk.bf16.gmra.mxu1 %vm549_vm3, %v5589_v38 }
 0x121   : > { %v1396_v57 = vadd.f32 %v1380_v51, %v1356_v30  ;;  %1080 = vst.msk [vmem:[%s5234_s7 + $0x60] sm:$0xff] %vm549_vm3, %v1064_v46 }
 0x122   : > { %4415 = vmatmul.msk.bf16.gmra.mxu0 %vm549_vm3, %v4505_v2  ;;  %4268 = vmatmul.msk.bf16.gmra.mxu2 %vm549_vm3, %v5647_v35  ;;  %v4497_v62 = vld [vmem:[#allocation2 + $0x38] sm:$0xff]  ;;  %v1049_v35 = vld [vmem:[%s5234_s7 + $0x68] sm:$0xff] }
 0x123   : > { %v1605_v58 = vld [vmem:[%s5234_s7 + $0x50] sm:$0xff]  ;;  %1412 = vst.msk [vmem:[%s5234_s7 + $0x58] sm:$0xff] %vm549_vm3, %v1396_v57 }
 0x124   : > { %v1621_v29 = vadd.f32 %v1605_v58, %v1580_v13  ;;  %v2046_v61 = vld [vmem:[%s5234_s7 + $0x48] sm:$0xff]  ;;  %3218 = vst.msk [vmem:[#allocation2 + $0x3c] sm:$0xf] %vm439_vm0, %v3214_v59 }
 0x125   : > { %v1582_v52 = vpop.f32.mrf.mxu3  ;;  %v2062_v38 = vadd.f32 %v2046_v61, %v5682_v41  ;;  %v1359_v34 = vpop.f32.mrf.mxu2 }
 0x126   : > { %1637 = vst.msk [vmem:[%s5234_s7 + $0x50] sm:$0xff] %vm549_vm3, %v1621_v29  ;;  %v1028_v0 = vpop.f32.mrf.mxu1 }
 0x127   : > { %v2024_v53 = vpop.f32.mrf.mxu0  ;;  %2078 = vst.msk [vmem:[%s5234_s7 + $0x48] sm:$0xff] %vm549_vm3, %v2062_v38  ;;  %v1065_v44 = vadd.f32 %v1049_v35, %v1028_v0 }
 0x128   : > { %v1381_v63 = vld [vmem:[%s5234_s7 + $0x60] sm:$0xff] }
 0x129   : > { %v1397_v5 = vadd.f32 %v1381_v63, %v1359_v34  ;;  %1081 = vst.msk [vmem:[%s5234_s7 + $0x68] sm:$0xff] %vm549_vm3, %v1065_v44  ;;  %v2369_v34 = vld [vmem:[%s5234_s7 + $0x10] sm:$0xff] }
 0x12a   : > { %4338 = vmatmul.msk.bf16.gmra.mxu3 %vm549_vm3, %v4496_v19  ;;  %v1606_v3 = vld [vmem:[%s5234_s7 + $0x58] sm:$0xff] }
 0x12b   : > { %v1622_v7 = vadd.f32 %v1606_v3, %v1582_v52  ;;  %1413 = vst.msk [vmem:[%s5234_s7 + $0x60] sm:$0xff] %vm549_vm3, %v1397_v5  ;;  %v4507_v22 = vld [vmem:[#allocation2 + $0x38] sm:$0xff] }
 0x12d   : > { %v1585_v43 = vpop.f32.mrf.mxu3  ;;  %v2047_v8 = vld [vmem:[%s5234_s7 + $0x50] sm:$0xff]  ;;  %1638 = vst.msk [vmem:[%s5234_s7 + $0x58] sm:$0xff] %vm549_vm3, %v1622_v7  ;;  %v1361_v9 = vpop.f32.mrf.mxu2 }
 0x12e   : > { %v2063_v25 = vadd.f32 %v2047_v8, %v2022_v16  ;;  %v1031_v47 = vpop.f32.mrf.mxu1 }
 0x12f   : > { %v2027_v41 = vpop.f32.mrf.mxu0  ;;  %v1066_v11 = vadd.f32 %v1050_v12, %v1031_v47 }
 0x130   : > { %2079 = vst.msk [vmem:[%s5234_s7 + $0x50] sm:$0xff] %vm549_vm3, %v2063_v25  ;;  %v1382_v4 = vld [vmem:[%s5234_s7 + $0x68] sm:$0xff]  ;;  %4205 = vmatmul.msk.bf16.gmra.mxu1 %vm549_vm3, %v5661_v36  ;;  %v2370_v25 = vld [vmem:[%s5234_s7 + $0x18] sm:$0xff] }
 0x131   : > { %v1398_v55 = vadd.f32 %v1382_v4, %v1361_v9  ;;  %1082 = vst.msk [vmem:[%s5234_s7 + $0x70] sm:$0xff] %vm549_vm3, %v1066_v11 }
 0x132   : > { %4416 = vmatmul.msk.bf16.gmra.mxu0 %vm549_vm3, %v4506_v27  ;;  %v1607_v39 = vld [vmem:[%s5234_s7 + $0x60] sm:$0xff]  ;;  %4269 = vmatmul.msk.bf16.gmra.mxu2 %vm549_vm3, %v5710_v6 }
 0x133   : > { %v1623_v31 = vadd.f32 %v1607_v39, %v1585_v43  ;;  %1414 = vst.msk [vmem:[%s5234_s7 + $0x68] sm:$0xff] %vm549_vm3, %v1398_v55 }
 0x134   : > { %v2048_v40 = vld [vmem:[%s5234_s7 + $0x58] sm:$0xff] }
 0x135   : > { %v1587_v14 = vpop.f32.mrf.mxu3  ;;  %1639 = vst.msk [vmem:[%s5234_s7 + $0x60] sm:$0xff] %vm549_vm3, %v1623_v31  ;;  %v2064_v19 = vadd.f32 %v2048_v40, %v2024_v53  ;;  %v1364_v26 = vpop.f32.mrf.mxu2  ;;  %v2368_v53 = vld [vmem:[%s5234_s7 + $0x8] sm:$0xff] }
 0x136   : > { %v1033_v36 = vpop.f32.mrf.mxu1 }
 0x137   : > { %v2029_v15 = vpop.f32.mrf.mxu0  ;;  %2080 = vst.msk [vmem:[%s5234_s7 + $0x58] sm:$0xff] %vm549_vm3, %v2064_v19  ;;  %v1067_v1 = vadd.f32 %v1051_v21, %v1033_v36  ;;  %v2371_v19 = vld [vmem:[%s5234_s7 + $0x20] sm:$0xff] }
 0x138   : > { %v1383_v18 = vld [vmem:[%s5234_s7 + $0x70] sm:$0xff] }
 0x139   : > { %v1399_v20 = vadd.f32 %v1383_v18, %v1364_v26  ;;  %1083 = vst.msk [vmem:[%s5234_s7 + $0x78] sm:$0xff] %vm549_vm3, %v1067_v1 }
 0x13a   : > { %4339 = vmatmul.msk.bf16.gmra.mxu3 %vm549_vm3, %v4497_v62  ;;  %v1608_v33 = vld [vmem:[%s5234_s7 + $0x68] sm:$0xff] }
 0x13b   : > { %v1624_v13 = vadd.f32 %v1608_v33, %v1587_v14  ;;  %1415 = vst.msk [vmem:[%s5234_s7 + $0x70] sm:$0xff] %vm549_vm3, %v1399_v20 }
 0x13c   : > { %v2049_v16 = vld [vmem:[%s5234_s7 + $0x60] sm:$0xff] }
 0x13d   : > { %v1590_v2 = vpop.f32.mrf.mxu3  ;;  %1640 = vst.msk [vmem:[%s5234_s7 + $0x68] sm:$0xff] %vm549_vm3, %v1624_v13  ;;  %v2065_v48 = vadd.f32 %v2049_v16, %v2027_v41  ;;  %v1366_v24 = vpop.f32.mrf.mxu2 }
 0x13e   : > { %v2327_v32 = vpop.f32.mrf.mxu1 }
 0x13f   : > { %v2032_v6 = vpop.f32.mrf.mxu0  ;;  %2081 = vst.msk [vmem:[%s5234_s7 + $0x60] sm:$0xff] %vm549_vm3, %v2065_v48  ;;  %v2383_v60 = vadd.f32 %v2367_v37, %v2327_v32 }
 0x140   : > { %v1384_v17 = vld [vmem:[%s5234_s7 + $0x78] sm:$0xff] }
 0x141   : > { %v1400_v42 = vadd.f32 %v1384_v17, %v1366_v24  ;;  %2399 = vst.msk [vmem:[%s5234_s7] sm:$0xff] %vm549_vm3, %v2383_v60  ;;  %v2372_v24 = vld [vmem:[%s5234_s7 + $0x28] sm:$0xff] }
 0x142   : > { %4417 = vmatmul.msk.bf16.gmra.mxu0 %vm549_vm3, %v4507_v22  ;;  %v1609_v45 = vld [vmem:[%s5234_s7 + $0x70] sm:$0xff] }
 0x143   : > { %v1625_v46 = vadd.f32 %v1609_v45, %v1590_v2  ;;  %1416 = vst.msk [vmem:[%s5234_s7 + $0x78] sm:$0xff] %vm549_vm3, %v1400_v42  ;;  %v5855_v2 = vld [vmem:[%s6194_s4] ss:$0 sm:$0xff] }
 0x144   : > { %v2050_v49 = vld [vmem:[%s5234_s7 + $0x68] sm:$0xff] }
 0x145   : > { %v1592_v30 = vpop.f32.mrf.mxu3  ;;  %1641 = vst.msk [vmem:[%s5234_s7 + $0x70] sm:$0xff] %vm549_vm3, %v1625_v46  ;;  %v2066_v50 = vadd.f32 %v2050_v49, %v2029_v15  ;;  %v2553_v51 = vpop.f32.mrf.mxu2 }
 0x146   : > { %v2329_v52 = vpop.f32.mrf.mxu1 }
 0x147   : > { %v2034_v23 = vpop.f32.mrf.mxu0  ;;  %2082 = vst.msk [vmem:[%s5234_s7 + $0x68] sm:$0xff] %vm549_vm3, %v2066_v50  ;;  %v2384_v54 = vadd.f32 %v2368_v53, %v2329_v52 }
 0x148   : > { %v2593_v28 = vld [vmem:[%s5234_s7] sm:$0xff] }
 0x149   : > { %v2609_v58 = vadd.f32 %v2593_v28, %v2553_v51  ;;  %2400 = vst.msk [vmem:[%s5234_s7 + $0x8] sm:$0xff] %vm549_vm3, %v2384_v54  ;;  %v2373_v54 = vld [vmem:[%s5234_s7 + $0x30] sm:$0xff] }
 0x14a   : > { %v1610_v10 = vld [vmem:[%s5234_s7 + $0x78] sm:$0xff] }
 0x14b   : > { %v1626_v29 = vadd.f32 %v1610_v10, %v1592_v30  ;;  %2625 = vst.msk [vmem:[%s5234_s7] sm:$0xff] %vm549_vm3, %v2609_v58 }
 0x14c   : > { %v2051_v59 = vld [vmem:[%s5234_s7 + $0x70] sm:$0xff] }
 0x14d   : > { %v2995_v56 = vpop.f32.mrf.mxu3  ;;  %1642 = vst.msk [vmem:[%s5234_s7 + $0x78] sm:$0xff] %vm549_vm3, %v1626_v29  ;;  %v2067_v61 = vadd.f32 %v2051_v59, %v2032_v6  ;;  %v2555_v38 = vpop.f32.mrf.mxu2 }
 0x14e   : > { %v2332_v62 = vpop.f32.mrf.mxu1 }
 0x14f   : > { %v3325_v57 = vpop.f32.mrf.mxu0  ;;  %2083 = vst.msk [vmem:[%s5234_s7 + $0x70] sm:$0xff] %vm549_vm3, %v2067_v61  ;;  %v2385_v0 = vadd.f32 %v2369_v34, %v2332_v62 }
 0x150   : > { %v2594_v35 = vld [vmem:[%s5234_s7 + $0x8] sm:$0xff] }
 0x151   : > { %v2610_v63 = vadd.f32 %v2594_v35, %v2555_v38  ;;  %2401 = vst.msk [vmem:[%s5234_s7 + $0x10] sm:$0xff] %vm549_vm3, %v2385_v0 }
 0x152   : > { %v3035_v43 = vld [vmem:[%s5234_s7] sm:$0xff] }
 0x153   : > { %v3051_v41 = vadd.f32 %v3035_v43, %v2995_v56  ;;  %2626 = vst.msk [vmem:[%s5234_s7 + $0x8] sm:$0xff] %vm549_vm3, %v2610_v63 }
 0x154   : > { %v2052_v5 = vld [vmem:[%s5234_s7 + $0x78] sm:$0xff] }
 0x155   : > { %v2997_v44 = vpop.f32.mrf.mxu3  ;;  %3067 = vst.msk [vmem:[%s5234_s7] sm:$0xff] %vm549_vm3, %v3051_v41  ;;  %v2068_v3 = vadd.f32 %v2052_v5, %v2034_v23  ;;  %v2558_v7 = vpop.f32.mrf.mxu2 }
 0x156   : > { %v2334_v8 = vpop.f32.mrf.mxu1 }
 0x157   : > { %v3327_v27 = vpop.f32.mrf.mxu0  ;;  %2084 = vst.msk [vmem:[%s5234_s7 + $0x78] sm:$0xff] %vm549_vm3, %v2068_v3  ;;  %v2386_v9 = vadd.f32 %v2370_v25, %v2334_v8  ;;  %v2374_v25 = vld [vmem:[%s5234_s7 + $0x38] sm:$0xff] }
 0x158   : > { %v2595_v47 = vld [vmem:[%s5234_s7 + $0x10] sm:$0xff] }
 0x159   : > { %v2611_v4 = vadd.f32 %v2595_v47, %v2558_v7  ;;  %2402 = vst.msk [vmem:[%s5234_s7 + $0x18] sm:$0xff] %vm549_vm3, %v2386_v9 }
 0x15a   : > { %v3036_v14 = vld [vmem:[%s5234_s7 + $0x8] sm:$0xff] }
 0x15b   : > { %v3052_v15 = vadd.f32 %v3036_v14, %v2997_v44  ;;  %2627 = vst.msk [vmem:[%s5234_s7 + $0x10] sm:$0xff] %vm549_vm3, %v2611_v4 }
 0x15c   : > { %v3365_v55 = vld [vmem:[%s5234_s7] sm:$0xff] }
 0x15d   : > { %v3000_v12 = vpop.f32.mrf.mxu3  ;;  %3068 = vst.msk [vmem:[%s5234_s7 + $0x8] sm:$0xff] %vm549_vm3, %v3052_v15  ;;  %v3381_v39 = vadd.f32 %v3365_v55, %v3325_v57  ;;  %v2560_v31 = vpop.f32.mrf.mxu2 }
 0x15e   : > { %v2337_v40 = vpop.f32.mrf.mxu1 }
 0x15f   : > { %v3330_v11 = vpop.f32.mrf.mxu0  ;;  %3397 = vst.msk [vmem:[%s5234_s7] sm:$0xff] %vm549_vm3, %v3381_v39  ;;  %v2387_v26 = vadd.f32 %v2371_v19, %v2337_v40 }
 0x160   : > { %v2596_v36 = vld [vmem:[%s5234_s7 + $0x18] sm:$0xff] }
 0x161   : > { %v2612_v22 = vadd.f32 %v2596_v36, %v2560_v31  ;;  %2403 = vst.msk [vmem:[%s5234_s7 + $0x20] sm:$0xff] %vm549_vm3, %v2387_v26 }
 0x162   : > { %v3037_v18 = vld [vmem:[%s5234_s7 + $0x10] sm:$0xff] }
 0x163   : > { %v3053_v6 = vadd.f32 %v3037_v18, %v3000_v12  ;;  %2628 = vst.msk [vmem:[%s5234_s7 + $0x18] sm:$0xff] %vm549_vm3, %v2612_v22 }
 0x164   : > { %v3366_v20 = vld [vmem:[%s5234_s7 + $0x8] sm:$0xff] }
 0x165   : > { %v3002_v21 = vpop.f32.mrf.mxu3  ;;  %3069 = vst.msk [vmem:[%s5234_s7 + $0x10] sm:$0xff] %vm549_vm3, %v3053_v6  ;;  %v3382_v33 = vadd.f32 %v3366_v20, %v3327_v27  ;;  %v2563_v16 = vpop.f32.mrf.mxu2  ;;  %v2375_v20 = vld [vmem:[%s5234_s7 + $0x40] sm:$0xff] }
 0x166   : > { %v3413_v13 = vld [vmem:[%s5234_s7] sm:$0xff]  ;;  %v2339_v48 = vpop.f32.mrf.mxu1 }
 0x167   : > { %v3332_v1 = vpop.f32.mrf.mxu0  ;;  %v3433_v32 = vadd.f32 %v5855_v2, %v3413_v13  ;;  %3398 = vst.msk [vmem:[%s5234_s7 + $0x8] sm:$0xff] %vm549_vm3, %v3382_v33  ;;  %v2388_v37 = vadd.f32 %v2372_v24, %v2339_v48 }
 0x168   : > { %v2597_v60 = vld [vmem:[%s5234_s7 + $0x20] sm:$0xff] }
 0x169   : > { %v3449_v23 = vmax.f32 %v3433_v32, 0.0  ;;  %v2613_v42 = vadd.f32 %v2597_v60, %v2563_v16  ;;  %2404 = vst.msk [vmem:[%s5234_s7 + $0x28] sm:$0xff] %vm549_vm3, %v2388_v37 }
 0x16a   : > { %v3038_v45 = vld [vmem:[%s5234_s7 + $0x18] sm:$0xff] }
 0x16b   : > { %3465 = vst.msk [vmem:[%s5234_s7] sm:$0xff] %vm549_vm3, %v3449_v23  ;;  %v3054_v46 = vadd.f32 %v3038_v45, %v3002_v21  ;;  %v3520_v10 = vmul.f32 %v3449_v23, %v3449_v23  ;;  %v3481_v38 = vsel %vm549_vm3, %v3449_v23, 0.0 }
 0x16c   : > { %2629 = vst.msk [vmem:[%s5234_s7 + $0x20] sm:$0xff] %vm549_vm3, %v2613_v42  ;;  %v3367_v49 = vld [vmem:[%s5234_s7 + $0x10] sm:$0xff] }
 0x16d   : > { %v3005_v17 = vpop.f32.mrf.mxu3  ;;  %3070 = vst.msk [vmem:[%s5234_s7 + $0x18] sm:$0xff] %vm549_vm3, %v3054_v46  ;;  %v3383_v50 = vadd.f32 %v3367_v49, %v3330_v11  ;;  %v2565_v52 = vpop.f32.mrf.mxu2  ;;  %v3536_v63 = vsel %vm549_vm3, %v3520_v10, 0.0 }
 0x16e   : > { %v3414_v51 = vld [vmem:[%s5234_s7 + $0x8] sm:$0xff]  ;;  %v2342_v53 = vpop.f32.mrf.mxu1 }
 0x16f   : > { %v5868_v30 = vpop.f32.mrf.mxu0  ;;  %v3434_v28 = vadd.f32 %v5855_v2, %v3414_v51  ;;  %3399 = vst.msk [vmem:[%s5234_s7 + $0x10] sm:$0xff] %vm549_vm3, %v3383_v50  ;;  %v2389_v56 = vadd.f32 %v2373_v54, %v2342_v53  ;;  %v2376_v53 = vld [vmem:[%s5234_s7 + $0x48] sm:$0xff] }
 0x170   : > { %v2598_v57 = vld [vmem:[%s5234_s7 + $0x28] sm:$0xff] }
 0x171   : > { %v3450_v29 = vmax.f32 %v3434_v28, 0.0  ;;  %v2614_v59 = vadd.f32 %v2598_v57, %v2565_v52  ;;  %2405 = vst.msk [vmem:[%s5234_s7 + $0x30] sm:$0xff] %vm549_vm3, %v2389_v56 }
 0x173   : > { %3466 = vst.msk [vmem:[%s5234_s7 + $0x8] sm:$0xff] %vm549_vm3, %v3450_v29  ;;  %v3482_v62 = vsel %vm549_vm3, %v3450_v29, 0.0  ;;  %v3521_v34 = vmul.f32 %v3450_v29, %v3450_v29  ;;  %v3039_v0 = vld [vmem:[%s5234_s7 + $0x20] sm:$0xff] }
 0x174   : > { %v3483_v35 = vadd.f32 %v3482_v62, %v3481_v38  ;;  %v3055_v44 = vadd.f32 %v3039_v0, %v3005_v17  ;;  %2630 = vst.msk [vmem:[%s5234_s7 + $0x28] sm:$0xff] %vm549_vm3, %v2614_v59  ;;  %v3368_v27 = vld [vmem:[%s5234_s7 + $0x18] sm:$0xff] }
 0x175   : > { %v3007_v58 = vpop.f32.mrf.mxu3  ;;  %v3537_v43 = vsel %vm549_vm3, %v3521_v34, 0.0  ;;  %v3384_v41 = vadd.f32 %v3368_v27, %v3332_v1  ;;  %v2568_v7 = vpop.f32.mrf.mxu2 }
 0x176   : > { %v3538_v5 = vadd.f32 %v3537_v43, %v3536_v63  ;;  %v3415_v3 = vld [vmem:[%s5234_s7 + $0x10] sm:$0xff]  ;;  %3071 = vst.msk [vmem:[%s5234_s7 + $0x20] sm:$0xff] %vm549_vm3, %v3055_v44  ;;  %v2344_v8 = vpop.f32.mrf.mxu1 }
 0x177   : > { %v5888_v61 = vpop.f32.mrf.mxu0  ;;  %v3435_v9 = vadd.f32 %v5855_v2, %v3415_v3  ;;  %3400 = vst.msk [vmem:[%s5234_s7 + $0x18] sm:$0xff] %vm549_vm3, %v3384_v41  ;;  %v2390_v47 = vadd.f32 %v2374_v25, %v2344_v8  ;;  %v2377_v43 = vld [vmem:[%s5234_s7 + $0x50] sm:$0xff] }
 0x178   : > { %v2599_v12 = vld [vmem:[%s5234_s7 + $0x30] sm:$0xff] }
 0x179   : > { %v3451_v4 = vmax.f32 %v3435_v9, 0.0  ;;  %v2615_v14 = vadd.f32 %v2599_v12, %v2568_v7  ;;  %2406 = vst.msk [vmem:[%s5234_s7 + $0x38] sm:$0xff] %vm549_vm3, %v2390_v47 }
 0x17b   : > { %3467 = vst.msk [vmem:[%s5234_s7 + $0x10] sm:$0xff] %vm549_vm3, %v3451_v4  ;;  %v3484_v15 = vsel %vm549_vm3, %v3451_v4, 0.0  ;;  %v3522_v55 = vmul.f32 %v3451_v4, %v3451_v4  ;;  %v3040_v39 = vld [vmem:[%s5234_s7 + $0x28] sm:$0xff] }
 0x17c   : > { %v3485_v40 = vadd.f32 %v3484_v15, %v3483_v35  ;;  %v3056_v19 = vadd.f32 %v3040_v39, %v3007_v58  ;;  %2631 = vst.msk [vmem:[%s5234_s7 + $0x30] sm:$0xff] %vm549_vm3, %v2615_v14 }
 0x17d   : > { %v3010_v11 = vpop.f32.mrf.mxu3  ;;  %v3539_v26 = vsel %vm549_vm3, %v3522_v55, 0.0  ;;  %v3369_v36 = vld [vmem:[%s5234_s7 + $0x20] sm:$0xff]  ;;  %v2570_v18 = vpop.f32.mrf.mxu2 }
 0x17e   : > { %v3540_v21 = vadd.f32 %v3539_v26, %v3538_v5  ;;  %v3416_v1 = vld [vmem:[%s5234_s7 + $0x18] sm:$0xff]  ;;  %3072 = vst.msk [vmem:[%s5234_s7 + $0x28] sm:$0xff] %vm549_vm3, %v3056_v19  ;;  %v3385_v22 = vadd.f32 %v3369_v36, %v5868_v30  ;;  %v2347_v6 = vpop.f32.mrf.mxu1 }
 0x17f   : > { %v3340_v31 = vpop.f32.mrf.mxu0  ;;  %v3436_v33 = vadd.f32 %v5855_v2, %v3416_v1  ;;  %v2391_v13 = vadd.f32 %v2375_v20, %v2347_v6 }
 0x180   : > { %3401 = vst.msk [vmem:[%s5234_s7 + $0x20] sm:$0xff] %vm549_vm3, %v3385_v22  ;;  %v2600_v16 = vld [vmem:[%s5234_s7 + $0x38] sm:$0xff] }
 0x181   : > { %v3452_v24 = vmax.f32 %v3436_v33, 0.0  ;;  %v2616_v32 = vadd.f32 %v2600_v16, %v2570_v18  ;;  %2407 = vst.msk [vmem:[%s5234_s7 + $0x40] sm:$0xff] %vm549_vm3, %v2391_v13 }
 0x183   : > { %3468 = vst.msk [vmem:[%s5234_s7 + $0x18] sm:$0xff] %vm549_vm3, %v3452_v24  ;;  %v3486_v37 = vsel %vm549_vm3, %v3452_v24, 0.0  ;;  %v3523_v60 = vmul.f32 %v3452_v24, %v3452_v24  ;;  %v3041_v17 = vld [vmem:[%s5234_s7 + $0x30] sm:$0xff]  ;;  %v2379_v24 = vld [vmem:[%s5234_s7 + $0x60] sm:$0xff] }
 0x184   : > { %v3487_v30 = vadd.f32 %v3486_v37, %v3485_v40  ;;  %v3057_v23 = vadd.f32 %v3041_v17, %v3010_v11  ;;  %2632 = vst.msk [vmem:[%s5234_s7 + $0x38] sm:$0xff] %vm549_vm3, %v2616_v32 }
 0x185   : > { %v3012_v48 = vpop.f32.mrf.mxu3  ;;  %v3541_v42 = vsel %vm549_vm3, %v3523_v60, 0.0  ;;  %v3370_v45 = vld [vmem:[%s5234_s7 + $0x28] sm:$0xff]  ;;  %v2573_v51 = vpop.f32.mrf.mxu2 }
 0x186   : > { %v3542_v49 = vadd.f32 %v3541_v42, %v3540_v21  ;;  %3073 = vst.msk [vmem:[%s5234_s7 + $0x30] sm:$0xff] %vm549_vm3, %v3057_v23  ;;  %v3386_v50 = vadd.f32 %v3370_v45, %v5888_v61  ;;  %v2349_v52 = vpop.f32.mrf.mxu1 }
 0x187   : > { %v3342_v46 = vpop.f32.mrf.mxu0  ;;  %v3417_v54 = vld [vmem:[%s5234_s7 + $0x20] sm:$0xff]  ;;  %v2392_v28 = vadd.f32 %v2376_v53, %v2349_v52 }
 0x188   : > { %v3437_v56 = vadd.f32 %v5855_v2, %v3417_v54  ;;  %3402 = vst.msk [vmem:[%s5234_s7 + $0x28] sm:$0xff] %vm549_vm3, %v3386_v50  ;;  %v2601_v57 = vld [vmem:[%s5234_s7 + $0x40] sm:$0xff] }
 0x189   : > { %v2617_v10 = vadd.f32 %v2601_v57, %v2573_v51  ;;  %2408 = vst.msk [vmem:[%s5234_s7 + $0x48] sm:$0xff] %vm549_vm3, %v2392_v28  ;;  %v2380_v28 = vld [vmem:[%s5234_s7 + $0x68] sm:$0xff] }
 0x18a   : > { %v3453_v29 = vmax.f32 %v3437_v56, 0.0 }
 0x18b   : > { %v3042_v59 = vld [vmem:[%s5234_s7 + $0x38] sm:$0xff]  ;;  %2633 = vst.msk [vmem:[%s5234_s7 + $0x40] sm:$0xff] %vm549_vm3, %v2617_v10 }
 0x18c   : > { %3469 = vst.msk [vmem:[%s5234_s7 + $0x20] sm:$0xff] %vm549_vm3, %v3453_v29  ;;  %v3488_v61 = vsel %vm549_vm3, %v3453_v29, 0.0  ;;  %v3524_v38 = vmul.f32 %v3453_v29, %v3453_v29  ;;  %v3058_v62 = vadd.f32 %v3042_v59, %v3012_v48 }
 0x18d   : > { %v3015_v58 = vpop.f32.mrf.mxu3  ;;  %v5954_v34 = vadd.f32 %v3488_v61, %v3487_v30  ;;  %v3371_v0 = vld [vmem:[%s5234_s7 + $0x30] sm:$0xff]  ;;  %v2575_v27 = vpop.f32.mrf.mxu2 }
 0x18e   : > { %v3543_v35 = vsel %vm549_vm3, %v3524_v38, 0.0  ;;  %3074 = vst.msk [vmem:[%s5234_s7 + $0x38] sm:$0xff] %vm549_vm3, %v3058_v62  ;;  %v3387_v44 = vadd.f32 %v3371_v0, %v3340_v31  ;;  %v2352_v63 = vpop.f32.mrf.mxu1  ;;  %v2378_v31 = vld [vmem:[%s5234_s7 + $0x58] sm:$0xff] }
 0x18f   : > { %v5961_v41 = vadd.f32 %v3543_v35, %v3542_v49  ;;  %v3418_v5 = vld [vmem:[%s5234_s7 + $0x28] sm:$0xff]  ;;  %v2393_v3 = vadd.f32 %v2377_v43, %v2352_v63  ;;  %v3345_v7 = vpop.f32.mrf.mxu0  ;;  %v2381_v43 = vld [vmem:[%s5234_s7 + $0x70] sm:$0xff] }
 0x190   : > { %v3438_v8 = vadd.f32 %v5855_v2, %v3418_v5  ;;  %3403 = vst.msk [vmem:[%s5234_s7 + $0x30] sm:$0xff] %vm549_vm3, %v3387_v44  ;;  %v2602_v25 = vld [vmem:[%s5234_s7 + $0x48] sm:$0xff] }
 0x191   : > { %v2618_v47 = vadd.f32 %v2602_v25, %v2575_v27  ;;  %2409 = vst.msk [vmem:[%s5234_s7 + $0x50] sm:$0xff] %vm549_vm3, %v2393_v3 }
 0x192   : > { %v5970_v12 = vmax.f32 %v3438_v8, 0.0  ;;  %v3043_v11 = vld [vmem:[%s5234_s7 + $0x40] sm:$0xff] }
 0x193   : > { %v3059_v4 = vadd.f32 %v3043_v11, %v3015_v58  ;;  %2634 = vst.msk [vmem:[%s5234_s7 + $0x48] sm:$0xff] %vm549_vm3, %v2618_v47 }
 0x194   : > { %3470 = vst.msk [vmem:[%s5234_s7 + $0x28] sm:$0xff] %vm549_vm3, %v5970_v12 }
 0x195   : > { %v3017_v9 = vpop.f32.mrf.mxu3  ;;  %3075 = vst.msk [vmem:[%s5234_s7 + $0x40] sm:$0xff] %vm549_vm3, %v3059_v4  ;;  %v3372_v14 = vld [vmem:[%s5234_s7 + $0x38] sm:$0xff]  ;;  %v2578_v55 = vpop.f32.mrf.mxu2 }
 0x196   : > { %v3388_v15 = vadd.f32 %v3372_v14, %v3342_v46  ;;  %v2354_v39 = vpop.f32.mrf.mxu1 }
 0x197   : > { %v3419_v40 = vld [vmem:[%s5234_s7 + $0x30] sm:$0xff]  ;;  %v2394_v19 = vadd.f32 %v2378_v31, %v2354_v39  ;;  %v3347_v22 = vpop.f32.mrf.mxu0  ;;  %v2382_v39 = vld [vmem:[%s5234_s7 + $0x78] sm:$0xff] }
 0x198   : > { %v3439_v26 = vadd.f32 %v5855_v2, %v3419_v40  ;;  %3404 = vst.msk [vmem:[%s5234_s7 + $0x38] sm:$0xff] %vm549_vm3, %v3388_v15  ;;  %v2603_v36 = vld [vmem:[%s5234_s7 + $0x50] sm:$0xff] }
 0x199   : > { %v2619_v21 = vadd.f32 %v2603_v36, %v2578_v55  ;;  %2410 = vst.msk [vmem:[%s5234_s7 + $0x58] sm:$0xff] %vm549_vm3, %v2394_v19 }
 0x19a   : > { %v5989_v18 = vmax.f32 %v3439_v26, 0.0  ;;  %v3044_v6 = vld [vmem:[%s5234_s7 + $0x48] sm:$0xff] }
 0x19b   : > { %v3060_v20 = vadd.f32 %v3044_v6, %v3017_v9  ;;  %2635 = vst.msk [vmem:[%s5234_s7 + $0x50] sm:$0xff] %vm549_vm3, %v2619_v21 }
 0x19c   : > { %3471 = vst.msk [vmem:[%s5234_s7 + $0x30] sm:$0xff] %vm549_vm3, %v5989_v18  ;;  %v3373_v33 = vld [vmem:[%s5234_s7 + $0x40] sm:$0xff] }
 0x19d   : > { %v3020_v1 = vpop.f32.mrf.mxu3  ;;  %3076 = vst.msk [vmem:[%s5234_s7 + $0x48] sm:$0xff] %vm549_vm3, %v3060_v20  ;;  %v3389_v13 = vadd.f32 %v3373_v33, %v3345_v7  ;;  %v2580_v16 = vpop.f32.mrf.mxu2 }
 0x19e   : > { %v2357_v48 = vpop.f32.mrf.mxu1 }
 0x19f   : > { %v3420_v32 = vld [vmem:[%s5234_s7 + $0x38] sm:$0xff]  ;;  %3405 = vst.msk [vmem:[%s5234_s7 + $0x40] sm:$0xff] %vm549_vm3, %v3389_v13  ;;  %v2395_v37 = vadd.f32 %v2379_v24, %v2357_v48  ;;  %v3350_v49 = vpop.f32.mrf.mxu0 }
 0x1a0   : > { %v3440_v60 = vadd.f32 %v5855_v2, %v3420_v32  ;;  %v2604_v17 = vld [vmem:[%s5234_s7 + $0x58] sm:$0xff] }
 0x1a1   : > { %v2620_v30 = vadd.f32 %v2604_v17, %v2580_v16  ;;  %2411 = vst.msk [vmem:[%s5234_s7 + $0x60] sm:$0xff] %vm549_vm3, %v2395_v37 }
 0x1a2   : > { %v6008_v23 = vmax.f32 %v3440_v60, 0.0  ;;  %v3045_v42 = vld [vmem:[%s5234_s7 + $0x50] sm:$0xff] }
 0x1a3   : > { %v3061_v45 = vadd.f32 %v3045_v42, %v3020_v1  ;;  %2636 = vst.msk [vmem:[%s5234_s7 + $0x58] sm:$0xff] %vm549_vm3, %v2620_v30 }
 0x1a4   : > { %3472 = vst.msk [vmem:[%s5234_s7 + $0x38] sm:$0xff] %vm549_vm3, %v6008_v23  ;;  %v3374_v50 = vld [vmem:[%s5234_s7 + $0x48] sm:$0xff] }
 0x1a5   : > { %v3022_v46 = vpop.f32.mrf.mxu3  ;;  %3077 = vst.msk [vmem:[%s5234_s7 + $0x50] sm:$0xff] %vm549_vm3, %v3061_v45  ;;  %v3390_v51 = vadd.f32 %v3374_v50, %v3347_v22  ;;  %v2583_v53 = vpop.f32.mrf.mxu2 }
 0x1a6   : > { %v3421_v52 = vld [vmem:[%s5234_s7 + $0x40] sm:$0xff]  ;;  %v2359_v54 = vpop.f32.mrf.mxu1 }
 0x1a7   : > { %v3441_v56 = vadd.f32 %v5855_v2, %v3421_v52  ;;  %3406 = vst.msk [vmem:[%s5234_s7 + $0x48] sm:$0xff] %vm549_vm3, %v3390_v51  ;;  %v2396_v57 = vadd.f32 %v2380_v28, %v2359_v54  ;;  %v3352_v35 = vpop.f32.mrf.mxu0  ;;  %v3525_v28 = vmul.f32 %v5970_v12, %v5970_v12 }
 0x1a8   : > { %v2605_v58 = vld [vmem:[%s5234_s7 + $0x60] sm:$0xff] }
 0x1a9   : > { %v6025_v10 = vmax.f32 %v3441_v56, 0.0  ;;  %v2621_v29 = vadd.f32 %v2605_v58, %v2583_v53  ;;  %2412 = vst.msk [vmem:[%s5234_s7 + $0x68] sm:$0xff] %vm549_vm3, %v2396_v57  ;;  %v3490_v58 = vsel %vm549_vm3, %v5970_v12, 0.0 }
 0x1aa   : > { %v3046_v59 = vld [vmem:[%s5234_s7 + $0x58] sm:$0xff]  ;;  %v3491_v12 = vadd.f32 %v3490_v58, %v5954_v34 }
 0x1ab   : > { %3473 = vst.msk [vmem:[%s5234_s7 + $0x40] sm:$0xff] %vm549_vm3, %v6025_v10  ;;  %v3062_v61 = vadd.f32 %v3046_v59, %v3022_v46 }
 0x1ac   : > { %2637 = vst.msk [vmem:[%s5234_s7 + $0x60] sm:$0xff] %vm549_vm3, %v2621_v29  ;;  %v3375_v38 = vld [vmem:[%s5234_s7 + $0x50] sm:$0xff]  ;;  %v3526_v29 = vmul.f32 %v5989_v18, %v5989_v18 }
 0x1ad   : > { %3078 = vst.msk [vmem:[%s5234_s7 + $0x58] sm:$0xff] %vm549_vm3, %v3062_v61  ;;  %v3391_v62 = vadd.f32 %v3375_v38, %v3350_v49  ;;  %v3025_v0 = vpop.f32.mrf.mxu3  ;;  %v2585_v27 = vpop.f32.mrf.mxu2  ;;  %v3545_v38 = vsel %vm549_vm3, %v3525_v28, 0.0 }
 0x1ae   : > { %v3422_v44 = vld [vmem:[%s5234_s7 + $0x48] sm:$0xff]  ;;  %v2362_v63 = vpop.f32.mrf.mxu1 }
 0x1af   : > { %v3442_v5 = vadd.f32 %v5855_v2, %v3422_v44  ;;  %3407 = vst.msk [vmem:[%s5234_s7 + $0x50] sm:$0xff] %vm549_vm3, %v3391_v62  ;;  %v2397_v3 = vadd.f32 %v2381_v43, %v2362_v63  ;;  %v3355_v19 = vpop.f32.mrf.mxu0  ;;  %v3492_v62 = vsel %vm549_vm3, %v5989_v18, 0.0  ;;  %v3547_v44 = vsel %vm549_vm3, %v3526_v29, 0.0 }
 0x1b0   : > { %v2606_v7 = vld [vmem:[%s5234_s7 + $0x68] sm:$0xff]  ;;  %v3528_v63 = vmul.f32 %v6025_v10, %v6025_v10  ;;  %v3546_v18 = vadd.f32 %v3545_v38, %v5961_v41 }
 0x1b1   : > { %v6044_v8 = vmax.f32 %v3442_v5, 0.0  ;;  %v2622_v25 = vadd.f32 %v2606_v7, %v2585_v27  ;;  %2413 = vst.msk [vmem:[%s5234_s7 + $0x70] sm:$0xff] %vm549_vm3, %v2397_v3  ;;  %v3494_v27 = vsel %vm549_vm3, %v6008_v23, 0.0  ;;  %v3493_v5 = vadd.f32 %v3492_v62, %v3491_v12 }
 0x1b2   : > { %v3496_v7 = vsel %vm549_vm3, %v6025_v10, 0.0  ;;  %v3551_v10 = vsel %vm549_vm3, %v3528_v63, 0.0 }
 0x1b3   : > { %3474 = vst.msk [vmem:[%s5234_s7 + $0x48] sm:$0xff] %vm549_vm3, %v6044_v8  ;;  %v3047_v9 = vld [vmem:[%s5234_s7 + $0x60] sm:$0xff]  ;;  %v3529_v34 = vmul.f32 %v6044_v8, %v6044_v8 }
 0x1b4   : > { %v3063_v47 = vadd.f32 %v3047_v9, %v3025_v0  ;;  %2638 = vst.msk [vmem:[%s5234_s7 + $0x68] sm:$0xff] %vm549_vm3, %v2622_v25  ;;  %v3376_v11 = vld [vmem:[%s5234_s7 + $0x58] sm:$0xff]  ;;  %v3527_v0 = vmul.f32 %v6008_v23, %v6008_v23  ;;  %v3548_v23 = vadd.f32 %v3547_v44, %v3546_v18  ;;  %v3495_v25 = vadd.f32 %v3494_v27, %v3493_v5 }
 0x1b5   : > { %v3392_v4 = vadd.f32 %v3376_v11, %v3352_v35  ;;  %v2588_v15 = vpop.f32.mrf.mxu2  ;;  %v3027_v40 = vpop.f32.mrf.mxu3 }
 0x1b6   : > { %v3423_v14 = vld [vmem:[%s5234_s7 + $0x50] sm:$0xff]  ;;  %3079 = vst.msk [vmem:[%s5234_s7 + $0x60] sm:$0xff] %vm549_vm3, %v3063_v47  ;;  %v2364_v55 = vpop.f32.mrf.mxu1  ;;  %v3549_v3 = vsel %vm549_vm3, %v3527_v0, 0.0  ;;  %v3498_v47 = vsel %vm549_vm3, %v6044_v8, 0.0 }
 0x1b7   : > { %v3443_v31 = vadd.f32 %v5855_v2, %v3423_v14  ;;  %3408 = vst.msk [vmem:[%s5234_s7 + $0x58] sm:$0xff] %vm549_vm3, %v3392_v4  ;;  %v2398_v26 = vadd.f32 %v2382_v39, %v2364_v55  ;;  %v3357_v17 = vpop.f32.mrf.mxu0  ;;  %v4602_v14 = vmov 0.0   ;;  %v3497_v55 = vadd.f32 %v3496_v7, %v3495_v25 }
 0x1b8   : > { %v2607_v36 = vld [vmem:[%s5234_s7 + $0x70] sm:$0xff]  ;;  %3575 = vst.msk [vmem:[%s6137_s20 + $0x2] sm:$0x3f] %vm3574_vm8, %v4602_v14 }
 0x1b9   : > { %v6063_v21 = vmax.f32 %v3443_v31, 0.0  ;;  %v2623_v1 = vadd.f32 %v2607_v36, %v2588_v15  ;;  %2414 = vst.msk [vmem:[%s5234_s7 + $0x78] sm:$0xff] %vm549_vm3, %v2398_v26  ;;  %v3550_v15 = vadd.f32 %v3549_v3, %v3548_v23  ;;  %v3553_v31 = vsel %vm549_vm3, %v3529_v34, 0.0 }
 0x1ba   : > { %v3499_v36 = vadd.f32 %v3498_v47, %v3497_v55 }
 0x1bb   : > { %3475 = vst.msk [vmem:[%s5234_s7 + $0x50] sm:$0xff] %vm549_vm3, %v6063_v21  ;;  %v3048_v22 = vld [vmem:[%s5234_s7 + $0x68] sm:$0xff]  ;;  %v3530_v11 = vmul.f32 %v6063_v21, %v6063_v21  ;;  %v3552_v26 = vadd.f32 %v3551_v10, %v3550_v15 }
 0x1bc   : > { %v3064_v6 = vadd.f32 %v3048_v22, %v3027_v40  ;;  %2639 = vst.msk [vmem:[%s5234_s7 + $0x70] sm:$0xff] %vm549_vm3, %v2623_v1  ;;  %v3500_v40 = vsel %vm549_vm3, %v6063_v21, 0.0 }
 0x1bd   : > { %v3377_v20 = vld [vmem:[%s5234_s7 + $0x60] sm:$0xff]  ;;  %v2590_v48 = vpop.f32.mrf.mxu2  ;;  %v3030_v37 = vpop.f32.mrf.mxu3  ;;  %v3555_v1 = vsel %vm549_vm3, %v3530_v11, 0.0 }
 0x1be   : > { %v3424_v33 = vld [vmem:[%s5234_s7 + $0x58] sm:$0xff]  ;;  %3080 = vst.msk [vmem:[%s5234_s7 + $0x68] sm:$0xff] %vm549_vm3, %v3064_v6  ;;  %v3393_v13 = vadd.f32 %v3377_v20, %v3355_v19 }
 0x1bf   : > { %v3444_v16 = vadd.f32 %v5855_v2, %v3424_v33  ;;  %v3360_v54 = vpop.f32.mrf.mxu0  ;;  %v3554_v33 = vadd.f32 %v3553_v31, %v3552_v26 }
 0x1c0   : > { %3409 = vst.msk [vmem:[%s5234_s7 + $0x60] sm:$0xff] %vm549_vm3, %v3393_v13  ;;  %v2608_v24 = vld [vmem:[%s5234_s7 + $0x78] sm:$0xff]  ;;  %v3501_v13 = vadd.f32 %v3500_v40, %v3499_v36 }
 0x1c1   : > { %v6081_v32 = vmax.f32 %v3444_v16, 0.0  ;;  %v2624_v60 = vadd.f32 %v2608_v24, %v2590_v48  ;;  %v3556_v24 = vadd.f32 %v3555_v1, %v3554_v33 }
 0x1c3   : > { %3476 = vst.msk [vmem:[%s5234_s7 + $0x58] sm:$0xff] %vm549_vm3, %v6081_v32  ;;  %v3049_v30 = vld [vmem:[%s5234_s7 + $0x70] sm:$0xff]  ;;  %v3531_v19 = vmul.f32 %v6081_v32, %v6081_v32  ;;  %v3502_v22 = vsel %vm549_vm3, %v6081_v32, 0.0 }
 0x1c4   : > { %v3065_v42 = vadd.f32 %v3049_v30, %v3030_v37  ;;  %2640 = vst.msk [vmem:[%s5234_s7 + $0x78] sm:$0xff] %vm549_vm3, %v2624_v60  ;;  %v3503_v37 = vadd.f32 %v3502_v22, %v3501_v13 }
 0x1c5   : > { %v3378_v45 = vld [vmem:[%s5234_s7 + $0x68] sm:$0xff]  ;;  %v3032_v52 = vpop.f32.mrf.mxu3  ;;  %v3557_v21 = vsel %vm549_vm3, %v3531_v19, 0.0 }
 0x1c6   : > { %3081 = vst.msk [vmem:[%s5234_s7 + $0x70] sm:$0xff] %vm549_vm3, %v3065_v42  ;;  %v3394_v46 = vadd.f32 %v3378_v45, %v3357_v17  ;;  %v3558_v30 = vadd.f32 %v3557_v21, %v3556_v24 }
 0x1c7   : > { %v3425_v49 = vld [vmem:[%s5234_s7 + $0x60] sm:$0xff]  ;;  %v3362_v41 = vpop.f32.mrf.mxu0 }
 0x1c8   : > { %v3445_v50 = vadd.f32 %v5855_v2, %v3425_v49  ;;  %3410 = vst.msk [vmem:[%s5234_s7 + $0x68] sm:$0xff] %vm549_vm3, %v3394_v46 }
 0x1ca   : > { %v3461_v51 = vmax.f32 %v3445_v50, 0.0 }
 0x1cb   : > { %v3050_v53 = vld [vmem:[%s5234_s7 + $0x78] sm:$0xff] }
 0x1cc   : > { %3477 = vst.msk [vmem:[%s5234_s7 + $0x60] sm:$0xff] %vm549_vm3, %v3461_v51  ;;  %v3066_v56 = vadd.f32 %v3050_v53, %v3032_v52  ;;  %v3532_v6 = vmul.f32 %v3461_v51, %v3461_v51  ;;  %v3504_v16 = vsel %vm549_vm3, %v3461_v51, 0.0 }
 0x1cd   : > { %v3379_v57 = vld [vmem:[%s5234_s7 + $0x70] sm:$0xff]  ;;  %v3505_v42 = vadd.f32 %v3504_v16, %v3503_v37 }
 0x1ce   : > { %3082 = vst.msk [vmem:[%s5234_s7 + $0x78] sm:$0xff] %vm549_vm3, %v3066_v56  ;;  %v3395_v59 = vadd.f32 %v3379_v57, %v3360_v54  ;;  %v3559_v60 = vsel %vm549_vm3, %v3532_v6, 0.0 }
 0x1cf   : > { %v3426_v61 = vld [vmem:[%s5234_s7 + $0x68] sm:$0xff]  ;;  %v3560_v51 = vadd.f32 %v3559_v60, %v3558_v30 }
 0x1d0   : > { %v3446_v35 = vadd.f32 %v5855_v2, %v3426_v61  ;;  %3411 = vst.msk [vmem:[%s5234_s7 + $0x70] sm:$0xff] %vm549_vm3, %v3395_v59 }
 0x1d2   : > { %v3462_v43 = vmax.f32 %v3446_v35, 0.0 }
 0x1d4   : > { %3478 = vst.msk [vmem:[%s5234_s7 + $0x68] sm:$0xff] %vm549_vm3, %v3462_v43  ;;  %v3533_v48 = vmul.f32 %v3462_v43, %v3462_v43  ;;  %v3506_v17 = vsel %vm549_vm3, %v3462_v43, 0.0 }
 0x1d5   : > { %v3380_v9 = vld [vmem:[%s5234_s7 + $0x78] sm:$0xff]  ;;  %v3507_v52 = vadd.f32 %v3506_v17, %v3505_v42 }
 0x1d6   : > { %v3396_v4 = vadd.f32 %v3380_v9, %v3362_v41  ;;  %v3561_v46 = vsel %vm549_vm3, %v3533_v48, 0.0 }
 0x1d7   : > { %v3427_v39 = vld [vmem:[%s5234_s7 + $0x70] sm:$0xff]  ;;  %v3562_v28 = vadd.f32 %v3561_v46, %v3560_v51 }
 0x1d8   : > { %v3447_v8 = vadd.f32 %v5855_v2, %v3427_v39  ;;  %3412 = vst.msk [vmem:[%s5234_s7 + $0x78] sm:$0xff] %vm549_vm3, %v3396_v4 }
 0x1da   : > { %v3463_v20 = vmax.f32 %v3447_v8, 0.0 }
 0x1dc   : > { %3479 = vst.msk [vmem:[%s5234_s7 + $0x70] sm:$0xff] %vm549_vm3, %v3463_v20  ;;  %v3534_v32 = vmul.f32 %v3463_v20, %v3463_v20  ;;  %v3508_v49 = vsel %vm549_vm3, %v3463_v20, 0.0 }
 0x1dd   : > { %v3509_v56 = vadd.f32 %v3508_v49, %v3507_v52 }
 0x1de   : > { %v3563_v53 = vsel %vm549_vm3, %v3534_v32, 0.0 }
 0x1df   : > { %v3428_v45 = vld [vmem:[%s5234_s7 + $0x78] sm:$0xff]  ;;  %v3564_v29 = vadd.f32 %v3563_v53, %v3562_v28 }
 0x1e0   : > { %v3448_v50 = vadd.f32 %v5855_v2, %v3428_v45 }
 0x1e2   : > { %v3464_v54 = vmax.f32 %v3448_v50, 0.0 }
 0x1e4   : > { %3480 = vst.msk [vmem:[%s5234_s7 + $0x78] sm:$0xff] %vm549_vm3, %v3464_v54  ;;  %v3510_v57 = vsel %vm549_vm3, %v3464_v54, 0.0  ;;  %v3535_v58 = vmul.f32 %v3464_v54, %v3464_v54 }
 0x1e5   : > { %v3511_v59 = vadd.f32 %v3510_v57, %v3509_v56 }
 0x1e6   : > { %v3565_v61 = vsel %vm549_vm3, %v3535_v58, 0.0 }
 0x1e7   : > { %v3512_v38 = vrot.slane %v3511_v59, 4  ;;  %v3566_v2 = vadd.f32 %v3565_v61, %v3564_v29 }
 0x1e9   : > { %v3513_v62 = vadd.f32 %v3512_v38, %v3511_v59  ;;  %v3567_v0 = vrot.slane %v3566_v2, 4 }
 0x1eb   : > { %v3514_v35 = vrot.slane %v3513_v62, 2  ;;  %v3568_v12 = vadd.f32 %v3567_v0, %v3566_v2 }
 0x1ed   : > { %v3515_v44 = vadd.f32 %v3514_v35, %v3513_v62  ;;  %v3569_v27 = vrot.slane %v3568_v12, 2 }
 0x1ef   : > { %v3516_v63 = vrot.slane %v3515_v44, 1  ;;  %v3570_v43 = vadd.f32 %v3569_v27, %v3568_v12 }
 0x1f1   : > { %v3517_v18 = vadd.f32 %v3516_v63, %v3515_v44  ;;  %v3571_v5 = vrot.slane %v3570_v43, 1 }
 0x1f3   : > { %3519 = vst.msk [vmem:[%s6137_s20] sm:$0x1] %vm3518_vm9, %v3517_v18  ;;  %v3572_v3 = vadd.f32 %v3571_v5, %v3570_v43 }
 0x1f5   : > { %3573 = vst.msk [vmem:[%s6137_s20 + $0x1] sm:$0x1] %vm3518_vm9, %v3572_v3 }
 0x1f6 PF: > { %s17_s25 = sadd.s32 1, %s4600_s25   ;;  %s6203_s21 = smov %s4592_s23 }
 0x1f7   : > { %p14_p11 = scmp.ge.s32.totalorder %s17_s25, 6   ;;  %s6204_s22 = smov %s4596_s24 }
 0x1f8   : > { %s6205_s23 = smov %s6208_s26  ;;  %s6206_s24 = smov %s6212_s27 }
 0x1f9   :  { %16 = sbr.rel (!%p14_p11) target bundleno = 3 (0x3), region = 103 }

</bundles_post_ra>
